<compile_context>
chip_gen: v6e
topology: v6e:2x2x1
jax: 0.10.0
libtpu: 0.0.40
codegen_flags: <defaults>
</compile_context>

<pallas_src>
import functools

import jax
import jax.numpy as jnp
from jax import lax
from jax.experimental import pallas as pl
from jax.experimental.pallas import tpu as pltpu

BN_EPS = 1e-5


# ----------------------------------------------------------------------------
# Fused kernel: one grid step per batch image.
# ----------------------------------------------------------------------------
def _upsample_fused_kernel(xrep_ref, x2_ref, mask_ref, wup_ref, bup_ref,
                           w1_ref, sc1_ref, sh1_ref,
                           w2_ref, sc2_ref, sh2_ref,
                           o_ref, xcat_ref, mid_ref, *, compute_dtype):
    # xrep_ref: (1, Ho, Wo, Cin)   x1 NN-replicated 2x2 (NHWC)
    # x2_ref  : (1, Ho, Wo, Cskip) skip connection (NHWC)
    # mask_ref: (4, Ho*Wo, 1)      0/1 phase masks, p = di*2 + dj
    # wup_ref : (4, Cin, Cup)      ConvTranspose weight per phase
    # bup_ref : (1, Cup)           ConvTranspose bias (fp32)
    # w1_ref  : (3, 3, Cup+Cskip, Cout); w2_ref: (3, 3, Cout, Cout)  HWIO weights
    # sc*/sh* : (1, Cout)          folded (conv-bias + eval-BN) scale / shift
    # o_ref   : (1, Cout, Ho*Wo)   lane-dense, NCHW-ready output
    # xcat_ref: VMEM (Ho+2, Wo+2, Cup+Cskip); mid_ref: VMEM (Ho+2, Wo+2, Cout)
    Ho = xrep_ref.shape[1]
    Wo = xrep_ref.shape[2]
    Cin = xrep_ref.shape[3]
    Cup = wup_ref.shape[2]
    Ctot = xcat_ref.shape[2]
    Cout = o_ref.shape[1]
    cd = compute_dtype

    # Zero only the 1-px halo border of both scratches (the interior is fully
    # overwritten every step, so a full zero-fill would be wasted VMEM writes).
    xcat_ref[0:1, :, :] = jnp.zeros((1, Wo + 2, Ctot), jnp.float32)
    xcat_ref[Ho + 1:Ho + 2, :, :] = jnp.zeros((1, Wo + 2, Ctot), jnp.float32)
    xcat_ref[:, 0:1, :] = jnp.zeros((Ho + 2, 1, Ctot), jnp.float32)
    xcat_ref[:, Wo + 1:Wo + 2, :] = jnp.zeros((Ho + 2, 1, Ctot), jnp.float32)
    mid_ref[0:1, :, :] = jnp.zeros((1, Wo + 2, Cout), jnp.float32)
    mid_ref[Ho + 1:Ho + 2, :, :] = jnp.zeros((1, Wo + 2, Cout), jnp.float32)
    mid_ref[:, 0:1, :] = jnp.zeros((Ho + 2, 1, Cout), jnp.float32)
    mid_ref[:, Wo + 1:Wo + 2, :] = jnp.zeros((Ho + 2, 1, Cout), jnp.float32)

    # ---- ConvTranspose2d(k=2, s=2) -----------------------------------------------
    # up[(2i+di)*Wo + (2j+dj), o] = sum_c x1[i*W+j, c] * Wup[c, o, di, dj] + b[o].
    # xrep already holds x1[ho//2, wo//2, :] at every fine pixel, so each phase is
    # a plain matmul; the 0/1 masks pick the phase matching each pixel's parity.
    xrepf = xrep_ref[0].reshape(Ho * Wo, Cin).astype(cd)
    up = jnp.zeros((Ho * Wo, Cup), jnp.float32)
    for p in range(4):
        u = jnp.dot(xrepf, wup_ref[p].astype(cd),
                    preferred_element_type=jnp.float32)
        up = up + mask_ref[p] * u
    up = up + bup_ref[...]

    # Fused torch.cat([up(x1), x2], dim=C): write the two channel groups of the
    # shared halo'd scratch (no concatenated tensor ever materialized in HBM).
    xcat_ref[1:1 + Ho, 1:1 + Wo, 0:Cup] = up.reshape(Ho, Wo, Cup)
    xcat_ref[1:1 + Ho, 1:1 + Wo, Cup:Ctot] = x2_ref[0].astype(jnp.float32)

    # ---- conv1 3x3 'same' + folded BN + ReLU (9-tap accumulation on the MXU) -----
    acc = jnp.zeros((Ho * Wo, Cout), jnp.float32)
    for dy in range(3):
        for dx in range(3):
            patch = xcat_ref[dy:dy + Ho, dx:dx + Wo, :].reshape(Ho * Wo, Ctot)
            acc = acc + jnp.dot(patch.astype(cd), w1_ref[dy, dx].astype(cd),
                                preferred_element_type=jnp.float32)
    y1 = jnp.maximum(acc * sc1_ref[...] + sh1_ref[...], 0.0)
    mid_ref[1:1 + Ho, 1:1 + Wo, :] = y1.reshape(Ho, Wo, Cout)

    # ---- conv2 3x3 'same' + folded BN + ReLU -------------------------------------
    acc2 = jnp.zeros((Ho * Wo, Cout), jnp.float32)
    for dy in range(3):
        for dx in range(3):
            patch = mid_ref[dy:dy + Ho, dx:dx + Wo, :].reshape(Ho * Wo, Cout)
            acc2 = acc2 + jnp.dot(patch.astype(cd), w2_ref[dy, dx].astype(cd),
                                  preferred_element_type=jnp.float32)
    y2 = jnp.maximum(acc2 * sc2_ref[...] + sh2_ref[...], 0.0)

    # Lane-dense, NCHW-ready store: (Cout, Ho*Wo) -> wrapper reshape is free.
    o_ref[0] = y2.T.astype(o_ref.dtype)


# ----------------------------------------------------------------------------
# Wrapper: parameter reshaping + single pallas_call.
# ----------------------------------------------------------------------------
def upsample_forward(params, x1_nchw, x2_nchw, *, compute_dtype=jnp.float32):
    """Matches UpSample.forward: up(x1); cat([x1, x2], C); DoubleConv. NCHW in/out."""
    N, Cin, H, W = x1_nchw.shape
    Cskip = x2_nchw.shape[1]
    Cup = params["up_w"].shape[1]
    Ctot = Cup + Cskip
    Cout = params["c1_w"].shape[0]
    Ho, Wo = 2 * H, 2 * W

    # Input-side layout plumbing (NHWC) + 2x2 nearest-neighbour replication of x1:
    # the replication turns the stride-2 deconv scatter into plain per-phase
    # matmuls + per-pixel masks inside the kernel (no O((H*W)^2) scatter operand).
    x1 = jnp.transpose(x1_nchw, (0, 2, 3, 1))
    x2 = jnp.transpose(x2_nchw, (0, 2, 3, 1)).astype(compute_dtype)
    xrep = jnp.repeat(jnp.repeat(x1, 2, axis=1), 2, axis=2).astype(compute_dtype)

    # ConvTranspose weight per output phase p = di*2 + dj: (4, Cin, Cup)
    wup = jnp.transpose(params["up_w"], (2, 3, 0, 1)).reshape(4, Cin, Cup)
    wup = wup.astype(compute_dtype)
    bup = params["up_b"].reshape(1, Cup).astype(jnp.float32)

    # Per-pixel 0/1 phase masks: mask[p, ho*Wo+wo] = 1 iff (ho%2)*2 + (wo%2) == p.
    ph = ((jnp.arange(Ho) % 2)[:, None] * 2
          + (jnp.arange(Wo) % 2)[None, :]).reshape(Ho * Wo)
    masks = (ph[None, :] == jnp.arange(4)[:, None]).astype(jnp.float32)[..., None]

    # Fold conv bias + eval-mode BatchNorm into per-channel scale / shift.
    def fold(bias, g, b, mean, var):
        s = g / jnp.sqrt(var + BN_EPS)
        return (s.reshape(1, -1).astype(jnp.float32),
                (b - mean * s + bias * s).reshape(1, -1).astype(jnp.float32))

    sc1, sh1 = fold(params["c1_b"], params["bn1_gamma"], params["bn1_beta"],
                    params["bn1_mean"], params["bn1_var"])
    sc2, sh2 = fold(params["c2_b"], params["bn2_gamma"], params["bn2_beta"],
                    params["bn2_mean"], params["bn2_var"])

    w1 = jnp.transpose(params["c1_w"], (2, 3, 1, 0)).astype(compute_dtype)  # (3,3,Ctot,Cout)
    w2 = jnp.transpose(params["c2_w"], (2, 3, 1, 0)).astype(compute_dtype)  # (3,3,Cout,Cout)

    flops = N * (8 * Ho * Wo * Cin * Cup                 # 4 masked phase matmuls
                 + 18 * Ho * Wo * Ctot * Cout            # conv1 (9 taps)
                 + 18 * Ho * Wo * Cout * Cout)           # conv2 (9 taps)
    itm = jnp.dtype(compute_dtype).itemsize
    bytes_accessed = (N * (Ho * Wo * Cin + Ho * Wo * Cskip) * itm
                      + N * Cout * Ho * Wo * 4
                      + (wup.size + w1.size + w2.size) * itm
                      + (masks.size + bup.size + 4 * Cout * 2) * 4)

    kernel = functools.partial(_upsample_fused_kernel, compute_dtype=compute_dtype)

    out = pl.pallas_call(
        kernel,
        out_shape=jax.ShapeDtypeStruct((N, Cout, Ho * Wo), jnp.float32),
        grid_spec=pltpu.PrefetchScalarGridSpec(
            num_scalar_prefetch=0,
            grid=(N,),
            in_specs=[
                pl.BlockSpec((1, Ho, Wo, Cin), lambda n: (n, 0, 0, 0)),
                pl.BlockSpec((1, Ho, Wo, Cskip), lambda n: (n, 0, 0, 0)),
                pl.BlockSpec((4, Ho * Wo, 1), lambda n: (0, 0, 0)),
                pl.BlockSpec((4, Cin, Cup), lambda n: (0, 0, 0)),
                pl.BlockSpec((1, Cup), lambda n: (0, 0)),
                pl.BlockSpec((3, 3, Ctot, Cout), lambda n: (0, 0, 0, 0)),
                pl.BlockSpec((1, Cout), lambda n: (0, 0)),
                pl.BlockSpec((1, Cout), lambda n: (0, 0)),
                pl.BlockSpec((3, 3, Cout, Cout), lambda n: (0, 0, 0, 0)),
                pl.BlockSpec((1, Cout), lambda n: (0, 0)),
                pl.BlockSpec((1, Cout), lambda n: (0, 0)),
            ],
            out_specs=pl.BlockSpec((1, Cout, Ho * Wo), lambda n: (n, 0, 0)),
            scratch_shapes=[
                pltpu.VMEM((Ho + 2, Wo + 2, Ctot), jnp.float32),
                pltpu.VMEM((Ho + 2, Wo + 2, Cout), jnp.float32),
            ],
        ),
        compiler_params=pltpu.CompilerParams(
            dimension_semantics=("parallel",),
            vmem_limit_bytes=32 * 1024 * 1024,
        ),
        cost_estimate=pl.CostEstimate(flops=flops, transcendentals=0,
                                      bytes_accessed=int(bytes_accessed)),
    )(xrep, x2, masks, wup, bup, w1, sc1, sh1, w2, sc2, sh2)

    # (N, Cout, Ho*Wo) -> NCHW is a free reshape (no output transpose in XLA).
    return out.reshape(N, Cout, Ho, Wo)


# ----------------------------------------------------------------------------
# Parameters (deterministic, in-script)
# ----------------------------------------------------------------------------
def init_upsample_params(key, in_channels, out_channels):
    cin, cup = in_channels, in_channels // 2
    ks = jax.random.split(key, 14)
    p = {}
    # ConvTranspose2d(in, in//2, k=2, s=2): PyTorch weight layout (in, out, 2, 2)
    p["up_w"] = 0.1 * jax.random.normal(ks[0], (cin, cup, 2, 2), jnp.float32)
    p["up_b"] = 0.1 * jax.random.normal(ks[1], (cup,), jnp.float32)
    # DoubleConv: conv1 (out, in, 3, 3) OIHW, conv2 (out, out, 3, 3) OIHW
    p["c1_w"] = 0.1 * jax.random.normal(ks[2], (out_channels, in_channels, 3, 3), jnp.float32)
    p["c1_b"] = 0.1 * jax.random.normal(ks[3], (out_channels,), jnp.float32)
    p["c2_w"] = 0.1 * jax.random.normal(ks[4], (out_channels, out_channels, 3, 3), jnp.float32)
    p["c2_b"] = 0.1 * jax.random.normal(ks[5], (out_channels,), jnp.float32)
    # BatchNorm2d (eval-mode running stats; non-trivial values to exercise the fold)
    k = 6
    for tag in ("bn1", "bn2"):
        p[f"{tag}_gamma"] = 1.0 + 0.1 * jax.random.normal(ks[k + 0], (out_channels,), jnp.float32)
        p[f"{tag}_beta"] = 0.1 * jax.random.normal(ks[k + 1], (out_channels,), jnp.float32)
        p[f"{tag}_mean"] = 0.1 * jax.random.normal(ks[k + 2], (out_channels,), jnp.float32)
        p[f"{tag}_var"] = 1.0 + 0.2 * jax.random.uniform(ks[k + 3], (out_channels,), jnp.float32)
        k += 4
    return p


# ----------------------------------------------------------------------------
# Pure-JAX reference (lax convs) for correctness check
# ----------------------------------------------------------------------------
def upsample_reference(params, x1_nchw, x2_nchw):
    N, Cin, H, W = x1_nchw.shape
    Cup = params["up_w"].shape[1]
    # ConvTranspose2d(k=2,s=2): out[n,o,2i+di,2j+dj] = sum_c x[n,c,i,j] W[c,o,di,dj] + b
    y = jnp.einsum("nchw,codk->nohdwk", x1_nchw, params["up_w"],
                   precision=lax.Precision.HIGHEST)
    y = y.reshape(N, Cup, 2 * H, 2 * W) + params["up_b"][None, :, None, None]
    x = jnp.concatenate([y, x2_nchw], axis=1)

    def conv_bn_relu(x, w_oihw, b, g, bt, m, v):
        out = lax.conv_general_dilated(
            x, w_oihw, window_strides=(1, 1), padding=((1, 1), (1, 1)),
            dimension_numbers=("NCHW", "OIHW", "NCHW"),
            precision=lax.Precision.HIGHEST)
        out = out + b[None, :, None, None]
        out = g[None, :, None, None] * (out - m[None, :, None, None]) / \
            jnp.sqrt(v[None, :, None, None] + BN_EPS) + bt[None, :, None, None]
        return jnp.maximum(out, 0.0)

    x = conv_bn_relu(x, params["c1_w"], params["c1_b"], params["bn1_gamma"],
                     params["bn1_beta"], params["bn1_mean"], params["bn1_var"])
    x = conv_bn_relu(x, params["c2_w"], params["c2_b"], params["bn2_gamma"],
                     params["bn2_beta"], params["bn2_mean"], params["bn2_var"])
    return x


if __name__ == "__main__":
    in_channels, out_channels = 16, 16
    N, H, W = 2, 8, 8  # x1 spatial; x2 is twice the resolution with in_channels//2 ch

    key = jax.random.PRNGKey(0)
    k_params, k_x1, k_x2 = jax.random.split(key, 3)
    params = init_upsample_params(k_params, in_channels, out_channels)

    x1 = jax.random.normal(k_x1, (N, in_channels, H, W), jnp.float32)             # NCHW
    x2 = jax.random.normal(k_x2, (N, in_channels // 2, 2 * H, 2 * W), jnp.float32)

    ref = upsample_reference(params, x1, x2)

    # fp32 MXU operands (v5e-friendly path), tight check
    fwd_f32 = jax.jit(functools.partial(upsample_forward, compute_dtype=jnp.float32))
    out = jax.block_until_ready(fwd_f32(params, x1, x2))
    assert out.shape == (N, out_channels, 2 * H, 2 * W), out.shape
    assert jnp.allclose(out, ref, atol=2e-4, rtol=2e-4), \
        float(jnp.max(jnp.abs(out - ref)))

    # bf16 MXU operands (v6e/v7x path): fp32 accumulation + fp32 epilogue, loose check
    fwd_bf16 = jax.jit(functools.partial(upsample_forward, compute_dtype=jnp.bfloat16))
    out16 = jax.block_until_ready(fwd_bf16(params, x1, x2))
    assert out16.shape == (N, out_channels, 2 * H, 2 * W), out16.shape
    assert jnp.allclose(out16, ref, atol=1e-1, rtol=1e-1), \
        float(jnp.max(jnp.abs(out16 - ref)))

    print("KERNEL_OK")
</pallas_src>

<mosaic_0001>
module attributes {stable_mosaic.version = 11 : i64} {
  func.func @_upsample_fused_kernel(%arg0: i32, %arg1: memref<1x16x16x16xf32, #tpu.memory_space<vmem>>, %arg2: memref<1x16x16x8xf32, #tpu.memory_space<vmem>>, %arg3: memref<4x256x1xf32, #tpu.memory_space<vmem>>, %arg4: memref<4x16x8xf32, #tpu.memory_space<vmem>>, %arg5: memref<1x8xf32, #tpu.memory_space<vmem>>, %arg6: memref<3x3x16x16xf32, #tpu.memory_space<vmem>>, %arg7: memref<1x16xf32, #tpu.memory_space<vmem>>, %arg8: memref<1x16xf32, #tpu.memory_space<vmem>>, %arg9: memref<3x3x16x16xf32, #tpu.memory_space<vmem>>, %arg10: memref<1x16xf32, #tpu.memory_space<vmem>>, %arg11: memref<1x16xf32, #tpu.memory_space<vmem>>, %arg12: memref<1x16x256xf32, #tpu.memory_space<vmem>>, %arg13: memref<18x18x16xf32, #tpu.memory_space<vmem>>, %arg14: memref<18x18x16xf32, #tpu.memory_space<vmem>>) attributes {dimension_semantics = [#tpu.dimension_semantics<parallel>], iteration_bounds = array<i64: 2>, scalar_prefetch = 0 : i64, scratch_operands = 2 : i64, tpu.core_type = #tpu.core_type<tc>, window_params = [{transform_indices = @transform_0, window_bounds = array<i64: 1, 16, 16, 16>}, {transform_indices = @transform_1, window_bounds = array<i64: 1, 16, 16, 8>}, {pipeline_mode = #tpu.pipeline_mode<synchronous>, transform_indices = @transform_2, window_bounds = array<i64: 4, 256, 1>}, {pipeline_mode = #tpu.pipeline_mode<synchronous>, transform_indices = @transform_3, window_bounds = array<i64: 4, 16, 8>}, {pipeline_mode = #tpu.pipeline_mode<synchronous>, transform_indices = @transform_4, window_bounds = array<i64: 1, 8>}, {pipeline_mode = #tpu.pipeline_mode<synchronous>, transform_indices = @transform_5, window_bounds = array<i64: 3, 3, 16, 16>}, {pipeline_mode = #tpu.pipeline_mode<synchronous>, transform_indices = @transform_6, window_bounds = array<i64: 1, 16>}, {pipeline_mode = #tpu.pipeline_mode<synchronous>, transform_indices = @transform_7, window_bounds = array<i64: 1, 16>}, {pipeline_mode = #tpu.pipeline_mode<synchronous>, transform_indices = @transform_8, window_bounds = array<i64: 3, 3, 16, 16>}, {pipeline_mode = #tpu.pipeline_mode<synchronous>, transform_indices = @transform_9, window_bounds = array<i64: 1, 16>}, {pipeline_mode = #tpu.pipeline_mode<synchronous>, transform_indices = @transform_10, window_bounds = array<i64: 1, 16>}, {transform_indices = @transform_11, window_bounds = array<i64: 1, 16, 256>}]} {
    %cst = arith.constant 0.000000e+00 : f32
    %0 = vector.broadcast %cst : f32 to vector<1x18x16xf32>
    %c0 = arith.constant 0 : index
    %c0_0 = arith.constant 0 : index
    %c0_1 = arith.constant 0 : index
    %1 = vector.load %arg13[%c0, %c0_0, %c0_1] : memref<18x18x16xf32, #tpu.memory_space<vmem>>, vector<1x18x16xf32>
    tpu.vector_store %arg13[%c0, %c0_0, %c0_1], %0 {strides = array<i32>} : memref<18x18x16xf32, #tpu.memory_space<vmem>>, vector<1x18x16xf32>,
    %cst_2 = arith.constant 0.000000e+00 : f32
    %2 = vector.broadcast %cst_2 : f32 to vector<1x18x16xf32>
    %c17 = arith.constant 17 : index
    %c0_3 = arith.constant 0 : index
    %c0_4 = arith.constant 0 : index
    %3 = vector.load %arg13[%c17, %c0_3, %c0_4] : memref<18x18x16xf32, #tpu.memory_space<vmem>>, vector<1x18x16xf32>
    tpu.vector_store %arg13[%c17, %c0_3, %c0_4], %2 {strides = array<i32>} : memref<18x18x16xf32, #tpu.memory_space<vmem>>, vector<1x18x16xf32>,
    %cst_5 = arith.constant 0.000000e+00 : f32
    %4 = vector.broadcast %cst_5 : f32 to vector<18x1x16xf32>
    %c0_6 = arith.constant 0 : index
    %c0_7 = arith.constant 0 : index
    %c0_8 = arith.constant 0 : index
    %5 = vector.load %arg13[%c0_6, %c0_7, %c0_8] : memref<18x18x16xf32, #tpu.memory_space<vmem>>, vector<18x1x16xf32>
    tpu.vector_store %arg13[%c0_6, %c0_7, %c0_8], %4 {strides = array<i32>} : memref<18x18x16xf32, #tpu.memory_space<vmem>>, vector<18x1x16xf32>,
    %cst_9 = arith.constant 0.000000e+00 : f32
    %6 = vector.broadcast %cst_9 : f32 to vector<18x1x16xf32>
    %c0_10 = arith.constant 0 : index
    %c17_11 = arith.constant 17 : index
    %c0_12 = arith.constant 0 : index
    %7 = vector.load %arg13[%c0_10, %c17_11, %c0_12] : memref<18x18x16xf32, #tpu.memory_space<vmem>>, vector<18x1x16xf32>
    tpu.vector_store %arg13[%c0_10, %c17_11, %c0_12], %6 {strides = array<i32>} : memref<18x18x16xf32, #tpu.memory_space<vmem>>, vector<18x1x16xf32>,
    %cst_13 = arith.constant 0.000000e+00 : f32
    %8 = vector.broadcast %cst_13 : f32 to vector<1x18x16xf32>
    %c0_14 = arith.constant 0 : index
    %c0_15 = arith.constant 0 : index
    %c0_16 = arith.constant 0 : index
    %9 = vector.load %arg14[%c0_14, %c0_15, %c0_16] : memref<18x18x16xf32, #tpu.memory_space<vmem>>, vector<1x18x16xf32>
    tpu.vector_store %arg14[%c0_14, %c0_15, %c0_16], %8 {strides = array<i32>} : memref<18x18x16xf32, #tpu.memory_space<vmem>>, vector<1x18x16xf32>,
    %cst_17 = arith.constant 0.000000e+00 : f32
    %10 = vector.broadcast %cst_17 : f32 to vector<1x18x16xf32>
    %c17_18 = arith.constant 17 : index
    %c0_19 = arith.constant 0 : index
    %c0_20 = arith.constant 0 : index
    %11 = vector.load %arg14[%c17_18, %c0_19, %c0_20] : memref<18x18x16xf32, #tpu.memory_space<vmem>>, vector<1x18x16xf32>
    tpu.vector_store %arg14[%c17_18, %c0_19, %c0_20], %10 {strides = array<i32>} : memref<18x18x16xf32, #tpu.memory_space<vmem>>, vector<1x18x16xf32>,
    %cst_21 = arith.constant 0.000000e+00 : f32
    %12 = vector.broadcast %cst_21 : f32 to vector<18x1x16xf32>
    %c0_22 = arith.constant 0 : index
    %c0_23 = arith.constant 0 : index
    %c0_24 = arith.constant 0 : index
    %13 = vector.load %arg14[%c0_22, %c0_23, %c0_24] : memref<18x18x16xf32, #tpu.memory_space<vmem>>, vector<18x1x16xf32>
    tpu.vector_store %arg14[%c0_22, %c0_23, %c0_24], %12 {strides = array<i32>} : memref<18x18x16xf32, #tpu.memory_space<vmem>>, vector<18x1x16xf32>,
    %cst_25 = arith.constant 0.000000e+00 : f32
    %14 = vector.broadcast %cst_25 : f32 to vector<18x1x16xf32>
    %c0_26 = arith.constant 0 : index
    %c17_27 = arith.constant 17 : index
    %c0_28 = arith.constant 0 : index
    %15 = vector.load %arg14[%c0_26, %c17_27, %c0_28] : memref<18x18x16xf32, #tpu.memory_space<vmem>>, vector<18x1x16xf32>
    tpu.vector_store %arg14[%c0_26, %c17_27, %c0_28], %14 {strides = array<i32>} : memref<18x18x16xf32, #tpu.memory_space<vmem>>, vector<18x1x16xf32>,
    %c0_29 = arith.constant 0 : index
    %c0_30 = arith.constant 0 : index
    %c0_31 = arith.constant 0 : index
    %c0_32 = arith.constant 0 : index
    %16 = vector.load %arg1[%c0_29, %c0_30, %c0_31, %c0_32] : memref<1x16x16x16xf32, #tpu.memory_space<vmem>>, vector<1x16x16x16xf32>
    %17 = vector.shape_cast %16 : vector<1x16x16x16xf32> to vector<16x16x16xf32>
    %18 = vector.shape_cast %17 : vector<16x16x16xf32> to vector<256x16xf32>
    %cst_33 = arith.constant 0.000000e+00 : f32
    %19 = vector.broadcast %cst_33 : f32 to vector<256x8xf32>
    %c0_34 = arith.constant 0 : index
    %c0_35 = arith.constant 0 : index
    %c0_36 = arith.constant 0 : index
    %20 = vector.load %arg4[%c0_34, %c0_35, %c0_36] : memref<4x16x8xf32, #tpu.memory_space<vmem>>, vector<1x16x8xf32>
    %21 = vector.shape_cast %20 : vector<1x16x8xf32> to vector<16x8xf32>
    %cst_37 = arith.constant dense<0.000000e+00> : vector<256x8xf32>
    %22 = tpu.matmul %18, %21, %cst_37 {dimension_numbers = #tpu.dot_dimension_numbers<[1], [0], [0], [1], [0, 0, 1, 1], [], []>} : vector<256x16xf32>, vector<16x8xf32>, vector<256x8xf32> -> vector<256x8xf32>
    %c0_38 = arith.constant 0 : index
    %c0_39 = arith.constant 0 : index
    %c0_40 = arith.constant 0 : index
    %23 = vector.load %arg3[%c0_38, %c0_39, %c0_40] : memref<4x256x1xf32, #tpu.memory_space<vmem>>, vector<1x256x1xf32>
    %24 = vector.shape_cast %23 : vector<1x256x1xf32> to vector<256x1xf32>
    %25 = vector.broadcast %24 : vector<256x1xf32> to vector<256x8xf32>
    %26 = arith.mulf %25, %22 : vector<256x8xf32>
    %27 = arith.addf %19, %26 : vector<256x8xf32>
    %c1 = arith.constant 1 : index
    %c0_41 = arith.constant 0 : index
    %c0_42 = arith.constant 0 : index
    %28 = vector.load %arg4[%c1, %c0_41, %c0_42] : memref<4x16x8xf32, #tpu.memory_space<vmem>>, vector<1x16x8xf32>
    %29 = vector.shape_cast %28 : vector<1x16x8xf32> to vector<16x8xf32>
    %cst_43 = arith.constant dense<0.000000e+00> : vector<256x8xf32>
    %30 = tpu.matmul %18, %29, %cst_43 {dimension_numbers = #tpu.dot_dimension_numbers<[1], [0], [0], [1], [0, 0, 1, 1], [], []>} : vector<256x16xf32>, vector<16x8xf32>, vector<256x8xf32> -> vector<256x8xf32>
    %c1_44 = arith.constant 1 : index
    %c0_45 = arith.constant 0 : index
    %c0_46 = arith.constant 0 : index
    %31 = vector.load %arg3[%c1_44, %c0_45, %c0_46] : memref<4x256x1xf32, #tpu.memory_space<vmem>>, vector<1x256x1xf32>
    %32 = vector.shape_cast %31 : vector<1x256x1xf32> to vector<256x1xf32>
    %33 = vector.broadcast %32 : vector<256x1xf32> to vector<256x8xf32>
    %34 = arith.mulf %33, %30 : vector<256x8xf32>
    %35 = arith.addf %27, %34 : vector<256x8xf32>
    %c2 = arith.constant 2 : index
    %c0_47 = arith.constant 0 : index
    %c0_48 = arith.constant 0 : index
    %36 = vector.load %arg4[%c2, %c0_47, %c0_48] : memref<4x16x8xf32, #tpu.memory_space<vmem>>, vector<1x16x8xf32>
    %37 = vector.shape_cast %36 : vector<1x16x8xf32> to vector<16x8xf32>
    %cst_49 = arith.constant dense<0.000000e+00> : vector<256x8xf32>
    %38 = tpu.matmul %18, %37, %cst_49 {dimension_numbers = #tpu.dot_dimension_numbers<[1], [0], [0], [1], [0, 0, 1, 1], [], []>} : vector<256x16xf32>, vector<16x8xf32>, vector<256x8xf32> -> vector<256x8xf32>
    %c2_50 = arith.constant 2 : index
    %c0_51 = arith.constant 0 : index
    %c0_52 = arith.constant 0 : index
    %39 = vector.load %arg3[%c2_50, %c0_51, %c0_52] : memref<4x256x1xf32, #tpu.memory_space<vmem>>, vector<1x256x1xf32>
    %40 = vector.shape_cast %39 : vector<1x256x1xf32> to vector<256x1xf32>
    %41 = vector.broadcast %40 : vector<256x1xf32> to vector<256x8xf32>
    %42 = arith.mulf %41, %38 : vector<256x8xf32>
    %43 = arith.addf %35, %42 : vector<256x8xf32>
    %c3 = arith.constant 3 : index
    %c0_53 = arith.constant 0 : index
    %c0_54 = arith.constant 0 : index
    %44 = vector.load %arg4[%c3, %c0_53, %c0_54] : memref<4x16x8xf32, #tpu.memory_space<vmem>>, vector<1x16x8xf32>
    %45 = vector.shape_cast %44 : vector<1x16x8xf32> to vector<16x8xf32>
    %cst_55 = arith.constant dense<0.000000e+00> : vector<256x8xf32>
    %46 = tpu.matmul %18, %45, %cst_55 {dimension_numbers = #tpu.dot_dimension_numbers<[1], [0], [0], [1], [0, 0, 1, 1], [], []>} : vector<256x16xf32>, vector<16x8xf32>, vector<256x8xf32> -> vector<256x8xf32>
    %c3_56 = arith.constant 3 : index
    %c0_57 = arith.constant 0 : index
    %c0_58 = arith.constant 0 : index
    %47 = vector.load %arg3[%c3_56, %c0_57, %c0_58] : memref<4x256x1xf32, #tpu.memory_space<vmem>>, vector<1x256x1xf32>
    %48 = vector.shape_cast %47 : vector<1x256x1xf32> to vector<256x1xf32>
    %49 = vector.broadcast %48 : vector<256x1xf32> to vector<256x8xf32>
    %50 = arith.mulf %49, %46 : vector<256x8xf32>
    %51 = arith.addf %43, %50 : vector<256x8xf32>
    %c0_59 = arith.constant 0 : index
    %c0_60 = arith.constant 0 : index
    %52 = vector.load %arg5[%c0_59, %c0_60] : memref<1x8xf32, #tpu.memory_space<vmem>>, vector<1x8xf32>
    %53 = vector.broadcast %52 : vector<1x8xf32> to vector<256x8xf32>
    %54 = arith.addf %51, %53 : vector<256x8xf32>
    %55 = vector.shape_cast %54 : vector<256x8xf32> to vector<16x16x8xf32>
    %c1_61 = arith.constant 1 : index
    %c1_62 = arith.constant 1 : index
    %c0_63 = arith.constant 0 : index
    %56 = vector.load %arg13[%c1_61, %c1_62, %c0_63] : memref<18x18x16xf32, #tpu.memory_space<vmem>>, vector<16x16x8xf32>
    tpu.vector_store %arg13[%c1_61, %c1_62, %c0_63], %55 {strides = array<i32>} : memref<18x18x16xf32, #tpu.memory_space<vmem>>, vector<16x16x8xf32>,
    %c0_64 = arith.constant 0 : index
    %c0_65 = arith.constant 0 : index
    %c0_66 = arith.constant 0 : index
    %c0_67 = arith.constant 0 : index
    %57 = vector.load %arg2[%c0_64, %c0_65, %c0_66, %c0_67] : memref<1x16x16x8xf32, #tpu.memory_space<vmem>>, vector<1x16x16x8xf32>
    %58 = vector.shape_cast %57 : vector<1x16x16x8xf32> to vector<16x16x8xf32>
    %c1_68 = arith.constant 1 : index
    %c1_69 = arith.constant 1 : index
    %c8 = arith.constant 8 : index
    %59 = vector.load %arg13[%c1_68, %c1_69, %c8] : memref<18x18x16xf32, #tpu.memory_space<vmem>>, vector<16x16x8xf32>
    tpu.vector_store %arg13[%c1_68, %c1_69, %c8], %58 {strides = array<i32>} : memref<18x18x16xf32, #tpu.memory_space<vmem>>, vector<16x16x8xf32>,
    %cst_70 = arith.constant 0.000000e+00 : f32
    %60 = vector.broadcast %cst_70 : f32 to vector<256x16xf32>
    %c0_71 = arith.constant 0 : index
    %c0_72 = arith.constant 0 : index
    %c0_73 = arith.constant 0 : index
    %61 = vector.load %arg13[%c0_71, %c0_72, %c0_73] : memref<18x18x16xf32, #tpu.memory_space<vmem>>, vector<16x16x16xf32>
    %62 = vector.shape_cast %61 : vector<16x16x16xf32> to vector<256x16xf32>
    %c0_74 = arith.constant 0 : index
    %c0_75 = arith.constant 0 : index
    %c0_76 = arith.constant 0 : index
    %c0_77 = arith.constant 0 : index
    %63 = vector.load %arg6[%c0_74, %c0_75, %c0_76, %c0_77] : memref<3x3x16x16xf32, #tpu.memory_space<vmem>>, vector<1x1x16x16xf32>
    %64 = vector.shape_cast %63 : vector<1x1x16x16xf32> to vector<16x16xf32>
    %cst_78 = arith.constant dense<0.000000e+00> : vector<256x16xf32>
    %65 = tpu.matmul %62, %64, %cst_78 {dimension_numbers = #tpu.dot_dimension_numbers<[1], [0], [0], [1], [0, 0, 1, 1], [], []>} : vector<256x16xf32>, vector<16x16xf32>, vector<256x16xf32> -> vector<256x16xf32>
    %66 = arith.addf %60, %65 : vector<256x16xf32>
    %c0_79 = arith.constant 0 : index
    %c1_80 = arith.constant 1 : index
    %c0_81 = arith.constant 0 : index
    %67 = vector.load %arg13[%c0_79, %c1_80, %c0_81] : memref<18x18x16xf32, #tpu.memory_space<vmem>>, vector<16x16x16xf32>
    %68 = vector.shape_cast %67 : vector<16x16x16xf32> to vector<256x16xf32>
    %c0_82 = arith.constant 0 : index
    %c1_83 = arith.constant 1 : index
    %c0_84 = arith.constant 0 : index
    %c0_85 = arith.constant 0 : index
    %69 = vector.load %arg6[%c0_82, %c1_83, %c0_84, %c0_85] : memref<3x3x16x16xf32, #tpu.memory_space<vmem>>, vector<1x1x16x16xf32>
    %70 = vector.shape_cast %69 : vector<1x1x16x16xf32> to vector<16x16xf32>
    %cst_86 = arith.constant dense<0.000000e+00> : vector<256x16xf32>
    %71 = tpu.matmul %68, %70, %cst_86 {dimension_numbers = #tpu.dot_dimension_numbers<[1], [0], [0], [1], [0, 0, 1, 1], [], []>} : vector<256x16xf32>, vector<16x16xf32>, vector<256x16xf32> -> vector<256x16xf32>
    %72 = arith.addf %66, %71 : vector<256x16xf32>
    %c0_87 = arith.constant 0 : index
    %c2_88 = arith.constant 2 : index
    %c0_89 = arith.constant 0 : index
    %73 = vector.load %arg13[%c0_87, %c2_88, %c0_89] : memref<18x18x16xf32, #tpu.memory_space<vmem>>, vector<16x16x16xf32>
    %74 = vector.shape_cast %73 : vector<16x16x16xf32> to vector<256x16xf32>
    %c0_90 = arith.constant 0 : index
    %c2_91 = arith.constant 2 : index
    %c0_92 = arith.constant 0 : index
    %c0_93 = arith.constant 0 : index
    %75 = vector.load %arg6[%c0_90, %c2_91, %c0_92, %c0_93] : memref<3x3x16x16xf32, #tpu.memory_space<vmem>>, vector<1x1x16x16xf32>
    %76 = vector.shape_cast %75 : vector<1x1x16x16xf32> to vector<16x16xf32>
    %cst_94 = arith.constant dense<0.000000e+00> : vector<256x16xf32>
    %77 = tpu.matmul %74, %76, %cst_94 {dimension_numbers = #tpu.dot_dimension_numbers<[1], [0], [0], [1], [0, 0, 1, 1], [], []>} : vector<256x16xf32>, vector<16x16xf32>, vector<256x16xf32> -> vector<256x16xf32>
    %78 = arith.addf %72, %77 : vector<256x16xf32>
    %c1_95 = arith.constant 1 : index
    %c0_96 = arith.constant 0 : index
    %c0_97 = arith.constant 0 : index
    %79 = vector.load %arg13[%c1_95, %c0_96, %c0_97] : memref<18x18x16xf32, #tpu.memory_space<vmem>>, vector<16x16x16xf32>
    %80 = vector.shape_cast %79 : vector<16x16x16xf32> to vector<256x16xf32>
    %c1_98 = arith.constant 1 : index
    %c0_99 = arith.constant 0 : index
    %c0_100 = arith.constant 0 : index
    %c0_101 = arith.constant 0 : index
    %81 = vector.load %arg6[%c1_98, %c0_99, %c0_100, %c0_101] : memref<3x3x16x16xf32, #tpu.memory_space<vmem>>, vector<1x1x16x16xf32>
    %82 = vector.shape_cast %81 : vector<1x1x16x16xf32> to vector<16x16xf32>
    %cst_102 = arith.constant dense<0.000000e+00> : vector<256x16xf32>
    %83 = tpu.matmul %80, %82, %cst_102 {dimension_numbers = #tpu.dot_dimension_numbers<[1], [0], [0], [1], [0, 0, 1, 1], [], []>} : vector<256x16xf32>, vector<16x16xf32>, vector<256x16xf32> -> vector<256x16xf32>
    %84 = arith.addf %78, %83 : vector<256x16xf32>
    %c1_103 = arith.constant 1 : index
    %c1_104 = arith.constant 1 : index
    %c0_105 = arith.constant 0 : index
    %85 = vector.load %arg13[%c1_103, %c1_104, %c0_105] : memref<18x18x16xf32, #tpu.memory_space<vmem>>, vector<16x16x16xf32>
    %86 = vector.shape_cast %85 : vector<16x16x16xf32> to vector<256x16xf32>
    %c1_106 = arith.constant 1 : index
    %c1_107 = arith.constant 1 : index
    %c0_108 = arith.constant 0 : index
    %c0_109 = arith.constant 0 : index
    %87 = vector.load %arg6[%c1_106, %c1_107, %c0_108, %c0_109] : memref<3x3x16x16xf32, #tpu.memory_space<vmem>>, vector<1x1x16x16xf32>
    %88 = vector.shape_cast %87 : vector<1x1x16x16xf32> to vector<16x16xf32>
    %cst_110 = arith.constant dense<0.000000e+00> : vector<256x16xf32>
    %89 = tpu.matmul %86, %88, %cst_110 {dimension_numbers = #tpu.dot_dimension_numbers<[1], [0], [0], [1], [0, 0, 1, 1], [], []>} : vector<256x16xf32>, vector<16x16xf32>, vector<256x16xf32> -> vector<256x16xf32>
    %90 = arith.addf %84, %89 : vector<256x16xf32>
    %c1_111 = arith.constant 1 : index
    %c2_112 = arith.constant 2 : index
    %c0_113 = arith.constant 0 : index
    %91 = vector.load %arg13[%c1_111, %c2_112, %c0_113] : memref<18x18x16xf32, #tpu.memory_space<vmem>>, vector<16x16x16xf32>
    %92 = vector.shape_cast %91 : vector<16x16x16xf32> to vector<256x16xf32>
    %c1_114 = arith.constant 1 : index
    %c2_115 = arith.constant 2 : index
    %c0_116 = arith.constant 0 : index
    %c0_117 = arith.constant 0 : index
    %93 = vector.load %arg6[%c1_114, %c2_115, %c0_116, %c0_117] : memref<3x3x16x16xf32, #tpu.memory_space<vmem>>, vector<1x1x16x16xf32>
    %94 = vector.shape_cast %93 : vector<1x1x16x16xf32> to vector<16x16xf32>
    %cst_118 = arith.constant dense<0.000000e+00> : vector<256x16xf32>
    %95 = tpu.matmul %92, %94, %cst_118 {dimension_numbers = #tpu.dot_dimension_numbers<[1], [0], [0], [1], [0, 0, 1, 1], [], []>} : vector<256x16xf32>, vector<16x16xf32>, vector<256x16xf32> -> vector<256x16xf32>
    %96 = arith.addf %90, %95 : vector<256x16xf32>
    %c2_119 = arith.constant 2 : index
    %c0_120 = arith.constant 0 : index
    %c0_121 = arith.constant 0 : index
    %97 = vector.load %arg13[%c2_119, %c0_120, %c0_121] : memref<18x18x16xf32, #tpu.memory_space<vmem>>, vector<16x16x16xf32>
    %98 = vector.shape_cast %97 : vector<16x16x16xf32> to vector<256x16xf32>
    %c2_122 = arith.constant 2 : index
    %c0_123 = arith.constant 0 : index
    %c0_124 = arith.constant 0 : index
    %c0_125 = arith.constant 0 : index
    %99 = vector.load %arg6[%c2_122, %c0_123, %c0_124, %c0_125] : memref<3x3x16x16xf32, #tpu.memory_space<vmem>>, vector<1x1x16x16xf32>
    %100 = vector.shape_cast %99 : vector<1x1x16x16xf32> to vector<16x16xf32>
    %cst_126 = arith.constant dense<0.000000e+00> : vector<256x16xf32>
    %101 = tpu.matmul %98, %100, %cst_126 {dimension_numbers = #tpu.dot_dimension_numbers<[1], [0], [0], [1], [0, 0, 1, 1], [], []>} : vector<256x16xf32>, vector<16x16xf32>, vector<256x16xf32> -> vector<256x16xf32>
    %102 = arith.addf %96, %101 : vector<256x16xf32>
    %c2_127 = arith.constant 2 : index
    %c1_128 = arith.constant 1 : index
    %c0_129 = arith.constant 0 : index
    %103 = vector.load %arg13[%c2_127, %c1_128, %c0_129] : memref<18x18x16xf32, #tpu.memory_space<vmem>>, vector<16x16x16xf32>
    %104 = vector.shape_cast %103 : vector<16x16x16xf32> to vector<256x16xf32>
    %c2_130 = arith.constant 2 : index
    %c1_131 = arith.constant 1 : index
    %c0_132 = arith.constant 0 : index
    %c0_133 = arith.constant 0 : index
    %105 = vector.load %arg6[%c2_130, %c1_131, %c0_132, %c0_133] : memref<3x3x16x16xf32, #tpu.memory_space<vmem>>, vector<1x1x16x16xf32>
    %106 = vector.shape_cast %105 : vector<1x1x16x16xf32> to vector<16x16xf32>
    %cst_134 = arith.constant dense<0.000000e+00> : vector<256x16xf32>
    %107 = tpu.matmul %104, %106, %cst_134 {dimension_numbers = #tpu.dot_dimension_numbers<[1], [0], [0], [1], [0, 0, 1, 1], [], []>} : vector<256x16xf32>, vector<16x16xf32>, vector<256x16xf32> -> vector<256x16xf32>
    %108 = arith.addf %102, %107 : vector<256x16xf32>
    %c2_135 = arith.constant 2 : index
    %c2_136 = arith.constant 2 : index
    %c0_137 = arith.constant 0 : index
    %109 = vector.load %arg13[%c2_135, %c2_136, %c0_137] : memref<18x18x16xf32, #tpu.memory_space<vmem>>, vector<16x16x16xf32>
    %110 = vector.shape_cast %109 : vector<16x16x16xf32> to vector<256x16xf32>
    %c2_138 = arith.constant 2 : index
    %c2_139 = arith.constant 2 : index
    %c0_140 = arith.constant 0 : index
    %c0_141 = arith.constant 0 : index
    %111 = vector.load %arg6[%c2_138, %c2_139, %c0_140, %c0_141] : memref<3x3x16x16xf32, #tpu.memory_space<vmem>>, vector<1x1x16x16xf32>
    %112 = vector.shape_cast %111 : vector<1x1x16x16xf32> to vector<16x16xf32>
    %cst_142 = arith.constant dense<0.000000e+00> : vector<256x16xf32>
    %113 = tpu.matmul %110, %112, %cst_142 {dimension_numbers = #tpu.dot_dimension_numbers<[1], [0], [0], [1], [0, 0, 1, 1], [], []>} : vector<256x16xf32>, vector<16x16xf32>, vector<256x16xf32> -> vector<256x16xf32>
    %114 = arith.addf %108, %113 : vector<256x16xf32>
    %c0_143 = arith.constant 0 : index
    %c0_144 = arith.constant 0 : index
    %115 = vector.load %arg7[%c0_143, %c0_144] : memref<1x16xf32, #tpu.memory_space<vmem>>, vector<1x16xf32>
    %116 = vector.broadcast %115 : vector<1x16xf32> to vector<256x16xf32>
    %117 = arith.mulf %114, %116 : vector<256x16xf32>
    %c0_145 = arith.constant 0 : index
    %c0_146 = arith.constant 0 : index
    %118 = vector.load %arg8[%c0_145, %c0_146] : memref<1x16xf32, #tpu.memory_space<vmem>>, vector<1x16xf32>
    %119 = vector.broadcast %118 : vector<1x16xf32> to vector<256x16xf32>
    %120 = arith.addf %117, %119 : vector<256x16xf32>
    %cst_147 = arith.constant 0.000000e+00 : f32
    %121 = vector.broadcast %cst_147 : f32 to vector<256x16xf32>
    %122 = arith.maximumf %120, %121 : vector<256x16xf32>
    %123 = vector.shape_cast %122 : vector<256x16xf32> to vector<16x16x16xf32>
    %c1_148 = arith.constant 1 : index
    %c1_149 = arith.constant 1 : index
    %c0_150 = arith.constant 0 : index
    %124 = vector.load %arg14[%c1_148, %c1_149, %c0_150] : memref<18x18x16xf32, #tpu.memory_space<vmem>>, vector<16x16x16xf32>
    tpu.vector_store %arg14[%c1_148, %c1_149, %c0_150], %123 {strides = array<i32>} : memref<18x18x16xf32, #tpu.memory_space<vmem>>, vector<16x16x16xf32>,
    %cst_151 = arith.constant 0.000000e+00 : f32
    %125 = vector.broadcast %cst_151 : f32 to vector<256x16xf32>
    %c0_152 = arith.constant 0 : index
    %c0_153 = arith.constant 0 : index
    %c0_154 = arith.constant 0 : index
    %126 = vector.load %arg14[%c0_152, %c0_153, %c0_154] : memref<18x18x16xf32, #tpu.memory_space<vmem>>, vector<16x16x16xf32>
    %127 = vector.shape_cast %126 : vector<16x16x16xf32> to vector<256x16xf32>
    %c0_155 = arith.constant 0 : index
    %c0_156 = arith.constant 0 : index
    %c0_157 = arith.constant 0 : index
    %c0_158 = arith.constant 0 : index
    %128 = vector.load %arg9[%c0_155, %c0_156, %c0_157, %c0_158] : memref<3x3x16x16xf32, #tpu.memory_space<vmem>>, vector<1x1x16x16xf32>
    %129 = vector.shape_cast %128 : vector<1x1x16x16xf32> to vector<16x16xf32>
    %cst_159 = arith.constant dense<0.000000e+00> : vector<256x16xf32>
    %130 = tpu.matmul %127, %129, %cst_159 {dimension_numbers = #tpu.dot_dimension_numbers<[1], [0], [0], [1], [0, 0, 1, 1], [], []>} : vector<256x16xf32>, vector<16x16xf32>, vector<256x16xf32> -> vector<256x16xf32>
    %131 = arith.addf %125, %130 : vector<256x16xf32>
    %c0_160 = arith.constant 0 : index
    %c1_161 = arith.constant 1 : index
    %c0_162 = arith.constant 0 : index
    %132 = vector.load %arg14[%c0_160, %c1_161, %c0_162] : memref<18x18x16xf32, #tpu.memory_space<vmem>>, vector<16x16x16xf32>
    %133 = vector.shape_cast %132 : vector<16x16x16xf32> to vector<256x16xf32>
    %c0_163 = arith.constant 0 : index
    %c1_164 = arith.constant 1 : index
    %c0_165 = arith.constant 0 : index
    %c0_166 = arith.constant 0 : index
    %134 = vector.load %arg9[%c0_163, %c1_164, %c0_165, %c0_166] : memref<3x3x16x16xf32, #tpu.memory_space<vmem>>, vector<1x1x16x16xf32>
    %135 = vector.shape_cast %134 : vector<1x1x16x16xf32> to vector<16x16xf32>
    %cst_167 = arith.constant dense<0.000000e+00> : vector<256x16xf32>
    %136 = tpu.matmul %133, %135, %cst_167 {dimension_numbers = #tpu.dot_dimension_numbers<[1], [0], [0], [1], [0, 0, 1, 1], [], []>} : vector<256x16xf32>, vector<16x16xf32>, vector<256x16xf32> -> vector<256x16xf32>
    %137 = arith.addf %131, %136 : vector<256x16xf32>
    %c0_168 = arith.constant 0 : index
    %c2_169 = arith.constant 2 : index
    %c0_170 = arith.constant 0 : index
    %138 = vector.load %arg14[%c0_168, %c2_169, %c0_170] : memref<18x18x16xf32, #tpu.memory_space<vmem>>, vector<16x16x16xf32>
    %139 = vector.shape_cast %138 : vector<16x16x16xf32> to vector<256x16xf32>
    %c0_171 = arith.constant 0 : index
    %c2_172 = arith.constant 2 : index
    %c0_173 = arith.constant 0 : index
    %c0_174 = arith.constant 0 : index
    %140 = vector.load %arg9[%c0_171, %c2_172, %c0_173, %c0_174] : memref<3x3x16x16xf32, #tpu.memory_space<vmem>>, vector<1x1x16x16xf32>
    %141 = vector.shape_cast %140 : vector<1x1x16x16xf32> to vector<16x16xf32>
    %cst_175 = arith.constant dense<0.000000e+00> : vector<256x16xf32>
    %142 = tpu.matmul %139, %141, %cst_175 {dimension_numbers = #tpu.dot_dimension_numbers<[1], [0], [0], [1], [0, 0, 1, 1], [], []>} : vector<256x16xf32>, vector<16x16xf32>, vector<256x16xf32> -> vector<256x16xf32>
    %143 = arith.addf %137, %142 : vector<256x16xf32>
    %c1_176 = arith.constant 1 : index
    %c0_177 = arith.constant 0 : index
    %c0_178 = arith.constant 0 : index
    %144 = vector.load %arg14[%c1_176, %c0_177, %c0_178] : memref<18x18x16xf32, #tpu.memory_space<vmem>>, vector<16x16x16xf32>
    %145 = vector.shape_cast %144 : vector<16x16x16xf32> to vector<256x16xf32>
    %c1_179 = arith.constant 1 : index
    %c0_180 = arith.constant 0 : index
    %c0_181 = arith.constant 0 : index
    %c0_182 = arith.constant 0 : index
    %146 = vector.load %arg9[%c1_179, %c0_180, %c0_181, %c0_182] : memref<3x3x16x16xf32, #tpu.memory_space<vmem>>, vector<1x1x16x16xf32>
    %147 = vector.shape_cast %146 : vector<1x1x16x16xf32> to vector<16x16xf32>
    %cst_183 = arith.constant dense<0.000000e+00> : vector<256x16xf32>
    %148 = tpu.matmul %145, %147, %cst_183 {dimension_numbers = #tpu.dot_dimension_numbers<[1], [0], [0], [1], [0, 0, 1, 1], [], []>} : vector<256x16xf32>, vector<16x16xf32>, vector<256x16xf32> -> vector<256x16xf32>
    %149 = arith.addf %143, %148 : vector<256x16xf32>
    %c1_184 = arith.constant 1 : index
    %c1_185 = arith.constant 1 : index
    %c0_186 = arith.constant 0 : index
    %150 = vector.load %arg14[%c1_184, %c1_185, %c0_186] : memref<18x18x16xf32, #tpu.memory_space<vmem>>, vector<16x16x16xf32>
    %151 = vector.shape_cast %150 : vector<16x16x16xf32> to vector<256x16xf32>
    %c1_187 = arith.constant 1 : index
    %c1_188 = arith.constant 1 : index
    %c0_189 = arith.constant 0 : index
    %c0_190 = arith.constant 0 : index
    %152 = vector.load %arg9[%c1_187, %c1_188, %c0_189, %c0_190] : memref<3x3x16x16xf32, #tpu.memory_space<vmem>>, vector<1x1x16x16xf32>
    %153 = vector.shape_cast %152 : vector<1x1x16x16xf32> to vector<16x16xf32>
    %cst_191 = arith.constant dense<0.000000e+00> : vector<256x16xf32>
    %154 = tpu.matmul %151, %153, %cst_191 {dimension_numbers = #tpu.dot_dimension_numbers<[1], [0], [0], [1], [0, 0, 1, 1], [], []>} : vector<256x16xf32>, vector<16x16xf32>, vector<256x16xf32> -> vector<256x16xf32>
    %155 = arith.addf %149, %154 : vector<256x16xf32>
    %c1_192 = arith.constant 1 : index
    %c2_193 = arith.constant 2 : index
    %c0_194 = arith.constant 0 : index
    %156 = vector.load %arg14[%c1_192, %c2_193, %c0_194] : memref<18x18x16xf32, #tpu.memory_space<vmem>>, vector<16x16x16xf32>
    %157 = vector.shape_cast %156 : vector<16x16x16xf32> to vector<256x16xf32>
    %c1_195 = arith.constant 1 : index
    %c2_196 = arith.constant 2 : index
    %c0_197 = arith.constant 0 : index
    %c0_198 = arith.constant 0 : index
    %158 = vector.load %arg9[%c1_195, %c2_196, %c0_197, %c0_198] : memref<3x3x16x16xf32, #tpu.memory_space<vmem>>, vector<1x1x16x16xf32>
    %159 = vector.shape_cast %158 : vector<1x1x16x16xf32> to vector<16x16xf32>
    %cst_199 = arith.constant dense<0.000000e+00> : vector<256x16xf32>
    %160 = tpu.matmul %157, %159, %cst_199 {dimension_numbers = #tpu.dot_dimension_numbers<[1], [0], [0], [1], [0, 0, 1, 1], [], []>} : vector<256x16xf32>, vector<16x16xf32>, vector<256x16xf32> -> vector<256x16xf32>
    %161 = arith.addf %155, %160 : vector<256x16xf32>
    %c2_200 = arith.constant 2 : index
    %c0_201 = arith.constant 0 : index
    %c0_202 = arith.constant 0 : index
    %162 = vector.load %arg14[%c2_200, %c0_201, %c0_202] : memref<18x18x16xf32, #tpu.memory_space<vmem>>, vector<16x16x16xf32>
    %163 = vector.shape_cast %162 : vector<16x16x16xf32> to vector<256x16xf32>
    %c2_203 = arith.constant 2 : index
    %c0_204 = arith.constant 0 : index
    %c0_205 = arith.constant 0 : index
    %c0_206 = arith.constant 0 : index
    %164 = vector.load %arg9[%c2_203, %c0_204, %c0_205, %c0_206] : memref<3x3x16x16xf32, #tpu.memory_space<vmem>>, vector<1x1x16x16xf32>
    %165 = vector.shape_cast %164 : vector<1x1x16x16xf32> to vector<16x16xf32>
    %cst_207 = arith.constant dense<0.000000e+00> : vector<256x16xf32>
    %166 = tpu.matmul %163, %165, %cst_207 {dimension_numbers = #tpu.dot_dimension_numbers<[1], [0], [0], [1], [0, 0, 1, 1], [], []>} : vector<256x16xf32>, vector<16x16xf32>, vector<256x16xf32> -> vector<256x16xf32>
    %167 = arith.addf %161, %166 : vector<256x16xf32>
    %c2_208 = arith.constant 2 : index
    %c1_209 = arith.constant 1 : index
    %c0_210 = arith.constant 0 : index
    %168 = vector.load %arg14[%c2_208, %c1_209, %c0_210] : memref<18x18x16xf32, #tpu.memory_space<vmem>>, vector<16x16x16xf32>
    %169 = vector.shape_cast %168 : vector<16x16x16xf32> to vector<256x16xf32>
    %c2_211 = arith.constant 2 : index
    %c1_212 = arith.constant 1 : index
    %c0_213 = arith.constant 0 : index
    %c0_214 = arith.constant 0 : index
    %170 = vector.load %arg9[%c2_211, %c1_212, %c0_213, %c0_214] : memref<3x3x16x16xf32, #tpu.memory_space<vmem>>, vector<1x1x16x16xf32>
    %171 = vector.shape_cast %170 : vector<1x1x16x16xf32> to vector<16x16xf32>
    %cst_215 = arith.constant dense<0.000000e+00> : vector<256x16xf32>
    %172 = tpu.matmul %169, %171, %cst_215 {dimension_numbers = #tpu.dot_dimension_numbers<[1], [0], [0], [1], [0, 0, 1, 1], [], []>} : vector<256x16xf32>, vector<16x16xf32>, vector<256x16xf32> -> vector<256x16xf32>
    %173 = arith.addf %167, %172 : vector<256x16xf32>
    %c2_216 = arith.constant 2 : index
    %c2_217 = arith.constant 2 : index
    %c0_218 = arith.constant 0 : index
    %174 = vector.load %arg14[%c2_216, %c2_217, %c0_218] : memref<18x18x16xf32, #tpu.memory_space<vmem>>, vector<16x16x16xf32>
    %175 = vector.shape_cast %174 : vector<16x16x16xf32> to vector<256x16xf32>
    %c2_219 = arith.constant 2 : index
    %c2_220 = arith.constant 2 : index
    %c0_221 = arith.constant 0 : index
    %c0_222 = arith.constant 0 : index
    %176 = vector.load %arg9[%c2_219, %c2_220, %c0_221, %c0_222] : memref<3x3x16x16xf32, #tpu.memory_space<vmem>>, vector<1x1x16x16xf32>
    %177 = vector.shape_cast %176 : vector<1x1x16x16xf32> to vector<16x16xf32>
    %cst_223 = arith.constant dense<0.000000e+00> : vector<256x16xf32>
    %178 = tpu.matmul %175, %177, %cst_223 {dimension_numbers = #tpu.dot_dimension_numbers<[1], [0], [0], [1], [0, 0, 1, 1], [], []>} : vector<256x16xf32>, vector<16x16xf32>, vector<256x16xf32> -> vector<256x16xf32>
    %179 = arith.addf %173, %178 : vector<256x16xf32>
    %c0_224 = arith.constant 0 : index
    %c0_225 = arith.constant 0 : index
    %180 = vector.load %arg10[%c0_224, %c0_225] : memref<1x16xf32, #tpu.memory_space<vmem>>, vector<1x16xf32>
    %181 = vector.broadcast %180 : vector<1x16xf32> to vector<256x16xf32>
    %182 = arith.mulf %179, %181 : vector<256x16xf32>
    %c0_226 = arith.constant 0 : index
    %c0_227 = arith.constant 0 : index
    %183 = vector.load %arg11[%c0_226, %c0_227] : memref<1x16xf32, #tpu.memory_space<vmem>>, vector<1x16xf32>
    %184 = vector.broadcast %183 : vector<1x16xf32> to vector<256x16xf32>
    %185 = arith.addf %182, %184 : vector<256x16xf32>
    %cst_228 = arith.constant 0.000000e+00 : f32
    %186 = vector.broadcast %cst_228 : f32 to vector<256x16xf32>
    %187 = arith.maximumf %185, %186 : vector<256x16xf32>
    %188 = tpu.transpose %187, [1, 0] : vector<256x16xf32> -> vector<16x256xf32>
    %c0_229 = arith.constant 0 : index
    %c0_230 = arith.constant 0 : index
    %c0_231 = arith.constant 0 : index
    %189 = vector.load %arg12[%c0_229, %c0_230, %c0_231] : memref<1x16x256xf32, #tpu.memory_space<vmem>>, vector<1x16x256xf32>
    %190 = vector.shape_cast %189 : vector<1x16x256xf32> to vector<16x256xf32>
    %191 = vector.shape_cast %188 : vector<16x256xf32> to vector<1x16x256xf32>
    tpu.vector_store %arg12[%c0_229, %c0_230, %c0_231], %191 {strides = array<i32>} : memref<1x16x256xf32, #tpu.memory_space<vmem>>, vector<1x16x256xf32>,
    return
  }
  func.func @transform_0(%arg0: i32) -> (i32, i32, i32, i32) {
    %c0_i32 = arith.constant 0 : i32
    %c0_i32_0 = arith.constant 0 : i32
    %c0_i32_1 = arith.constant 0 : i32
    %c0_i32_2 = arith.constant 0 : i32
    return %arg0, %c0_i32, %c0_i32_0, %c0_i32_1 : i32, i32, i32, i32
  }
  func.func @transform_1(%arg0: i32) -> (i32, i32, i32, i32) {
    %c0_i32 = arith.constant 0 : i32
    %c0_i32_0 = arith.constant 0 : i32
    %c0_i32_1 = arith.constant 0 : i32
    %c0_i32_2 = arith.constant 0 : i32
    return %arg0, %c0_i32, %c0_i32_0, %c0_i32_1 : i32, i32, i32, i32
  }
  func.func @transform_2(%arg0: i32) -> (i32, i32, i32) {
    %c0_i32 = arith.constant 0 : i32
    %c0_i32_0 = arith.constant 0 : i32
    %c0_i32_1 = arith.constant 0 : i32
    %c0_i32_2 = arith.constant 0 : i32
    return %c0_i32, %c0_i32_0, %c0_i32_1 : i32, i32, i32
  }
  func.func @transform_3(%arg0: i32) -> (i32, i32, i32) {
    %c0_i32 = arith.constant 0 : i32
    %c0_i32_0 = arith.constant 0 : i32
    %c0_i32_1 = arith.constant 0 : i32
    %c0_i32_2 = arith.constant 0 : i32
    return %c0_i32, %c0_i32_0, %c0_i32_1 : i32, i32, i32
  }
  func.func @transform_4(%arg0: i32) -> (i32, i32) {
    %c0_i32 = arith.constant 0 : i32
    %c0_i32_0 = arith.constant 0 : i32
    %c0_i32_1 = arith.constant 0 : i32
    return %c0_i32, %c0_i32_0 : i32, i32
  }
  func.func @transform_5(%arg0: i32) -> (i32, i32, i32, i32) {
    %c0_i32 = arith.constant 0 : i32
    %c0_i32_0 = arith.constant 0 : i32
    %c0_i32_1 = arith.constant 0 : i32
    %c0_i32_2 = arith.constant 0 : i32
    %c0_i32_3 = arith.constant 0 : i32
    return %c0_i32, %c0_i32_0, %c0_i32_1, %c0_i32_2 : i32, i32, i32, i32
  }
  func.func @transform_6(%arg0: i32) -> (i32, i32) {
    %c0_i32 = arith.constant 0 : i32
    %c0_i32_0 = arith.constant 0 : i32
    %c0_i32_1 = arith.constant 0 : i32
    return %c0_i32, %c0_i32_0 : i32, i32
  }
  func.func @transform_7(%arg0: i32) -> (i32, i32) {
    %c0_i32 = arith.constant 0 : i32
    %c0_i32_0 = arith.constant 0 : i32
    %c0_i32_1 = arith.constant 0 : i32
    return %c0_i32, %c0_i32_0 : i32, i32
  }
  func.func @transform_8(%arg0: i32) -> (i32, i32, i32, i32) {
    %c0_i32 = arith.constant 0 : i32
    %c0_i32_0 = arith.constant 0 : i32
    %c0_i32_1 = arith.constant 0 : i32
    %c0_i32_2 = arith.constant 0 : i32
    %c0_i32_3 = arith.constant 0 : i32
    return %c0_i32, %c0_i32_0, %c0_i32_1, %c0_i32_2 : i32, i32, i32, i32
  }
  func.func @transform_9(%arg0: i32) -> (i32, i32) {
    %c0_i32 = arith.constant 0 : i32
    %c0_i32_0 = arith.constant 0 : i32
    %c0_i32_1 = arith.constant 0 : i32
    return %c0_i32, %c0_i32_0 : i32, i32
  }
  func.func @transform_10(%arg0: i32) -> (i32, i32) {
    %c0_i32 = arith.constant 0 : i32
    %c0_i32_0 = arith.constant 0 : i32
    %c0_i32_1 = arith.constant 0 : i32
    return %c0_i32, %c0_i32_0 : i32, i32
  }
  func.func @transform_11(%arg0: i32) -> (i32, i32, i32) {
    %c0_i32 = arith.constant 0 : i32
    %c0_i32_0 = arith.constant 0 : i32
    %c0_i32_1 = arith.constant 0 : i32
    return %arg0, %c0_i32, %c0_i32_0 : i32, i32, i32
  }
}

</mosaic_0001>

<bundles_post_ra>
// kernel: upsample_forward.1
= control target key start
LH: loop header
LB: loop body
LE: loop exit
PB: predicated region body
PF: predicated region fallthrough
CT: control target
= control target key end

     0   :  { %s12909_s17 = smov 0   ;;  %s17509_s0 = inlined_call_operand.vmem [shape: f32[2,16,16,16], index: 0, kind: input, shape index: {}]   ;;  %s17510_s1 = inlined_call_operand.vmem [shape: f32[2,16,16,8], index: 1, kind: input, shape index: {}]   ;;  %s17511_s2 = inlined_call_operand.vmem [shape: f32[4,256,1], index: 2, kind: input, shape index: {}]   ;;  %s17512_s3 = inlined_call_operand.vmem [shape: f32[4,16,8], index: 3, kind: input, shape index: {}]   ;;  %s17513_s4 = inlined_call_operand.vmem [shape: f32[1,8], index: 4, kind: input, shape index: {}]   ;;  %s17514_s5 = inlined_call_operand.vmem [shape: f32[3,3,16,16], index: 5, kind: input, shape index: {}]   ;;  %s17515_s6 = inlined_call_operand.vmem [shape: f32[1,16], index: 6, kind: input, shape index: {}]   ;;  %s17516_s7 = inlined_call_operand.vmem [shape: f32[1,16], index: 7, kind: input, shape index: {}]   ;;  %s17517_s8 = inlined_call_operand.vmem [shape: f32[3,3,16,16], index: 8, kind: input, shape index: {}]   ;;  %s17518_s9 = inlined_call_operand.vmem [shape: f32[1,16], index: 9, kind: input, shape index: {}]   ;;  %s17519_s10 = inlined_call_operand.vmem [shape: f32[1,16], index: 10, kind: input, shape index: {}]   ;;  %s17520_s11 = inlined_call_operand.vmem [shape: f32[2,16,256], index: 11, kind: output, shape index: {}]  }
   0x1 LB: > { %s10072_s18 = sadd.s32 4294967295, %s12844_s17   ;;  %p10076_p0 = scmp.ge.s32.totalorder %s12844_s17, 1  ;;  %s12844_s17 = sphi %s12909_s17, %s21_s17  }
   0x2   : > { %p347_p1 = scmp.lt.s32.totalorder %s12844_s17, 3 }
   0x4   : > { %p348_p2 = pnand %p10076_p0, %p347_p1 }
   0x6   : > { %351 = sbr.rel (%p348_p2) target bundleno = 1474 (0x5c2), region = 64 }
   0xb   : > { %v852_v0 = vld [vmem:[%s17511_s2 + $0x8] sm:$0xff]  ;;  %v851_v1 = vld [vmem:[%s17511_s2] sm:$0xff]  ;;  %p392_p3 = scmp.lt.s32.totalorder %s10072_s18, 1  ;;  %v12846_v3 = vmov 0   ;;  %v10116_v4 = vld [vmem:[%s17512_s3 + $0x18] sm:$0xff]  ;;  %vm407_vm0 = vcmask 130048  }
   0xc   : > { %v529_v2 = vld [vmem:[%s17512_s3 + $0x8] sm:$0xff]  ;;  %12835 = vset.pattern.permute.xlu1 %v12846_v3  ;;  %12834 = vset.pattern.permute.xlu0 %v12846_v3  ;;  %v10115_v5 = vld [vmem:[%s17512_s3 + $0x10] sm:$0xff]  ;;  %v528_v6 = vld [vmem:[%s17512_s3] sm:$0xff]  ;;  %s12847_s30 = smov 8   ;;  %vm416_vm1 = vcmask 122880   ;;  %vm410_vm2 = vcmask 123904  }
   0xd   : > { %890 = vperm.xlu1 %12835, %v852_v0   ;;  %885 = vperm.xlu0 %12834, %v851_v1   ;;  %s18040_s18 = smov (!%p392_p3, %s10072_s18), 1  ;;  %v10150_v7 = vld [vmem:[%s17511_s2 + $0x108] sm:$0xff]  ;;  %v10149_v8 = vld [vmem:[%s17511_s2 + $0x100] sm:$0xff]  ;;  %v10151_v15 = vld [vmem:[%s17511_s2 + $0x110] sm:$0xff]  ;;  %vm2602_vm3 = vcmask 64512   ;;  %vm2795_vm4 = vcmask 130112  }
   0xe   : > { %11679 = vmatprep.subr.mxu0 %v529_v2  ;;  %11731 = vmatprep.subr.mxu1 %v10116_v4  ;;  %s10928_s16 = sshll.u32 %s18040_s18, 8  ;;  %v10216_v11 = vld [vmem:[%s17511_s2 + $0x208] sm:$0xff]  ;;  %v10215_v12 = vld [vmem:[%s17511_s2 + $0x200] sm:$0xff]  ;;  %v853_v16 = vld [vmem:[%s17511_s2 + $0x10] sm:$0xff] }
   0xf   : > { %11680 = vmatpush3.msra.mxu0 %v529_v2  ;;  %11732 = vmatpush3.msra.mxu1 %v10116_v4  ;;  %s12949_s21 = scalar_lea.vmem %s17509_s0, %s10928_s16  ;;  %v854_v19 = vld [vmem:[%s17511_s2 + $0x18] sm:$0xff]  ;;  %v10281_v20 = vld [vmem:[%s17511_s2 + $0x300] sm:$0xff]  ;;  %v10282_v23 = vld [vmem:[%s17511_s2 + $0x308] sm:$0xff]  ;;  %s13247_s28 = scalar_lea.vmem %s17510_s1, %s10928_s16 }
  0x10   : > { %11733 = vmatprep.subr.mxu1 %v10115_v5  ;;  %11681 = vmatprep.subr.mxu0 %v528_v6  ;;  %v12952_v9 = vld [vmem:[%s12949_s21] sm:$0xff]  ;;  %v12955_v10 = vld [vmem:[%s12949_s21 + $0x8] sm:$0xff]  ;;  %v12968_v13 = vld [vmem:[%s12949_s21 + $0x10] sm:$0xff]  ;;  %s10930_s16 = sshll.u32 %s18040_s18, 5 }
  0x11   : > { %1375 = vperm.xlu1 %12835, %v10150_v7   ;;  %1370 = vperm.xlu0 %12834, %v10149_v8   ;;  %v12975_v14 = vld [vmem:[%s12949_s21 + $0x18] sm:$0xff]  ;;  %v12988_v17 = vld [vmem:[%s12949_s21 + $0x20] sm:$0xff]  ;;  %v12995_v18 = vld [vmem:[%s12949_s21 + $0x28] sm:$0xff] }
  0x12   : > { %11682 = vmatpush3.msra.mxu0 %v528_v6  ;;  %11683 = vmatprep.mubr.msk.f32.mxu0 %vm407_vm0, %v12952_v9  ;;  %v13008_v21 = vld [vmem:[%s12949_s21 + $0x30] sm:$0xff]  ;;  %v13015_v22 = vld [vmem:[%s12949_s21 + $0x38] sm:$0xff]  ;;  %v13028_v25 = vld [vmem:[%s12949_s21 + $0x40] sm:$0xff] }
  0x13   : > { %11734 = vmatpush3.msra.mxu1 %v10115_v5  ;;  %11735 = vmatprep.mubr.msk.f32.mxu1 %vm407_vm0, %v12952_v9  ;;  %v10152_v24 = vld [vmem:[%s17511_s2 + $0x118] sm:$0xff]  ;;  %v13035_v26 = vld [vmem:[%s12949_s21 + $0x48] sm:$0xff]  ;;  %v10217_v28 = vld [vmem:[%s17511_s2 + $0x210] sm:$0xff] }
  0x14   : > { %11684 = vmatmul.mubr.msk.f32.vlgmr.msra.gmra.mxu0 %vm407_vm0, %v12955_v10  ;;  %11736 = vmatmul.mubr.msk.f32.vlgmr.msra.gmra.mxu1 %vm407_vm0, %v12955_v10  ;;  %v10218_v27 = vld [vmem:[%s17511_s2 + $0x218] sm:$0xff]  ;;  %v10182_v29 = vld [vmem:[%s17512_s3 + $0x28] sm:$0xff]  ;;  %v13054_v31 = vld [vmem:[%s12949_s21 + $0x50] sm:$0xff] }
  0x15   : > { %1860 = vperm.xlu1 %12835, %v10216_v11   ;;  %1855 = vperm.xlu0 %12834, %v10215_v12   ;;  %v10248_v30 = vld [vmem:[%s17512_s3 + $0x38] sm:$0xff]  ;;  %v10153_v33 = vld [vmem:[%s17511_s2 + $0x120] sm:$0xff]  ;;  %v10247_v37 = vld [vmem:[%s17512_s3 + $0x30] sm:$0xff] }
  0x16   : > { %11686 = vmatprep.mubr.msk.f32.mxu0 %vm407_vm0, %v12968_v13  ;;  %11738 = vmatprep.mubr.msk.f32.mxu1 %vm407_vm0, %v12968_v13  ;;  %v13061_v32 = vld [vmem:[%s12949_s21 + $0x58] sm:$0xff]  ;;  %v855_v34 = vld [vmem:[%s17511_s2 + $0x20] sm:$0xff]  ;;  %v13087_v38 = vld [vmem:[%s12949_s21 + $0x68] sm:$0xff] }
  0x17   : > { %11783 = vmatprep.subr.mxu0 %v10182_v29  ;;  %11835 = vmatprep.subr.mxu1 %v10248_v30  ;;  %v13074_v35 = vld [vmem:[%s12949_s21 + $0x60] sm:$0xff]  ;;  %v856_v39 = vld [vmem:[%s17511_s2 + $0x28] sm:$0xff]  ;;  %v10283_v40 = vld [vmem:[%s17511_s2 + $0x310] sm:$0xff] }
  0x18   : > { %11687 = vmatmul.mubr.msk.f32.gmra.mxu0 %vm407_vm0, %v12975_v14  ;;  %11739 = vmatmul.mubr.msk.f32.gmra.mxu1 %vm407_vm0, %v12975_v14  ;;  %v10181_v36 = vld [vmem:[%s17512_s3 + $0x20] sm:$0xff]  ;;  %v13100_v41 = vld [vmem:[%s12949_s21 + $0x70] sm:$0xff]  ;;  %v13107_v42 = vld [vmem:[%s12949_s21 + $0x78] sm:$0xff] }
  0x19   : > { %1380 = vperm.xlu1 %12835, %v10151_v15   ;;  %895 = vperm.xlu0 %12834, %v853_v16   ;;  %v10284_v43 = vld [vmem:[%s17511_s2 + $0x318] sm:$0xff]  ;;  %v10154_v44 = vld [vmem:[%s17511_s2 + $0x128] sm:$0xff]  ;;  %v13120_v45 = vld [vmem:[%s12949_s21 + $0x80] sm:$0xff] }
  0x1a   : > { %11689 = vmatprep.mubr.msk.f32.mxu0 %vm407_vm0, %v12988_v17  ;;  %11741 = vmatprep.mubr.msk.f32.mxu1 %vm407_vm0, %v12988_v17  ;;  %v13127_v46 = vld [vmem:[%s12949_s21 + $0x88] sm:$0xff]  ;;  %v10219_v48 = vld [vmem:[%s17511_s2 + $0x220] sm:$0xff]  ;;  %v13140_v49 = vld [vmem:[%s12949_s21 + $0x90] sm:$0xff] }
  0x1b   : > { %11784 = vmatpush3.msra.mxu0 %v10182_v29  ;;  %11836 = vmatpush3.msra.mxu1 %v10248_v30  ;;  %v10220_v47 = vld [vmem:[%s17511_s2 + $0x228] sm:$0xff]  ;;  %v13147_v50 = vld [vmem:[%s12949_s21 + $0x98] sm:$0xff]  ;;  %v10155_v51 = vld [vmem:[%s17511_s2 + $0x130] sm:$0xff] }
  0x1c   : > { %11690 = vmatmul.mubr.msk.f32.gmra.mxu0 %vm407_vm0, %v12995_v18  ;;  %11742 = vmatmul.mubr.msk.f32.gmra.mxu1 %vm407_vm0, %v12995_v18  ;;  %v857_v52 = vld [vmem:[%s17511_s2 + $0x30] sm:$0xff]  ;;  %v13160_v53 = vld [vmem:[%s12949_s21 + $0xa0] sm:$0xff]  ;;  %v13167_v54 = vld [vmem:[%s12949_s21 + $0xa8] sm:$0xff] }
  0x1d   : > { %900 = vperm.xlu1 %12835, %v854_v19   ;;  %2340 = vperm.xlu0 %12834, %v10281_v20   ;;  %v858_v55 = vld [vmem:[%s17511_s2 + $0x38] sm:$0xff]  ;;  %v10285_v56 = vld [vmem:[%s17511_s2 + $0x320] sm:$0xff]  ;;  %v13180_v57 = vld [vmem:[%s12949_s21 + $0xb0] sm:$0xff] }
  0x1e   : > { %11692 = vmatprep.mubr.msk.f32.mxu0 %vm407_vm0, %v13008_v21  ;;  %11744 = vmatprep.mubr.msk.f32.mxu1 %vm407_vm0, %v13008_v21  ;;  %v13187_v58 = vld [vmem:[%s12949_s21 + $0xb8] sm:$0xff]  ;;  %v10286_v59 = vld [vmem:[%s17511_s2 + $0x328] sm:$0xff]  ;;  %v13200_v61 = vld [vmem:[%s12949_s21 + $0xc0] sm:$0xff] }
  0x1f   : > { %11785 = vmatprep.subr.mxu0 %v10181_v36  ;;  %11837 = vmatprep.subr.mxu1 %v10247_v37  ;;  %v10156_v60 = vld [vmem:[%s17511_s2 + $0x138] sm:$0xff]  ;;  %v13207_v62 = vld [vmem:[%s12949_s21 + $0xc8] sm:$0xff]  ;;  %v10221_v0 = vld [vmem:[%s17511_s2 + $0x230] sm:$0xff] }
  0x20   : > { %11693 = vmatmul.mubr.msk.f32.gmra.mxu0 %vm407_vm0, %v13015_v22  ;;  %11745 = vmatmul.mubr.msk.f32.gmra.mxu1 %vm407_vm0, %v13015_v22  ;;  %v10222_v63 = vld [vmem:[%s17511_s2 + $0x238] sm:$0xff]  ;;  %v13220_v1 = vld [vmem:[%s12949_s21 + $0xd0] sm:$0xff]  ;;  %v10157_v3 = vld [vmem:[%s17511_s2 + $0x140] sm:$0xff] }
  0x21   : > { %2345 = vperm.xlu1 %12835, %v10282_v23   ;;  %1385 = vperm.xlu0 %12834, %v10152_v24   ;;  %v13227_v2 = vld [vmem:[%s12949_s21 + $0xd8] sm:$0xff]  ;;  %v859_v4 = vld [vmem:[%s17511_s2 + $0x40] sm:$0xff]  ;;  %v13254_v6 = vld [vmem:[%s12949_s21 + $0xe8] sm:$0xff] }
  0x22   : > { %11695 = vmatprep.mubr.msk.f32.mxu0 %vm407_vm0, %v13028_v25  ;;  %11747 = vmatprep.mubr.msk.f32.mxu1 %vm407_vm0, %v13028_v25  ;;  %v13240_v5 = vld [vmem:[%s12949_s21 + $0xe0] sm:$0xff]  ;;  %v10287_v7 = vld [vmem:[%s17511_s2 + $0x330] sm:$0xff]  ;;  %v13273_v12 = vld [vmem:[%s12949_s21 + $0xf8] sm:$0xff] }
  0x23   : > { %11786 = vmatpush3.msra.mxu0 %v10181_v36  ;;  %11838 = vmatpush3.msra.mxu1 %v10247_v37  ;;  %v2635_v8 = vld [vmem:[%s13247_s28] sm:$0xff]  ;;  %v13265_v11 = vld [vmem:[%s12949_s21 + $0xf0] sm:$0xff]  ;;  %v860_v15 = vld [vmem:[%s17511_s2 + $0x48] sm:$0xff] }
  0x24   : > { %11696 = vmatmul.mubr.msk.f32.gmra.mxu0 %vm407_vm0, %v13035_v26  ;;  %11748 = vmatmul.mubr.msk.f32.gmra.mxu1 %vm407_vm0, %v13035_v26  ;;  %v10158_v16 = vld [vmem:[%s17511_s2 + $0x148] sm:$0xff]  ;;  %v10288_v19 = vld [vmem:[%s17511_s2 + $0x338] sm:$0xff]  ;;  %v10291_v29 = vld [vmem:[%s17511_s2 + $0x350] sm:$0xff] }
  0x25   : > { %1870 = vperm.xlu1 %12835, %v10218_v27   ;;  %1865 = vperm.xlu0 %12834, %v10217_v28   ;;  %v2636_v20 = vld [vmem:[%s13247_s28 + $0x8] sm:$0xff]  ;;  %v2638_v24 = vld [vmem:[%s13247_s28 + $0x18] sm:$0xff]  ;;  %v863_v27 = vld [vmem:[%s17511_s2 + $0x60] sm:$0xff] }
  0x26   : > { %11698 = vmatprep.mubr.msk.f32.mxu0 %vm407_vm0, %v13054_v31  ;;  %11750 = vmatprep.mubr.msk.f32.mxu1 %vm407_vm0, %v13054_v31  ;;  %v10224_v23 = vld [vmem:[%s17511_s2 + $0x248] sm:$0xff]  ;;  %v10161_v28 = vld [vmem:[%s17511_s2 + $0x160] sm:$0xff]  ;;  %v865_v37 = vld [vmem:[%s17511_s2 + $0x70] sm:$0xff] }
  0x27   : > { %v2639_v30 = vld [vmem:[%s13247_s28 + $0x20] sm:$0xff]  ;;  %v10228_v36 = vld [vmem:[%s17511_s2 + $0x268] sm:$0xff] }
  0x28   : > { %11699 = vmatmul.mubr.msk.f32.gmra.mxu0 %vm407_vm0, %v13061_v32  ;;  %11751 = vmatmul.mubr.msk.f32.gmra.mxu1 %vm407_vm0, %v13061_v32 }
  0x29   : > { %1390 = vperm.xlu1 %12835, %v10153_v33   ;;  %905 = vperm.xlu0 %12834, %v855_v34   ;;  %v10292_v33 = vld [vmem:[%s17511_s2 + $0x358] sm:$0xff]  ;;  %v2640_v34 = vld [vmem:[%s13247_s28 + $0x28] sm:$0xff] }
  0x2a   : > { %11701 = vmatprep.mubr.msk.f32.mxu0 %vm407_vm0, %v13074_v35  ;;  %11753 = vmatprep.mubr.msk.f32.mxu1 %vm407_vm0, %v13074_v35 }
  0x2c   : > { %11702 = vmatmul.mubr.msk.f32.gmra.mxu0 %vm407_vm0, %v13087_v38  ;;  %11754 = vmatmul.mubr.msk.f32.gmra.mxu1 %vm407_vm0, %v13087_v38 }
  0x2d   : > { %910 = vperm.xlu1 %12835, %v856_v39   ;;  %2350 = vperm.xlu0 %12834, %v10283_v40   ;;  %v10293_v39 = vld [vmem:[%s17511_s2 + $0x360] sm:$0xff]  ;;  %v2641_v40 = vld [vmem:[%s13247_s28 + $0x30] sm:$0xff] }
  0x2e   : > { %11704 = vmatprep.mubr.msk.f32.mxu0 %vm407_vm0, %v13100_v41  ;;  %11756 = vmatprep.mubr.msk.f32.mxu1 %vm407_vm0, %v13100_v41 }
  0x30   : > { %11705 = vmatmul.mubr.msk.f32.gmra.mxu0 %vm407_vm0, %v13107_v42  ;;  %11757 = vmatmul.mubr.msk.f32.gmra.mxu1 %vm407_vm0, %v13107_v42 }
  0x31   : > { %2355 = vperm.xlu1 %12835, %v10284_v43   ;;  %1395 = vperm.xlu0 %12834, %v10154_v44   ;;  %v866_v43 = vld [vmem:[%s17511_s2 + $0x78] sm:$0xff] }
  0x32   : > { %11707 = vmatprep.mubr.msk.f32.mxu0 %vm407_vm0, %v13120_v45  ;;  %11759 = vmatprep.mubr.msk.f32.mxu1 %vm407_vm0, %v13120_v45  ;;  %v10164_v44 = vld [vmem:[%s17511_s2 + $0x178] sm:$0xff] }
  0x34   : > { %11708 = vmatmul.mubr.msk.f32.gmra.mxu0 %vm407_vm0, %v13127_v46  ;;  %11760 = vmatmul.mubr.msk.f32.gmra.mxu1 %vm407_vm0, %v13127_v46 }
  0x35   : > { %1880 = vperm.xlu1 %12835, %v10220_v47   ;;  %1875 = vperm.xlu0 %12834, %v10219_v48   ;;  %v10294_v47 = vld [vmem:[%s17511_s2 + $0x368] sm:$0xff]  ;;  %v2642_v48 = vld [vmem:[%s13247_s28 + $0x38] sm:$0xff] }
  0x36   : > { %11710 = vmatprep.mubr.msk.f32.mxu0 %vm407_vm0, %v13140_v49  ;;  %11762 = vmatprep.mubr.msk.f32.mxu1 %vm407_vm0, %v13140_v49 }
  0x38   : > { %11711 = vmatmul.mubr.msk.f32.gmra.mxu0 %vm407_vm0, %v13147_v50  ;;  %11763 = vmatmul.mubr.msk.f32.gmra.mxu1 %vm407_vm0, %v13147_v50 }
  0x39   : > { %1400 = vperm.xlu1 %12835, %v10155_v51   ;;  %915 = vperm.xlu0 %12834, %v857_v52   ;;  %v10229_v51 = vld [vmem:[%s17511_s2 + $0x270] sm:$0xff]  ;;  %v10230_v52 = vld [vmem:[%s17511_s2 + $0x278] sm:$0xff] }
  0x3a   : > { %11713 = vmatprep.mubr.msk.f32.mxu0 %vm407_vm0, %v13160_v53  ;;  %11765 = vmatprep.mubr.msk.f32.mxu1 %vm407_vm0, %v13160_v53 }
  0x3c   : > { %11714 = vmatmul.mubr.msk.f32.gmra.mxu0 %vm407_vm0, %v13167_v54  ;;  %11766 = vmatmul.mubr.msk.f32.gmra.mxu1 %vm407_vm0, %v13167_v54 }
  0x3d   : > { %920 = vperm.xlu1 %12835, %v858_v55   ;;  %2360 = vperm.xlu0 %12834, %v10285_v56   ;;  %v867_v55 = vld [vmem:[%s17511_s2 + $0x80] sm:$0xff] }
  0x3e   : > { %11716 = vmatprep.mubr.msk.f32.mxu0 %vm407_vm0, %v13180_v57  ;;  %11768 = vmatprep.mubr.msk.f32.mxu1 %vm407_vm0, %v13180_v57  ;;  %v10165_v56 = vld [vmem:[%s17511_s2 + $0x180] sm:$0xff] }
  0x40   : > { %11717 = vmatmul.mubr.msk.f32.gmra.mxu0 %vm407_vm0, %v13187_v58  ;;  %11769 = vmatmul.mubr.msk.f32.gmra.mxu1 %vm407_vm0, %v13187_v58 }
  0x41   : > { %2365 = vperm.xlu1 %12835, %v10286_v59   ;;  %1405 = vperm.xlu0 %12834, %v10156_v60   ;;  %v10295_v59 = vld [vmem:[%s17511_s2 + $0x370] sm:$0xff]  ;;  %v2643_v60 = vld [vmem:[%s13247_s28 + $0x40] sm:$0xff] }
  0x42   : > { %11719 = vmatprep.mubr.msk.f32.mxu0 %vm407_vm0, %v13200_v61  ;;  %11771 = vmatprep.mubr.msk.f32.mxu1 %vm407_vm0, %v13200_v61 }
  0x44   : > { %11720 = vmatmul.mubr.msk.f32.gmra.mxu0 %vm407_vm0, %v13207_v62  ;;  %11772 = vmatmul.mubr.msk.f32.gmra.mxu1 %vm407_vm0, %v13207_v62 }
  0x45   : > { %1890 = vperm.xlu1 %12835, %v10222_v63   ;;  %1885 = vperm.xlu0 %12834, %v10221_v0   ;;  %v12848_v63 = vmov 0.0   ;;  %v868_v0 = vld [vmem:[%s17511_s2 + $0x88] sm:$0xff] }
  0x46   : > { %11722 = vmatprep.mubr.msk.f32.mxu0 %vm407_vm0, %v13220_v1  ;;  %11774 = vmatprep.mubr.msk.f32.mxu1 %vm407_vm0, %v13220_v1  ;;  %408 = vst.msk [vmem:[#allocation2] sm:$0xff] %vm407_vm0, %v12848_v63  ;;  %409 = vst.msk [vmem:[#allocation2 + $0x8] sm:$0xff] %vm407_vm0, %v12848_v63 }
  0x47   : > { %413 = vst.msk [vmem:[#allocation2 + $0x198] sm:$0xff] %vm407_vm0, %v12848_v63  ;;  %414 = vst.msk [vmem:[#allocation2 + $0x1a0] sm:$0xff] %vm407_vm0, %v12848_v63 }
  0x48   : > { %11723 = vmatmul.mubr.msk.f32.gmra.mxu0 %vm407_vm0, %v13227_v2  ;;  %11775 = vmatmul.mubr.msk.f32.gmra.mxu1 %vm407_vm0, %v13227_v2  ;;  %453 = vst.msk [vmem:[#allocation3] sm:$0xff] %vm407_vm0, %v12848_v63  ;;  %454 = vst.msk [vmem:[#allocation3 + $0x8] sm:$0xff] %vm407_vm0, %v12848_v63 }
  0x49   : > { %1410 = vperm.xlu1 %12835, %v10157_v3   ;;  %925 = vperm.xlu0 %12834, %v859_v4   ;;  %457 = vst.msk [vmem:[#allocation3 + $0x198] sm:$0xff] %vm407_vm0, %v12848_v63  ;;  %458 = vst.msk [vmem:[#allocation3 + $0x1a0] sm:$0xff] %vm407_vm0, %v12848_v63  ;;  %v10315_v4 = vld [vmem:[%s17514_s5 + $0x18] sm:$0xff] }
  0x4a   : > { %11725 = vmatprep.mubr.msk.f32.mxu0 %vm407_vm0, %v13240_v5  ;;  %11777 = vmatprep.mubr.msk.f32.mxu1 %vm407_vm0, %v13240_v5  ;;  %417 = vst.msk [vmem:[#allocation2] sm:$0x1] %vm416_vm1, %v12848_v63  ;;  %418 = vst.msk [vmem:[#allocation2 + $0x18] sm:$0x1] %vm416_vm1, %v12848_v63 }
  0x4b   : > { %419 = vst.msk [vmem:[#allocation2 + $0x30] sm:$0x1] %vm416_vm1, %v12848_v63  ;;  %420 = vst.msk [vmem:[#allocation2 + $0x48] sm:$0x1] %vm416_vm1, %v12848_v63  ;;  %11887 = vmatprep.subr.mxu0 %v10315_v4 }
  0x4c   : > { %11726 = vmatmul.mubr.msk.f32.gmra.mxu0 %vm407_vm0, %v13254_v6  ;;  %11778 = vmatmul.mubr.msk.f32.gmra.mxu1 %vm407_vm0, %v13254_v6  ;;  %421 = vst.msk [vmem:[#allocation2 + $0x60] sm:$0x1] %vm416_vm1, %v12848_v63  ;;  %422 = vst.msk [vmem:[#allocation2 + $0x78] sm:$0x1] %vm416_vm1, %v12848_v63 }
  0x4d   : > { %2370 = vperm.xlu0 %12834, %v10287_v7   ;;  %2699 = vrot.lane.b32.xlu1 %v2635_v8, %s12847_s30  ;;  %423 = vst.msk [vmem:[#allocation2 + $0x90] sm:$0x1] %vm416_vm1, %v12848_v63  ;;  %424 = vst.msk [vmem:[#allocation2 + $0xa8] sm:$0x1] %vm416_vm1, %v12848_v63  ;;  %v2644_v7 = vld [vmem:[%s13247_s28 + $0x48] sm:$0xff]  ;;  %v10314_v8 = vld [vmem:[%s17514_s5 + $0x10] sm:$0xff] }
  0x4e   : > { %11728 = vmatprep.mubr.msk.f32.mxu0 %vm407_vm0, %v13265_v11  ;;  %11780 = vmatprep.mubr.msk.f32.mxu1 %vm407_vm0, %v13265_v11  ;;  %425 = vst.msk [vmem:[#allocation2 + $0xc0] sm:$0x1] %vm416_vm1, %v12848_v63  ;;  %426 = vst.msk [vmem:[#allocation2 + $0xd8] sm:$0x1] %vm416_vm1, %v12848_v63 }
  0x4f   : > { %427 = vst.msk [vmem:[#allocation2 + $0xf0] sm:$0x1] %vm416_vm1, %v12848_v63  ;;  %428 = vst.msk [vmem:[#allocation2 + $0x108] sm:$0x1] %vm416_vm1, %v12848_v63 }
  0x50   : > { %11729 = vmatmul.mubr.msk.f32.gmra.mxu0 %vm407_vm0, %v13273_v12  ;;  %11781 = vmatmul.mubr.msk.f32.gmra.mxu1 %vm407_vm0, %v13273_v12  ;;  %429 = vst.msk [vmem:[#allocation2 + $0x120] sm:$0x1] %vm416_vm1, %v12848_v63  ;;  %430 = vst.msk [vmem:[#allocation2 + $0x138] sm:$0x1] %vm416_vm1, %v12848_v63 }
  0x51   : > { %930 = vperm.xlu0 %12834, %v860_v15   ;;  %1415 = vperm.xlu1 %12835, %v10158_v16   ;;  %431 = vst.msk [vmem:[#allocation2 + $0x150] sm:$0x1] %vm416_vm1, %v12848_v63  ;;  %432 = vst.msk [vmem:[#allocation2 + $0x168] sm:$0x1] %vm416_vm1, %v12848_v63  ;;  %v2862_v16 = vld [vmem:[#allocation2 + $0x1] sm:$0xff] }
  0x52   : > { %11787 = vmatprep.mubr.msk.f32.mxu0 %vm407_vm0, %v12952_v9  ;;  %11839 = vmatprep.mubr.msk.f32.mxu1 %vm407_vm0, %v12952_v9  ;;  %v10223_v9 = vld [vmem:[%s17511_s2 + $0x240] sm:$0xff]  ;;  %433 = vst.msk [vmem:[#allocation2 + $0x180] sm:$0x1] %vm416_vm1, %v12848_v63  ;;  %434 = vst.msk [vmem:[#allocation2 + $0x198] sm:$0x1] %vm416_vm1, %v12848_v63 }
  0x53   : > { %436 = vst.msk [vmem:[#allocation2 + $0x29] sm:$0x1] %vm416_vm1, %v12848_v63  ;;  %437 = vst.msk [vmem:[#allocation2 + $0x41] sm:$0x1] %vm416_vm1, %v12848_v63 }
  0x54   : > { %11788 = vmatmul.mubr.msk.f32.vlgmr.msra.gmra.mxu0 %vm407_vm0, %v12955_v10  ;;  %11840 = vmatmul.mubr.msk.f32.vlgmr.msra.gmra.mxu1 %vm407_vm0, %v12955_v10  ;;  %v861_v10 = vld [vmem:[%s17511_s2 + $0x50] sm:$0xff]  ;;  %438 = vst.msk [vmem:[#allocation2 + $0x59] sm:$0x1] %vm416_vm1, %v12848_v63  ;;  %439 = vst.msk [vmem:[#allocation2 + $0x71] sm:$0x1] %vm416_vm1, %v12848_v63 }
  0x55   : > { %2375 = vperm.xlu0 %12834, %v10288_v19   ;;  %2701 = vrot.lane.b32.xlu1 %v2636_v20, %s12847_s30  ;;  %440 = vst.msk [vmem:[#allocation2 + $0x89] sm:$0x1] %vm416_vm1, %v12848_v63  ;;  %441 = vst.msk [vmem:[#allocation2 + $0xa1] sm:$0x1] %vm416_vm1, %v12848_v63  ;;  %v2828_v19 = vld [vmem:[#allocation2] sm:$0xff] }
  0x56   : > { %11790 = vmatprep.mubr.msk.f32.mxu0 %vm407_vm0, %v12968_v13  ;;  %11842 = vmatprep.mubr.msk.f32.mxu1 %vm407_vm0, %v12968_v13  ;;  %v10159_v13 = vld [vmem:[%s17511_s2 + $0x150] sm:$0xff]  ;;  %442 = vst.msk [vmem:[#allocation2 + $0xb9] sm:$0x1] %vm416_vm1, %v12848_v63  ;;  %443 = vst.msk [vmem:[#allocation2 + $0xd1] sm:$0x1] %vm416_vm1, %v12848_v63 }
  0x57   : > { %444 = vst.msk [vmem:[#allocation2 + $0xe9] sm:$0x1] %vm416_vm1, %v12848_v63  ;;  %445 = vst.msk [vmem:[#allocation2 + $0x101] sm:$0x1] %vm416_vm1, %v12848_v63  ;;  %11888 = vmatpush3.msra.mxu0 %v10315_v4 }
  0x58   : > { %11791 = vmatmul.mubr.msk.f32.gmra.mxu0 %vm407_vm0, %v12975_v14  ;;  %11843 = vmatmul.mubr.msk.f32.gmra.mxu1 %vm407_vm0, %v12975_v14  ;;  %v10289_v14 = vld [vmem:[%s17511_s2 + $0x340] sm:$0xff]  ;;  %446 = vst.msk [vmem:[#allocation2 + $0x119] sm:$0x1] %vm416_vm1, %v12848_v63  ;;  %447 = vst.msk [vmem:[#allocation2 + $0x131] sm:$0x1] %vm416_vm1, %v12848_v63 }
  0x59   : > { %1895 = vperm.xlu0 %12834, %v10223_v9   ;;  %1900 = vperm.xlu1 %12835, %v10224_v23   ;;  %448 = vst.msk [vmem:[#allocation2 + $0x149] sm:$0x1] %vm416_vm1, %v12848_v63  ;;  %449 = vst.msk [vmem:[#allocation2 + $0x161] sm:$0x1] %vm416_vm1, %v12848_v63  ;;  %v2829_v9 = vld [vmem:[#allocation2 + $0x8] sm:$0xff]  ;;  %v10231_v23 = vld [vmem:[%s17511_s2 + $0x280] sm:$0xff] }
  0x5a   : > { %11793 = vmatprep.mubr.msk.f32.mxu0 %vm407_vm0, %v12988_v17  ;;  %11845 = vmatprep.mubr.msk.f32.mxu1 %vm407_vm0, %v12988_v17  ;;  %v2637_v17 = vld [vmem:[%s13247_s28 + $0x10] sm:$0xff]  ;;  %450 = vst.msk [vmem:[#allocation2 + $0x179] sm:$0x1] %vm416_vm1, %v12848_v63  ;;  %451 = vst.msk [vmem:[#allocation2 + $0x191] sm:$0x1] %vm416_vm1, %v12848_v63 }
  0x5b   : > { %460 = vst.msk [vmem:[#allocation3] sm:$0x1] %vm416_vm1, %v12848_v63  ;;  %461 = vst.msk [vmem:[#allocation3 + $0x18] sm:$0x1] %vm416_vm1, %v12848_v63  ;;  %11889 = vmatprep.subr.mxu0 %v10314_v8 }
  0x5c   : > { %11794 = vmatmul.mubr.msk.f32.gmra.mxu0 %vm407_vm0, %v12995_v18  ;;  %11846 = vmatmul.mubr.msk.f32.gmra.mxu1 %vm407_vm0, %v12995_v18  ;;  %v862_v18 = vld [vmem:[%s17511_s2 + $0x58] sm:$0xff]  ;;  %462 = vst.msk [vmem:[#allocation3 + $0x30] sm:$0x1] %vm416_vm1, %v12848_v63  ;;  %463 = vst.msk [vmem:[#allocation3 + $0x48] sm:$0x1] %vm416_vm1, %v12848_v63 }
  0x5d   : > { %935 = vperm.xlu0 %12834, %v861_v10   ;;  %1420 = vperm.xlu1 %12835, %v10159_v13   ;;  %464 = vst.msk [vmem:[#allocation3 + $0x60] sm:$0x1] %vm416_vm1, %v12848_v63  ;;  %465 = vst.msk [vmem:[#allocation3 + $0x78] sm:$0x1] %vm416_vm1, %v12848_v63  ;;  %v10232_v10 = vld [vmem:[%s17511_s2 + $0x288] sm:$0xff] }
  0x5e   : > { %11796 = vmatprep.mubr.msk.f32.mxu0 %vm407_vm0, %v13008_v21  ;;  %11848 = vmatprep.mubr.msk.f32.mxu1 %vm407_vm0, %v13008_v21  ;;  %v10160_v21 = vld [vmem:[%s17511_s2 + $0x158] sm:$0xff]  ;;  %466 = vst.msk [vmem:[#allocation3 + $0x90] sm:$0x1] %vm416_vm1, %v12848_v63  ;;  %467 = vst.msk [vmem:[#allocation3 + $0xa8] sm:$0x1] %vm416_vm1, %v12848_v63 }
  0x5f   : > { %468 = vst.msk [vmem:[#allocation3 + $0xc0] sm:$0x1] %vm416_vm1, %v12848_v63  ;;  %469 = vst.msk [vmem:[#allocation3 + $0xd8] sm:$0x1] %vm416_vm1, %v12848_v63  ;;  %11890 = vmatpush3.msra.mxu0 %v10314_v8 }
  0x60   : > { %11797 = vmatmul.mubr.msk.f32.gmra.mxu0 %vm407_vm0, %v13015_v22  ;;  %11849 = vmatmul.mubr.msk.f32.gmra.mxu1 %vm407_vm0, %v13015_v22  ;;  %v10290_v22 = vld [vmem:[%s17511_s2 + $0x348] sm:$0xff]  ;;  %470 = vst.msk [vmem:[#allocation3 + $0xf0] sm:$0x1] %vm416_vm1, %v12848_v63  ;;  %471 = vst.msk [vmem:[#allocation3 + $0x108] sm:$0x1] %vm416_vm1, %v12848_v63 }
  0x61   : > { %2380 = vperm.xlu0 %12834, %v10289_v14   ;;  %2703 = vrot.lane.b32.xlu1 %v2637_v17, %s12847_s30  ;;  %472 = vst.msk [vmem:[#allocation3 + $0x120] sm:$0x1] %vm416_vm1, %v12848_v63  ;;  %473 = vst.msk [vmem:[#allocation3 + $0x138] sm:$0x1] %vm416_vm1, %v12848_v63  ;;  %v869_v17 = vld [vmem:[%s17511_s2 + $0x90] sm:$0xff] }
  0x62   : > { %11799 = vmatprep.mubr.msk.f32.mxu0 %vm407_vm0, %v13028_v25  ;;  %11851 = vmatprep.mubr.msk.f32.mxu1 %vm407_vm0, %v13028_v25  ;;  %v10225_v25 = vld [vmem:[%s17511_s2 + $0x250] sm:$0xff]  ;;  %474 = vst.msk [vmem:[#allocation3 + $0x150] sm:$0x1] %vm416_vm1, %v12848_v63  ;;  %475 = vst.msk [vmem:[#allocation3 + $0x168] sm:$0x1] %vm416_vm1, %v12848_v63 }
  0x63   : > { %476 = vst.msk [vmem:[#allocation3 + $0x180] sm:$0x1] %vm416_vm1, %v12848_v63  ;;  %477 = vst.msk [vmem:[#allocation3 + $0x198] sm:$0x1] %vm416_vm1, %v12848_v63 }
  0x64   : > { %11800 = vmatmul.mubr.msk.f32.gmra.mxu0 %vm407_vm0, %v13035_v26  ;;  %11852 = vmatmul.mubr.msk.f32.gmra.mxu1 %vm407_vm0, %v13035_v26  ;;  %v10226_v26 = vld [vmem:[%s17511_s2 + $0x258] sm:$0xff]  ;;  %479 = vst.msk [vmem:[#allocation3 + $0x29] sm:$0x1] %vm416_vm1, %v12848_v63  ;;  %480 = vst.msk [vmem:[#allocation3 + $0x41] sm:$0x1] %vm416_vm1, %v12848_v63 }
  0x65   : > { %940 = vperm.xlu0 %12834, %v862_v18   ;;  %1425 = vperm.xlu1 %12835, %v10160_v21   ;;  %481 = vst.msk [vmem:[#allocation3 + $0x59] sm:$0x1] %vm416_vm1, %v12848_v63  ;;  %482 = vst.msk [vmem:[#allocation3 + $0x71] sm:$0x1] %vm416_vm1, %v12848_v63  ;;  %v10167_v18 = vld [vmem:[%s17511_s2 + $0x190] sm:$0xff] }
  0x66   : > { %11802 = vmatprep.mubr.msk.f32.mxu0 %vm407_vm0, %v13054_v31  ;;  %11854 = vmatprep.mubr.msk.f32.mxu1 %vm407_vm0, %v13054_v31  ;;  %v864_v31 = vld [vmem:[%s17511_s2 + $0x68] sm:$0xff]  ;;  %483 = vst.msk [vmem:[#allocation3 + $0x89] sm:$0x1] %vm416_vm1, %v12848_v63  ;;  %484 = vst.msk [vmem:[#allocation3 + $0xa1] sm:$0x1] %vm416_vm1, %v12848_v63 }
  0x67   : > { %485 = vst.msk [vmem:[#allocation3 + $0xb9] sm:$0x1] %vm416_vm1, %v12848_v63  ;;  %486 = vst.msk [vmem:[#allocation3 + $0xd1] sm:$0x1] %vm416_vm1, %v12848_v63 }
  0x68   : > { %11803 = vmatmul.mubr.msk.f32.gmra.mxu0 %vm407_vm0, %v13061_v32  ;;  %11855 = vmatmul.mubr.msk.f32.gmra.mxu1 %vm407_vm0, %v13061_v32  ;;  %v10162_v32 = vld [vmem:[%s17511_s2 + $0x168] sm:$0xff]  ;;  %487 = vst.msk [vmem:[#allocation3 + $0xe9] sm:$0x1] %vm416_vm1, %v12848_v63  ;;  %488 = vst.msk [vmem:[#allocation3 + $0x101] sm:$0x1] %vm416_vm1, %v12848_v63 }
  0x69   : > { %2385 = vperm.xlu0 %12834, %v10290_v22   ;;  %2705 = vrot.lane.b32.xlu1 %v2638_v24, %s12847_s30  ;;  %489 = vst.msk [vmem:[#allocation3 + $0x119] sm:$0x1] %vm416_vm1, %v12848_v63  ;;  %490 = vst.msk [vmem:[#allocation3 + $0x131] sm:$0x1] %vm416_vm1, %v12848_v63  ;;  %v10297_v24 = vld [vmem:[%s17511_s2 + $0x380] sm:$0xff] }
  0x6a   : > { %11805 = vmatprep.mubr.msk.f32.mxu0 %vm407_vm0, %v13074_v35  ;;  %11857 = vmatprep.mubr.msk.f32.mxu1 %vm407_vm0, %v13074_v35  ;;  %v10227_v35 = vld [vmem:[%s17511_s2 + $0x260] sm:$0xff]  ;;  %491 = vst.msk [vmem:[#allocation3 + $0x149] sm:$0x1] %vm416_vm1, %v12848_v63  ;;  %492 = vst.msk [vmem:[#allocation3 + $0x161] sm:$0x1] %vm416_vm1, %v12848_v63 }
  0x6b   : > { %493 = vst.msk [vmem:[#allocation3 + $0x179] sm:$0x1] %vm416_vm1, %v12848_v63  ;;  %494 = vst.msk [vmem:[#allocation3 + $0x191] sm:$0x1] %vm416_vm1, %v12848_v63 }
  0x6c   : > { %11806 = vmatmul.mubr.msk.f32.gmra.mxu0 %vm407_vm0, %v13087_v38  ;;  %11858 = vmatmul.mubr.msk.f32.gmra.mxu1 %vm407_vm0, %v13087_v38  ;;  %v10163_v38 = vld [vmem:[%s17511_s2 + $0x170] sm:$0xff]  ;;  %411 = vst.msk [vmem:[#allocation2 + $0x10] sm:$0x3] %vm410_vm2, %v12848_v63  ;;  %415 = vst.msk [vmem:[#allocation2 + $0x1a8] sm:$0x3] %vm410_vm2, %v12848_v63 }
  0x6d   : > { %1905 = vperm.xlu0 %12834, %v10225_v25   ;;  %1910 = vperm.xlu1 %12835, %v10226_v26   ;;  %455 = vst.msk [vmem:[#allocation3 + $0x10] sm:$0x3] %vm410_vm2, %v12848_v63  ;;  %459 = vst.msk [vmem:[#allocation3 + $0x1a8] sm:$0x3] %vm410_vm2, %v12848_v63  ;;  %v2645_v25 = vld [vmem:[%s13247_s28 + $0x50] sm:$0xff] }
  0x6e   : > { %11808 = vmatprep.mubr.msk.f32.mxu0 %vm407_vm0, %v13100_v41  ;;  %11860 = vmatprep.mubr.msk.f32.mxu1 %vm407_vm0, %v13100_v41  ;;  %435 = vst.msk [vmem:[#allocation2 + $0x11] sm:$0x1] %vm416_vm1, %v12848_v63  ;;  %452 = vst.msk [vmem:[#allocation2 + $0x1a9] sm:$0x1] %vm416_vm1, %v12848_v63 }
  0x6f   : > { %478 = vst.msk [vmem:[#allocation3 + $0x11] sm:$0x1] %vm416_vm1, %v12848_v63  ;;  %495 = vst.msk [vmem:[#allocation3 + $0x1a9] sm:$0x1] %vm416_vm1, %v12848_v63 }
  0x70   : > { %11809 = vmatmul.mubr.msk.f32.gmra.mxu0 %vm407_vm0, %v13107_v42  ;;  %11861 = vmatmul.mubr.msk.f32.gmra.mxu1 %vm407_vm0, %v13107_v42 }
  0x71   : > { %945 = vperm.xlu0 %12834, %v863_v27   ;;  %1430 = vperm.xlu1 %12835, %v10161_v28   ;;  %v870_v28 = vld [vmem:[%s17511_s2 + $0x98] sm:$0xff] }
  0x72   : > { %11811 = vmatprep.mubr.msk.f32.mxu0 %vm407_vm0, %v13120_v45  ;;  %11863 = vmatprep.mubr.msk.f32.mxu1 %vm407_vm0, %v13120_v45 }
  0x73   : > { %v2863_v20 = vld [vmem:[#allocation2 + $0x9] sm:$0xff] }
  0x74   : > { %11812 = vmatmul.mubr.msk.f32.gmra.mxu0 %vm407_vm0, %v13127_v46  ;;  %11864 = vmatmul.mubr.msk.f32.gmra.mxu1 %vm407_vm0, %v13127_v46 }
  0x75   : > { %2390 = vperm.xlu0 %12834, %v10291_v29   ;;  %2707 = vrot.lane.b32.xlu1 %v2639_v30, %s12847_s30  ;;  %v10168_v29 = vld [vmem:[%s17511_s2 + $0x198] sm:$0xff] }
  0x76   : > { %11814 = vmatprep.mubr.msk.f32.mxu0 %vm407_vm0, %v13140_v49  ;;  %11866 = vmatprep.mubr.msk.f32.mxu1 %vm407_vm0, %v13140_v49 }
  0x78   : > { %11815 = vmatmul.mubr.msk.f32.gmra.mxu0 %vm407_vm0, %v13147_v50  ;;  %11867 = vmatmul.mubr.msk.f32.gmra.mxu1 %vm407_vm0, %v13147_v50 }
  0x79   : > { %950 = vperm.xlu0 %12834, %v864_v31   ;;  %1435 = vperm.xlu1 %12835, %v10162_v32   ;;  %v10298_v32 = vld [vmem:[%s17511_s2 + $0x388] sm:$0xff] }
  0x7a   : > { %11817 = vmatprep.mubr.msk.f32.mxu0 %vm407_vm0, %v13160_v53  ;;  %11869 = vmatprep.mubr.msk.f32.mxu1 %vm407_vm0, %v13160_v53 }
  0x7c   : > { %11818 = vmatmul.mubr.msk.f32.gmra.mxu0 %vm407_vm0, %v13167_v54  ;;  %11870 = vmatmul.mubr.msk.f32.gmra.mxu1 %vm407_vm0, %v13167_v54 }
  0x7d   : > { %2395 = vperm.xlu0 %12834, %v10292_v33   ;;  %2709 = vrot.lane.b32.xlu1 %v2640_v34, %s12847_s30  ;;  %v2646_v33 = vld [vmem:[%s13247_s28 + $0x58] sm:$0xff] }
  0x7e   : > { %11820 = vmatprep.mubr.msk.f32.mxu0 %vm407_vm0, %v13180_v57  ;;  %11872 = vmatprep.mubr.msk.f32.mxu1 %vm407_vm0, %v13180_v57 }
  0x80   : > { %11821 = vmatmul.mubr.msk.f32.gmra.mxu0 %vm407_vm0, %v13187_v58  ;;  %11873 = vmatmul.mubr.msk.f32.gmra.mxu1 %vm407_vm0, %v13187_v58 }
  0x81   : > { %1915 = vperm.xlu0 %12834, %v10227_v35   ;;  %1920 = vperm.xlu1 %12835, %v10228_v36   ;;  %v10233_v36 = vld [vmem:[%s17511_s2 + $0x290] sm:$0xff] }
  0x82   : > { %11823 = vmatprep.mubr.msk.f32.mxu0 %vm407_vm0, %v13200_v61  ;;  %11875 = vmatprep.mubr.msk.f32.mxu1 %vm407_vm0, %v13200_v61 }
  0x84   : > { %11824 = vmatmul.mubr.msk.f32.gmra.mxu0 %vm407_vm0, %v13207_v62  ;;  %11876 = vmatmul.mubr.msk.f32.gmra.mxu1 %vm407_vm0, %v13207_v62 }
  0x85   : > { %955 = vperm.xlu0 %12834, %v865_v37   ;;  %1440 = vperm.xlu1 %12835, %v10163_v38   ;;  %v10234_v37 = vld [vmem:[%s17511_s2 + $0x298] sm:$0xff] }
  0x86   : > { %11826 = vmatprep.mubr.msk.f32.mxu0 %vm407_vm0, %v13220_v1  ;;  %11878 = vmatprep.mubr.msk.f32.mxu1 %vm407_vm0, %v13220_v1  ;;  %v10166_v1 = vld [vmem:[%s17511_s2 + $0x188] sm:$0xff] }
  0x88   : > { %v13474_v41 = vpop.permute.xlu1 %890  ;;  %v13476_v42 = vpop.permute.xlu0 %885  ;;  %11827 = vmatmul.mubr.msk.f32.gmra.mxu0 %vm407_vm0, %v13227_v2  ;;  %11879 = vmatmul.mubr.msk.f32.gmra.mxu1 %vm407_vm0, %v13227_v2 }
  0x89   : > { %2400 = vperm.xlu0 %12834, %v10293_v39   ;;  %2711 = vrot.lane.b32.xlu1 %v2641_v40, %s12847_s30  ;;  %v871_v40 = vld [vmem:[%s17511_s2 + $0xa0] sm:$0xff] }
  0x8a   : > { %11829 = vmatprep.mubr.msk.f32.mxu0 %vm407_vm0, %v13240_v5  ;;  %11881 = vmatprep.mubr.msk.f32.mxu1 %vm407_vm0, %v13240_v5  ;;  %v2861_v5 = vld [vmem:[%s17514_s5 + $0x8] sm:$0xff] }
  0x8b   : > { %11939 = vmatprep.subr.mxu1 %v2861_v5 }
  0x8c   : > { %v13493_v45 = vpop.permute.xlu1 %1375  ;;  %v13495_v46 = vpop.permute.xlu0 %1370  ;;  %11830 = vmatmul.mubr.msk.f32.gmra.mxu0 %vm407_vm0, %v13254_v6  ;;  %11882 = vmatmul.mubr.msk.f32.gmra.mxu1 %vm407_vm0, %v13254_v6  ;;  %v10296_v6 = vld [vmem:[%s17511_s2 + $0x378] sm:$0xff] }
  0x8d   : > { %960 = vperm.xlu0 %12834, %v866_v43   ;;  %1445 = vperm.xlu1 %12835, %v10164_v44   ;;  %v10169_v43 = vld [vmem:[%s17511_s2 + $0x1a0] sm:$0xff] }
  0x8e   : > { %11832 = vmatprep.mubr.msk.f32.mxu0 %vm407_vm0, %v13265_v11  ;;  %11884 = vmatprep.mubr.msk.f32.mxu1 %vm407_vm0, %v13265_v11  ;;  %v2860_v11 = vld [vmem:[%s17514_s5] sm:$0xff] }
  0x8f   : > { %11940 = vmatpush3.msra.mxu1 %v2861_v5 }
  0x90   : > { %v13509_v49 = vpop.permute.xlu1 %1860  ;;  %v13511_v50 = vpop.permute.xlu0 %1855  ;;  %11833 = vmatmul.mubr.msk.f32.gmra.mxu0 %vm407_vm0, %v13273_v12  ;;  %11885 = vmatmul.mubr.msk.f32.gmra.mxu1 %vm407_vm0, %v13273_v12 }
  0x91   : > { %2405 = vperm.xlu0 %12834, %v10294_v47   ;;  %2713 = vrot.lane.b32.xlu1 %v2642_v48, %s12847_s30  ;;  %v10299_v48 = vld [vmem:[%s17511_s2 + $0x390] sm:$0xff] }
  0x92   : > { %11941 = vmatprep.subr.mxu1 %v2860_v11  ;;  %11891 = vmatprep.mubr.msk.f32.mxu0 %vm407_vm0, %v2862_v16  ;;  %v873_v16 = vld [vmem:[%s17511_s2 + $0xb0] sm:$0xff] }
  0x93   : > { %11942 = vmatpush3.msra.mxu1 %v2860_v11  ;;  %11943 = vmatprep.mubr.msk.f32.mxu1 %vm407_vm0, %v2828_v19  ;;  %v10171_v19 = vld [vmem:[%s17511_s2 + $0x1b0] sm:$0xff] }
  0x94   : > { %v13524_v53 = vpop.permute.xlu1 %1380  ;;  %v13526_v54 = vpop.permute.xlu0 %895  ;;  %11892 = vmatmul.mubr.msk.f32.vlgmr.msra.gmra.mxu0 %vm407_vm0, %v2863_v20  ;;  %11944 = vmatmul.mubr.msk.f32.vlgmr.msra.gmra.mxu1 %vm407_vm0, %v2829_v9 }
  0x95   : > { %1925 = vperm.xlu0 %12834, %v10229_v51   ;;  %1930 = vperm.xlu1 %12835, %v10230_v52   ;;  %v2647_v51 = vld [vmem:[%s13247_s28 + $0x60] sm:$0xff] }
  0x98   : > { %v13534_v57 = vpop.permute.xlu1 %900  ;;  %v13536_v58 = vpop.permute.xlu0 %2340 }
  0x99   : > { %965 = vperm.xlu0 %12834, %v867_v55   ;;  %1450 = vperm.xlu1 %12835, %v10165_v56   ;;  %v872_v56 = vld [vmem:[%s17511_s2 + $0xa8] sm:$0xff] }
  0x9c   : > { %v13542_v61 = vpop.permute.xlu1 %2345  ;;  %v13544_v62 = vpop.permute.xlu0 %1385 }
  0x9d   : > { %2410 = vperm.xlu0 %12834, %v10295_v59   ;;  %2715 = vrot.lane.b32.xlu1 %v2643_v60, %s12847_s30  ;;  %v10170_v59 = vld [vmem:[%s17511_s2 + $0x1a8] sm:$0xff] }
  0xa0   : > { %v13717_v2 = vpop.permute.xlu1 %1870  ;;  %v13719_v3 = vpop.permute.xlu0 %1865 }
  0xa1   : > { %970 = vperm.xlu0 %12834, %v868_v0   ;;  %1455 = vperm.xlu1 %12835, %v10166_v1   ;;  %v10300_v0 = vld [vmem:[%s17511_s2 + $0x398] sm:$0xff]  ;;  %v2648_v1 = vld [vmem:[%s13247_s28 + $0x68] sm:$0xff] }
  0xa4   : > { %v13737_v12 = vpop.permute.xlu1 %1390  ;;  %v13739_v15 = vpop.permute.xlu0 %905 }
  0xa5   : > { %2415 = vperm.xlu0 %12834, %v10296_v6   ;;  %2717 = vrot.lane.b32.xlu1 %v2644_v7, %s12847_s30  ;;  %v10235_v6 = vld [vmem:[%s17511_s2 + $0x2a0] sm:$0xff]  ;;  %v10236_v7 = vld [vmem:[%s17511_s2 + $0x2a8] sm:$0xff] }
  0xa8   : > { %v13750_v13 = vpop.permute.xlu1 %910  ;;  %v13752_v14 = vpop.permute.xlu0 %2350 }
  0xa9   : > { %1935 = vperm.xlu0 %12834, %v10231_v23   ;;  %1940 = vperm.xlu1 %12835, %v10232_v10  }
  0xac   : > { %v13762_v21 = vpop.permute.xlu1 %2355  ;;  %v13764_v22 = vpop.permute.xlu0 %1395 }
  0xad   : > { %975 = vperm.xlu0 %12834, %v869_v17   ;;  %1460 = vperm.xlu1 %12835, %v10167_v18  }
  0xb0   : > { %v13770_v26 = vpop.permute.xlu1 %1880  ;;  %v13772_v27 = vpop.permute.xlu0 %1875 }
  0xb1   : > { %17561 = vst [vmem:[#allocation4_spill] sm:$0xff] %v13772_v27  ;;  %2420 = vperm.xlu0 %12834, %v10297_v24   ;;  %2719 = vrot.lane.b32.xlu1 %v2645_v25, %s12847_s30  ;;  %v10301_v24 = vld [vmem:[%s17511_s2 + $0x3a0] sm:$0xff]  ;;  %v2649_v25 = vld [vmem:[%s13247_s28 + $0x70] sm:$0xff] }
  0xb2   : > { %v10303_v27 = vld [vmem:[%s17511_s2 + $0x3b0] sm:$0xff] }
  0xb4   : > { %v13781_v30 = vpop.permute.xlu1 %1400  ;;  %v13783_v31 = vpop.permute.xlu0 %915 }
  0xb5   : > { %980 = vperm.xlu0 %12834, %v870_v28   ;;  %1465 = vperm.xlu1 %12835, %v10168_v29  }
  0xb8   : > { %v13789_v34 = vpop.permute.xlu1 %920  ;;  %v13791_v35 = vpop.permute.xlu0 %2360 }
  0xb9   : > { %17562 = vst [vmem:[#allocation5_spill] sm:$0xff] %v13791_v35  ;;  %2425 = vperm.xlu0 %12834, %v10298_v32   ;;  %2721 = vrot.lane.b32.xlu1 %v2646_v33, %s12847_s30 }
  0xbc   : > { %v13800_v38 = vpop.permute.xlu1 %2365  ;;  %v13802_v39 = vpop.permute.xlu0 %1405 }
  0xbd   : > { %17563 = vst [vmem:[#allocation6_spill] sm:$0xff] %v13800_v38  ;;  %1945 = vperm.xlu0 %12834, %v10233_v36   ;;  %1950 = vperm.xlu1 %12835, %v10234_v37   ;;  %v2651_v38 = vld [vmem:[%s13247_s28 + $0x80] sm:$0xff] }
  0xc0   : > { %v13810_v44 = vpop.permute.xlu1 %1890  ;;  %v13812_v47 = vpop.permute.xlu0 %1885 }
  0xc1   : > { %17564 = vst [vmem:[#allocation7_spill] sm:$0xff] %v13810_v44  ;;  %17565 = vst [vmem:[#allocation8_spill] sm:$0xff] %v13812_v47  ;;  %985 = vperm.xlu0 %12834, %v871_v40   ;;  %1470 = vperm.xlu1 %12835, %v10169_v43   ;;  %v874_v40 = vld [vmem:[%s17511_s2 + $0xb8] sm:$0xff]  ;;  %v10173_v44 = vld [vmem:[%s17511_s2 + $0x1c0] sm:$0xff] }
  0xc2   : > { %v10172_v43 = vld [vmem:[%s17511_s2 + $0x1b8] sm:$0xff] }
  0xc4   : > { %v13818_v52 = vpop.permute.xlu1 %1410  ;;  %v13820_v55 = vpop.permute.xlu0 %925 }
  0xc5   : > { %2430 = vperm.xlu0 %12834, %v10299_v48   ;;  %2723 = vrot.lane.b32.xlu1 %v2647_v51, %s12847_s30 }
  0xc8   : > { %v13829_v60 = vpop.permute.xlu0 %2370  ;;  %v13831_v63 = vpop.permute.xlu1 %2699 }
  0xc9   : > { %17566 = vst [vmem:[#allocation9_spill] sm:$0xff] %v13829_v60  ;;  %17567 = vst [vmem:[#allocation10_spill] sm:$0xff] %v13831_v63  ;;  %990 = vperm.xlu0 %12834, %v872_v56   ;;  %1475 = vperm.xlu1 %12835, %v10170_v59  }
  0xcc   : > { %v13837_v4 = vpop.permute.xlu0 %930  ;;  %v13839_v5 = vpop.permute.xlu1 %1415 }
  0xcd   : > { %2435 = vperm.xlu0 %12834, %v10300_v0   ;;  %2725 = vrot.lane.b32.xlu1 %v2648_v1, %s12847_s30 }
  0xd0   : > { %v13848_v8 = vpop.permute.xlu0 %2375  ;;  %v13850_v11 = vpop.permute.xlu1 %2701 }
  0xd1   : > { %17568 = vst [vmem:[#allocation11_spill] sm:$0xff] %v13848_v8  ;;  %17569 = vst [vmem:[#allocation12_spill] sm:$0xff] %v13850_v11  ;;  %1955 = vperm.xlu0 %12834, %v10235_v6   ;;  %1960 = vperm.xlu1 %12835, %v10236_v7   ;;  %v10302_v6 = vld [vmem:[%s17511_s2 + $0x3a8] sm:$0xff]  ;;  %v2650_v7 = vld [vmem:[%s13247_s28 + $0x78] sm:$0xff] }
  0xd2   : > { %v875_v8 = vld [vmem:[%s17511_s2 + $0xc0] sm:$0xff] }
  0xd4   : > { %v13858_v20 = vpop.f32.mrf.mxu0  ;;  %v13860_v9 = vpop.f32.mrf.mxu1 }
  0xd5   : > { %v13862_v23 = vpop.permute.xlu0 %1895  ;;  %v13864_v10 = vpop.permute.xlu1 %1900  ;;  %995 = vperm.xlu0 %12834, %v873_v16   ;;  %1480 = vperm.xlu1 %12835, %v10171_v19  }
  0xd6   : > { %17570 = vst [vmem:[#allocation13_spill] sm:$0xff] %v13862_v23  ;;  %17571 = vst [vmem:[#allocation14_spill] sm:$0xff] %v13864_v10  ;;  %v13866_v17 = vpop.f32.mrf.mxu0  ;;  %v13868_v18 = vpop.f32.mrf.mxu1  ;;  %v10238_v23 = vld [vmem:[%s17511_s2 + $0x2b8] sm:$0xff] }
  0xd8   : > { %v13874_v28 = vpop.f32.mrf.mxu0  ;;  %v13876_v29 = vpop.f32.mrf.mxu1 }
  0xd9   : > { %v13878_v32 = vpop.permute.xlu0 %935  ;;  %v13880_v33 = vpop.permute.xlu1 %1420  ;;  %2440 = vperm.xlu0 %12834, %v10301_v24   ;;  %2727 = vrot.lane.b32.xlu1 %v2649_v25, %s12847_s30 }
  0xda   : > { %17572 = vst [vmem:[#allocation15_spill] sm:$0xff] %v13878_v32  ;;  %17573 = vst [vmem:[#allocation16_spill] sm:$0xff] %v13880_v33  ;;  %v13883_v36 = vpop.f32.mrf.mxu0  ;;  %v13885_v37 = vpop.f32.mrf.mxu1 }
  0xdc   : > { %v13893_v48 = vpop.f32.mrf.mxu0  ;;  %v13895_v51 = vpop.f32.mrf.mxu1 }
  0xdd   : > { %v13897_v56 = vpop.permute.xlu0 %2380  ;;  %v13899_v59 = vpop.permute.xlu1 %2703  ;;  %1000 = vperm.xlu0 %12834, %v874_v40   ;;  %1485 = vperm.xlu1 %12835, %v10172_v43  }
  0xde   : > { %17574 = vst [vmem:[#allocation17_spill] sm:$0xff] %v13897_v56  ;;  %17575 = vst [vmem:[#allocation18_spill] sm:$0xff] %v13899_v59  ;;  %v13901_v0 = vpop.f32.mrf.mxu0  ;;  %v13903_v1 = vpop.f32.mrf.mxu1  ;;  %v10237_v56 = vld [vmem:[%s17511_s2 + $0x2b0] sm:$0xff] }
  0xe0   : > { %v13909_v16 = vpop.f32.mrf.mxu0  ;;  %v13911_v19 = vpop.f32.mrf.mxu1 }
  0xe1   : > { %v13913_v24 = vpop.permute.xlu0 %940  ;;  %v13915_v25 = vpop.permute.xlu1 %1425  ;;  %2445 = vperm.xlu0 %12834, %v10302_v6   ;;  %2729 = vrot.lane.b32.xlu1 %v2650_v7, %s12847_s30 }
  0xe2   : > { %v13918_v40 = vpop.f32.mrf.mxu0  ;;  %v13920_v43 = vpop.f32.mrf.mxu1 }
  0xe4   : > { %v13928_v10 = vpop.f32.mrf.mxu0  ;;  %v13930_v60 = vpop.f32.mrf.mxu1 }
  0xe5   : > { %v13932_v59 = vpop.permute.xlu0 %2385  ;;  %v13934_v6 = vpop.permute.xlu1 %2705  ;;  %1965 = vperm.xlu0 %12834, %v10237_v56   ;;  %1970 = vperm.xlu1 %12835, %v10238_v23  }
  0xe6   : > { %17576 = vst [vmem:[#allocation19_spill] sm:$0xff] %v13932_v59  ;;  %17577 = vst [vmem:[#allocation20_spill] sm:$0xff] %v13934_v6  ;;  %v13936_v7 = vpop.f32.mrf.mxu0  ;;  %v13938_v47 = vpop.f32.mrf.mxu1 }
  0xe8   : > { %v13946_v35 = vpop.f32.mrf.mxu0  ;;  %v13948_v59 = vpop.f32.mrf.mxu1 }
  0xe9   : > { %v13950_v6 = vpop.permute.xlu0 %1905  ;;  %v13952_v56 = vpop.permute.xlu1 %1910  ;;  %1005 = vperm.xlu0 %12834, %v875_v8   ;;  %1490 = vperm.xlu1 %12835, %v10173_v44  }
  0xea   : > { %17578 = vst [vmem:[#allocation21_spill] sm:$0xff] %v13950_v6  ;;  %17579 = vst [vmem:[#allocation22_spill] sm:$0xff] %v13952_v56  ;;  %v13954_v23 = vpop.f32.mrf.mxu0  ;;  %v13956_v63 = vpop.f32.mrf.mxu1  ;;  %v876_v56 = vld [vmem:[%s17511_s2 + $0xc8] sm:$0xff] }
  0xeb   : > { %17580 = vst [vmem:[#allocation23_spill] sm:$0xff] %v13954_v23  ;;  %17581 = vst [vmem:[#allocation24_spill] sm:$0xff] %v13956_v63  ;;  %v2652_v63 = vld [vmem:[%s13247_s28 + $0x88] sm:$0xff] }
  0xec   : > { %v13962_v11 = vpop.f32.mrf.mxu0  ;;  %v13964_v33 = vpop.f32.mrf.mxu1 }
  0xed   : > { %17582 = vst [vmem:[#allocation25_spill] sm:$0xff] %v13962_v11  ;;  %17583 = vst [vmem:[#allocation26_spill] sm:$0xff] %v13964_v33  ;;  %v13966_v32 = vpop.permute.xlu0 %945  ;;  %v13968_v6 = vpop.permute.xlu1 %1430  ;;  %2450 = vperm.xlu0 %12834, %v10303_v27   ;;  %2731 = vrot.lane.b32.xlu1 %v2651_v38, %s12847_s30  ;;  %v10174_v33 = vld [vmem:[%s17511_s2 + $0x1c8] sm:$0xff] }
  0xee   : > { %17584 = vst [vmem:[#allocation27_spill] sm:$0xff] %v13966_v32  ;;  %17585 = vst [vmem:[#allocation28_spill] sm:$0xff] %v13968_v6  ;;  %v13971_v44 = vpop.f32.mrf.mxu0  ;;  %v13973_v8 = vpop.f32.mrf.mxu1 }
  0xef   : > { %17586 = vst [vmem:[#allocation29_spill] sm:$0xff] %v13971_v44  ;;  %17587 = vst [vmem:[#allocation30_spill] sm:$0xff] %v13973_v8  ;;  %v10304_v44 = vld [vmem:[%s17511_s2 + $0x3b8] sm:$0xff] }
  0xf0   : > { %v13981_v11 = vpop.f32.mrf.mxu0  ;;  %v13983_v32 = vpop.f32.mrf.mxu1 }
  0xf1   : > { %17588 = vst [vmem:[#allocation31_spill] sm:$0xff] %v13981_v11  ;;  %17589 = vst [vmem:[#allocation32_spill] sm:$0xff] %v13983_v32  ;;  %v13985_v6 = vpop.permute.xlu0 %2390  ;;  %v13987_v27 = vpop.permute.xlu1 %2707  ;;  %1010 = vperm.xlu0 %12834, %v876_v56   ;;  %1495 = vperm.xlu1 %12835, %v10174_v33  }
  0xf2   : > { %17590 = vst [vmem:[#allocation33_spill] sm:$0xff] %v13985_v6  ;;  %17591 = vst [vmem:[#allocation34_spill] sm:$0xff] %v13987_v27  ;;  %v13989_v38 = vpop.f32.mrf.mxu0  ;;  %v13991_v8 = vpop.f32.mrf.mxu1  ;;  %v10239_v27 = vld [vmem:[%s17511_s2 + $0x2c0] sm:$0xff] }
  0xf3   : > { %17592 = vst [vmem:[#allocation35_spill] sm:$0xff] %v13989_v38  ;;  %17593 = vst [vmem:[#allocation36_spill] sm:$0xff] %v13991_v8 }
  0xf4   : > { %v13997_v23 = vpop.f32.mrf.mxu0  ;;  %v13999_v11 = vpop.f32.mrf.mxu1 }
  0xf5   : > { %17594 = vst [vmem:[#allocation37_spill] sm:$0xff] %v13997_v23  ;;  %17595 = vst [vmem:[#allocation38_spill] sm:$0xff] %v13999_v11  ;;  %v14001_v32 = vpop.permute.xlu0 %950  ;;  %v14003_v6 = vpop.permute.xlu1 %1435  ;;  %2455 = vperm.xlu0 %12834, %v10304_v44   ;;  %2733 = vrot.lane.b32.xlu1 %v2652_v63, %s12847_s30  ;;  %v10240_v23 = vld [vmem:[%s17511_s2 + $0x2c8] sm:$0xff] }
  0xf6   : > { %17596 = vst [vmem:[#allocation39_spill] sm:$0xff] %v14001_v32  ;;  %17597 = vst [vmem:[#allocation40_spill] sm:$0xff] %v14003_v6  ;;  %v14006_v33 = vpop.f32.mrf.mxu0  ;;  %v14008_v56 = vpop.f32.mrf.mxu1  ;;  %v2653_v6 = vld [vmem:[%s13247_s28 + $0x90] sm:$0xff] }
  0xf7   : > { %17598 = vst [vmem:[#allocation41_spill] sm:$0xff] %v14006_v33  ;;  %17599 = vst [vmem:[#allocation42_spill] sm:$0xff] %v14008_v56  ;;  %v877_v33 = vld [vmem:[%s17511_s2 + $0xd0] sm:$0xff] }
  0xf8   : > { %v14016_v11 = vpop.f32.mrf.mxu0  ;;  %v14018_v8 = vpop.f32.mrf.mxu1 }
  0xf9   : > { %17600 = vst [vmem:[#allocation43_spill] sm:$0xff] %v14016_v11  ;;  %17601 = vst [vmem:[#allocation44_spill] sm:$0xff] %v14018_v8  ;;  %v14020_v38 = vpop.permute.xlu0 %2395  ;;  %v14022_v44 = vpop.permute.xlu1 %2709  ;;  %1975 = vperm.xlu0 %12834, %v10239_v27   ;;  %1980 = vperm.xlu1 %12835, %v10240_v23   ;;  %v10175_v11 = vld [vmem:[%s17511_s2 + $0x1d0] sm:$0xff] }
  0xfa   : > { %17602 = vst [vmem:[#allocation45_spill] sm:$0xff] %v14020_v38  ;;  %17603 = vst [vmem:[#allocation46_spill] sm:$0xff] %v14022_v44  ;;  %v14024_v63 = vpop.f32.mrf.mxu0  ;;  %v14026_v56 = vpop.f32.mrf.mxu1 }
  0xfb   : > { %17604 = vst [vmem:[#allocation47_spill] sm:$0xff] %v14024_v63  ;;  %17605 = vst [vmem:[#allocation48_spill] sm:$0xff] %v14026_v56  ;;  %v10305_v63 = vld [vmem:[%s17511_s2 + $0x3c0] sm:$0xff] }
  0xfc   : > { %v14034_v8 = vpop.f32.mrf.mxu0  ;;  %v14036_v38 = vpop.f32.mrf.mxu1 }
  0xfd   : > { %17606 = vst [vmem:[#allocation49_spill] sm:$0xff] %v14034_v8  ;;  %17607 = vst [vmem:[#allocation50_spill] sm:$0xff] %v14036_v38  ;;  %v14038_v44 = vpop.permute.xlu0 %1915  ;;  %v14040_v27 = vpop.permute.xlu1 %1920  ;;  %1015 = vperm.xlu0 %12834, %v877_v33   ;;  %1500 = vperm.xlu1 %12835, %v10175_v11  }
  0xfe   : > { %17608 = vst [vmem:[#allocation51_spill] sm:$0xff] %v14038_v44  ;;  %17609 = vst [vmem:[#allocation52_spill] sm:$0xff] %v14040_v27  ;;  %v14042_v23 = vpop.f32.mrf.mxu0  ;;  %v14044_v56 = vpop.f32.mrf.mxu1 }
  0xff   : > { %17610 = vst [vmem:[#allocation53_spill] sm:$0xff] %v14042_v23  ;;  %17611 = vst [vmem:[#allocation54_spill] sm:$0xff] %v14044_v56  ;;  %v878_v56 = vld [vmem:[%s17511_s2 + $0xd8] sm:$0xff] }
 0x100   : > { %v14050_v32 = vpop.f32.mrf.mxu0  ;;  %v14052_v8 = vpop.f32.mrf.mxu1 }
 0x101   : > { %17612 = vst [vmem:[#allocation55_spill] sm:$0xff] %v14050_v32  ;;  %17613 = vst [vmem:[#allocation56_spill] sm:$0xff] %v14052_v8  ;;  %v14054_v38 = vpop.permute.xlu0 %955  ;;  %v14056_v44 = vpop.permute.xlu1 %1440  ;;  %2460 = vperm.xlu0 %12834, %v10305_v63   ;;  %2735 = vrot.lane.b32.xlu1 %v2653_v6, %s12847_s30  ;;  %v10176_v8 = vld [vmem:[%s17511_s2 + $0x1d8] sm:$0xff]  ;;  %v10381_v6 = vld [vmem:[%s17514_s5 + $0x28] sm:$0xff] }
 0x102   : > { %17614 = vst [vmem:[#allocation57_spill] sm:$0xff] %v14054_v38  ;;  %17615 = vst [vmem:[#allocation58_spill] sm:$0xff] %v14056_v44  ;;  %v14059_v11 = vpop.f32.mrf.mxu0  ;;  %v14061_v33 = vpop.f32.mrf.mxu1  ;;  %v2654_v44 = vld [vmem:[%s13247_s28 + $0x98] sm:$0xff]  ;;  %11991 = vmatprep.subr.mxu0 %v10381_v6 }
 0x103   : > { %17616 = vst [vmem:[#allocation59_spill] sm:$0xff] %v14059_v11  ;;  %17617 = vst [vmem:[#allocation60_spill] sm:$0xff] %v14061_v33  ;;  %11992 = vmatpush3.msra.mxu0 %v10381_v6  ;;  %v10242_v6 = vld [vmem:[%s17511_s2 + $0x2d8] sm:$0xff] }
 0x104   : > { %v14069_v32 = vpop.f32.mrf.mxu0  ;;  %v14071_v23 = vpop.f32.mrf.mxu1 }
 0x105   : > { %17618 = vst [vmem:[#allocation61_spill] sm:$0xff] %v14069_v32  ;;  %17619 = vst [vmem:[#allocation62_spill] sm:$0xff] %v14071_v23  ;;  %v14076_v63 = vpop.permute.xlu0 %2400  ;;  %v14078_v11 = vpop.permute.xlu1 %2711  ;;  %1020 = vperm.xlu0 %12834, %v878_v56   ;;  %1505 = vperm.xlu1 %12835, %v10176_v8   ;;  %v10306_v32 = vld [vmem:[%s17511_s2 + $0x3c8] sm:$0xff] }
 0x106   : > { %17620 = vst [vmem:[#allocation63_spill] sm:$0xff] %v14076_v63  ;;  %17621 = vst [vmem:[#allocation64_spill] sm:$0xff] %v14078_v11  ;;  %v14080_v33 = vpop.f32.mrf.mxu0  ;;  %v14082_v27 = vpop.f32.mrf.mxu1 }
 0x107   : > { %17622 = vst [vmem:[#allocation65_spill] sm:$0xff] %v14080_v33  ;;  %17623 = vst [vmem:[#allocation66_spill] sm:$0xff] %v14082_v27  ;;  %v10241_v27 = vld [vmem:[%s17511_s2 + $0x2d0] sm:$0xff] }
 0x108   : > { %v14088_v23 = vpop.f32.mrf.mxu0  ;;  %v14090_v38 = vpop.f32.mrf.mxu1 }
 0x109   : > { %17624 = vst [vmem:[#allocation67_spill] sm:$0xff] %v14088_v23  ;;  %17625 = vst [vmem:[#allocation68_spill] sm:$0xff] %v14090_v38  ;;  %v14092_v63 = vpop.permute.xlu0 %960  ;;  %v14094_v11 = vpop.permute.xlu1 %1445  ;;  %2465 = vperm.xlu0 %12834, %v10306_v32   ;;  %2737 = vrot.lane.b32.xlu1 %v2654_v44, %s12847_s30 }
 0x10a   : > { %v14097_v8 = vpop.f32.mrf.mxu0  ;;  %v14099_v56 = vpop.f32.mrf.mxu1 }
 0x10b   : > { %17626 = vst [vmem:[#allocation69_spill] sm:$0xff] %v14097_v8  ;;  %17627 = vst [vmem:[#allocation70_spill] sm:$0xff] %v14099_v56  ;;  %v879_v8 = vld [vmem:[%s17511_s2 + $0xe0] sm:$0xff] }
 0x10c   : > { %v14107_v38 = vpop.f32.mrf.mxu0  ;;  %v14109_v23 = vpop.f32.mrf.mxu1 }
 0x10d   : > { %17628 = vst [vmem:[#allocation71_spill] sm:$0xff] %v14107_v38  ;;  %17629 = vst [vmem:[#allocation72_spill] sm:$0xff] %v14109_v23  ;;  %v14111_v33 = vpop.permute.xlu0 %2405  ;;  %v14113_v32 = vpop.permute.xlu1 %2713  ;;  %1985 = vperm.xlu0 %12834, %v10241_v27   ;;  %1990 = vperm.xlu1 %12835, %v10242_v6   ;;  %v10177_v38 = vld [vmem:[%s17511_s2 + $0x1e0] sm:$0xff]  ;;  %v1044_v27 = vmul.f32 %v13858_v20, %v13474_v41  ;;  %v1529_v6 = vmul.f32 %v13860_v9, %v13493_v45  ;;  %v10307_v9 = vld [vmem:[%s17511_s2 + $0x3d0] sm:$0xff] }
 0x10e   : > { %17630 = vst [vmem:[#allocation73_spill] sm:$0xff] %v14111_v33  ;;  %17631 = vst [vmem:[#allocation74_spill] sm:$0xff] %v14113_v32  ;;  %v14115_v44 = vpop.f32.mrf.mxu0  ;;  %v14117_v56 = vpop.f32.mrf.mxu1  ;;  %v1043_v32 = vmul.f32 %v13476_v42, %v13866_v17  ;;  %v1531_v41 = vmul.f32 %v13876_v29, %v13544_v62  ;;  %v1045_v42 = vmul.f32 %v13526_v54, %v13883_v36 }
 0x10f   : > { %17632 = vst [vmem:[#allocation75_spill] sm:$0xff] %v14115_v44  ;;  %17633 = vst [vmem:[#allocation76_spill] sm:$0xff] %v14117_v56  ;;  %v1533_v62 = vmul.f32 %v13895_v51, %v13764_v22  ;;  %v1047_v17 = vmul.f32 %v13739_v15, %v13901_v0  ;;  %v1535_v54 = vmul.f32 %v13911_v19, %v13802_v39  ;;  %v880_v39 = vld [vmem:[%s17511_s2 + $0xe8] sm:$0xff] }
 0x110   : > { %v14125_v23 = vpop.f32.mrf.mxu0  ;;  %v14127_v33 = vpop.f32.mrf.mxu1  ;;  %v1561_v36 = vadd.f32 %v1529_v6, %v1044_v27 }
 0x111   : > { %17634 = vst [vmem:[#allocation77_spill] sm:$0xff] %v14125_v23  ;;  %17635 = vst [vmem:[#allocation78_spill] sm:$0xff] %v14127_v33  ;;  %v14133_v56 = vpop.permute.xlu0 %1925  ;;  %v14135_v44 = vpop.permute.xlu1 %1930  ;;  %1025 = vperm.xlu0 %12834, %v879_v8   ;;  %1510 = vperm.xlu1 %12835, %v10177_v38   ;;  %v1528_v23 = vmul.f32 %v13495_v46, %v13868_v18  ;;  %v1046_v33 = vmul.f32 %v13874_v28, %v13534_v57  ;;  %v2655_v38 = vld [vmem:[%s13247_s28 + $0xa0] sm:$0xff] }
 0x112   : > { %v14145_v20 = vpop.f32.mrf.mxu0  ;;  %v14147_v45 = vpop.f32.mrf.mxu1  ;;  %v1530_v46 = vmul.f32 %v13524_v53, %v13885_v37  ;;  %v1048_v57 = vmul.f32 %v13893_v48, %v13750_v13  ;;  %v1532_v18 = vmul.f32 %v13737_v12, %v13903_v1  ;;  %v1050_v28 = vmul.f32 %v13909_v16, %v13789_v34  ;;  %v10178_v16 = vld [vmem:[%s17511_s2 + $0x1e8] sm:$0xff] }
 0x113   : > { %v1560_v15 = vadd.f32 %v1528_v23, %v1043_v32  ;;  %v1563_v12 = vadd.f32 %v1531_v41, %v1046_v33  ;;  %v1049_v8 = vmul.f32 %v13783_v31, %v13918_v40  ;;  %v14192_v32 = vld [vmem:[%s17513_s4] ss:$0 sm:$0xff]  ;;  %v1534_v31 = vmul.f32 %v13781_v30, %v13920_v43  ;;  %v2656_v43 = vld [vmem:[%s13247_s28 + $0xa8] sm:$0xff] }
 0x114   : > { %v11789_v29 = vpop.f32.mrf.mxu0  ;;  %v11841_v53 = vpop.f32.mrf.mxu1  ;;  %v1562_v51 = vadd.f32 %v1530_v46, %v1045_v42  ;;  %v1565_v19 = vadd.f32 %v1533_v62, %v1048_v57  ;;  %v14183_v23 = vadd.f32 %v1532_v18, %v1047_v17  ;;  %v14185_v33 = vadd.f32 %v1535_v54, %v1050_v28  ;;  %v10308_v62 = vld [vmem:[%s17511_s2 + $0x3d8] sm:$0xff] }
 0x115   : > { %v2014_v13 = vmul.f32 %v11789_v29, %v13509_v49  ;;  %v14170_v37 = vpop.permute.xlu0 %965  ;;  %v14172_v22 = vpop.permute.xlu1 %1450  ;;  %2470 = vperm.xlu0 %12834, %v10307_v9   ;;  %2739 = vrot.lane.b32.xlu1 %v2655_v38, %s12847_s30  ;;  %v2499_v49 = vmul.f32 %v11841_v53, %v13542_v61  ;;  %v1052_v40 = vmul.f32 %v13928_v10, %v13837_v4 }
 0x116   : > { %v1661_v34 = vpop.f32.mrf.mxu0  ;;  %v2146_v48 = vpop.f32.mrf.mxu1  ;;  %v1537_v46 = vmul.f32 %v13930_v60, %v13839_v5  ;;  %v1051_v4 = vmul.f32 %v13820_v55, %v13936_v7  ;;  %v1054_v60 = vmul.f32 %v13946_v35, %v13913_v24  ;;  %v1539_v35 = vmul.f32 %v13948_v59, %v13915_v25  ;;  %v17638_v24 = vld [vmem:[#allocation24_spill] sm:$0xff] }
 0x117   : > { %v2046_v0 = vadd.f32 %v2014_v13, %v1561_v36  ;;  %v2013_v1 = vmul.f32 %v13511_v50, %v1661_v34  ;;  %v2498_v41 = vmul.f32 %v13536_v58, %v2146_v48  ;;  %v17639_v7 = vld [vmem:[#allocation16_spill] sm:$0xff]  ;;  %v17641_v34 = vld [vmem:[#allocation6_spill] sm:$0xff] }
 0x118   : > { %v11792_v61 = vpop.f32.mrf.mxu0  ;;  %v11844_v27 = vpop.f32.mrf.mxu1 }
 0x119   : > { %v2531_v50 = vadd.f32 %v2499_v49, %v2046_v0  ;;  %v2045_v6 = vadd.f32 %v2013_v1, %v1560_v15  ;;  %v2016_v9 = vmul.f32 %v11792_v61, %v13717_v2  ;;  %v14196_v38 = vpop.permute.xlu0 %2410  ;;  %v14198_v42 = vpop.permute.xlu1 %2715  ;;  %1030 = vperm.xlu0 %12834, %v880_v39   ;;  %v2501_v57 = vmul.f32 %v11844_v27, %v13762_v21  ;;  %v17642_v49 = vld [vmem:[#allocation4_spill] sm:$0xff] }
 0x11a   : > { %1515 = vperm.xlu1 %12835, %v10178_v16   ;;  %v1671_v58 = vpop.f32.mrf.mxu0  ;;  %v2156_v2 = vpop.f32.mrf.mxu1  ;;  %v1536_v21 = vmul.f32 %v13818_v52, %v13938_v47  ;;  %v17636_v47 = vld [vmem:[#allocation23_spill] sm:$0xff]  ;;  %v1538_v15 = vmul.f32 %v17639_v7, %v17638_v24  ;;  %v10244_v16 = vld [vmem:[%s17511_s2 + $0x2e8] sm:$0xff]  ;;  %v1566_v61 = vadd.f32 %v1534_v31, %v1049_v8  ;;  %v1569_v27 = vadd.f32 %v1537_v46, %v1052_v40 }
 0x11b   : > { %v2570_v17 = vadd.f32 %v14192_v32, %v2531_v50  ;;  %v2530_v18 = vadd.f32 %v2498_v41, %v2045_v6  ;;  %v2048_v28 = vadd.f32 %v2016_v9, %v1563_v12  ;;  %v2015_v30 = vmul.f32 %v13719_v3, %v1671_v58  ;;  %v17640_v12 = vld [vmem:[#allocation12_spill] sm:$0xff]  ;;  %v17643_v6 = vld [vmem:[#allocation10_spill] sm:$0xff]  ;;  %v17644_v41 = vld [vmem:[#allocation5_spill] sm:$0xff] }
 0x11c   : > { %v2500_v5 = vmul.f32 %v13752_v14, %v2156_v2  ;;  %v11795_v10 = vpop.f32.mrf.mxu0  ;;  %v11847_v54 = vpop.f32.mrf.mxu1  ;;  %v17637_v14 = vld [vmem:[#allocation15_spill] sm:$0xff]  ;;  %v14246_v50 = vadd.f32 %v1536_v21, %v1051_v4 }
 0x11d   : > { %2604 = vst.msk [vmem:[#allocation2 + $0x21] sm:$0xff] %vm2602_vm3, %v2570_v17  ;;  %v2569_v29 = vadd.f32 %v14192_v32, %v2530_v18  ;;  %v2533_v53 = vadd.f32 %v2501_v57, %v2048_v28  ;;  %v2047_v3 = vadd.f32 %v2015_v30, %v1562_v51  ;;  %v2018_v36 = vmul.f32 %v11795_v10, %v13770_v26  ;;  %v14223_v13 = vpop.permute.xlu0 %970  ;;  %v14225_v55 = vpop.permute.xlu1 %1455  ;;  %v10243_v51 = vld [vmem:[%s17511_s2 + $0x2e0] sm:$0xff]  ;;  %v17645_v31 = vld [vmem:[#allocation7_spill] sm:$0xff] }
 0x11e   : > { %2475 = vperm.xlu0 %12834, %v10308_v62   ;;  %v1053_v52 = vmul.f32 %v17637_v14, %v17636_v47  ;;  %2797 = vst.msk [vmem:[#allocation2 + $0x21] sm:$0xff] %vm2795_vm4, %v17640_v12  ;;  %v2503_v48 = vmul.f32 %v11847_v54, %v17641_v34  ;;  %2741 = vrot.lane.b32.xlu1 %v2656_v43, %s12847_s30  ;;  %v1681_v26 = vpop.f32.mrf.mxu0  ;;  %v2166_v39 = vpop.f32.mrf.mxu1  ;;  %v17646_v30 = vld [vmem:[#allocation20_spill] sm:$0xff]  ;;  %v17647_v43 = vld [vmem:[#allocation11_spill] sm:$0xff]  ;;  %v17651_v14 = vld [vmem:[#allocation30_spill] sm:$0xff] }
 0x11f   : > { %2603 = vst.msk [vmem:[#allocation2 + $0x19] sm:$0xff] %vm2602_vm3, %v2569_v29  ;;  %v2572_v59 = vadd.f32 %v14192_v32, %v2533_v53  ;;  %v2532_v25 = vadd.f32 %v2500_v5, %v2047_v3  ;;  %v2050_v0 = vadd.f32 %v2018_v36, %v1565_v19  ;;  %v2017_v1 = vmul.f32 %v17642_v49, %v1681_v26  ;;  %v10380_v19 = vld [vmem:[%s17514_s5 + $0x20] sm:$0xff]  ;;  %v2657_v3 = vld [vmem:[%s13247_s28 + $0xb0] sm:$0xff]  ;;  %v17649_v36 = vld [vmem:[#allocation29_spill] sm:$0xff] }
 0x120   : > { %2796 = vst.msk [vmem:[#allocation2 + $0x19] sm:$0xff] %vm2795_vm4, %v17643_v6  ;;  %v2502_v9 = vmul.f32 %v17644_v41, %v2166_v39  ;;  %v11798_v57 = vpop.f32.mrf.mxu0  ;;  %v11850_v58 = vpop.f32.mrf.mxu1  ;;  %v14262_v18 = vadd.f32 %v1539_v35, %v1054_v60  ;;  %v14264_v28 = vadd.f32 %v1538_v15, %v1053_v52  ;;  %v10309_v5 = vld [vmem:[%s17511_s2 + $0x3e0] sm:$0xff]  ;;  %11993 = vmatprep.subr.mxu0 %v10380_v19  ;;  %v17650_v35 = vld [vmem:[#allocation27_spill] sm:$0xff]  ;;  %v17654_v15 = vld [vmem:[#allocation25_spill] sm:$0xff] }
 0x121   : > { %2606 = vst.msk [vmem:[#allocation2 + $0x39] sm:$0xff] %vm2602_vm3, %v2572_v59  ;;  %v2571_v2 = vadd.f32 %v14192_v32, %v2532_v25  ;;  %v2535_v62 = vadd.f32 %v2503_v48, %v2050_v0  ;;  %v2049_v8 = vadd.f32 %v2017_v1, %v14183_v23  ;;  %v2020_v40 = vmul.f32 %v11798_v57, %v17645_v31  ;;  %v14258_v46 = vpop.permute.xlu0 %2415  ;;  %v14260_v17 = vpop.permute.xlu1 %2717  ;;  %v17648_v29 = vld [vmem:[#allocation8_spill] sm:$0xff]  ;;  %v17653_v7 = vld [vmem:[#allocation39_spill] sm:$0xff]  ;;  %v17655_v34 = vld [vmem:[#allocation18_spill] sm:$0xff] }
 0x122   : > { %1995 = vperm.xlu0 %12834, %v10243_v51   ;;  %2799 = vst.msk [vmem:[#allocation2 + $0x39] sm:$0xff] %vm2795_vm4, %v17646_v30  ;;  %v2505_v4 = vmul.f32 %v11850_v58, %v17647_v43  ;;  %2000 = vperm.xlu1 %12835, %v10244_v16   ;;  %v1691_v21 = vpop.f32.mrf.mxu0  ;;  %v2176_v23 = vpop.f32.mrf.mxu1  ;;  %v1055_v47 = vmul.f32 %v17650_v35, %v17649_v36  ;;  %v17652_v52 = vld [vmem:[#allocation28_spill] sm:$0xff]  ;;  %v17656_v48 = vld [vmem:[#allocation9_spill] sm:$0xff]  ;;  %v17657_v0 = vld [vmem:[#allocation14_spill] sm:$0xff] }
 0x123   : > { %2605 = vst.msk [vmem:[#allocation2 + $0x31] sm:$0xff] %vm2602_vm3, %v2571_v2  ;;  %v2574_v60 = vadd.f32 %v14192_v32, %v2535_v62  ;;  %v2534_v10 = vadd.f32 %v2502_v9, %v2049_v8  ;;  %v2052_v54 = vadd.f32 %v2020_v40, %v14185_v33  ;;  %v2019_v53 = vmul.f32 %v17648_v29, %v1691_v21  ;;  %v17658_v6 = vld [vmem:[#allocation40_spill] sm:$0xff]  ;;  %v17659_v41 = vld [vmem:[#allocation26_spill] sm:$0xff]  ;;  %v17660_v57 = vld [vmem:[#allocation35_spill] sm:$0xff] }
 0x124   : > { %11994 = vmatpush3.msra.mxu0 %v10380_v19  ;;  %v1540_v24 = vmul.f32 %v17652_v52, %v17651_v14  ;;  %v1056_v12 = vmul.f32 %v17654_v15, %v17653_v7  ;;  %2798 = vst.msk [vmem:[#allocation2 + $0x31] sm:$0xff] %vm2795_vm4, %v17655_v34  ;;  %v2504_v26 = vmul.f32 %v17656_v48, %v2176_v23  ;;  %v11801_v39 = vpop.f32.mrf.mxu0  ;;  %v11853_v33 = vpop.f32.mrf.mxu1  ;;  %v17661_v58 = vld [vmem:[#allocation57_spill] sm:$0xff]  ;;  %v17662_v2 = vld [vmem:[#allocation36_spill] sm:$0xff]  ;;  %v17663_v62 = vld [vmem:[#allocation58_spill] sm:$0xff] }
 0x125   : > { %2608 = vst.msk [vmem:[#allocation2 + $0x51] sm:$0xff] %vm2602_vm3, %v2574_v60  ;;  %v2573_v51 = vadd.f32 %v14192_v32, %v2534_v10  ;;  %v2537_v59 = vadd.f32 %v2505_v4, %v2052_v54  ;;  %v2051_v25 = vadd.f32 %v2019_v53, %v1566_v61  ;;  %v2022_v49 = vmul.f32 %v11801_v39, %v17657_v0  ;;  %v14289_v1 = vpop.permute.xlu0 %1935  ;;  %v14291_v16 = vpop.permute.xlu1 %1940  ;;  %v17664_v31 = vld [vmem:[#allocation46_spill] sm:$0xff]  ;;  %v17665_v61 = vld [vmem:[#allocation19_spill] sm:$0xff]  ;;  %v10310_v4 = vld [vmem:[%s17511_s2 + $0x3e8] sm:$0xff] }
 0x126   : > { %2480 = vperm.xlu0 %12834, %v10309_v5   ;;  %v1541_v9 = vmul.f32 %v17659_v41, %v17658_v6  ;;  %v1057_v19 = vmul.f32 %v17661_v58, %v17660_v57  ;;  %v1542_v8 = vmul.f32 %v17663_v62, %v17662_v2  ;;  %2801 = vst.msk [vmem:[#allocation2 + $0x51] sm:$0xff] %vm2795_vm4, %v17664_v31  ;;  %v1701_v30 = vpop.f32.mrf.mxu0  ;;  %v2186_v43 = vpop.f32.mrf.mxu1  ;;  %v17666_v60 = vld [vmem:[#allocation13_spill] sm:$0xff]  ;;  %v17668_v35 = vld [vmem:[#allocation32_spill] sm:$0xff]  ;;  %v17669_v52 = vld [vmem:[#allocation34_spill] sm:$0xff] }
 0x127   : > { %v2507_v40 = vmul.f32 %v11853_v33, %v17665_v61  ;;  %2743 = vrot.lane.b32.xlu1 %v2657_v3, %s12847_s30  ;;  %2607 = vst.msk [vmem:[#allocation2 + $0x49] sm:$0xff] %vm2602_vm3, %v2573_v51  ;;  %v2576_v21 = vadd.f32 %v14192_v32, %v2537_v59  ;;  %v2536_v23 = vadd.f32 %v2504_v26, %v2051_v25  ;;  %v2864_v54 = vld [vmem:[#allocation2 + $0x19] sm:$0xff]  ;;  %v17670_v7 = vld [vmem:[#allocation17_spill] sm:$0xff]  ;;  %v17671_v33 = vld [vmem:[#allocation22_spill] sm:$0xff] }
 0x128   : > { %v2054_v5 = vadd.f32 %v2022_v49, %v1569_v27  ;;  %v2021_v10 = vmul.f32 %v17666_v60, %v1701_v30  ;;  %v14309_v29 = vld [vmem:[#allocation2 + $0x18] sm:$0xff]  ;;  %v14311_v53 = vld [vmem:[#allocation2 + $0x20] sm:$0xff]  ;;  %v1543_v14 = vmul.f32 %v17668_v35, %v14094_v11  ;;  %2800 = vst.msk [vmem:[#allocation2 + $0x49] sm:$0xff] %vm2795_vm4, %v17669_v52  ;;  %v2506_v15 = vmul.f32 %v17670_v7, %v2186_v43  ;;  %v11804_v34 = vpop.f32.mrf.mxu0  ;;  %v11856_v27 = vpop.f32.mrf.mxu1  ;;  %v17672_v6 = vld [vmem:[#allocation74_spill] sm:$0xff] }
 0x129   : > { %v17667_v3 = vld [vmem:[#allocation31_spill] sm:$0xff]  ;;  %11894 = vmatprep.mubr.msk.f32.mxu0 %vm407_vm0, %v2864_v54  ;;  %11946 = vmatprep.mubr.msk.f32.mxu1 %vm407_vm0, %v14309_v29  ;;  %v2865_v48 = vld [vmem:[#allocation2 + $0x21] sm:$0xff]  ;;  %2610 = vst.msk [vmem:[#allocation2 + $0x69] sm:$0xff] %vm2602_vm3, %v2576_v21  ;;  %v2024_v51 = vmul.f32 %v11804_v34, %v17671_v33  ;;  %v14328_v59 = vpop.permute.xlu0 %975  ;;  %v14330_v25 = vpop.permute.xlu1 %1460  ;;  %v14333_v0 = vadd.f32 %v1540_v24, %v1055_v47 }
 0x12a   : > { %v1058_v36 = vmul.f32 %v17667_v3, %v14092_v63  ;;  %v2658_v26 = vld [vmem:[%s13247_s28 + $0xb8] sm:$0xff]  ;;  %v2575_v63 = vadd.f32 %v14192_v32, %v2536_v23  ;;  %v2539_v11 = vadd.f32 %v2507_v40, %v2054_v5  ;;  %v2053_v39 = vadd.f32 %v2021_v10, %v14246_v50  ;;  %11895 = vmatmul.mubr.msk.f32.gmra.mxu0 %vm407_vm0, %v2865_v48  ;;  %v17673_v41 = vld [vmem:[#allocation45_spill] sm:$0xff]  ;;  %v1711_v50 = vpop.f32.mrf.mxu0  ;;  %v2196_v58 = vpop.f32.mrf.mxu1  ;;  %v2659_v2 = vld [vmem:[%s13247_s28 + $0xc0] sm:$0xff] }
 0x12b   : > { %v1573_v49 = vadd.f32 %v1541_v9, %v1056_v12  ;;  %2803 = vst.msk [vmem:[#allocation2 + $0x69] sm:$0xff] %vm2795_vm4, %v17672_v6  ;;  %v2509_v57 = vmul.f32 %v11856_v27, %v17673_v41  ;;  %11947 = vmatmul.mubr.msk.f32.gmra.mxu1 %vm407_vm0, %v14311_v53  ;;  %2485 = vperm.xlu0 %12834, %v10310_v4   ;;  %v17674_v24 = vld [vmem:[#allocation21_spill] sm:$0xff]  ;;  %v2866_v9 = vld [vmem:[#allocation2 + $0x31] sm:$0xff]  ;;  %v17675_v4 = vld [vmem:[#allocation64_spill] sm:$0xff] }
 0x12c   : > { %2609 = vst.msk [vmem:[#allocation2 + $0x61] sm:$0xff] %vm2602_vm3, %v2575_v63  ;;  %v2578_v62 = vadd.f32 %v14192_v32, %v2539_v11  ;;  %v2538_v31 = vadd.f32 %v2506_v15, %v2053_v39  ;;  %v2056_v47 = vadd.f32 %v2024_v51, %v14262_v18  ;;  %2745 = vrot.lane.b32.xlu1 %v2658_v26, %s12847_s30  ;;  %v14346_v61 = vld [vmem:[#allocation2 + $0x30] sm:$0xff]  ;;  %v14348_v40 = vld [vmem:[#allocation2 + $0x38] sm:$0xff]  ;;  %v17676_v21 = vld [vmem:[#allocation33_spill] sm:$0xff]  ;;  %v11807_v5 = vpop.f32.mrf.mxu0  ;;  %v11859_v18 = vpop.f32.mrf.mxu1 }
 0x12d   : > { %v2023_v12 = vmul.f32 %v17674_v24, %v1711_v50  ;;  %v14350_v30 = vadd.f32 %v1542_v8, %v1057_v19  ;;  %v14352_v43 = vadd.f32 %v1543_v14, %v1058_v36  ;;  %2802 = vst.msk [vmem:[#allocation2 + $0x61] sm:$0xff] %vm2795_vm4, %v17675_v4  ;;  %v2508_v23 = vmul.f32 %v17676_v21, %v2196_v58  ;;  %v2867_v60 = vld [vmem:[#allocation2 + $0x39] sm:$0xff]  ;;  %v2660_v10 = vld [vmem:[%s13247_s28 + $0xc8] sm:$0xff]  ;;  %v14365_v35 = vpop.permute.xlu0 %2420  ;;  %v2720_v14 = vpop.permute.xlu1 %2719  ;;  %v17679_v15 = vld [vmem:[#allocation42_spill] sm:$0xff] }
 0x12e   : > { %11897 = vmatprep.mubr.msk.f32.mxu0 %vm407_vm0, %v2866_v9  ;;  %11949 = vmatprep.mubr.msk.f32.mxu1 %vm407_vm0, %v14346_v61  ;;  %2612 = vst.msk [vmem:[#allocation2 + $0x81] sm:$0xff] %vm2602_vm3, %v2578_v62  ;;  %v2577_v19 = vadd.f32 %v14192_v32, %v2538_v31  ;;  %v2541_v8 = vadd.f32 %v2509_v57, %v2056_v47  ;;  %v17677_v3 = vld [vmem:[#allocation52_spill] sm:$0xff]  ;;  %v17678_v52 = vld [vmem:[#allocation41_spill] sm:$0xff]  ;;  %v1721_v48 = vpop.f32.mrf.mxu0  ;;  %v2206_v26 = vpop.f32.mrf.mxu1  ;;  %v2661_v63 = vld [vmem:[%s13247_s28 + $0xd0] sm:$0xff] }
 0x12f   : > { %v2055_v54 = vadd.f32 %v2023_v12, %v14264_v28  ;;  %v2026_v36 = vmul.f32 %v11807_v5, %v17677_v3  ;;  %11898 = vmatmul.mubr.msk.f32.gmra.mxu0 %vm407_vm0, %v2867_v60  ;;  %v14370_v7 = vmul.f32 %v14170_v37, %v17678_v52  ;;  %v14374_v34 = vmul.f32 %v14172_v22, %v17679_v15  ;;  %v17680_v27 = vld [vmem:[#allocation73_spill] sm:$0xff]  ;;  %v14389_v6 = vld [vmem:[#allocation2 + $0x50] sm:$0xff]  ;;  %v2662_v24 = vld [vmem:[%s13247_s28 + $0xd8] sm:$0xff] }
 0x130   : > { %2805 = vst.msk [vmem:[#allocation2 + $0x81] sm:$0xff] %vm2795_vm4, %v14260_v17  ;;  %v2511_v28 = vmul.f32 %v11859_v18, %v17680_v27  ;;  %11950 = vmatmul.mubr.msk.f32.gmra.mxu1 %vm407_vm0, %v14348_v40  ;;  %2747 = vrot.lane.b32.xlu0 %v2659_v2, %s12847_s30  ;;  %v2580_v37 = vadd.f32 %v14192_v32, %v2541_v8  ;;  %v17681_v17 = vld [vmem:[#allocation51_spill] sm:$0xff]  ;;  %v2868_v33 = vld [vmem:[#allocation2 + $0x49] sm:$0xff]  ;;  %v11810_v62 = vpop.f32.mrf.mxu0  ;;  %v11862_v31 = vpop.f32.mrf.mxu1  ;;  %v17686_v18 = vld [vmem:[#allocation44_spill] sm:$0xff] }
 0x131   : > { %2611 = vst.msk [vmem:[#allocation2 + $0x79] sm:$0xff] %vm2602_vm3, %v2577_v19  ;;  %v2540_v11 = vadd.f32 %v2508_v23, %v2055_v54  ;;  %v2058_v22 = vadd.f32 %v2026_v36, %v1573_v49  ;;  %2749 = vrot.lane.b32.xlu1 %v2660_v10, %s12847_s30  ;;  %v2025_v39 = vmul.f32 %v17681_v17, %v1721_v48  ;;  %v14387_v51 = vld [vmem:[#allocation2 + $0x48] sm:$0xff]  ;;  %v17683_v50 = vld [vmem:[#allocation38_spill] sm:$0xff]  ;;  %v17684_v2 = vld [vmem:[#allocation63_spill] sm:$0xff]  ;;  %v981_v9 = vpop.permute.xlu0 %980  ;;  %v1466_v4 = vpop.permute.xlu1 %1465 }
 0x132   : > { %v17682_v41 = vld [vmem:[#allocation37_spill] sm:$0xff]  ;;  %v1545_v58 = vmul.f32 %v17683_v50, %v14225_v55  ;;  %2804 = vst.msk [vmem:[#allocation2 + $0x79] sm:$0xff] %vm2795_vm4, %v14198_v42  ;;  %v2510_v49 = vmul.f32 %v17684_v2, %v2206_v26  ;;  %11900 = vmatprep.mubr.msk.f32.mxu0 %vm407_vm0, %v2868_v33  ;;  %11952 = vmatprep.mubr.msk.f32.mxu1 %vm407_vm0, %v14387_v51  ;;  %v2869_v47 = vld [vmem:[#allocation2 + $0x51] sm:$0xff]  ;;  %v1731_v10 = vpop.f32.mrf.mxu0  ;;  %v2216_v19 = vpop.f32.mrf.mxu1 }
 0x133   : > { %v1060_v57 = vmul.f32 %v17682_v41, %v14223_v13  ;;  %2614 = vst.msk [vmem:[#allocation2 + $0x99] sm:$0xff] %vm2602_vm3, %v2580_v37  ;;  %v2579_v13 = vadd.f32 %v14192_v32, %v2540_v11  ;;  %v2543_v55 = vadd.f32 %v2511_v28, %v2058_v22  ;;  %v2057_v12 = vadd.f32 %v2025_v39, %v14333_v0  ;;  %v17685_v23 = vld [vmem:[#allocation43_spill] sm:$0xff]  ;;  %v2663_v0 = vld [vmem:[%s13247_s28 + $0xe0] sm:$0xff] }
 0x134   : > { %v2028_v42 = vmul.f32 %v11810_v62, %v14135_v44  ;;  %11901 = vmatmul.mubr.msk.f32.gmra.mxu0 %vm407_vm0, %v2869_v47  ;;  %v2513_v21 = vmul.f32 %v11862_v31, %v14258_v46  ;;  %v1062_v5 = vmul.f32 %v17685_v23, %v981_v9  ;;  %v1547_v60 = vmul.f32 %v17686_v18, %v1466_v4  ;;  %v2870_v3 = vld [vmem:[#allocation2 + $0x61] sm:$0xff]  ;;  %v11813_v48 = vpop.f32.mrf.mxu0  ;;  %v11865_v26 = vpop.f32.mrf.mxu1  ;;  %v10179_v31 = vld [vmem:[%s17511_s2 + $0x1f0] sm:$0xff]  ;;  %v10415_v18 = vld [vmem:[%s17514_s5 + $0x38] sm:$0xff] }
 0x135   : > { %11953 = vmatmul.mubr.msk.f32.gmra.mxu1 %vm407_vm0, %v14389_v6  ;;  %2751 = vrot.lane.b32.xlu0 %v2661_v63, %s12847_s30  ;;  %2613 = vst.msk [vmem:[#allocation2 + $0x91] sm:$0xff] %vm2602_vm3, %v2579_v13  ;;  %v2582_v44 = vadd.f32 %v14192_v32, %v2543_v55  ;;  %v2542_v8 = vadd.f32 %v2510_v49, %v2057_v12  ;;  %v14419_v36 = vld [vmem:[#allocation2 + $0x60] sm:$0xff]  ;;  %v14421_v52 = vld [vmem:[#allocation2 + $0x68] sm:$0xff]  ;;  %v2426_v22 = vpop.permute.xlu0 %2425 }
 0x136   : > { %v2060_v46 = vadd.f32 %v2028_v42, %v14352_v43  ;;  %2753 = vrot.lane.b32.xlu1 %v2662_v24, %s12847_s30  ;;  %v2027_v54 = vmul.f32 %v14133_v56, %v1731_v10  ;;  %v1577_v15 = vadd.f32 %v1545_v58, %v1060_v57  ;;  %2806 = vst.msk [vmem:[#allocation2 + $0x91] sm:$0xff] %vm2795_vm4, %v2720_v14  ;;  %v2871_v56 = vld [vmem:[#allocation2 + $0x69] sm:$0xff]  ;;  %v1741_v33 = vpop.f32.mrf.mxu0  ;;  %v2226_v41 = vpop.f32.mrf.mxu1  ;;  %v882_v42 = vld [vmem:[%s17511_s2 + $0xf8] sm:$0xff] }
 0x137   : > { %v14424_v27 = vadd.f32 %v1547_v60, %v1062_v5  ;;  %v2512_v28 = vmul.f32 %v14196_v38, %v2216_v19  ;;  %11903 = vmatprep.mubr.msk.f32.mxu0 %vm407_vm0, %v2870_v3  ;;  %11955 = vmatprep.mubr.msk.f32.mxu1 %vm407_vm0, %v14419_v36  ;;  %v2664_v43 = vld [vmem:[%s13247_s28 + $0xe8] sm:$0xff]  ;;  %2616 = vst.msk [vmem:[#allocation2 + $0xb1] sm:$0xff] %vm2602_vm3, %v2582_v44  ;;  %v2722_v38 = vpop.permute.xlu1 %2721  ;;  %v17687_v60 = vld [vmem:[#allocation47_spill] sm:$0xff]  ;;  %v17688_v19 = vld [vmem:[#allocation48_spill] sm:$0xff] }
 0x138   : > { %v2581_v63 = vadd.f32 %v14192_v32, %v2542_v8  ;;  %v2545_v37 = vadd.f32 %v2513_v21, %v2060_v46  ;;  %v2059_v14 = vadd.f32 %v2027_v54, %v14350_v30  ;;  %v2030_v11 = vmul.f32 %v11813_v48, %v14291_v16  ;;  %11904 = vmatmul.mubr.msk.f32.gmra.mxu0 %vm407_vm0, %v2871_v56  ;;  %v881_v16 = vld [vmem:[%s17511_s2 + $0xf0] sm:$0xff]  ;;  %v14453_v49 = vpop.f32.mrf.mxu0  ;;  %v2873_v62 = vld [vmem:[#allocation2 + $0x81] sm:$0xff]  ;;  %v11868_v5 = vpop.f32.mrf.mxu1  ;;  %v10180_v44 = vld [vmem:[%s17511_s2 + $0x1f8] sm:$0xff] }
 0x139   : > { %v1576_v17 = vadd.f32 %v14374_v34, %v14370_v7  ;;  %v2515_v39 = vmul.f32 %v11865_v26, %v2426_v22  ;;  %2807 = vst.msk [vmem:[#allocation2 + $0x99] sm:$0xff] %vm2795_vm4, %v2722_v38  ;;  %11956 = vmatmul.mubr.msk.f32.gmra.mxu1 %vm407_vm0, %v14421_v52  ;;  %2755 = vrot.lane.b32.xlu0 %v2663_v0, %s12847_s30  ;;  %v2872_v50 = vld [vmem:[#allocation2 + $0x79] sm:$0xff]  ;;  %v1946_v55 = vpop.permute.xlu0 %1945  ;;  %v10245_v48 = vld [vmem:[%s17511_s2 + $0x2f0] sm:$0xff] }
 0x13a   : > { %2615 = vst.msk [vmem:[#allocation2 + $0xa9] sm:$0xff] %vm2602_vm3, %v2581_v63  ;;  %v2584_v30 = vadd.f32 %v14192_v32, %v2545_v37  ;;  %v2544_v57 = vadd.f32 %v2512_v28, %v2059_v14  ;;  %v2062_v7 = vadd.f32 %v2030_v11, %v1577_v15  ;;  %2757 = vrot.lane.b32.xlu1 %v2664_v43, %s12847_s30  ;;  %v14449_v58 = vld [vmem:[#allocation2 + $0x78] sm:$0xff]  ;;  %v14451_v2 = vld [vmem:[#allocation2 + $0x80] sm:$0xff]  ;;  %v1751_v21 = vpop.f32.mrf.mxu0  ;;  %v10414_v15 = vld [vmem:[%s17514_s5 + $0x30] sm:$0xff]  ;;  %v2236_v28 = vpop.f32.mrf.mxu1 }
 0x13b   : > { %v2029_v34 = vmul.f32 %v14289_v1, %v1741_v33  ;;  %11906 = vmatprep.mubr.msk.f32.mxu0 %vm407_vm0, %v2872_v50  ;;  %11958 = vmatprep.mubr.msk.f32.mxu1 %vm407_vm0, %v14449_v58  ;;  %v2514_v13 = vmul.f32 %v14365_v35, %v2226_v41  ;;  %v1951_v12 = vpop.permute.xlu1 %1950  ;;  %v1061_v10 = vmul.f32 %v14328_v59, %v17687_v60  ;;  %v10246_v56 = vld [vmem:[%s17511_s2 + $0x2f8] sm:$0xff]  ;;  %v14511_v37 = vld [vmem:[%s17514_s5 + $0x48] sm:$0xff]  ;;  %v10311_v22 = vld [vmem:[%s17511_s2 + $0x3f0] sm:$0xff] }
 0x13c   : > { %2618 = vst.msk [vmem:[#allocation2 + $0xc9] sm:$0xff] %vm2602_vm3, %v2584_v30  ;;  %v2583_v1 = vadd.f32 %v14192_v32, %v2544_v57  ;;  %v2547_v47 = vadd.f32 %v2515_v39, %v2062_v7  ;;  %11907 = vmatmul.mubr.msk.f32.gmra.mxu0 %vm407_vm0, %v2873_v62  ;;  %v1546_v0 = vmul.f32 %v14330_v25, %v17688_v19  ;;  %v11819_v39 = vpop.f32.mrf.mxu0  ;;  %v14521_v33 = vpop.f32.mrf.mxu1  ;;  %v2665_v50 = vld [vmem:[%s13247_s28 + $0xf0] sm:$0xff]  ;;  %v2666_v62 = vld [vmem:[%s13247_s28 + $0xf8] sm:$0xff] }
 0x13d   : > { %v2061_v24 = vadd.f32 %v2029_v34, %v1576_v17  ;;  %11959 = vmatmul.mubr.msk.f32.gmra.mxu1 %vm407_vm0, %v14451_v2  ;;  %1035 = vperm.xlu0 %12834, %v881_v16   ;;  %v2874_v35 = vld [vmem:[#allocation2 + $0x91] sm:$0xff]  ;;  %v14489_v46 = vpop.permute.xlu0 %985  ;;  %v2031_v25 = vmul.f32 %v1946_v55, %v1751_v21  ;;  %v2032_v30 = vmul.f32 %v14453_v49, %v1951_v12 }
 0x13e   : > { %2617 = vst.msk [vmem:[#allocation2 + $0xc1] sm:$0xff] %vm2602_vm3, %v2583_v1  ;;  %v2586_v9 = vadd.f32 %v14192_v32, %v2547_v47  ;;  %1520 = vperm.xlu1 %12835, %v10179_v31   ;;  %v14472_v23 = vld [vmem:[#allocation2 + $0x90] sm:$0xff]  ;;  %11909 = vmatprep.mubr.msk.f32.mxu0 %vm407_vm0, %v2874_v35  ;;  %v1578_v26 = vadd.f32 %v1546_v0, %v1061_v10  ;;  %v10312_v17 = vld [vmem:[%s17511_s2 + $0x3f8] sm:$0xff]  ;;  %v1761_v7 = vpop.f32.mrf.mxu0  ;;  %v2246_v34 = vpop.f32.mrf.mxu1 }
 0x13f   : > { %v2546_v4 = vadd.f32 %v2514_v13, %v2061_v24  ;;  %11961 = vmatprep.mubr.msk.f32.mxu1 %vm407_vm0, %v14472_v23  ;;  %v14491_v54 = vpop.permute.xlu1 %1470  ;;  %12043 = vmatprep.subr.mxu1 %v10415_v18  ;;  %v2064_v13 = vadd.f32 %v2032_v30, %v14424_v27  ;;  %v17690_v60 = vld [vmem:[#allocation54_spill] sm:$0xff] }
 0x140   : > { %2620 = vst.msk [vmem:[#allocation2 + $0xe1] sm:$0xff] %vm2602_vm3, %v2586_v9  ;;  %v2875_v59 = vld [vmem:[#allocation2 + $0x99] sm:$0xff]  ;;  %12044 = vmatpush3.msra.mxu1 %v10415_v18  ;;  %v2063_v14 = vadd.f32 %v2031_v25, %v1578_v26  ;;  %12095 = vmatprep.subr.mxu0 %v14511_v37  ;;  %v14535_v49 = vpop.f32.mrf.mxu0  ;;  %v14537_v12 = vpop.f32.mrf.mxu1  ;;  %v1548_v10 = vmul.f32 %v14491_v54, %v17690_v60 }
 0x141   : > { %v2585_v8 = vadd.f32 %v14192_v32, %v2546_v4  ;;  %v14493_v3 = vld [vmem:[#allocation2 + $0x98] sm:$0xff]  ;;  %1040 = vperm.xlu0 %12834, %v882_v42   ;;  %11910 = vmatmul.mubr.msk.f32.gmra.mxu0 %vm407_vm0, %v2875_v59  ;;  %v2431_v43 = vpop.permute.xlu0 %2430 }
 0x142   : > { %1525 = vperm.xlu1 %12835, %v10180_v44   ;;  %11962 = vmatmul.mubr.msk.f32.gmra.mxu1 %vm407_vm0, %v14493_v3  ;;  %v2516_v11 = vmul.f32 %v2431_v43, %v2236_v28  ;;  %v1771_v21 = vpop.f32.mrf.mxu0  ;;  %v14542_v35 = vpop.f32.mrf.mxu1 }
 0x143   : > { %2619 = vst.msk [vmem:[#allocation2 + $0xd9] sm:$0xff] %vm2602_vm3, %v2585_v8  ;;  %v2724_v63 = vpop.permute.xlu1 %2723  ;;  %12045 = vmatprep.subr.mxu1 %v10414_v15 }
 0x144   : > { %2808 = vst.msk [vmem:[#allocation2 + $0xa9] sm:$0xff] %vm2795_vm4, %v2724_v63  ;;  %12046 = vmatpush3.msra.mxu1 %v10414_v15  ;;  %v2548_v38 = vadd.f32 %v2516_v11, %v2063_v14  ;;  %v14549_v19 = vpop.f32.mrf.mxu0  ;;  %v14551_v0 = vpop.f32.mrf.mxu1  ;;  %v17691_v11 = vld [vmem:[#allocation49_spill] sm:$0xff] }
 0x145   : > { %2005 = vperm.xlu0 %12834, %v10245_v48   ;;  %v991_v41 = vpop.permute.xlu0 %990 }
 0x146   : > { %2010 = vperm.xlu1 %12835, %v10246_v56   ;;  %v2587_v57 = vadd.f32 %v14192_v32, %v2548_v38  ;;  %v14558_v28 = vpop.f32.mrf.mxu0  ;;  %v14560_v54 = vpop.f32.mrf.mxu1  ;;  %v17692_v38 = vld [vmem:[#allocation50_spill] sm:$0xff] }
 0x147   : > { %v1476_v16 = vpop.permute.xlu1 %1475 }
 0x148   : > { %2621 = vst.msk [vmem:[#allocation2 + $0xf1] sm:$0xff] %vm2602_vm3, %v2587_v57  ;;  %v14563_v63 = vpop.f32.mrf.mxu0  ;;  %v14565_v14 = vpop.f32.mrf.mxu1 }
 0x149   : > { %2490 = vperm.xlu0 %12834, %v10311_v22   ;;  %v2436_v31 = vpop.permute.xlu0 %2435  ;;  %v1064_v22 = vmul.f32 %v17691_v11, %v991_v41 }
 0x14a   : > { %2495 = vperm.xlu1 %12835, %v10312_v17   ;;  %v2517_v55 = vmul.f32 %v11868_v5, %v2436_v31  ;;  %v17689_v5 = vld [vmem:[#allocation53_spill] sm:$0xff]  ;;  %v1549_v17 = vmul.f32 %v17692_v38, %v1476_v16  ;;  %v14570_v31 = vpop.f32.mrf.mxu0 }
 0x14b   : > { %v2726_v1 = vpop.permute.xlu1 %2725  ;;  %v2876_v47 = vld [vmem:[#allocation2 + $0xa9] sm:$0xff]  ;;  %v1063_v18 = vmul.f32 %v14489_v46, %v17689_v5 }
 0x14c   : > { %v14528_v24 = vld [vmem:[#allocation2 + $0xa8] sm:$0xff]  ;;  %2809 = vst.msk [vmem:[#allocation2 + $0xb1] sm:$0xff] %vm2795_vm4, %v2726_v1  ;;  %11912 = vmatprep.mubr.msk.f32.mxu0 %vm407_vm0, %v2876_v47  ;;  %v2549_v42 = vadd.f32 %v2517_v55, %v2064_v13  ;;  %v14572_v1 = vpop.f32.mrf.mxu1  ;;  %v1581_v47 = vadd.f32 %v1549_v17, %v1064_v22 }
 0x14d   : > { %11964 = vmatprep.mubr.msk.f32.mxu1 %vm407_vm0, %v14528_v24  ;;  %2759 = vrot.lane.b32.xlu0 %v2665_v50, %s12847_s30  ;;  %v1956_v9 = vpop.permute.xlu0 %1955  ;;  %v1580_v46 = vadd.f32 %v1548_v10, %v1063_v18 }
 0x14e   : > { %2761 = vrot.lane.b32.xlu1 %v2666_v62, %s12847_s30  ;;  %v2588_v27 = vadd.f32 %v14192_v32, %v2549_v42  ;;  %v2033_v15 = vmul.f32 %v1956_v9, %v1761_v7  ;;  %v14577_v13 = vpop.f32.mrf.mxu1  ;;  %s406_s30 = scalar_lea.vmem %s17520_s11, %s10930_s16 }
 0x14f   : > { %v1961_v4 = vpop.permute.xlu1 %1960 }
 0x150   : > { %2622 = vst.msk [vmem:[#allocation2 + $0xf9] sm:$0xff] %vm2602_vm3, %v2588_v27  ;;  %v2065_v56 = vadd.f32 %v2033_v15, %v1580_v46  ;;  %v2034_v50 = vmul.f32 %v11819_v39, %v1961_v4  ;;  %v14591_v5 = vpop.f32.mrf.mxu1  ;;  %v17693_v15 = vld [vmem:[#allocation59_spill] sm:$0xff] }
 0x151   : > { %v996_v44 = vpop.permute.xlu0 %995 }
 0x152   : > { %v2066_v39 = vadd.f32 %v2034_v50, %v1581_v47  ;;  %v1065_v46 = vmul.f32 %v996_v44, %v17693_v15 }
 0x153   : > { %v1481_v8 = vpop.permute.xlu1 %1480  ;;  %v2877_v59 = vld [vmem:[#allocation2 + $0xb1] sm:$0xff] }
 0x154   : > { %v14553_v25 = vld [vmem:[#allocation2 + $0xb0] sm:$0xff]  ;;  %11913 = vmatmul.mubr.msk.f32.gmra.mxu0 %vm407_vm0, %v2877_v59 }
 0x155   : > { %11965 = vmatmul.mubr.msk.f32.gmra.mxu1 %vm407_vm0, %v14553_v25  ;;  %v2441_v48 = vpop.permute.xlu0 %2440 }
 0x156   : > { %v2518_v43 = vmul.f32 %v2441_v48, %v2246_v34  ;;  %v14575_v34 = vpop.f32.mrf.mxu0  ;;  %v17694_v48 = vld [vmem:[#allocation60_spill] sm:$0xff] }
 0x157   : > { %v2728_v26 = vpop.permute.xlu1 %2727 }
 0x158   : > { %2810 = vst.msk [vmem:[#allocation2 + $0xc1] sm:$0xff] %vm2795_vm4, %v2728_v26  ;;  %v2550_v30 = vadd.f32 %v2518_v43, %v2065_v56  ;;  %v14589_v27 = vpop.f32.mrf.mxu0  ;;  %v1550_v26 = vmul.f32 %v1481_v8, %v17694_v48 }
 0x159   : > { %v1001_v57 = vpop.permute.xlu0 %1000 }
 0x15a   : > { %v2589_v62 = vadd.f32 %v14192_v32, %v2550_v30  ;;  %v14594_v59 = vpop.f32.mrf.mxu0  ;;  %v1582_v8 = vadd.f32 %v1550_v26, %v1065_v46 }
 0x15b   : > { %v1486_v7 = vpop.permute.xlu1 %1485 }
 0x15c   : > { %2623 = vst.msk [vmem:[#allocation2 + $0x109] sm:$0xff] %vm2602_vm3, %v2589_v62  ;;  %v14609_v17 = vpop.f32.mrf.mxu0 }
 0x15d   : > { %v2446_v41 = vpop.permute.xlu0 %2445 }
 0x15e   : > { %v2519_v9 = vmul.f32 %v14521_v33, %v2446_v41  ;;  %v14596_v33 = vpop.f32.mrf.mxu1  ;;  %v11893_v30 = vpop.f32.mrf.mxu0 }
 0x15f   : > { %v2730_v55 = vpop.permute.xlu1 %2729  ;;  %v14579_v16 = vld [vmem:[#allocation2 + $0xc1] sm:$0xff] }
 0x160   : > { %v14581_v42 = vld [vmem:[#allocation2 + $0xc0] sm:$0xff]  ;;  %2811 = vst.msk [vmem:[#allocation2 + $0xc9] sm:$0xff] %vm2795_vm4, %v2730_v55  ;;  %11915 = vmatprep.mubr.msk.f32.mxu0 %vm407_vm0, %v14579_v16  ;;  %v2551_v4 = vadd.f32 %v2519_v9, %v2066_v39  ;;  %v14611_v44 = vpop.f32.mrf.mxu1  ;;  %v17697_v39 = vld [vmem:[#allocation55_spill] sm:$0xff] }
 0x161   : > { %11967 = vmatprep.mubr.msk.f32.mxu1 %vm407_vm0, %v14581_v42  ;;  %v1966_v18 = vpop.permute.xlu0 %1965  ;;  %v1066_v9 = vmul.f32 %v17697_v39, %v1001_v57 }
 0x162   : > { %v2590_v10 = vadd.f32 %v14192_v32, %v2551_v4  ;;  %v2035_v38 = vmul.f32 %v1966_v18, %v1771_v21  ;;  %v11945_v50 = vpop.f32.mrf.mxu1  ;;  %v17698_v4 = vld [vmem:[#allocation56_spill] sm:$0xff] }
 0x163   : > { %v1971_v60 = vpop.permute.xlu1 %1970  ;;  %v14613_v41 = vadd.f32 %v11945_v50, %v11893_v30  ;;  %v1551_v18 = vmul.f32 %v17698_v4, %v1486_v7 }
 0x164   : > { %2624 = vst.msk [vmem:[#allocation2 + $0x111] sm:$0xff] %vm2602_vm3, %v2590_v10  ;;  %v2067_v55 = vadd.f32 %v2035_v38, %v1582_v8  ;;  %v2036_v46 = vmul.f32 %v14535_v49, %v1971_v60 }
 0x165   : > { %v1006_v56 = vpop.permute.xlu0 %1005  ;;  %17696 = vst [vmem:[#allocation15_spill] sm:$0xff] %v14613_v41 }
 0x167   : > { %v1491_v43 = vpop.permute.xlu1 %1490  ;;  %v14601_v11 = vld [vmem:[#allocation2 + $0xc9] sm:$0xff] }
 0x168   : > { %17695 = vst [vmem:[#allocation23_spill] sm:$0xff] %v14601_v11  ;;  %v14603_v22 = vld [vmem:[#allocation2 + $0xc8] sm:$0xff]  ;;  %11916 = vmatmul.mubr.msk.f32.gmra.mxu0 %vm407_vm0, %v14601_v11  ;;  %v1583_v11 = vadd.f32 %v1551_v18, %v1066_v9 }
 0x169   : > { %11968 = vmatmul.mubr.msk.f32.gmra.mxu1 %vm407_vm0, %v14603_v22  ;;  %v2451_v62 = vpop.permute.xlu0 %2450 }
 0x16a   : > { %v2520_v21 = vmul.f32 %v2451_v62, %v14542_v35  ;;  %v2068_v35 = vadd.f32 %v2036_v46, %v1583_v11 }
 0x16b   : > { %v2732_v47 = vpop.permute.xlu1 %2731 }
 0x16c   : > { %2812 = vst.msk [vmem:[#allocation2 + $0xd9] sm:$0xff] %vm2795_vm4, %v2732_v47  ;;  %v2552_v10 = vadd.f32 %v2520_v21, %v2067_v55  ;;  %v17699_v47 = vld [vmem:[#allocation65_spill] sm:$0xff]  ;;  %v17700_v21 = vld [vmem:[#allocation66_spill] sm:$0xff] }
 0x16d   : > { %v1011_v15 = vpop.permute.xlu0 %1010  ;;  %v1067_v55 = vmul.f32 %v1006_v56, %v17699_v47  ;;  %v1552_v39 = vmul.f32 %v1491_v43, %v17700_v21  ;;  %v14648_v56 = vld [vmem:[%s17514_s5 + $0x58] sm:$0xff] }
 0x16e   : > { %v2591_v26 = vadd.f32 %v14192_v32, %v2552_v10  ;;  %12147 = vmatprep.subr.mxu1 %v14648_v56 }
 0x16f   : > { %v1496_v48 = vpop.permute.xlu1 %1495  ;;  %v1584_v43 = vadd.f32 %v1552_v39, %v1067_v55 }
 0x170   : > { %2625 = vst.msk [vmem:[#allocation2 + $0x121] sm:$0xff] %vm2602_vm3, %v2591_v26 }
 0x171   : > { %v2456_v30 = vpop.permute.xlu0 %2455 }
 0x172   : > { %v2521_v57 = vmul.f32 %v14537_v12, %v2456_v30  ;;  %v17701_v30 = vld [vmem:[#allocation61_spill] sm:$0xff] }
 0x173   : > { %v2734_v38 = vpop.permute.xlu1 %2733  ;;  %v14622_v8 = vld [vmem:[#allocation2 + $0xd9] sm:$0xff] }
 0x174   : > { %v14624_v50 = vld [vmem:[#allocation2 + $0xd8] sm:$0xff]  ;;  %2813 = vst.msk [vmem:[#allocation2 + $0xe1] sm:$0xff] %vm2795_vm4, %v2734_v38  ;;  %11918 = vmatprep.mubr.msk.f32.mxu0 %vm407_vm0, %v14622_v8  ;;  %v2553_v49 = vadd.f32 %v2521_v57, %v2068_v35  ;;  %v1068_v38 = vmul.f32 %v17701_v30, %v1011_v15  ;;  %v17702_v35 = vld [vmem:[#allocation62_spill] sm:$0xff] }
 0x175   : > { %11970 = vmatprep.mubr.msk.f32.mxu1 %vm407_vm0, %v14624_v50  ;;  %v1976_v7 = vpop.permute.xlu0 %1975  ;;  %v1553_v57 = vmul.f32 %v17702_v35, %v1496_v48  ;;  %v17704_v30 = vld [vmem:[#allocation70_spill] sm:$0xff] }
 0x176   : > { %v2592_v62 = vadd.f32 %v14192_v32, %v2553_v49  ;;  %v2037_v18 = vmul.f32 %v1976_v7, %v14558_v28 }
 0x177   : > { %v1981_v60 = vpop.permute.xlu1 %1980  ;;  %v1585_v21 = vadd.f32 %v1553_v57, %v1068_v38 }
 0x178   : > { %2626 = vst.msk [vmem:[#allocation2 + $0x129] sm:$0xff] %vm2602_vm3, %v2592_v62  ;;  %v2069_v26 = vadd.f32 %v2037_v18, %v1584_v43  ;;  %v2038_v47 = vmul.f32 %v14549_v19, %v1981_v60 }
 0x179   : > { %v1016_v12 = vpop.permute.xlu0 %1015 }
 0x17b   : > { %v1501_v11 = vpop.permute.xlu1 %1500  ;;  %v14636_v9 = vld [vmem:[#allocation2 + $0xe1] sm:$0xff] }
 0x17c   : > { %v14638_v4 = vld [vmem:[#allocation2 + $0xe0] sm:$0xff]  ;;  %11919 = vmatmul.mubr.msk.f32.gmra.mxu0 %vm407_vm0, %v14636_v9  ;;  %v1554_v38 = vmul.f32 %v1501_v11, %v17704_v30 }
 0x17d   : > { %11971 = vmatmul.mubr.msk.f32.gmra.mxu1 %vm407_vm0, %v14638_v4  ;;  %v2461_v10 = vpop.permute.xlu0 %2460 }
 0x17e   : > { %v2522_v28 = vmul.f32 %v2461_v10, %v14560_v54  ;;  %v2070_v54 = vadd.f32 %v2038_v47, %v1585_v21 }
 0x17f   : > { %v2736_v46 = vpop.permute.xlu1 %2735 }
 0x180   : > { %2814 = vst.msk [vmem:[#allocation2 + $0xf1] sm:$0xff] %vm2795_vm4, %v2736_v46  ;;  %v2554_v49 = vadd.f32 %v2522_v28, %v2069_v26  ;;  %v17703_v26 = vld [vmem:[#allocation69_spill] sm:$0xff] }
 0x181   : > { %v1021_v7 = vpop.permute.xlu0 %1020  ;;  %v1069_v28 = vmul.f32 %v1016_v12, %v17703_v26 }
 0x182   : > { %v2593_v55 = vadd.f32 %v14192_v32, %v2554_v49 }
 0x183   : > { %v1506_v62 = vpop.permute.xlu1 %1505 }
 0x184   : > { %2627 = vst.msk [vmem:[#allocation2 + $0x139] sm:$0xff] %vm2602_vm3, %v2593_v55  ;;  %v1586_v55 = vadd.f32 %v1554_v38, %v1069_v28 }
 0x185   : > { %v2466_v39 = vpop.permute.xlu0 %2465 }
 0x186   : > { %v2523_v15 = vmul.f32 %v14551_v0, %v2466_v39 }
 0x187   : > { %v2738_v18 = vpop.permute.xlu1 %2737  ;;  %v14658_v43 = vld [vmem:[#allocation2 + $0xf1] sm:$0xff] }
 0x188   : > { %v14660_v46 = vld [vmem:[#allocation2 + $0xf0] sm:$0xff]  ;;  %2815 = vst.msk [vmem:[#allocation2 + $0xf9] sm:$0xff] %vm2795_vm4, %v2738_v18  ;;  %11921 = vmatprep.mubr.msk.f32.mxu0 %vm407_vm0, %v14658_v43  ;;  %v2555_v19 = vadd.f32 %v2523_v15, %v2070_v54  ;;  %v17705_v18 = vld [vmem:[#allocation67_spill] sm:$0xff]  ;;  %v17706_v15 = vld [vmem:[#allocation68_spill] sm:$0xff] }
 0x189   : > { %11973 = vmatprep.mubr.msk.f32.mxu1 %vm407_vm0, %v14660_v46  ;;  %v1986_v48 = vpop.permute.xlu0 %1985  ;;  %v1070_v54 = vmul.f32 %v17705_v18, %v1021_v7 }
 0x18a   : > { %v2594_v10 = vadd.f32 %v14192_v32, %v2555_v19  ;;  %v2039_v47 = vmul.f32 %v1986_v48, %v14570_v31  ;;  %v1555_v19 = vmul.f32 %v17706_v15, %v1506_v62  ;;  %v17708_v62 = vld [vmem:[#allocation76_spill] sm:$0xff] }
 0x18b   : > { %v1991_v60 = vpop.permute.xlu1 %1990 }
 0x18c   : > { %2628 = vst.msk [vmem:[#allocation2 + $0x141] sm:$0xff] %vm2602_vm3, %v2594_v10  ;;  %v2071_v11 = vadd.f32 %v2039_v47, %v1586_v55  ;;  %v2040_v26 = vmul.f32 %v14563_v63, %v1991_v60  ;;  %v1587_v41 = vadd.f32 %v1555_v19, %v1070_v54  ;;  %v17709_v54 = vld [vmem:[#allocation71_spill] sm:$0xff]  ;;  %v17710_v19 = vld [vmem:[#allocation72_spill] sm:$0xff] }
 0x18d   : > { %v1026_v0 = vpop.permute.xlu0 %1025 }
 0x18f   : > { %v1511_v35 = vpop.permute.xlu1 %1510  ;;  %v14672_v57 = vld [vmem:[#allocation2 + $0xf9] sm:$0xff] }
 0x190   : > { %v14674_v49 = vld [vmem:[#allocation2 + $0xf8] sm:$0xff]  ;;  %11922 = vmatmul.mubr.msk.f32.gmra.mxu0 %vm407_vm0, %v14672_v57  ;;  %v1556_v60 = vmul.f32 %v1511_v35, %v17708_v62 }
 0x191   : > { %11974 = vmatmul.mubr.msk.f32.gmra.mxu1 %vm407_vm0, %v14674_v49  ;;  %v2471_v12 = vpop.permute.xlu0 %2470 }
 0x192   : > { %v2524_v39 = vmul.f32 %v2471_v12, %v14572_v1  ;;  %v2072_v1 = vadd.f32 %v2040_v26, %v1587_v41  ;;  %v14703_v41 = vld [vmem:[%s17513_s4] ss:$0 sm:$0xff] }
 0x193   : > { %v2740_v21 = vpop.permute.xlu1 %2739 }
 0x194   : > { %2816 = vst.msk [vmem:[#allocation2 + $0x109] sm:$0xff] %vm2795_vm4, %v2740_v21  ;;  %v2556_v10 = vadd.f32 %v2524_v39, %v2071_v11 }
 0x195   : > { %v1031_v31 = vpop.permute.xlu0 %1030 }
 0x196   : > { %v2595_v30 = vadd.f32 %v14192_v32, %v2556_v10  ;;  %v17707_v32 = vld [vmem:[#allocation75_spill] sm:$0xff]  ;;  %v1072_v15 = vmul.f32 %v17709_v54, %v1031_v31 }
 0x197   : > { %v1516_v48 = vpop.permute.xlu1 %1515  ;;  %v1071_v63 = vmul.f32 %v1026_v0, %v17707_v32 }
 0x198   : > { %2629 = vst.msk [vmem:[#allocation2 + $0x151] sm:$0xff] %vm2602_vm3, %v2595_v30  ;;  %v1557_v10 = vmul.f32 %v17710_v19, %v1516_v48 }
 0x199   : > { %v2476_v28 = vpop.permute.xlu0 %2475  ;;  %v1588_v18 = vadd.f32 %v1556_v60, %v1071_v63 }
 0x19a   : > { %v2525_v7 = vmul.f32 %v14565_v14, %v2476_v28  ;;  %v1589_v31 = vadd.f32 %v1557_v10, %v1072_v15 }
 0x19b   : > { %v2742_v38 = vpop.permute.xlu1 %2741  ;;  %v14688_v47 = vld [vmem:[#allocation2 + $0x109] sm:$0xff] }
 0x19c   : > { %v14690_v55 = vld [vmem:[#allocation2 + $0x108] sm:$0xff]  ;;  %2817 = vst.msk [vmem:[#allocation2 + $0x111] sm:$0xff] %vm2795_vm4, %v2742_v38  ;;  %11924 = vmatprep.mubr.msk.f32.mxu0 %vm407_vm0, %v14688_v47  ;;  %v2557_v12 = vadd.f32 %v2525_v7, %v2072_v1 }
 0x19d   : > { %11976 = vmatprep.mubr.msk.f32.mxu1 %vm407_vm0, %v14690_v55  ;;  %v1996_v21 = vpop.permute.xlu0 %1995 }
 0x19e   : > { %v2596_v14 = vadd.f32 %v14703_v41, %v2557_v12  ;;  %v2041_v39 = vmul.f32 %v1996_v21, %v14589_v27 }
 0x19f   : > { %v2001_v11 = vpop.permute.xlu1 %2000 }
 0x1a0   : > { %2630 = vst.msk [vmem:[#allocation2 + $0x159] sm:$0xff] %vm2602_vm3, %v2596_v14  ;;  %v2042_v28 = vmul.f32 %v14575_v34, %v2001_v11  ;;  %v2073_v38 = vadd.f32 %v2041_v39, %v1588_v18 }
 0x1a1   : > { %v2481_v0 = vpop.permute.xlu0 %2480 }
 0x1a2   : > { %v2526_v27 = vmul.f32 %v2481_v0, %v14591_v5  ;;  %v2074_v32 = vadd.f32 %v2042_v28, %v1589_v31 }
 0x1a3   : > { %v2744_v35 = vpop.permute.xlu1 %2743  ;;  %v14710_v26 = vld [vmem:[#allocation2 + $0x111] sm:$0xff] }
 0x1a4   : > { %v14712_v30 = vld [vmem:[#allocation2 + $0x110] sm:$0xff]  ;;  %2818 = vst.msk [vmem:[#allocation2 + $0x121] sm:$0xff] %vm2795_vm4, %v2744_v35  ;;  %11925 = vmatmul.mubr.msk.f32.gmra.mxu0 %vm407_vm0, %v14710_v26  ;;  %v2558_v48 = vadd.f32 %v2526_v27, %v2073_v38 }
 0x1a5   : > { %11977 = vmatmul.mubr.msk.f32.gmra.mxu1 %vm407_vm0, %v14712_v30 }
 0x1a6   : > { %v2486_v1 = vpop.permute.xlu0 %2485  ;;  %v2597_v63 = vadd.f32 %v14703_v41, %v2558_v48 }
 0x1a7   : > { %v2746_v7 = vpop.permute.xlu1 %2745  ;;  %v2527_v34 = vmul.f32 %v14577_v13, %v2486_v1 }
 0x1a8   : > { %2819 = vst.msk [vmem:[#allocation2 + $0x129] sm:$0xff] %vm2795_vm4, %v2746_v7  ;;  %v3539_v7 = vld [vmem:[#allocation2 + $0x2] sm:$0xff] }
 0x1a9   : > { %2631 = vst.msk [vmem:[#allocation2 + $0x169] sm:$0xff] %vm2602_vm3, %v2597_v63  ;;  %v2559_v5 = vadd.f32 %v2527_v34, %v2074_v32 }
 0x1aa   : > { %v2748_v62 = vpop.permute.xlu0 %2747 }
 0x1ab   : > { %v2750_v60 = vpop.permute.xlu1 %2749  ;;  %v14725_v12 = vld [vmem:[#allocation2 + $0x121] sm:$0xff]  ;;  %v2598_v11 = vadd.f32 %v14703_v41, %v2559_v5  ;;  %2820 = vst.msk [vmem:[#allocation2 + $0x139] sm:$0xff] %vm2795_vm4, %v2748_v62 }
 0x1ac   : > { %v14727_v21 = vld [vmem:[#allocation2 + $0x120] sm:$0xff]  ;;  %2821 = vst.msk [vmem:[#allocation2 + $0x141] sm:$0xff] %vm2795_vm4, %v2750_v60  ;;  %11927 = vmatprep.mubr.msk.f32.mxu0 %vm407_vm0, %v14725_v12 }
 0x1ad   : > { %11979 = vmatprep.mubr.msk.f32.mxu1 %vm407_vm0, %v14727_v21  ;;  %2632 = vst.msk [vmem:[#allocation2 + $0x171] sm:$0xff] %vm2602_vm3, %v2598_v11 }
 0x1ae   : > { %v2752_v13 = vpop.permute.xlu0 %2751 }
 0x1af   : > { %v2754_v14 = vpop.permute.xlu1 %2753  ;;  %v14737_v39 = vld [vmem:[#allocation2 + $0x129] sm:$0xff]  ;;  %2822 = vst.msk [vmem:[#allocation2 + $0x151] sm:$0xff] %vm2795_vm4, %v2752_v13 }
 0x1b0   : > { %v14739_v18 = vld [vmem:[#allocation2 + $0x128] sm:$0xff]  ;;  %2823 = vst.msk [vmem:[#allocation2 + $0x159] sm:$0xff] %vm2795_vm4, %v2754_v14  ;;  %11928 = vmatmul.mubr.msk.f32.gmra.mxu0 %vm407_vm0, %v14737_v39 }
 0x1b1   : > { %11980 = vmatmul.mubr.msk.f32.gmra.mxu1 %vm407_vm0, %v14739_v18  ;;  %v3540_v14 = vld [vmem:[#allocation2 + $0xa] sm:$0xff] }
 0x1b2   : > { %v2756_v54 = vpop.permute.xlu0 %2755  ;;  %v14747_v19 = vld [vmem:[#allocation2 + $0x139] sm:$0xff] }
 0x1b3   : > { %v2758_v15 = vpop.permute.xlu1 %2757  ;;  %v14749_v10 = vld [vmem:[#allocation2 + $0x138] sm:$0xff]  ;;  %v14751_v0 = vld [vmem:[#allocation2 + $0x141] sm:$0xff]  ;;  %2824 = vst.msk [vmem:[#allocation2 + $0x169] sm:$0xff] %vm2795_vm4, %v2756_v54  ;;  %11930 = vmatprep.mubr.msk.f32.mxu0 %vm407_vm0, %v14747_v19 }
 0x1b4   : > { %17711 = vst [vmem:[#allocation24_spill] sm:$0xff] %v14751_v0  ;;  %2825 = vst.msk [vmem:[#allocation2 + $0x171] sm:$0xff] %vm2795_vm4, %v2758_v15  ;;  %11982 = vmatprep.mubr.msk.f32.mxu1 %vm407_vm0, %v14749_v10  ;;  %v14759_v35 = vld [vmem:[#allocation2 + $0x140] sm:$0xff]  ;;  %11931 = vmatmul.mubr.msk.f32.gmra.mxu0 %vm407_vm0, %v14751_v0  ;;  %v17716_v54 = vld [vmem:[#allocation77_spill] sm:$0xff] }
 0x1b5   : > { %11983 = vmatmul.mubr.msk.f32.gmra.mxu1 %vm407_vm0, %v14759_v35 }
 0x1b6   : > { %v14765_v38 = vld [vmem:[#allocation2 + $0x151] sm:$0xff] }
 0x1b7   : > { %17712 = vst [vmem:[#allocation16_spill] sm:$0xff] %v14765_v38  ;;  %v14767_v27 = vld [vmem:[#allocation2 + $0x150] sm:$0xff]  ;;  %v14769_v31 = vld [vmem:[#allocation2 + $0x159] sm:$0xff]  ;;  %11933 = vmatprep.mubr.msk.f32.mxu0 %vm407_vm0, %v14765_v38 }
 0x1b8   : > { %v1036_v28 = vpop.permute.xlu0 %1035  ;;  %17713 = vst [vmem:[#allocation12_spill] sm:$0xff] %v14769_v31  ;;  %11985 = vmatprep.mubr.msk.f32.mxu1 %vm407_vm0, %v14767_v27  ;;  %v14775_v1 = vld [vmem:[#allocation2 + $0x158] sm:$0xff]  ;;  %11934 = vmatmul.mubr.msk.f32.gmra.mxu0 %vm407_vm0, %v14769_v31 }
 0x1b9   : > { %v1521_v48 = vpop.permute.xlu1 %1520  ;;  %11986 = vmatmul.mubr.msk.f32.gmra.mxu1 %vm407_vm0, %v14775_v1  ;;  %v1073_v11 = vmul.f32 %v1036_v28, %v14145_v20  ;;  %v10448_v20 = vld [vmem:[%s17514_s5 + $0x40] sm:$0xff] }
 0x1ba   : > { %v14781_v63 = vld [vmem:[#allocation2 + $0x169] sm:$0xff]  ;;  %v1558_v13 = vmul.f32 %v1521_v48, %v14147_v45 }
 0x1bb   : > { %17714 = vst [vmem:[#allocation6_spill] sm:$0xff] %v14781_v63  ;;  %v14783_v34 = vld [vmem:[#allocation2 + $0x168] sm:$0xff]  ;;  %v14785_v5 = vld [vmem:[#allocation2 + $0x171] sm:$0xff]  ;;  %11936 = vmatprep.mubr.msk.f32.mxu0 %vm407_vm0, %v14781_v63 }
 0x1bc   : > { %v1041_v32 = vpop.permute.xlu0 %1040  ;;  %17715 = vst [vmem:[#allocation4_spill] sm:$0xff] %v14785_v5  ;;  %11988 = vmatprep.mubr.msk.f32.mxu1 %vm407_vm0, %v14783_v34  ;;  %v14791_v60 = vld [vmem:[#allocation2 + $0x170] sm:$0xff]  ;;  %11937 = vmatmul.mubr.msk.f32.gmra.mxu0 %vm407_vm0, %v14785_v5  ;;  %v1590_v28 = vadd.f32 %v1558_v13, %v1073_v11  ;;  %v14885_v13 = vld [vmem:[#allocation2 + $0x7a] sm:$0xff] }
 0x1bd   : > { %v1526_v62 = vpop.permute.xlu1 %1525  ;;  %11989 = vmatmul.mubr.msk.f32.gmra.mxu1 %vm407_vm0, %v14791_v60  ;;  %11995 = vmatprep.mubr.msk.f32.mxu0 %vm407_vm0, %v3539_v7  ;;  %v1074_v15 = vmul.f32 %v17716_v54, %v1041_v32  ;;  %v17717_v63 = vld [vmem:[#allocation78_spill] sm:$0xff]  ;;  %v14820_v7 = vld [vmem:[#allocation2 + $0x22] sm:$0xff]  ;;  %17718 = vst [vmem:[#allocation10_spill] sm:$0xff] %v14885_v13 }
 0x1be   : > { %12047 = vmatprep.mubr.msk.f32.mxu1 %vm407_vm0, %v14309_v29  ;;  %v1559_v31 = vmul.f32 %v17717_v63, %v1526_v62  ;;  %v14812_v29 = vld [vmem:[#allocation2 + $0x1a] sm:$0xff] }
 0x1bf   : > { %v14844_v63 = vld [vmem:[#allocation2 + $0x3a] sm:$0xff] }
 0x1c0   : > { %v2006_v38 = vpop.permute.xlu0 %2005  ;;  %11996 = vmatmul.mubr.msk.f32.vlgmr.msra.gmra.mxu0 %vm407_vm0, %v3540_v14  ;;  %v14953_v14 = vpop.f32.mrf.mxu1 }
 0x1c1   : > { %v2011_v0 = vpop.permute.xlu1 %2010  ;;  %v2043_v5 = vmul.f32 %v2006_v38, %v14609_v17  ;;  %12048 = vmatmul.mubr.msk.f32.vlgmr.msra.gmra.mxu1 %vm407_vm0, %v14311_v53  ;;  %12096 = vmatpush3.msra.mxu0 %v14511_v37  ;;  %v1591_v17 = vadd.f32 %v1559_v31, %v1074_v15  ;;  %v10482_v53 = vld [vmem:[%s17514_s5 + $0x50] sm:$0xff]  ;;  %v14829_v37 = vld [vmem:[%s17514_s5 + $0x68] sm:$0xff]  ;;  %17720 = vst [vmem:[#allocation7_spill] sm:$0xff] %v14953_v14 }
 0x1c2   : > { %v2044_v45 = vmul.f32 %v14594_v59, %v2011_v0  ;;  %11998 = vmatprep.mubr.msk.f32.mxu0 %vm407_vm0, %v14812_v29  ;;  %12050 = vmatprep.mubr.msk.f32.mxu1 %vm407_vm0, %v14346_v61  ;;  %v14967_v15 = vld [vmem:[#allocation2 + $0x112] sm:$0xff]  ;;  %v4316_v14 = vld [vmem:[#allocation2 + $0x21] sm:$0xff] }
 0x1c3   : > { %12097 = vmatprep.subr.mxu0 %v10448_v20  ;;  %v2075_v59 = vadd.f32 %v2043_v5, %v1590_v28  ;;  %12148 = vmatpush3.msra.mxu1 %v14648_v56 }
 0x1c4   : > { %v2491_v38 = vpop.permute.xlu0 %2490  ;;  %12098 = vmatpush3.msra.mxu0 %v10448_v20  ;;  %v2076_v61 = vadd.f32 %v2044_v45, %v1591_v17  ;;  %12149 = vmatprep.subr.mxu1 %v10482_v53 }
 0x1c5   : > { %v2496_v0 = vpop.permute.xlu1 %2495  ;;  %v2528_v48 = vmul.f32 %v2491_v38, %v14611_v44  ;;  %11999 = vmatmul.mubr.msk.f32.gmra.mxu0 %vm407_vm0, %v14820_v7  ;;  %12051 = vmatmul.mubr.msk.f32.gmra.mxu1 %vm407_vm0, %v14348_v40  ;;  %v14836_v44 = vld [vmem:[#allocation2 + $0x32] sm:$0xff]  ;;  %v14985_v38 = vld [vmem:[#allocation2 + $0x12a] sm:$0xff] }
 0x1c6   : > { %v2529_v31 = vmul.f32 %v14596_v33, %v2496_v0  ;;  %12001 = vmatprep.mubr.msk.f32.mxu0 %vm407_vm0, %v14836_v44  ;;  %12053 = vmatprep.mubr.msk.f32.mxu1 %vm407_vm0, %v14387_v51  ;;  %v14849_v40 = vld [vmem:[%s17514_s5 + $0x78] sm:$0xff]  ;;  %v14856_v51 = vld [vmem:[#allocation2 + $0x4a] sm:$0xff] }
 0x1c7   : > { %v2560_v56 = vadd.f32 %v2528_v48, %v2075_v59  ;;  %12199 = vmatprep.subr.mxu0 %v14829_v37  ;;  %12150 = vmatpush3.msra.mxu1 %v10482_v53  ;;  %v14995_v48 = vld [vmem:[#allocation2 + $0x13a] sm:$0xff] }
 0x1c8   : > { %v2561_v32 = vadd.f32 %v2529_v31, %v2076_v61  ;;  %v2760_v5 = vpop.permute.xlu0 %2759  ;;  %12251 = vmatprep.subr.mxu1 %v14849_v40 }
 0x1c9   : > { %v2599_v33 = vadd.f32 %v14703_v41, %v2560_v56  ;;  %12002 = vmatmul.mubr.msk.f32.gmra.mxu0 %vm407_vm0, %v14844_v63  ;;  %12054 = vmatmul.mubr.msk.f32.gmra.mxu1 %vm407_vm0, %v14389_v6  ;;  %v2762_v11 = vpop.permute.xlu1 %2761  ;;  %v14873_v6 = vld [vmem:[#allocation2 + $0x62] sm:$0xff] }
 0x1ca   : > { %v2600_v62 = vadd.f32 %v14703_v41, %v2561_v32  ;;  %12004 = vmatprep.mubr.msk.f32.mxu0 %vm407_vm0, %v14856_v51  ;;  %12056 = vmatprep.mubr.msk.f32.mxu1 %vm407_vm0, %v14419_v36  ;;  %v14866_v41 = vld [vmem:[#allocation2 + $0x52] sm:$0xff]  ;;  %v14879_v36 = vld [vmem:[#allocation2 + $0x6a] sm:$0xff]  ;;  %v15003_v56 = vld [vmem:[#allocation2 + $0x142] sm:$0xff] }
 0x1cb   : > { %2633 = vst.msk [vmem:[#allocation2 + $0x181] sm:$0xff] %vm2602_vm3, %v2599_v33 }
 0x1cc   : > { %2634 = vst.msk [vmem:[#allocation2 + $0x189] sm:$0xff] %vm2602_vm3, %v2600_v62 }
 0x1cd   : > { %2826 = vst.msk [vmem:[#allocation2 + $0x181] sm:$0xff] %vm2795_vm4, %v2760_v5  ;;  %2827 = vst.msk [vmem:[#allocation2 + $0x189] sm:$0xff] %vm2795_vm4, %v2762_v11  ;;  %12005 = vmatmul.mubr.msk.f32.gmra.mxu0 %vm407_vm0, %v14866_v41  ;;  %12057 = vmatmul.mubr.msk.f32.gmra.mxu1 %vm407_vm0, %v14421_v52  ;;  %v14891_v52 = vld [vmem:[#allocation2 + $0x82] sm:$0xff]  ;;  %v15013_v5 = vld [vmem:[#allocation2 + $0x152] sm:$0xff] }
 0x1ce   : > { %12007 = vmatprep.mubr.msk.f32.mxu0 %vm407_vm0, %v14873_v6  ;;  %12059 = vmatprep.mubr.msk.f32.mxu1 %vm407_vm0, %v14449_v58  ;;  %v14897_v58 = vld [vmem:[#allocation2 + $0x92] sm:$0xff] }
 0x1d1   : > { %12008 = vmatmul.mubr.msk.f32.gmra.mxu0 %vm407_vm0, %v14879_v36  ;;  %12060 = vmatmul.mubr.msk.f32.gmra.mxu1 %vm407_vm0, %v14451_v2  ;;  %v14903_v2 = vld [vmem:[#allocation2 + $0x9a] sm:$0xff] }
 0x1d2   : > { %12010 = vmatprep.mubr.msk.f32.mxu0 %vm407_vm0, %v14885_v13  ;;  %12062 = vmatprep.mubr.msk.f32.mxu1 %vm407_vm0, %v14472_v23  ;;  %v14909_v23 = vld [vmem:[#allocation2 + $0xaa] sm:$0xff] }
 0x1d5   : > { %12011 = vmatmul.mubr.msk.f32.gmra.mxu0 %vm407_vm0, %v14891_v52  ;;  %12063 = vmatmul.mubr.msk.f32.gmra.mxu1 %vm407_vm0, %v14493_v3  ;;  %v14915_v3 = vld [vmem:[#allocation2 + $0xb2] sm:$0xff] }
 0x1d6   : > { %12013 = vmatprep.mubr.msk.f32.mxu0 %vm407_vm0, %v14897_v58  ;;  %12065 = vmatprep.mubr.msk.f32.mxu1 %vm407_vm0, %v14528_v24  ;;  %v14921_v24 = vld [vmem:[#allocation2 + $0xc2] sm:$0xff] }
 0x1d9   : > { %12014 = vmatmul.mubr.msk.f32.gmra.mxu0 %vm407_vm0, %v14903_v2  ;;  %12066 = vmatmul.mubr.msk.f32.gmra.mxu1 %vm407_vm0, %v14553_v25  ;;  %v14927_v25 = vld [vmem:[#allocation2 + $0xca] sm:$0xff] }
 0x1da   : > { %12016 = vmatprep.mubr.msk.f32.mxu0 %vm407_vm0, %v14909_v23  ;;  %12068 = vmatprep.mubr.msk.f32.mxu1 %vm407_vm0, %v14581_v42  ;;  %v14933_v42 = vld [vmem:[#allocation2 + $0xda] sm:$0xff] }
 0x1dd   : > { %12017 = vmatmul.mubr.msk.f32.gmra.mxu0 %vm407_vm0, %v14915_v3  ;;  %12069 = vmatmul.mubr.msk.f32.gmra.mxu1 %vm407_vm0, %v14603_v22  ;;  %v14939_v22 = vld [vmem:[#allocation2 + $0xe2] sm:$0xff] }
 0x1de   : > { %12019 = vmatprep.mubr.msk.f32.mxu0 %vm407_vm0, %v14921_v24  ;;  %12071 = vmatprep.mubr.msk.f32.mxu1 %vm407_vm0, %v14624_v50  ;;  %v14945_v50 = vld [vmem:[#allocation2 + $0xf2] sm:$0xff] }
 0x1e1   : > { %12020 = vmatmul.mubr.msk.f32.gmra.mxu0 %vm407_vm0, %v14927_v25  ;;  %12072 = vmatmul.mubr.msk.f32.gmra.mxu1 %vm407_vm0, %v14638_v4  ;;  %v14951_v4 = vpop.f32.mrf.mxu0 }
 0x1e2   : > { %12022 = vmatprep.mubr.msk.f32.mxu0 %vm407_vm0, %v14933_v42  ;;  %12074 = vmatprep.mubr.msk.f32.mxu1 %vm407_vm0, %v14660_v46  ;;  %17719 = vst [vmem:[#allocation5_spill] sm:$0xff] %v14951_v4  ;;  %v14955_v46 = vld [vmem:[#allocation2 + $0xfa] sm:$0xff] }
 0x1e5   : > { %12023 = vmatmul.mubr.msk.f32.gmra.mxu0 %vm407_vm0, %v14939_v22  ;;  %12075 = vmatmul.mubr.msk.f32.gmra.mxu1 %vm407_vm0, %v14674_v49  ;;  %v14961_v49 = vld [vmem:[#allocation2 + $0x10a] sm:$0xff] }
 0x1e6   : > { %12025 = vmatprep.mubr.msk.f32.mxu0 %vm407_vm0, %v14945_v50  ;;  %12077 = vmatprep.mubr.msk.f32.mxu1 %vm407_vm0, %v14690_v55 }
 0x1e9   : > { %12026 = vmatmul.mubr.msk.f32.gmra.mxu0 %vm407_vm0, %v14955_v46  ;;  %12078 = vmatmul.mubr.msk.f32.gmra.mxu1 %vm407_vm0, %v14712_v30  ;;  %v14977_v30 = vld [vmem:[#allocation2 + $0x122] sm:$0xff] }
 0x1ea   : > { %12028 = vmatprep.mubr.msk.f32.mxu0 %vm407_vm0, %v14961_v49  ;;  %12080 = vmatprep.mubr.msk.f32.mxu1 %vm407_vm0, %v14727_v21  ;;  %v11896_v55 = vpop.f32.mrf.mxu0 }
 0x1eb   : > { %v11948_v54 = vpop.f32.mrf.mxu1 }
 0x1ec   : > { %v14969_v20 = vadd.f32 %v11948_v54, %v11896_v55  ;;  %v14971_v45 = vpop.f32.mrf.mxu0  ;;  %v15021_v55 = vld [vmem:[#allocation2 + $0x180] sm:$0xff] }
 0x1ed   : > { %17721 = vst [vmem:[#allocation20_spill] sm:$0xff] %v14971_v45  ;;  %12029 = vmatmul.mubr.msk.f32.gmra.mxu0 %vm407_vm0, %v14967_v15  ;;  %12081 = vmatmul.mubr.msk.f32.gmra.mxu1 %vm407_vm0, %v14739_v18  ;;  %v14979_v28 = vpop.f32.mrf.mxu1 }
 0x1ee   : > { %17722 = vst [vmem:[#allocation11_spill] sm:$0xff] %v14979_v28  ;;  %12031 = vmatprep.mubr.msk.f32.mxu0 %vm407_vm0, %v14977_v30  ;;  %12083 = vmatprep.mubr.msk.f32.mxu1 %vm407_vm0, %v14749_v10 }
 0x1ef   : > { %v11899_v21 = vpop.f32.mrf.mxu0 }
 0x1f0   : > { %v11951_v17 = vpop.f32.mrf.mxu1 }
 0x1f1   : > { %v14987_v59 = vadd.f32 %v11951_v17, %v11899_v21  ;;  %v14989_v0 = vpop.f32.mrf.mxu0  ;;  %12032 = vmatmul.mubr.msk.f32.gmra.mxu0 %vm407_vm0, %v14985_v38  ;;  %12084 = vmatmul.mubr.msk.f32.gmra.mxu1 %vm407_vm0, %v14759_v35  ;;  %v15023_v21 = vld [vmem:[#allocation2 + $0x15a] sm:$0xff] }
 0x1f2   : > { %17723 = vst [vmem:[#allocation8_spill] sm:$0xff] %v14989_v0  ;;  %v14997_v53 = vpop.f32.mrf.mxu1  ;;  %12034 = vmatprep.mubr.msk.f32.mxu0 %vm407_vm0, %v14995_v48  ;;  %12086 = vmatprep.mubr.msk.f32.mxu1 %vm407_vm0, %v14767_v27 }
 0x1f3   : > { %17724 = vst [vmem:[#allocation29_spill] sm:$0xff] %v14997_v53 }
 0x1f4   : > { %v11902_v61 = vpop.f32.mrf.mxu0 }
 0x1f5   : > { %v11954_v31 = vpop.f32.mrf.mxu1  ;;  %12035 = vmatmul.mubr.msk.f32.gmra.mxu0 %vm407_vm0, %v15003_v56  ;;  %12087 = vmatmul.mubr.msk.f32.gmra.mxu1 %vm407_vm0, %v14775_v1 }
 0x1f6   : > { %v15005_v32 = vadd.f32 %v11954_v31, %v11902_v61  ;;  %v15007_v33 = vpop.f32.mrf.mxu0  ;;  %12037 = vmatprep.mubr.msk.f32.mxu0 %vm407_vm0, %v15013_v5  ;;  %12089 = vmatprep.mubr.msk.f32.mxu1 %vm407_vm0, %v14783_v34  ;;  %v15033_v31 = vld [vmem:[#allocation2 + $0x16a] sm:$0xff] }
 0x1f7   : > { %17726 = vst [vmem:[#allocation30_spill] sm:$0xff] %v15007_v33  ;;  %v15015_v62 = vpop.f32.mrf.mxu1  ;;  %v15043_v33 = vld [vmem:[#allocation2 + $0x172] sm:$0xff] }
 0x1f8   : > { %17725 = vst [vmem:[#allocation27_spill] sm:$0xff] %v15005_v32  ;;  %17727 = vst [vmem:[#allocation28_spill] sm:$0xff] %v15015_v62  ;;  %v11905_v11 = vpop.f32.mrf.mxu0  ;;  %v15135_v32 = vld [vmem:[#allocation2 + $0x99] sm:$0xff] }
 0x1f9   : > { %v11957_v54 = vpop.f32.mrf.mxu1  ;;  %12038 = vmatmul.mubr.msk.f32.gmra.mxu0 %vm407_vm0, %v15023_v21  ;;  %12090 = vmatmul.mubr.msk.f32.gmra.mxu1 %vm407_vm0, %v14791_v60 }
 0x1fa   : > { %v15025_v17 = vadd.f32 %v11957_v54, %v11905_v11  ;;  %v15027_v61 = vpop.f32.mrf.mxu0  ;;  %12040 = vmatprep.mubr.msk.f32.mxu0 %vm407_vm0, %v15033_v31  ;;  %12092 = vmatprep.mubr.msk.f32.mxu1 %vm407_vm0, %v15021_v55  ;;  %v15041_v11 = vld [vmem:[#allocation2 + $0x188] sm:$0xff] }
 0x1fb   : > { %17729 = vst [vmem:[#allocation25_spill] sm:$0xff] %v15027_v61  ;;  %v15035_v62 = vpop.f32.mrf.mxu1 }
 0x1fc   : > { %17728 = vst [vmem:[#allocation39_spill] sm:$0xff] %v15025_v17  ;;  %17730 = vst [vmem:[#allocation18_spill] sm:$0xff] %v15035_v62  ;;  %v11908_v54 = vpop.f32.mrf.mxu0  ;;  %v4315_v62 = vld [vmem:[#allocation2 + $0x19] sm:$0xff] }
 0x1fd   : > { %v11960_v61 = vpop.f32.mrf.mxu1  ;;  %12041 = vmatmul.mubr.msk.f32.gmra.mxu0 %vm407_vm0, %v15043_v33  ;;  %12093 = vmatmul.mubr.msk.f32.gmra.mxu1 %vm407_vm0, %v15041_v11 }
 0x1fe   : > { %v15045_v53 = vadd.f32 %v11960_v61, %v11908_v54  ;;  %v15047_v0 = vpop.f32.mrf.mxu0  ;;  %12099 = vmatprep.mubr.msk.f32.mxu0 %vm407_vm0, %v4315_v62  ;;  %12151 = vmatprep.mubr.msk.f32.mxu1 %vm407_vm0, %v14812_v29  ;;  %v10516_v61 = vld [vmem:[%s17514_s5 + $0x60] sm:$0xff]  ;;  %v15107_v62 = vld [vmem:[#allocation2 + $0x69] sm:$0xff] }
 0x1ff   : > { %17732 = vst [vmem:[#allocation14_spill] sm:$0xff] %v15047_v0  ;;  %v15053_v28 = vpop.f32.mrf.mxu1  ;;  %v15064_v0 = vld [vmem:[#allocation2 + $0x31] sm:$0xff]  ;;  %v15073_v29 = vld [vmem:[#allocation2 + $0x39] sm:$0xff] }
 0x200   : > { %17731 = vst [vmem:[#allocation9_spill] sm:$0xff] %v15045_v53  ;;  %17733 = vst [vmem:[#allocation40_spill] sm:$0xff] %v15053_v28 }
 0x201   : > { %v11911_v45 = vpop.f32.mrf.mxu0  ;;  %12100 = vmatmul.mubr.msk.f32.vlgmr.msra.gmra.mxu0 %vm407_vm0, %v4316_v14  ;;  %12152 = vmatmul.mubr.msk.f32.vlgmr.msra.gmra.mxu1 %vm407_vm0, %v14820_v7  ;;  %v10550_v7 = vld [vmem:[%s17514_s5 + $0x70] sm:$0xff] }
 0x202   : > { %v11963_v54 = vpop.f32.mrf.mxu1  ;;  %12200 = vmatpush3.msra.mxu0 %v14829_v37  ;;  %12102 = vmatprep.mubr.msk.f32.mxu0 %vm407_vm0, %v15064_v0  ;;  %v15082_v37 = vld [vmem:[%s17514_s5 + $0x88] sm:$0xff] }
 0x203   : > { %v15066_v28 = vadd.f32 %v11963_v54, %v11911_v45  ;;  %12154 = vmatprep.mubr.msk.f32.mxu1 %vm407_vm0, %v14836_v44  ;;  %12201 = vmatprep.subr.mxu0 %v10516_v61  ;;  %v15088_v14 = vld [vmem:[#allocation2 + $0x49] sm:$0xff]  ;;  %v15101_v45 = vld [vmem:[#allocation2 + $0x61] sm:$0xff]  ;;  %v15127_v4 = vpop.f32.mrf.mxu0 }
 0x204   : > { %12202 = vmatpush3.msra.mxu0 %v10516_v61  ;;  %12252 = vmatpush3.msra.mxu1 %v14849_v40  ;;  %v15095_v40 = vld [vmem:[#allocation2 + $0x51] sm:$0xff]  ;;  %v15113_v61 = vld [vmem:[#allocation2 + $0x79] sm:$0xff]  ;;  %v15119_v54 = vld [vmem:[#allocation2 + $0x81] sm:$0xff]  ;;  %17735 = vst [vmem:[#allocation35_spill] sm:$0xff] %v15127_v4 }
 0x205   : > { %17734 = vst [vmem:[#allocation26_spill] sm:$0xff] %v15066_v28  ;;  %12103 = vmatmul.mubr.msk.f32.gmra.mxu0 %vm407_vm0, %v15073_v29  ;;  %12155 = vmatmul.mubr.msk.f32.gmra.mxu1 %vm407_vm0, %v14844_v63  ;;  %v15129_v28 = vpop.f32.mrf.mxu1  ;;  %v15143_v4 = vld [vmem:[#allocation2 + $0xa9] sm:$0xff] }
 0x206   : > { %12105 = vmatprep.mubr.msk.f32.mxu0 %vm407_vm0, %v15088_v14  ;;  %12157 = vmatprep.mubr.msk.f32.mxu1 %vm407_vm0, %v14856_v51  ;;  %17736 = vst [vmem:[#allocation57_spill] sm:$0xff] %v15129_v28  ;;  %v15149_v28 = vld [vmem:[#allocation2 + $0xb1] sm:$0xff] }
 0x207   : > { %12253 = vmatprep.subr.mxu1 %v10550_v7  ;;  %12303 = vmatprep.subr.mxu0 %v15082_v37 }
 0x208   : > { %12254 = vmatpush3.msra.mxu1 %v10550_v7  ;;  %v15125_v7 = vld [vmem:[#allocation2 + $0x91] sm:$0xff] }
 0x209   : > { %12106 = vmatmul.mubr.msk.f32.gmra.mxu0 %vm407_vm0, %v15095_v40  ;;  %12158 = vmatmul.mubr.msk.f32.gmra.mxu1 %vm407_vm0, %v14866_v41 }
 0x20a   : > { %12108 = vmatprep.mubr.msk.f32.mxu0 %vm407_vm0, %v15101_v45  ;;  %12160 = vmatprep.mubr.msk.f32.mxu1 %vm407_vm0, %v14873_v6 }
 0x20d   : > { %12109 = vmatmul.mubr.msk.f32.gmra.mxu0 %vm407_vm0, %v15107_v62  ;;  %12161 = vmatmul.mubr.msk.f32.gmra.mxu1 %vm407_vm0, %v14879_v36 }
 0x20e   : > { %12111 = vmatprep.mubr.msk.f32.mxu0 %vm407_vm0, %v15113_v61  ;;  %12163 = vmatprep.mubr.msk.f32.mxu1 %vm407_vm0, %v14885_v13 }
 0x211   : > { %12112 = vmatmul.mubr.msk.f32.gmra.mxu0 %vm407_vm0, %v15119_v54  ;;  %12164 = vmatmul.mubr.msk.f32.gmra.mxu1 %vm407_vm0, %v14891_v52 }
 0x212   : > { %12114 = vmatprep.mubr.msk.f32.mxu0 %vm407_vm0, %v15125_v7  ;;  %12166 = vmatprep.mubr.msk.f32.mxu1 %vm407_vm0, %v14897_v58 }
 0x214   : > { %v11914_v53 = vpop.f32.mrf.mxu0 }
 0x215   : > { %v11966_v17 = vpop.f32.mrf.mxu1  ;;  %12115 = vmatmul.mubr.msk.f32.gmra.mxu0 %vm407_vm0, %v15135_v32  ;;  %12167 = vmatmul.mubr.msk.f32.gmra.mxu1 %vm407_vm0, %v14903_v2  ;;  %v17737_v2 = vld [vmem:[#allocation23_spill] sm:$0xff] }
 0x216   : > { %v15137_v13 = vadd.f32 %v11966_v17, %v11914_v53  ;;  %12117 = vmatprep.mubr.msk.f32.mxu0 %vm407_vm0, %v15143_v4  ;;  %12169 = vmatprep.mubr.msk.f32.mxu1 %vm407_vm0, %v14909_v23  ;;  %v10584_v53 = vld [vmem:[%s17514_s5 + $0x80] sm:$0xff]  ;;  %v5094_v17 = vld [vmem:[#allocation2 + $0x48] sm:$0xff] }
 0x219   : > { %12118 = vmatmul.mubr.msk.f32.gmra.mxu0 %vm407_vm0, %v15149_v28  ;;  %12170 = vmatmul.mubr.msk.f32.gmra.mxu1 %vm407_vm0, %v14915_v3 }
 0x21a   : > { %12120 = vmatprep.mubr.msk.f32.mxu0 %vm407_vm0, %v14579_v16  ;;  %12172 = vmatprep.mubr.msk.f32.mxu1 %vm407_vm0, %v14921_v24  ;;  %v15179_v16 = vpop.f32.mrf.mxu0  ;;  %v15223_v24 = vld [vmem:[#allocation2 + $0x182] sm:$0xff] }
 0x21d   : > { %12121 = vmatmul.mubr.msk.f32.gmra.mxu0 %vm407_vm0, %v17737_v2  ;;  %12173 = vmatmul.mubr.msk.f32.gmra.mxu1 %vm407_vm0, %v14927_v25  ;;  %v17742_v25 = vld [vmem:[#allocation4_spill] sm:$0xff] }
 0x21e   : > { %12123 = vmatprep.mubr.msk.f32.mxu0 %vm407_vm0, %v14622_v8  ;;  %12175 = vmatprep.mubr.msk.f32.mxu1 %vm407_vm0, %v14933_v42  ;;  %v15181_v8 = vpop.f32.mrf.mxu1  ;;  %v5096_v2 = vld [vmem:[#allocation2 + $0x60] sm:$0xff] }
 0x221   : > { %12124 = vmatmul.mubr.msk.f32.gmra.mxu0 %vm407_vm0, %v14636_v9  ;;  %12176 = vmatmul.mubr.msk.f32.gmra.mxu1 %vm407_vm0, %v14939_v22 }
 0x222   : > { %12126 = vmatprep.mubr.msk.f32.mxu0 %vm407_vm0, %v14658_v43  ;;  %12178 = vmatprep.mubr.msk.f32.mxu1 %vm407_vm0, %v14945_v50 }
 0x225   : > { %12127 = vmatmul.mubr.msk.f32.gmra.mxu0 %vm407_vm0, %v14672_v57  ;;  %12179 = vmatmul.mubr.msk.f32.gmra.mxu1 %vm407_vm0, %v14955_v46  ;;  %v17738_v57 = vld [vmem:[#allocation24_spill] sm:$0xff] }
 0x226   : > { %12129 = vmatprep.mubr.msk.f32.mxu0 %vm407_vm0, %v14688_v47  ;;  %12181 = vmatprep.mubr.msk.f32.mxu1 %vm407_vm0, %v14961_v49  ;;  %v17739_v47 = vld [vmem:[#allocation16_spill] sm:$0xff]  ;;  %v15237_v49 = vld [vmem:[#allocation2 + $0x189] sm:$0xff] }
 0x228   : > { %v11917_v9 = vpop.f32.mrf.mxu0 }
 0x229   : > { %v11969_v43 = vpop.f32.mrf.mxu1  ;;  %12130 = vmatmul.mubr.msk.f32.gmra.mxu0 %vm407_vm0, %v14710_v26  ;;  %12182 = vmatmul.mubr.msk.f32.gmra.mxu1 %vm407_vm0, %v14967_v15  ;;  %v17740_v26 = vld [vmem:[#allocation12_spill] sm:$0xff]  ;;  %v15239_v15 = vld [vmem:[#allocation2 + $0x18a] sm:$0xff] }
 0x22a   : > { %v15187_v3 = vadd.f32 %v11969_v43, %v11917_v9  ;;  %12132 = vmatprep.mubr.msk.f32.mxu0 %vm407_vm0, %v14725_v12  ;;  %12184 = vmatprep.mubr.msk.f32.mxu1 %vm407_vm0, %v14977_v30  ;;  %v17741_v12 = vld [vmem:[#allocation6_spill] sm:$0xff]  ;;  %v15229_v42 = vpop.f32.mrf.mxu0 }
 0x22b   : > { %v15231_v22 = vpop.f32.mrf.mxu1 }
 0x22d   : > { %12133 = vmatmul.mubr.msk.f32.gmra.mxu0 %vm407_vm0, %v14737_v39  ;;  %12185 = vmatmul.mubr.msk.f32.gmra.mxu1 %vm407_vm0, %v14985_v38  ;;  %v15221_v39 = vld [vmem:[#allocation2 + $0x181] sm:$0xff]  ;;  %v5092_v38 = vld [vmem:[#allocation2 + $0x30] sm:$0xff] }
 0x22e   : > { %12135 = vmatprep.mubr.msk.f32.mxu0 %vm407_vm0, %v14747_v19  ;;  %12187 = vmatprep.mubr.msk.f32.mxu1 %vm407_vm0, %v14995_v48  ;;  %v5093_v48 = vld [vmem:[#allocation2 + $0x38] sm:$0xff] }
 0x231   : > { %12136 = vmatmul.mubr.msk.f32.gmra.mxu0 %vm407_vm0, %v17738_v57  ;;  %12188 = vmatmul.mubr.msk.f32.gmra.mxu1 %vm407_vm0, %v15003_v56 }
 0x232   : > { %12138 = vmatprep.mubr.msk.f32.mxu0 %vm407_vm0, %v17739_v47  ;;  %12190 = vmatprep.mubr.msk.f32.mxu1 %vm407_vm0, %v15013_v5 }
 0x235   : > { %12139 = vmatmul.mubr.msk.f32.gmra.mxu0 %vm407_vm0, %v17740_v26  ;;  %12191 = vmatmul.mubr.msk.f32.gmra.mxu1 %vm407_vm0, %v15023_v21 }
 0x236   : > { %12141 = vmatprep.mubr.msk.f32.mxu0 %vm407_vm0, %v17741_v12  ;;  %12193 = vmatprep.mubr.msk.f32.mxu1 %vm407_vm0, %v15033_v31 }
 0x239   : > { %12142 = vmatmul.mubr.msk.f32.gmra.mxu0 %vm407_vm0, %v17742_v25  ;;  %12194 = vmatmul.mubr.msk.f32.gmra.mxu1 %vm407_vm0, %v15043_v33 }
 0x23a   : > { %12144 = vmatprep.mubr.msk.f32.mxu0 %vm407_vm0, %v15221_v39  ;;  %12196 = vmatprep.mubr.msk.f32.mxu1 %vm407_vm0, %v15223_v24 }
 0x23c   : > { %v11920_v50 = vpop.f32.mrf.mxu0 }
 0x23d   : > { %v11972_v46 = vpop.f32.mrf.mxu1  ;;  %12145 = vmatmul.mubr.msk.f32.gmra.mxu0 %vm407_vm0, %v15237_v49  ;;  %12197 = vmatmul.mubr.msk.f32.gmra.mxu1 %vm407_vm0, %v15239_v15 }
 0x23e   : > { %v15241_v30 = vadd.f32 %v11972_v46, %v11920_v50  ;;  %12203 = vmatprep.mubr.msk.f32.mxu0 %vm407_vm0, %v5092_v38  ;;  %12255 = vmatprep.mubr.msk.f32.mxu1 %vm407_vm0, %v15064_v0  ;;  %v5095_v0 = vld [vmem:[#allocation2 + $0x50] sm:$0xff]  ;;  %v5101_v50 = vld [vmem:[#allocation2 + $0x98] sm:$0xff]  ;;  %v5492_v38 = vld [vmem:[#allocation2 + $0xc1] sm:$0xff] }
 0x23f   : > { %v15277_v9 = vpop.f32.mrf.mxu1  ;;  %v5103_v46 = vld [vmem:[#allocation2 + $0xb0] sm:$0xff] }
 0x241   : > { %12204 = vmatmul.mubr.msk.f32.vlgmr.msra.gmra.mxu0 %vm407_vm0, %v5093_v48  ;;  %12256 = vmatmul.mubr.msk.f32.vlgmr.msra.gmra.mxu1 %vm407_vm0, %v15073_v29  ;;  %v5097_v29 = vld [vmem:[#allocation2 + $0x68] sm:$0xff] }
 0x242   : > { %12304 = vmatpush3.msra.mxu0 %v15082_v37  ;;  %12206 = vmatprep.mubr.msk.f32.mxu0 %vm407_vm0, %v5094_v17  ;;  %v5098_v37 = vld [vmem:[#allocation2 + $0x78] sm:$0xff]  ;;  %v5105_v48 = vld [vmem:[#allocation2 + $0xc8] sm:$0xff]  ;;  %v5107_v17 = vld [vmem:[#allocation2 + $0xe0] sm:$0xff] }
 0x243   : > { %12258 = vmatprep.mubr.msk.f32.mxu1 %vm407_vm0, %v15088_v14  ;;  %12305 = vmatprep.subr.mxu0 %v10584_v53  ;;  %v5099_v14 = vld [vmem:[#allocation2 + $0x80] sm:$0xff] }
 0x244   : > { %12306 = vmatpush3.msra.mxu0 %v10584_v53  ;;  %v5106_v53 = vld [vmem:[#allocation2 + $0xd8] sm:$0xff] }
 0x245   : > { %12207 = vmatmul.mubr.msk.f32.gmra.mxu0 %vm407_vm0, %v5095_v0  ;;  %12259 = vmatmul.mubr.msk.f32.gmra.mxu1 %vm407_vm0, %v15095_v40  ;;  %v5100_v40 = vld [vmem:[#allocation2 + $0x90] sm:$0xff] }
 0x246   : > { %12209 = vmatprep.mubr.msk.f32.mxu0 %vm407_vm0, %v5096_v2  ;;  %12261 = vmatprep.mubr.msk.f32.mxu1 %vm407_vm0, %v15101_v45  ;;  %v15275_v45 = vpop.f32.mrf.mxu0  ;;  %v5108_v0 = vld [vmem:[#allocation2 + $0xf0] sm:$0xff] }
 0x247   : > { %v5496_v2 = vld [vmem:[#allocation2 + $0xf1] sm:$0xff] }
 0x249   : > { %12210 = vmatmul.mubr.msk.f32.gmra.mxu0 %vm407_vm0, %v5097_v29  ;;  %12262 = vmatmul.mubr.msk.f32.gmra.mxu1 %vm407_vm0, %v15107_v62  ;;  %v5109_v29 = vld [vmem:[#allocation2 + $0xf8] sm:$0xff] }
 0x24a   : > { %12212 = vmatprep.mubr.msk.f32.mxu0 %vm407_vm0, %v5098_v37  ;;  %12264 = vmatprep.mubr.msk.f32.mxu1 %vm407_vm0, %v15113_v61  ;;  %v5497_v37 = vld [vmem:[#allocation2 + $0xf9] sm:$0xff] }
 0x24d   : > { %12213 = vmatmul.mubr.msk.f32.gmra.mxu0 %vm407_vm0, %v5099_v14  ;;  %12265 = vmatmul.mubr.msk.f32.gmra.mxu1 %vm407_vm0, %v15119_v54  ;;  %v5102_v54 = vld [vmem:[#allocation2 + $0xa8] sm:$0xff] }
 0x24e   : > { %12215 = vmatprep.mubr.msk.f32.mxu0 %vm407_vm0, %v5100_v40  ;;  %12267 = vmatprep.mubr.msk.f32.mxu1 %vm407_vm0, %v15125_v7  ;;  %v5104_v7 = vld [vmem:[#allocation2 + $0xc0] sm:$0xff]  ;;  %v5110_v14 = vld [vmem:[#allocation2 + $0x108] sm:$0xff] }
 0x24f   : > { %v5498_v40 = vld [vmem:[#allocation2 + $0x109] sm:$0xff] }
 0x250   : > { %v11923_v62 = vpop.f32.mrf.mxu0 }
 0x251   : > { %v11975_v43 = vpop.f32.mrf.mxu1  ;;  %12216 = vmatmul.mubr.msk.f32.gmra.mxu0 %vm407_vm0, %v5101_v50  ;;  %12268 = vmatmul.mubr.msk.f32.gmra.mxu1 %vm407_vm0, %v15135_v32  ;;  %v5493_v32 = vld [vmem:[#allocation2 + $0xc9] sm:$0xff] }
 0x252   : > { %v15282_v61 = vadd.f32 %v11975_v43, %v11923_v62  ;;  %12218 = vmatprep.mubr.msk.f32.mxu0 %vm407_vm0, %v5102_v54  ;;  %12270 = vmatprep.mubr.msk.f32.mxu1 %vm407_vm0, %v15143_v4  ;;  %v5494_v4 = vld [vmem:[#allocation2 + $0xd9] sm:$0xff]  ;;  %v15305_v62 = vpop.f32.mrf.mxu0 }
 0x253   : > { %v15307_v43 = vpop.f32.mrf.mxu1 }
 0x255   : > { %12219 = vmatmul.mubr.msk.f32.gmra.mxu0 %vm407_vm0, %v5103_v46  ;;  %12271 = vmatmul.mubr.msk.f32.gmra.mxu1 %vm407_vm0, %v15149_v28  ;;  %v5495_v28 = vld [vmem:[#allocation2 + $0xe1] sm:$0xff]  ;;  %v5111_v46 = vld [vmem:[#allocation2 + $0x110] sm:$0xff] }
 0x256   : > { %12221 = vmatprep.mubr.msk.f32.mxu0 %vm407_vm0, %v5104_v7  ;;  %12273 = vmatprep.mubr.msk.f32.mxu1 %vm407_vm0, %v5492_v38  ;;  %v5499_v7 = vld [vmem:[#allocation2 + $0x111] sm:$0xff] }
 0x259   : > { %12222 = vmatmul.mubr.msk.f32.gmra.mxu0 %vm407_vm0, %v5105_v48  ;;  %12274 = vmatmul.mubr.msk.f32.gmra.mxu1 %vm407_vm0, %v5493_v32  ;;  %v5112_v48 = vld [vmem:[#allocation2 + $0x120] sm:$0xff] }
 0x25a   : > { %12224 = vmatprep.mubr.msk.f32.mxu0 %vm407_vm0, %v5106_v53  ;;  %12276 = vmatprep.mubr.msk.f32.mxu1 %vm407_vm0, %v5494_v4  ;;  %v5500_v32 = vld [vmem:[#allocation2 + $0x121] sm:$0xff]  ;;  %v5501_v53 = vld [vmem:[#allocation2 + $0x129] sm:$0xff] }
 0x25d   : > { %12225 = vmatmul.mubr.msk.f32.gmra.mxu0 %vm407_vm0, %v5107_v17  ;;  %12277 = vmatmul.mubr.msk.f32.gmra.mxu1 %vm407_vm0, %v5495_v28 }
 0x25e   : > { %12227 = vmatprep.mubr.msk.f32.mxu0 %vm407_vm0, %v5108_v0  ;;  %12279 = vmatprep.mubr.msk.f32.mxu1 %vm407_vm0, %v5496_v2 }
 0x261   : > { %12228 = vmatmul.mubr.msk.f32.gmra.mxu0 %vm407_vm0, %v5109_v29  ;;  %12280 = vmatmul.mubr.msk.f32.gmra.mxu1 %vm407_vm0, %v5497_v37 }
 0x262   : > { %12230 = vmatprep.mubr.msk.f32.mxu0 %vm407_vm0, %v5110_v14  ;;  %12282 = vmatprep.mubr.msk.f32.mxu1 %vm407_vm0, %v5498_v40 }
 0x264   : > { %v11926_v50 = vpop.f32.mrf.mxu0 }
 0x265   : > { %v11978_v54 = vpop.f32.mrf.mxu1  ;;  %12231 = vmatmul.mubr.msk.f32.gmra.mxu0 %vm407_vm0, %v5111_v46  ;;  %12283 = vmatmul.mubr.msk.f32.gmra.mxu1 %vm407_vm0, %v5499_v7  ;;  %v17743_v46 = vld [vmem:[#allocation15_spill] sm:$0xff] }
 0x266   : > { %v15311_v38 = vadd.f32 %v11978_v54, %v11926_v50  ;;  %12233 = vmatprep.mubr.msk.f32.mxu0 %vm407_vm0, %v5112_v48  ;;  %12285 = vmatprep.mubr.msk.f32.mxu1 %vm407_vm0, %v5500_v32  ;;  %v15328_v4 = vpop.f32.mrf.mxu0 }
 0x267   : > { %v15330_v17 = vpop.f32.mrf.mxu1 }
 0x269   : > { %12234 = vmatmul.mubr.msk.f32.gmra.mxu0 %vm407_vm0, %v14739_v18  ;;  %12286 = vmatmul.mubr.msk.f32.gmra.mxu1 %vm407_vm0, %v5501_v53 }
 0x26a   : > { %12236 = vmatprep.mubr.msk.f32.mxu0 %vm407_vm0, %v14749_v10  ;;  %12288 = vmatprep.mubr.msk.f32.mxu1 %vm407_vm0, %v14747_v19 }
 0x26d   : > { %12237 = vmatmul.mubr.msk.f32.gmra.mxu0 %vm407_vm0, %v14759_v35  ;;  %12289 = vmatmul.mubr.msk.f32.gmra.mxu1 %vm407_vm0, %v17738_v57 }
 0x26e   : > { %12239 = vmatprep.mubr.msk.f32.mxu0 %vm407_vm0, %v14767_v27  ;;  %12291 = vmatprep.mubr.msk.f32.mxu1 %vm407_vm0, %v17739_v47 }
 0x270   : > { %v11929_v18 = vpop.f32.mrf.mxu0 }
 0x271   : > { %v11981_v10 = vpop.f32.mrf.mxu1  ;;  %12240 = vmatmul.mubr.msk.f32.gmra.mxu0 %vm407_vm0, %v14775_v1  ;;  %12292 = vmatmul.mubr.msk.f32.gmra.mxu1 %vm407_vm0, %v17740_v26  ;;  %v5122_v26 = vld [vmem:[#allocation2 + $0x198] sm:$0xff] }
 0x272   : > { %v15336_v28 = vadd.f32 %v11981_v10, %v11929_v18  ;;  %v15342_v19 = vpop.f32.mrf.mxu0  ;;  %12242 = vmatprep.mubr.msk.f32.mxu0 %vm407_vm0, %v14783_v34  ;;  %12294 = vmatprep.mubr.msk.f32.mxu1 %vm407_vm0, %v17741_v12  ;;  %v5510_v12 = vld [vmem:[#allocation2 + $0x199] sm:$0xff] }
 0x273   : > { %v15344_v35 = vpop.f32.mrf.mxu1 }
 0x274   : > { %v11932_v27 = vpop.f32.mrf.mxu0 }
 0x275   : > { %v11984_v57 = vpop.f32.mrf.mxu1  ;;  %12243 = vmatmul.mubr.msk.f32.gmra.mxu0 %vm407_vm0, %v14791_v60  ;;  %12295 = vmatmul.mubr.msk.f32.gmra.mxu1 %vm407_vm0, %v17742_v25 }
 0x276   : > { %v15354_v1 = vadd.f32 %v11984_v57, %v11932_v27  ;;  %12245 = vmatprep.mubr.msk.f32.mxu0 %vm407_vm0, %v15021_v55  ;;  %12297 = vmatprep.mubr.msk.f32.mxu1 %vm407_vm0, %v15221_v39  ;;  %v15360_v34 = vpop.f32.mrf.mxu0  ;;  %v5123_v55 = vld [vmem:[#allocation2 + $0x1a0] sm:$0xff] }
 0x277   : > { %v15362_v47 = vpop.f32.mrf.mxu1  ;;  %v5511_v39 = vld [vmem:[#allocation2 + $0x1a1] sm:$0xff] }
 0x278   : > { %v11935_v0 = vpop.f32.mrf.mxu0 }
 0x279   : > { %v11987_v2 = vpop.f32.mrf.mxu1  ;;  %12246 = vmatmul.mubr.msk.f32.gmra.mxu0 %vm407_vm0, %v15041_v11  ;;  %12298 = vmatmul.mubr.msk.f32.gmra.mxu1 %vm407_vm0, %v15237_v49 }
 0x27a   : > { %v15368_v60 = vadd.f32 %v11987_v2, %v11935_v0  ;;  %12248 = vmatprep.mubr.msk.f32.mxu0 %vm407_vm0, %v5122_v26  ;;  %12300 = vmatprep.mubr.msk.f32.mxu1 %vm407_vm0, %v5510_v12  ;;  %v15372_v25 = vpop.f32.mrf.mxu0  ;;  %v17744_v0 = vld [vmem:[#allocation10_spill] sm:$0xff] }
 0x27b   : > { %v15374_v29 = vpop.f32.mrf.mxu1 }
 0x27c   : > { %v11938_v37 = vpop.f32.mrf.mxu0 }
 0x27d   : > { %v11990_v14 = vpop.f32.mrf.mxu1  ;;  %12249 = vmatmul.mubr.msk.f32.gmra.mxu0 %vm407_vm0, %v5123_v55  ;;  %12301 = vmatmul.mubr.msk.f32.gmra.mxu1 %vm407_vm0, %v5511_v39  ;;  %v17746_v39 = vld [vmem:[#allocation27_spill] sm:$0xff] }
 0x27e   : > { %v15378_v11 = vadd.f32 %v11990_v14, %v11938_v37  ;;  %12307 = vmatprep.mubr.msk.f32.mxu0 %vm407_vm0, %v14836_v44  ;;  %v15382_v49 = vpop.f32.mrf.mxu0 }
 0x27f   : > { %v15384_v40 = vpop.f32.mrf.mxu1 }
 0x280   : > { %v11997_v50 = vpop.f32.mrf.mxu0 }
 0x281   : > { %v12049_v54 = vpop.f32.mrf.mxu1  ;;  %12308 = vmatmul.mubr.msk.f32.vlgmr.msra.gmra.mxu0 %vm407_vm0, %v14844_v63  ;;  %v3896_v7 = vadd.f32 %v11997_v50, %v17743_v46  ;;  %v5877_v50 = vld [vmem:[#allocation2 + $0x9a] sm:$0xff] }
 0x282   : > { %12310 = vmatprep.mubr.msk.f32.mxu0 %vm407_vm0, %v14856_v51  ;;  %v15391_v48 = vpop.f32.mrf.mxu0 }
 0x283   : > { %v15393_v32 = vpop.f32.mrf.mxu1  ;;  %v15395_v53 = vadd.f32 %v12049_v54, %v3896_v7  ;;  %v17748_v7 = vld [vmem:[#allocation39_spill] sm:$0xff] }
 0x285   : > { %v12000_v44 = vpop.f32.mrf.mxu0  ;;  %v12052_v18 = vpop.f32.mrf.mxu1  ;;  %12311 = vmatmul.mubr.msk.f32.gmra.mxu0 %vm407_vm0, %v14866_v41 }
 0x286   : > { %v3898_v10 = vadd.f32 %v12000_v44, %v14969_v20  ;;  %12313 = vmatprep.mubr.msk.f32.mxu0 %vm407_vm0, %v14873_v6 }
 0x287   : > { %v15402_v63 = vpop.f32.mrf.mxu0  ;;  %v15404_v27 = vpop.f32.mrf.mxu1 }
 0x288   : > { %v15406_v51 = vadd.f32 %v12052_v18, %v3898_v10 }
 0x289   : > { %v12003_v57 = vpop.f32.mrf.mxu0  ;;  %v12055_v26 = vpop.f32.mrf.mxu1  ;;  %12314 = vmatmul.mubr.msk.f32.gmra.mxu0 %vm407_vm0, %v14879_v36 }
 0x28a   : > { %v3900_v12 = vadd.f32 %v12003_v57, %v14987_v59  ;;  %12316 = vmatprep.mubr.msk.f32.mxu0 %vm407_vm0, %v17744_v0  ;;  %v5879_v57 = vld [vmem:[#allocation2 + $0xb2] sm:$0xff]  ;;  %v5880_v0 = vld [vmem:[#allocation2 + $0xc2] sm:$0xff] }
 0x28b   : > { %v15413_v41 = vpop.f32.mrf.mxu0  ;;  %v15415_v20 = vpop.f32.mrf.mxu1 }
 0x28c   : > { %17745 = vst [vmem:[#allocation36_spill] sm:$0xff] %v15415_v20  ;;  %v15417_v6 = vadd.f32 %v12055_v26, %v3900_v12 }
 0x28d   : > { %v12006_v2 = vpop.f32.mrf.mxu0  ;;  %v12058_v55 = vpop.f32.mrf.mxu1  ;;  %12317 = vmatmul.mubr.msk.f32.gmra.mxu0 %vm407_vm0, %v14891_v52  ;;  %v10621_v52 = vld [vmem:[%s17517_s8 + $0x18] sm:$0xff] }
 0x28e   : > { %v3902_v37 = vadd.f32 %v12006_v2, %v17746_v39  ;;  %12319 = vmatprep.mubr.msk.f32.mxu0 %vm407_vm0, %v14897_v58  ;;  %12355 = vmatprep.subr.mxu1 %v10621_v52  ;;  %v17750_v2 = vld [vmem:[#allocation9_spill] sm:$0xff] }
 0x28f   : > { %v15424_v36 = vpop.f32.mrf.mxu0  ;;  %v15426_v59 = vpop.f32.mrf.mxu1  ;;  %12356 = vmatpush3.msra.mxu1 %v10621_v52 }
 0x290   : > { %17747 = vst [vmem:[#allocation58_spill] sm:$0xff] %v15426_v59  ;;  %v15428_v14 = vadd.f32 %v12058_v55, %v3902_v37 }
 0x291   : > { %v12009_v54 = vpop.f32.mrf.mxu0  ;;  %v12061_v46 = vpop.f32.mrf.mxu1  ;;  %12320 = vmatmul.mubr.msk.f32.gmra.mxu0 %vm407_vm0, %v5877_v50  ;;  %v5881_v50 = vld [vmem:[#allocation2 + $0xca] sm:$0xff] }
 0x292   : > { %v3904_v44 = vadd.f32 %v12009_v54, %v17748_v7  ;;  %12322 = vmatprep.mubr.msk.f32.mxu0 %vm407_vm0, %v14909_v23  ;;  %v5882_v7 = vld [vmem:[#allocation2 + $0xda] sm:$0xff] }
 0x293   : > { %v15437_v58 = vpop.f32.mrf.mxu0  ;;  %v15439_v18 = vpop.f32.mrf.mxu1 }
 0x294   : > { %17749 = vst [vmem:[#allocation46_spill] sm:$0xff] %v15439_v18  ;;  %v15441_v10 = vadd.f32 %v12061_v46, %v3904_v44  ;;  %v17752_v44 = vld [vmem:[#allocation26_spill] sm:$0xff] }
 0x295   : > { %v12012_v26 = vpop.f32.mrf.mxu0  ;;  %v12064_v12 = vpop.f32.mrf.mxu1  ;;  %12323 = vmatmul.mubr.msk.f32.gmra.mxu0 %vm407_vm0, %v5879_v57 }
 0x296   : > { %v3906_v23 = vadd.f32 %v12012_v26, %v17750_v2  ;;  %12325 = vmatprep.mubr.msk.f32.mxu0 %vm407_vm0, %v5880_v0  ;;  %v5883_v2 = vld [vmem:[#allocation2 + $0xe2] sm:$0xff] }
 0x297   : > { %v15446_v55 = vpop.f32.mrf.mxu0  ;;  %v15448_v39 = vpop.f32.mrf.mxu1 }
 0x298   : > { %17751 = vst [vmem:[#allocation19_spill] sm:$0xff] %v15448_v39  ;;  %v15450_v37 = vadd.f32 %v12064_v12, %v3906_v23  ;;  %v5884_v23 = vld [vmem:[#allocation2 + $0xf2] sm:$0xff] }
 0x299   : > { %v12015_v54 = vpop.f32.mrf.mxu0  ;;  %v12067_v46 = vpop.f32.mrf.mxu1  ;;  %12326 = vmatmul.mubr.msk.f32.gmra.mxu0 %vm407_vm0, %v5881_v50 }
 0x29a   : > { %v3908_v52 = vadd.f32 %v12015_v54, %v17752_v44  ;;  %12328 = vmatprep.mubr.msk.f32.mxu0 %vm407_vm0, %v5882_v7  ;;  %v5885_v44 = vld [vmem:[#allocation2 + $0xfa] sm:$0xff] }
 0x29b   : > { %v15455_v57 = vpop.f32.mrf.mxu0  ;;  %v15457_v26 = vpop.f32.mrf.mxu1 }
 0x29c   : > { %17753 = vst [vmem:[#allocation13_spill] sm:$0xff] %v15457_v26  ;;  %v15459_v0 = vadd.f32 %v12067_v46, %v3908_v52  ;;  %v5886_v52 = vld [vmem:[#allocation2 + $0x10a] sm:$0xff] }
 0x29d   : > { %v12018_v39 = vpop.f32.mrf.mxu0  ;;  %v12070_v12 = vpop.f32.mrf.mxu1  ;;  %12329 = vmatmul.mubr.msk.f32.gmra.mxu0 %vm407_vm0, %v5883_v2 }
 0x29e   : > { %v3910_v18 = vadd.f32 %v12018_v39, %v15137_v13  ;;  %12331 = vmatprep.mubr.msk.f32.mxu0 %vm407_vm0, %v5884_v23  ;;  %v5887_v23 = vld [vmem:[#allocation2 + $0x112] sm:$0xff] }
 0x29f   : > { %v15464_v50 = vpop.f32.mrf.mxu0  ;;  %v15466_v54 = vpop.f32.mrf.mxu1 }
 0x2a0   : > { %17754 = vst [vmem:[#allocation31_spill] sm:$0xff] %v15466_v54  ;;  %v15468_v7 = vadd.f32 %v12070_v12, %v3910_v18  ;;  %v5888_v12 = vld [vmem:[#allocation2 + $0x122] sm:$0xff] }
 0x2a1   : > { %v12021_v26 = vpop.f32.mrf.mxu0  ;;  %v12073_v46 = vpop.f32.mrf.mxu1  ;;  %12332 = vmatmul.mubr.msk.f32.gmra.mxu0 %vm407_vm0, %v5885_v44 }
 0x2a2   : > { %v3912_v59 = vadd.f32 %v12021_v26, %v15187_v3  ;;  %12334 = vmatprep.mubr.msk.f32.mxu0 %vm407_vm0, %v5886_v52  ;;  %v5889_v52 = vld [vmem:[#allocation2 + $0x12a] sm:$0xff] }
 0x2a3   : > { %v15473_v2 = vpop.f32.mrf.mxu0  ;;  %v15475_v13 = vpop.f32.mrf.mxu1 }
 0x2a4   : > { %17755 = vst [vmem:[#allocation32_spill] sm:$0xff] %v15473_v2  ;;  %17756 = vst [vmem:[#allocation34_spill] sm:$0xff] %v15475_v13  ;;  %v15477_v39 = vadd.f32 %v12073_v46, %v3912_v59  ;;  %v5890_v46 = vld [vmem:[#allocation2 + $0x13a] sm:$0xff] }
 0x2a5   : > { %v12024_v54 = vpop.f32.mrf.mxu0  ;;  %v12076_v18 = vpop.f32.mrf.mxu1  ;;  %12335 = vmatmul.mubr.msk.f32.gmra.mxu0 %vm407_vm0, %v5887_v23 }
 0x2a6   : > { %v3914_v20 = vadd.f32 %v12024_v54, %v15241_v30  ;;  %12337 = vmatprep.mubr.msk.f32.mxu0 %vm407_vm0, %v5888_v12 }
 0x2a7   : > { %v15482_v44 = vpop.f32.mrf.mxu0  ;;  %v15484_v3 = vpop.f32.mrf.mxu1 }
 0x2a8   : > { %17757 = vst [vmem:[#allocation17_spill] sm:$0xff] %v15484_v3  ;;  %v15486_v26 = vadd.f32 %v12076_v18, %v3914_v20 }
 0x2a9   : > { %v12027_v13 = vpop.f32.mrf.mxu0  ;;  %v12079_v59 = vpop.f32.mrf.mxu1  ;;  %12338 = vmatmul.mubr.msk.f32.gmra.mxu0 %vm407_vm0, %v5889_v52 }
 0x2aa   : > { %v3916_v2 = vadd.f32 %v12027_v13, %v15282_v61  ;;  %12340 = vmatprep.mubr.msk.f32.mxu0 %vm407_vm0, %v5890_v46 }
 0x2ab   : > { %v15491_v23 = vpop.f32.mrf.mxu0  ;;  %v15493_v30 = vpop.f32.mrf.mxu1 }
 0x2ac   : > { %17758 = vst [vmem:[#allocation22_spill] sm:$0xff] %v15493_v30  ;;  %v15495_v54 = vadd.f32 %v12079_v59, %v3916_v2 }
 0x2ad   : > { %v12030_v12 = vpop.f32.mrf.mxu0  ;;  %v12082_v3 = vpop.f32.mrf.mxu1  ;;  %12341 = vmatmul.mubr.msk.f32.gmra.mxu0 %vm407_vm0, %v15003_v56  ;;  %v10620_v56 = vld [vmem:[%s17517_s8 + $0x10] sm:$0xff] }
 0x2ae   : > { %v3918_v20 = vadd.f32 %v12030_v12, %v15311_v38  ;;  %12343 = vmatprep.mubr.msk.f32.mxu0 %vm407_vm0, %v15013_v5  ;;  %12357 = vmatprep.subr.mxu1 %v10620_v56 }
 0x2af   : > { %v15502_v18 = vpop.f32.mrf.mxu0  ;;  %v15504_v61 = vpop.f32.mrf.mxu1  ;;  %12358 = vmatpush3.msra.mxu1 %v10620_v56 }
 0x2b0   : > { %17759 = vst [vmem:[#allocation74_spill] sm:$0xff] %v15504_v61  ;;  %v15506_v13 = vadd.f32 %v12082_v3, %v3918_v20  ;;  %v5898_v20 = vld [vmem:[#allocation2 + $0x19a] sm:$0xff] }
 0x2b1   : > { %v12033_v52 = vpop.f32.mrf.mxu0  ;;  %v12085_v46 = vpop.f32.mrf.mxu1  ;;  %12344 = vmatmul.mubr.msk.f32.gmra.mxu0 %vm407_vm0, %v15023_v21 }
 0x2b2   : > { %v3920_v2 = vadd.f32 %v12033_v52, %v15336_v28  ;;  %12346 = vmatprep.mubr.msk.f32.mxu0 %vm407_vm0, %v15033_v31 }
 0x2b3   : > { %v15516_v5 = vpop.f32.mrf.mxu0  ;;  %v15518_v38 = vpop.f32.mrf.mxu1 }
 0x2b4   : > { %17760 = vst [vmem:[#allocation45_spill] sm:$0xff] %v15518_v38  ;;  %v15520_v3 = vadd.f32 %v12085_v46, %v3920_v2 }
 0x2b5   : > { %v12036_v59 = vpop.f32.mrf.mxu0  ;;  %v12088_v12 = vpop.f32.mrf.mxu1  ;;  %12347 = vmatmul.mubr.msk.f32.gmra.mxu0 %vm407_vm0, %v15043_v33  ;;  %v5899_v33 = vld [vmem:[#allocation2 + $0x1a2] sm:$0xff] }
 0x2b6   : > { %v3922_v21 = vadd.f32 %v12036_v59, %v15354_v1  ;;  %12349 = vmatprep.mubr.msk.f32.mxu0 %vm407_vm0, %v15223_v24 }
 0x2b7   : > { %v15527_v31 = vpop.f32.mrf.mxu0  ;;  %v15529_v28 = vpop.f32.mrf.mxu1 }
 0x2b8   : > { %17761 = vst [vmem:[#allocation21_spill] sm:$0xff] %v15527_v31  ;;  %17762 = vst [vmem:[#allocation64_spill] sm:$0xff] %v15529_v28  ;;  %v15531_v52 = vadd.f32 %v12088_v12, %v3922_v21 }
 0x2b9   : > { %v12039_v46 = vpop.f32.mrf.mxu0  ;;  %v12091_v2 = vpop.f32.mrf.mxu1  ;;  %12350 = vmatmul.mubr.msk.f32.gmra.mxu0 %vm407_vm0, %v15239_v15 }
 0x2ba   : > { %v3924_v56 = vadd.f32 %v12039_v46, %v15368_v60  ;;  %12352 = vmatprep.mubr.msk.f32.mxu0 %vm407_vm0, %v5898_v20 }
 0x2bb   : > { %v15537_v1 = vpop.f32.mrf.mxu0  ;;  %v15539_v24 = vpop.f32.mrf.mxu1 }
 0x2bc   : > { %17763 = vst [vmem:[#allocation33_spill] sm:$0xff] %v15537_v1  ;;  %17764 = vst [vmem:[#allocation52_spill] sm:$0xff] %v15539_v24  ;;  %v15541_v59 = vadd.f32 %v12091_v2, %v3924_v56 }
 0x2bd   : > { %v12042_v28 = vpop.f32.mrf.mxu0  ;;  %v12094_v38 = vpop.f32.mrf.mxu1  ;;  %12353 = vmatmul.mubr.msk.f32.gmra.mxu0 %vm407_vm0, %v5899_v33 }
 0x2be   : > { %v3926_v12 = vadd.f32 %v12042_v28, %v15378_v11 }
 0x2bf   : > { %v15545_v21 = vpop.f32.mrf.mxu0  ;;  %v15547_v15 = vpop.f32.mrf.mxu1 }
 0x2c0   : > { %17765 = vst [vmem:[#allocation41_spill] sm:$0xff] %v15545_v21  ;;  %17766 = vst [vmem:[#allocation42_spill] sm:$0xff] %v15547_v15  ;;  %v15549_v60 = vadd.f32 %v12094_v38, %v3926_v12 }
 0x2c1   : > { %v12101_v20 = vpop.f32.mrf.mxu0  ;;  %v15551_v46 = vpop.f32.mrf.mxu1 }
 0x2c2   : > { %v15554_v1 = vadd.f32 %v12101_v20, %v15395_v53 }
 0x2c3   : > { %v15556_v2 = vpop.f32.mrf.mxu0  ;;  %v15558_v56 = vpop.f32.mrf.mxu1 }
 0x2c5   : > { %v12104_v24 = vpop.f32.mrf.mxu0  ;;  %v15560_v33 = vpop.f32.mrf.mxu1 }
 0x2c6   : > { %v15563_v11 = vadd.f32 %v12104_v24, %v15406_v51  ;;  %v6432_v51 = vld [vmem:[%s17517_s8 + $0x8] sm:$0xff] }
 0x2c7   : > { %v15565_v28 = vpop.f32.mrf.mxu0  ;;  %v15567_v38 = vpop.f32.mrf.mxu1  ;;  %12407 = vmatprep.subr.mxu0 %v6432_v51 }
 0x2c8   : > { %12408 = vmatpush3.msra.mxu0 %v6432_v51 }
 0x2c9   : > { %v12107_v12 = vpop.f32.mrf.mxu0  ;;  %v15569_v15 = vpop.f32.mrf.mxu1 }
 0x2ca   : > { %17767 = vst [vmem:[#allocation73_spill] sm:$0xff] %v15569_v15  ;;  %v15572_v53 = vadd.f32 %v12107_v12, %v15417_v6  ;;  %v6431_v6 = vld [vmem:[%s17517_s8] sm:$0xff]  ;;  %v6433_v12 = vld [vmem:[#allocation3 + $0x1] sm:$0xff] }
 0x2cb   : > { %v15574_v20 = vpop.f32.mrf.mxu0  ;;  %v15576_v21 = vpop.f32.mrf.mxu1  ;;  %12409 = vmatprep.subr.mxu0 %v6431_v6  ;;  %12359 = vmatprep.mubr.msk.f32.mxu1 %vm407_vm0, %v6433_v12 }
 0x2cc   : > { %17768 = vst [vmem:[#allocation51_spill] sm:$0xff] %v15572_v53  ;;  %17769 = vst [vmem:[#allocation37_spill] sm:$0xff] %v15576_v21  ;;  %12410 = vmatpush3.msra.mxu0 %v6431_v6 }
 0x2cd   : > { %v12110_v61 = vpop.f32.mrf.mxu0  ;;  %v15578_v30 = vpop.f32.mrf.mxu1 }
 0x2ce   : > { %17770 = vst [vmem:[#allocation38_spill] sm:$0xff] %v15578_v30  ;;  %v15584_v24 = vadd.f32 %v12110_v61, %v15428_v14  ;;  %v6399_v30 = vld [vmem:[#allocation3] sm:$0xff]  ;;  %v6434_v14 = vld [vmem:[#allocation3 + $0x9] sm:$0xff] }
 0x2cf   : > { %v15586_v31 = vpop.f32.mrf.mxu0  ;;  %v15588_v15 = vpop.f32.mrf.mxu1  ;;  %v6400_v61 = vld [vmem:[#allocation3 + $0x8] sm:$0xff]  ;;  %12411 = vmatprep.mubr.msk.f32.mxu0 %vm407_vm0, %v6399_v30  ;;  %12360 = vmatmul.mubr.msk.f32.vlgmr.msra.gmra.mxu1 %vm407_vm0, %v6434_v14  ;;  %v10687_v30 = vld [vmem:[%s17517_s8 + $0x28] sm:$0xff] }
 0x2d0   : > { %17771 = vst [vmem:[#allocation63_spill] sm:$0xff] %v15584_v24  ;;  %17772 = vst [vmem:[#allocation43_spill] sm:$0xff] %v15586_v31  ;;  %12412 = vmatmul.mubr.msk.f32.vlgmr.msra.gmra.mxu0 %vm407_vm0, %v6400_v61  ;;  %12459 = vmatprep.subr.mxu1 %v10687_v30 }
 0x2d1   : > { %17773 = vst [vmem:[#allocation44_spill] sm:$0xff] %v15588_v15  ;;  %v12113_v21 = vpop.f32.mrf.mxu0  ;;  %v15593_v53 = vpop.f32.mrf.mxu1  ;;  %12460 = vmatpush3.msra.mxu1 %v10687_v30 }
 0x2d2   : > { %17774 = vst [vmem:[#allocation47_spill] sm:$0xff] %v15593_v53  ;;  %v15597_v24 = vadd.f32 %v12113_v21, %v15441_v10 }
 0x2d3   : > { %v15601_v51 = vpop.f32.mrf.mxu0  ;;  %v15603_v15 = vpop.f32.mrf.mxu1 }
 0x2d4   : > { %17775 = vst [vmem:[#allocation48_spill] sm:$0xff] %v15597_v24  ;;  %17776 = vst [vmem:[#allocation53_spill] sm:$0xff] %v15601_v51  ;;  %v17860_v51 = vld [vmem:[#allocation11_spill] sm:$0xff] }
 0x2d5   : > { %17777 = vst [vmem:[#allocation54_spill] sm:$0xff] %v15603_v15  ;;  %v12116_v31 = vpop.f32.mrf.mxu0  ;;  %v15606_v53 = vpop.f32.mrf.mxu1 }
 0x2d6   : > { %17778 = vst [vmem:[#allocation49_spill] sm:$0xff] %v15606_v53  ;;  %v15609_v6 = vadd.f32 %v12116_v31, %v15450_v37 }
 0x2d7   : > { %v15611_v12 = vpop.f32.mrf.mxu0  ;;  %v15613_v10 = vpop.f32.mrf.mxu1 }
 0x2d8   : > { %17779 = vst [vmem:[#allocation50_spill] sm:$0xff] %v15609_v6  ;;  %17780 = vst [vmem:[#allocation59_spill] sm:$0xff] %v15611_v12 }
 0x2d9   : > { %17781 = vst [vmem:[#allocation60_spill] sm:$0xff] %v15613_v10  ;;  %v12119_v21 = vpop.f32.mrf.mxu0  ;;  %v15618_v14 = vpop.f32.mrf.mxu1 }
 0x2da   : > { %17782 = vst [vmem:[#allocation55_spill] sm:$0xff] %v15618_v14  ;;  %v15621_v61 = vadd.f32 %v12119_v21, %v15459_v0 }
 0x2db   : > { %v15623_v53 = vpop.f32.mrf.mxu0  ;;  %v15625_v37 = vpop.f32.mrf.mxu1 }
 0x2dc   : > { %17783 = vst [vmem:[#allocation56_spill] sm:$0xff] %v15621_v61  ;;  %17784 = vst [vmem:[#allocation65_spill] sm:$0xff] %v15623_v53 }
 0x2dd   : > { %17785 = vst [vmem:[#allocation66_spill] sm:$0xff] %v15625_v37  ;;  %v12122_v31 = vpop.f32.mrf.mxu0  ;;  %v15627_v6 = vpop.f32.mrf.mxu1 }
 0x2de   : > { %17786 = vst [vmem:[#allocation61_spill] sm:$0xff] %v15627_v6  ;;  %v15630_v10 = vadd.f32 %v12122_v31, %v15468_v7 }
 0x2df   : > { %v15632_v12 = vpop.f32.mrf.mxu0  ;;  %v15634_v15 = vpop.f32.mrf.mxu1 }
 0x2e0   : > { %17787 = vst [vmem:[#allocation62_spill] sm:$0xff] %v15630_v10  ;;  %17788 = vst [vmem:[#allocation69_spill] sm:$0xff] %v15632_v12 }
 0x2e1   : > { %17789 = vst [vmem:[#allocation70_spill] sm:$0xff] %v15634_v15  ;;  %v12125_v14 = vpop.f32.mrf.mxu0  ;;  %v15636_v24 = vpop.f32.mrf.mxu1 }
 0x2e2   : > { %17790 = vst [vmem:[#allocation67_spill] sm:$0xff] %v15636_v24  ;;  %v15639_v0 = vadd.f32 %v12125_v14, %v15477_v39 }
 0x2e3   : > { %v15641_v30 = vpop.f32.mrf.mxu0  ;;  %v15643_v21 = vpop.f32.mrf.mxu1 }
 0x2e4   : > { %17791 = vst [vmem:[#allocation68_spill] sm:$0xff] %v15639_v0  ;;  %17792 = vst [vmem:[#allocation75_spill] sm:$0xff] %v15641_v30 }
 0x2e5   : > { %17793 = vst [vmem:[#allocation76_spill] sm:$0xff] %v15643_v21  ;;  %v12128_v37 = vpop.f32.mrf.mxu0  ;;  %v15645_v61 = vpop.f32.mrf.mxu1 }
 0x2e6   : > { %17794 = vst [vmem:[#allocation71_spill] sm:$0xff] %v15645_v61  ;;  %v15648_v7 = vadd.f32 %v12128_v37, %v15486_v26 }
 0x2e7   : > { %v15650_v31 = vpop.f32.mrf.mxu0  ;;  %v15652_v6 = vpop.f32.mrf.mxu1 }
 0x2e8   : > { %17795 = vst [vmem:[#allocation72_spill] sm:$0xff] %v15648_v7  ;;  %17796 = vst [vmem:[#allocation77_spill] sm:$0xff] %v15650_v31 }
 0x2e9   : > { %17797 = vst [vmem:[#allocation78_spill] sm:$0xff] %v15652_v6  ;;  %v12131_v15 = vpop.f32.mrf.mxu0  ;;  %v15654_v10 = vpop.f32.mrf.mxu1 }
 0x2ea   : > { %17798 = vst [vmem:[#allocation23_spill] sm:$0xff] %v15654_v10  ;;  %v15657_v39 = vadd.f32 %v12131_v15, %v15495_v54 }
 0x2eb   : > { %v15659_v14 = vpop.f32.mrf.mxu0  ;;  %v15661_v24 = vpop.f32.mrf.mxu1 }
 0x2ec   : > { %17799 = vst [vmem:[#allocation24_spill] sm:$0xff] %v15657_v39  ;;  %17800 = vst [vmem:[#allocation16_spill] sm:$0xff] %v15659_v14 }
 0x2ed   : > { %17801 = vst [vmem:[#allocation12_spill] sm:$0xff] %v15661_v24  ;;  %v12134_v21 = vpop.f32.mrf.mxu0  ;;  %v15663_v0 = vpop.f32.mrf.mxu1 }
 0x2ee   : > { %17802 = vst [vmem:[#allocation6_spill] sm:$0xff] %v15663_v0  ;;  %v15666_v26 = vadd.f32 %v12134_v21, %v15506_v13 }
 0x2ef   : > { %v15668_v37 = vpop.f32.mrf.mxu0  ;;  %v15670_v61 = vpop.f32.mrf.mxu1 }
 0x2f0   : > { %17803 = vst [vmem:[#allocation4_spill] sm:$0xff] %v15666_v26  ;;  %17804 = vst [vmem:[#allocation15_spill] sm:$0xff] %v15668_v37 }
 0x2f1   : > { %17805 = vst [vmem:[#allocation10_spill] sm:$0xff] %v15670_v61  ;;  %v12137_v6 = vpop.f32.mrf.mxu0  ;;  %v15672_v7 = vpop.f32.mrf.mxu1 }
 0x2f2   : > { %17806 = vst [vmem:[#allocation27_spill] sm:$0xff] %v15672_v7  ;;  %v15675_v54 = vadd.f32 %v12137_v6, %v15520_v3  ;;  %v10686_v7 = vld [vmem:[%s17517_s8 + $0x20] sm:$0xff] }
 0x2f3   : > { %v15677_v15 = vpop.f32.mrf.mxu0  ;;  %v15679_v10 = vpop.f32.mrf.mxu1  ;;  %12461 = vmatprep.subr.mxu1 %v10686_v7 }
 0x2f4   : > { %17807 = vst [vmem:[#allocation39_spill] sm:$0xff] %v15675_v54  ;;  %17808 = vst [vmem:[#allocation9_spill] sm:$0xff] %v15677_v15  ;;  %12462 = vmatpush3.msra.mxu1 %v10686_v7 }
 0x2f5   : > { %17809 = vst [vmem:[#allocation26_spill] sm:$0xff] %v15679_v10  ;;  %v12140_v24 = vpop.f32.mrf.mxu0  ;;  %v15681_v39 = vpop.f32.mrf.mxu1 }
 0x2f6   : > { %17810 = vst [vmem:[#allocation79_spill] sm:$0xff] %v15681_v39  ;;  %v15684_v13 = vadd.f32 %v12140_v24, %v15531_v52 }
 0x2f7   : > { %v15686_v21 = vpop.f32.mrf.mxu0  ;;  %v15688_v0 = vpop.f32.mrf.mxu1 }
 0x2f8   : > { %17811 = vst [vmem:[#allocation80_spill] sm:$0xff] %v15684_v13  ;;  %17812 = vst [vmem:[#allocation81_spill] sm:$0xff] %v15686_v21 }
 0x2f9   : > { %17813 = vst [vmem:[#allocation82_spill] sm:$0xff] %v15688_v0  ;;  %v12143_v3 = vpop.f32.mrf.mxu0  ;;  %v15693_v6 = vpop.f32.mrf.mxu1 }
 0x2fa   : > { %17814 = vst [vmem:[#allocation83_spill] sm:$0xff] %v15693_v6  ;;  %v15696_v10 = vadd.f32 %v12143_v3, %v15541_v59 }
 0x2fb   : > { %v15698_v39 = vpop.f32.mrf.mxu0  ;;  %v15700_v52 = vpop.f32.mrf.mxu1 }
 0x2fc   : > { %17815 = vst [vmem:[#allocation84_spill] sm:$0xff] %v15696_v10  ;;  %17816 = vst [vmem:[#allocation85_spill] sm:$0xff] %v15698_v39  ;;  %v10720_v10 = vld [vmem:[%s17517_s8 + $0x30] sm:$0xff]  ;;  %v10755_v39 = vld [vmem:[%s17517_s8 + $0x48] sm:$0xff] }
 0x2fd   : > { %17817 = vst [vmem:[#allocation86_spill] sm:$0xff] %v15700_v52  ;;  %v12146_v24 = vpop.f32.mrf.mxu0  ;;  %v15702_v13 = vpop.f32.mrf.mxu1  ;;  %12563 = vmatprep.subr.mxu1 %v10755_v39 }
 0x2fe   : > { %17818 = vst [vmem:[#allocation87_spill] sm:$0xff] %v15702_v13  ;;  %v15705_v0 = vadd.f32 %v12146_v24, %v15549_v60 }
 0x2ff   : > { %v15707_v21 = vpop.f32.mrf.mxu0  ;;  %v15709_v54 = vpop.f32.mrf.mxu1 }
 0x300   : > { %17819 = vst [vmem:[#allocation88_spill] sm:$0xff] %v15705_v0  ;;  %17820 = vst [vmem:[#allocation89_spill] sm:$0xff] %v15707_v21  ;;  %v10721_v21 = vld [vmem:[%s17517_s8 + $0x38] sm:$0xff] }
 0x301   : > { %17821 = vst [vmem:[#allocation90_spill] sm:$0xff] %v15709_v54  ;;  %v15711_v6 = vpop.f32.mrf.mxu0  ;;  %v15713_v15 = vpop.f32.mrf.mxu1  ;;  %12511 = vmatprep.subr.mxu0 %v10721_v21 }
 0x302   : > { %12512 = vmatpush3.msra.mxu0 %v10721_v21 }
 0x303   : > { %v15715_v59 = vpop.f32.mrf.mxu0  ;;  %v15717_v7 = vpop.f32.mrf.mxu1  ;;  %12513 = vmatprep.subr.mxu0 %v10720_v10 }
 0x304   : > { %17822 = vst [vmem:[#allocation91_spill] sm:$0xff] %v15717_v7  ;;  %12514 = vmatpush3.msra.mxu0 %v10720_v10 }
 0x305   : > { %v15719_v3 = vpop.f32.mrf.mxu0  ;;  %v15723_v13 = vpop.f32.mrf.mxu1 }
 0x306   : > { %17824 = vst [vmem:[#allocation93_spill] sm:$0xff] %v15723_v13  ;;  %v17864_v13 = vld [vmem:[#allocation30_spill] sm:$0xff] }
 0x307   : > { %v15721_v52 = vpop.f32.mrf.mxu0  ;;  %v15729_v0 = vpop.f32.mrf.mxu1 }
 0x308   : > { %17823 = vst [vmem:[#allocation92_spill] sm:$0xff] %v15721_v52  ;;  %17827 = vst [vmem:[#allocation96_spill] sm:$0xff] %v15729_v0  ;;  %v17869_v52 = vld [vmem:[#allocation40_spill] sm:$0xff] }
 0x309   : > { %v15725_v60 = vpop.f32.mrf.mxu0  ;;  %v15744_v26 = vpop.f32.mrf.mxu1 }
 0x30a   : > { %17825 = vst [vmem:[#allocation94_spill] sm:$0xff] %v15725_v60  ;;  %17830 = vst [vmem:[#allocation99_spill] sm:$0xff] %v15744_v26  ;;  %v17867_v60 = vld [vmem:[#allocation18_spill] sm:$0xff] }
 0x30b   : > { %v15727_v24 = vpop.f32.mrf.mxu0  ;;  %v15750_v31 = vpop.f32.mrf.mxu1 }
 0x30c   : > { %17826 = vst [vmem:[#allocation95_spill] sm:$0xff] %v15727_v24  ;;  %17833 = vst [vmem:[#allocation102_spill] sm:$0xff] %v15750_v31 }
 0x30d   : > { %v15731_v54 = vpop.f32.mrf.mxu0  ;;  %v15756_v53 = vpop.f32.mrf.mxu1 }
 0x30e   : > { %17828 = vst [vmem:[#allocation97_spill] sm:$0xff] %v15731_v54  ;;  %17836 = vst [vmem:[#allocation105_spill] sm:$0xff] %v15756_v53 }
 0x30f   : > { %v15742_v61 = vpop.f32.mrf.mxu0  ;;  %v15762_v39 = vpop.f32.mrf.mxu1 }
 0x310   : > { %17829 = vst [vmem:[#allocation98_spill] sm:$0xff] %v15742_v61  ;;  %17839 = vst [vmem:[#allocation108_spill] sm:$0xff] %v15762_v39 }
 0x311   : > { %v15746_v37 = vpop.f32.mrf.mxu0  ;;  %v15768_v10 = vpop.f32.mrf.mxu1 }
 0x312   : > { %17831 = vst [vmem:[#allocation100_spill] sm:$0xff] %v15746_v37  ;;  %17842 = vst [vmem:[#allocation111_spill] sm:$0xff] %v15768_v10 }
 0x313   : > { %v15748_v14 = vpop.f32.mrf.mxu0 }
 0x314   : > { %17832 = vst [vmem:[#allocation101_spill] sm:$0xff] %v15748_v14 }
 0x315   : > { %v15752_v30 = vpop.f32.mrf.mxu0 }
 0x316   : > { %17834 = vst [vmem:[#allocation103_spill] sm:$0xff] %v15752_v30  ;;  %v15774_v30 = vpop.f32.mrf.mxu1 }
 0x317   : > { %v15754_v12 = vpop.f32.mrf.mxu0  ;;  %17845 = vst [vmem:[#allocation114_spill] sm:$0xff] %v15774_v30 }
 0x318   : > { %17835 = vst [vmem:[#allocation104_spill] sm:$0xff] %v15754_v12 }
 0x319   : > { %v15758_v54 = vpop.f32.mrf.mxu0 }
 0x31a   : > { %17837 = vst [vmem:[#allocation106_spill] sm:$0xff] %v15758_v54  ;;  %v15780_v54 = vpop.f32.mrf.mxu1 }
 0x31b   : > { %v15760_v21 = vpop.f32.mrf.mxu0  ;;  %17848 = vst [vmem:[#allocation117_spill] sm:$0xff] %v15780_v54 }
 0x31c   : > { %17838 = vst [vmem:[#allocation107_spill] sm:$0xff] %v15760_v21 }
 0x31d   : > { %v15764_v61 = vpop.f32.mrf.mxu0 }
 0x31e   : > { %17840 = vst [vmem:[#allocation109_spill] sm:$0xff] %v15764_v61  ;;  %v15786_v61 = vpop.f32.mrf.mxu1 }
 0x31f   : > { %v15766_v37 = vpop.f32.mrf.mxu0  ;;  %17851 = vst [vmem:[#allocation120_spill] sm:$0xff] %v15786_v61  ;;  %v17862_v61 = vld [vmem:[#allocation8_spill] sm:$0xff] }
 0x320   : > { %17841 = vst [vmem:[#allocation110_spill] sm:$0xff] %v15766_v37  ;;  %v15794_v30 = vpop.f32.mrf.mxu1 }
 0x321   : > { %v15770_v14 = vpop.f32.mrf.mxu0 }
 0x322   : > { %17843 = vst [vmem:[#allocation112_spill] sm:$0xff] %v15770_v14  ;;  %v17854_v14 = vld [vmem:[#allocation5_spill] sm:$0xff]  ;;  %v15803_v0 = vpop.f32.mrf.mxu1 }
 0x323   : > { %v15772_v31 = vpop.f32.mrf.mxu0  ;;  %17856 = vst [vmem:[#allocation5_spill] sm:$0xff] %v15794_v30  ;;  %v17866_v30 = vld [vmem:[#allocation25_spill] sm:$0xff] }
 0x324   : > { %17844 = vst [vmem:[#allocation113_spill] sm:$0xff] %v15772_v31  ;;  %v17855_v31 = vld [vmem:[#allocation7_spill] sm:$0xff] }
 0x325   : > { %v15776_v12 = vpop.f32.mrf.mxu0  ;;  %v3381_v26 = vadd.f32 %v17855_v31, %v17854_v14  ;;  %v17865_v31 = vld [vmem:[#allocation28_spill] sm:$0xff] }
 0x326   : > { %17846 = vst [vmem:[#allocation115_spill] sm:$0xff] %v15776_v12  ;;  %v3411_v14 = vadd.f32 %v17865_v31, %v17864_v13 }
 0x327   : > { %v15778_v53 = vpop.f32.mrf.mxu0 }
 0x328   : > { %17847 = vst [vmem:[#allocation116_spill] sm:$0xff] %v15778_v53  ;;  %v3895_v53 = vadd.f32 %v15391_v48, %v3381_v26 }
 0x329   : > { %v15782_v21 = vpop.f32.mrf.mxu0 }
 0x32a   : > { %17849 = vst [vmem:[#allocation118_spill] sm:$0xff] %v15782_v21  ;;  %v17859_v21 = vld [vmem:[#allocation20_spill] sm:$0xff]  ;;  %v4283_v48 = vadd.f32 %v15393_v32, %v3895_v53  ;;  %v3481_v32 = vadd.f32 %v15307_v43, %v15305_v62 }
 0x32b   : > { %v15784_v39 = vpop.f32.mrf.mxu0  ;;  %17861 = vst [vmem:[#allocation20_spill] sm:$0xff] %v15803_v0  ;;  %v17871_v0 = vld [vmem:[#allocation57_spill] sm:$0xff] }
 0x32c   : > { %17850 = vst [vmem:[#allocation119_spill] sm:$0xff] %v15784_v39  ;;  %v3391_v39 = vadd.f32 %v17860_v51, %v17859_v21  ;;  %v17870_v21 = vld [vmem:[#allocation35_spill] sm:$0xff]  ;;  %v4671_v53 = vadd.f32 %v15556_v2, %v4283_v48  ;;  %v17879_v48 = vld [vmem:[#allocation34_spill] sm:$0xff] }
 0x32d   : > { %v15788_v37 = vpop.f32.mrf.mxu0  ;;  %v3441_v7 = vadd.f32 %v17871_v0, %v17870_v21 }
 0x32e   : > { %17852 = vst [vmem:[#allocation121_spill] sm:$0xff] %v15788_v37  ;;  %v17863_v37 = vld [vmem:[#allocation29_spill] sm:$0xff]  ;;  %v3897_v26 = vadd.f32 %v15402_v63, %v3391_v39 }
 0x32f   : > { %v15790_v10 = vpop.f32.mrf.mxu0  ;;  %v3401_v24 = vadd.f32 %v17863_v37, %v17862_v61  ;;  %v3451_v61 = vadd.f32 %v15181_v8, %v15179_v16  ;;  %v3461_v37 = vadd.f32 %v15231_v22, %v15229_v42  ;;  %v3491_v16 = vadd.f32 %v15330_v17, %v15328_v4 }
 0x330   : > { %17853 = vst [vmem:[#allocation122_spill] sm:$0xff] %v15790_v10  ;;  %v3501_v8 = vadd.f32 %v15344_v35, %v15342_v19  ;;  %v3901_v42 = vadd.f32 %v15424_v36, %v3411_v14  ;;  %v4285_v62 = vadd.f32 %v15404_v27, %v3897_v26  ;;  %v3521_v4 = vadd.f32 %v15374_v29, %v15372_v25  ;;  %v17873_v25 = vld [vmem:[#allocation58_spill] sm:$0xff] }
 0x331   : > { %v15796_v12 = vpop.f32.mrf.mxu0  ;;  %v3899_v63 = vadd.f32 %v15413_v41, %v3401_v24  ;;  %v5060_v41 = vadd.f32 %v15551_v46, %v15554_v1  ;;  %v15851_v17 = vadd.f32 %v15384_v40, %v15382_v49  ;;  %v3907_v19 = vadd.f32 %v15455_v57, %v3441_v7  ;;  %v17874_v49 = vld [vmem:[#allocation46_spill] sm:$0xff]  ;;  %v17875_v46 = vld [vmem:[#allocation32_spill] sm:$0xff] }
 0x332   : > { %17857 = vst [vmem:[#allocation7_spill] sm:$0xff] %v15796_v12  ;;  %v3421_v12 = vadd.f32 %v17867_v60, %v17866_v30  ;;  %v3471_v30 = vadd.f32 %v15277_v9, %v15275_v45  ;;  %v3511_v9 = vadd.f32 %v15362_v47, %v15360_v34  ;;  %v3909_v35 = vadd.f32 %v15464_v50, %v3451_v61  ;;  %v17872_v34 = vld [vmem:[#allocation36_spill] sm:$0xff]  ;;  %v17878_v60 = vld [vmem:[#allocation31_spill] sm:$0xff] }
 0x333   : > { %v15799_v54 = vpop.f32.mrf.mxu0  ;;  %v4287_v47 = vadd.f32 %v17872_v34, %v3899_v63  ;;  %v5059_v27 = vadd.f32 %v15558_v56, %v4671_v53  ;;  %v4289_v29 = vadd.f32 %v17873_v25, %v3901_v42  ;;  %v3911_v57 = vadd.f32 %v17875_v46, %v3461_v37  ;;  %v17882_v61 = vld [vmem:[#allocation51_spill] sm:$0xff]  ;;  %v17883_v37 = vld [vmem:[#allocation73_spill] sm:$0xff]  ;;  %v17886_v53 = vld [vmem:[#allocation92_spill] sm:$0xff] }
 0x334   : > { %17858 = vst [vmem:[#allocation123_spill] sm:$0xff] %v15799_v54  ;;  %v17868_v54 = vld [vmem:[#allocation14_spill] sm:$0xff]  ;;  %v3903_v22 = vadd.f32 %v15437_v58, %v3421_v12  ;;  %v4673_v58 = vadd.f32 %v15565_v28, %v4285_v62  ;;  %v3913_v50 = vadd.f32 %v15482_v44, %v3471_v30  ;;  %v17876_v12 = vld [vmem:[#allocation19_spill] sm:$0xff]  ;;  %v3915_v56 = vadd.f32 %v15491_v23, %v3481_v32  ;;  %v15920_v34 = vld [vmem:[%s17516_s7] ss:$0 sm:$0xff] }
 0x335   : > { %v15807_v10 = vpop.f32.mrf.mxu0  ;;  %v3431_v51 = vadd.f32 %v17869_v52, %v17868_v54  ;;  %v15831_v54 = vpop.f32.mrf.mxu1  ;;  %v5062_v28 = vadd.f32 %v15560_v33, %v15563_v11  ;;  %v17877_v52 = vld [vmem:[#allocation13_spill] sm:$0xff]  ;;  %v15880_v24 = vadd.f32 %v17878_v60, %v3909_v35  ;;  %v3917_v44 = vadd.f32 %v15502_v18, %v3491_v16  ;;  %v17885_v32 = vld [vmem:[#allocation91_spill] sm:$0xff]  ;;  %v17887_v42 = vld [vmem:[#allocation74_spill] sm:$0xff] }
 0x336   : > { %v4291_v40 = vadd.f32 %v17874_v49, %v3903_v22  ;;  %v15877_v7 = vadd.f32 %v17877_v52, %v3907_v19  ;;  %v4675_v39 = vadd.f32 %v15574_v20, %v4287_v47  ;;  %v3919_v14 = vadd.f32 %v15516_v5, %v3501_v8  ;;  %v17881_v18 = vld [vmem:[#allocation21_spill] sm:$0xff]  ;;  %v17890_v19 = vld [vmem:[#allocation94_spill] sm:$0xff]  ;;  %v17897_v60 = vld [vmem:[#allocation95_spill] sm:$0xff] }
 0x337   : > { %v15823_v13 = vpop.f32.mrf.mxu0  ;;  %v3905_v43 = vadd.f32 %v15446_v55, %v3431_v51  ;;  %v5449_v55 = vadd.f32 %v15711_v6, %v5060_v41  ;;  %v15861_v1 = vpop.f32.mrf.mxu1  ;;  %v5448_v6 = vadd.f32 %v15715_v59, %v5059_v27  ;;  %v5061_v23 = vadd.f32 %v15567_v38, %v4673_v58  ;;  %v17880_v51 = vld [vmem:[#allocation17_spill] sm:$0xff]  ;;  %v15904_v38 = vld [vmem:[%s17515_s6] ss:$0 sm:$0xff] }
 0x338   : > { %v5451_v11 = vadd.f32 %v15719_v3, %v5062_v28  ;;  %v15893_v26 = vadd.f32 %v17879_v48, %v3911_v57  ;;  %v15896_v21 = vadd.f32 %v17880_v51, %v3913_v50  ;;  %v3921_v20 = vadd.f32 %v17881_v18, %v3511_v9  ;;  %v17888_v9 = vld [vmem:[#allocation37_spill] sm:$0xff]  ;;  %v17893_v50 = vld [vmem:[#allocation64_spill] sm:$0xff]  ;;  %v17895_v28 = vld [vmem:[#allocation63_spill] sm:$0xff] }
 0x339   : > { %v15839_v45 = vpop.f32.mrf.mxu0  ;;  %v15870_v0 = vadd.f32 %v17876_v12, %v3905_v43  ;;  %v5837_v33 = vadd.f32 %v15713_v15, %v5449_v55  ;;  %v15890_v59 = vpop.f32.mrf.mxu1  ;;  %v5064_v30 = vadd.f32 %v17883_v37, %v17882_v61  ;;  %v17884_v15 = vld [vmem:[#allocation22_spill] sm:$0xff]  ;;  %v5836_v63 = vadd.f32 %v17885_v32, %v5448_v6  ;;  %v17889_v43 = vld [vmem:[#allocation43_spill] sm:$0xff]  ;;  %v17891_v27 = vld [vmem:[#allocation45_spill] sm:$0xff] }
 0x33a   : > { %v15907_v3 = vadd.f32 %v17884_v15, %v3915_v56  ;;  %v5450_v16 = vadd.f32 %v17886_v53, %v5061_v23  ;;  %v15912_v22 = vadd.f32 %v17887_v42, %v3917_v44  ;;  %v5063_v62 = vadd.f32 %v17888_v9, %v4675_v39  ;;  %v17892_v55 = vld [vmem:[#allocation93_spill] sm:$0xff]  ;;  %v17896_v6 = vld [vmem:[#allocation38_spill] sm:$0xff]  ;;  %v17899_v51 = vld [vmem:[#allocation44_spill] sm:$0xff] }
 0x33b   : > { %v15855_v36 = vpop.f32.mrf.mxu0  ;;  %v4677_v41 = vadd.f32 %v17889_v43, %v4289_v29  ;;  %v5453_v35 = vadd.f32 %v17890_v19, %v5064_v30  ;;  %v15923_v58 = vadd.f32 %v17891_v27, %v3919_v14  ;;  %v5839_v25 = vadd.f32 %v17892_v55, %v5451_v11  ;;  %v15926_v49 = vpop.f32.mrf.mxu1  ;;  %v17894_v12 = vld [vmem:[#allocation33_spill] sm:$0xff]  ;;  %v17898_v14 = vld [vmem:[#allocation96_spill] sm:$0xff]  ;;  %v17901_v37 = vld [vmem:[#allocation99_spill] sm:$0xff] }
 0x33c   : > { %v15930_v29 = vadd.f32 %v17893_v50, %v3921_v20  ;;  %v3923_v56 = vadd.f32 %v17894_v12, %v3521_v4  ;;  %v5066_v52 = vadd.f32 %v17896_v6, %v17895_v28  ;;  %v5452_v44 = vadd.f32 %v17897_v60, %v5063_v62  ;;  %v17900_v61 = vld [vmem:[#allocation53_spill] sm:$0xff]  ;;  %v17903_v42 = vld [vmem:[#allocation52_spill] sm:$0xff]  ;;  %v17905_v43 = vld [vmem:[#allocation47_spill] sm:$0xff] }
 0x33d   : > { %v15867_v2 = vpop.f32.mrf.mxu0  ;;  %v5838_v23 = vadd.f32 %v17898_v14, %v5450_v16  ;;  %v5065_v18 = vadd.f32 %v17899_v51, %v4677_v41  ;;  %v4679_v20 = vadd.f32 %v17900_v61, %v4291_v40  ;;  %v5841_v30 = vadd.f32 %v17901_v37, %v5453_v35  ;;  %v17902_v4 = vld [vmem:[#allocation97_spill] sm:$0xff]  ;;  %v15943_v32 = vpop.f32.mrf.mxu1  ;;  %v17904_v62 = vld [vmem:[#allocation48_spill] sm:$0xff]  ;;  %v17906_v40 = vld [vmem:[#allocation102_spill] sm:$0xff] }
 0x33e   : > { %v15948_v9 = vadd.f32 %v17903_v42, %v3923_v56  ;;  %v5068_v41 = vadd.f32 %v17905_v43, %v17904_v62  ;;  %v5840_v19 = vadd.f32 %v17906_v40, %v5452_v44  ;;  %v17907_v35 = vld [vmem:[#allocation98_spill] sm:$0xff]  ;;  %v17909_v56 = vld [vmem:[#allocation59_spill] sm:$0xff]  ;;  %v17910_v6 = vld [vmem:[#allocation105_spill] sm:$0xff] }
 0x33f   : > { %v15884_v31 = vpop.f32.mrf.mxu0  ;;  %v17908_v50 = vld [vmem:[#allocation54_spill] sm:$0xff]  ;;  %v4681_v28 = vadd.f32 %v17909_v56, %v15870_v0  ;;  %v17911_v60 = vld [vmem:[#allocation100_spill] sm:$0xff]  ;;  %v15962_v14 = vpop.f32.mrf.mxu1  ;;  %v17912_v51 = vld [vmem:[#allocation41_spill] sm:$0xff] }
 0x340   : > { %v5067_v12 = vadd.f32 %v17908_v50, %v4679_v20  ;;  %v5457_v44 = vadd.f32 %v17911_v60, %v5068_v41  ;;  %v17913_v61 = vld [vmem:[#allocation50_spill] sm:$0xff]  ;;  %v17914_v0 = vld [vmem:[#allocation49_spill] sm:$0xff]  ;;  %v17915_v37 = vld [vmem:[#allocation108_spill] sm:$0xff] }
 0x341   : > { %v12309_v5 = vpop.f32.mrf.mxu0  ;;  %v5070_v20 = vadd.f32 %v17914_v0, %v17913_v61  ;;  %v17917_v42 = vld [vmem:[#allocation60_spill] sm:$0xff]  ;;  %v17918_v43 = vld [vmem:[#allocation65_spill] sm:$0xff]  ;;  %v17919_v40 = vld [vmem:[#allocation111_spill] sm:$0xff] }
 0x342   : > { %v6225_v8 = vadd.f32 %v12309_v5, %v5837_v33  ;;  %v5455_v5 = vadd.f32 %v17902_v4, %v5066_v52  ;;  %v17916_v4 = vld [vmem:[#allocation101_spill] sm:$0xff]  ;;  %v5069_v62 = vadd.f32 %v17917_v42, %v4681_v28  ;;  %v4683_v41 = vadd.f32 %v17918_v43, %v15877_v7  ;;  %v17922_v28 = vld [vmem:[#allocation56_spill] sm:$0xff]  ;;  %v17923_v7 = vld [vmem:[#allocation55_spill] sm:$0xff] }
 0x343   : > { %v6065_v47 = vpop.f32.mrf.mxu0  ;;  %v17926_v61 = vld [vmem:[#allocation66_spill] sm:$0xff] }
 0x344   : > { %v6264_v46 = vmul.f32 %v15904_v38, %v6225_v8  ;;  %v6224_v57 = vadd.f32 %v6065_v47, %v5836_v63  ;;  %v5454_v47 = vadd.f32 %v17907_v35, %v5065_v18  ;;  %v5843_v52 = vadd.f32 %v17910_v6, %v5455_v5  ;;  %v17920_v35 = vld [vmem:[#allocation103_spill] sm:$0xff] }
 0x345   : > { %v12312_v39 = vpop.f32.mrf.mxu0  ;;  %v3925_v18 = vadd.f32 %v17912_v51, %v15851_v17  ;;  %v5456_v5 = vadd.f32 %v17916_v4, %v5067_v12  ;;  %v17921_v12 = vld [vmem:[#allocation42_spill] sm:$0xff]  ;;  %v5072_v6 = vadd.f32 %v17923_v7, %v17922_v28  ;;  %v5071_v0 = vadd.f32 %v17926_v61, %v4683_v41 }
 0x346   : > { %v6303_v33 = vadd.f32 %v15920_v34, %v6264_v46  ;;  %v6263_v11 = vmul.f32 %v15904_v38, %v6224_v57  ;;  %v6227_v48 = vadd.f32 %v12312_v39, %v5839_v25  ;;  %v17929_v4 = vld [vmem:[#allocation106_spill] sm:$0xff] }
 0x347   : > { %v6075_v15 = vpop.f32.mrf.mxu0  ;;  %v15993_v56 = vadd.f32 %v17921_v12, %v3925_v18  ;;  %v17927_v18 = vld [vmem:[#allocation69_spill] sm:$0xff] }
 0x348   : > { %v6335_v63 = vmax.f32 %v6303_v33, 0.0  ;;  %v6302_v53 = vadd.f32 %v15920_v34, %v6263_v11  ;;  %v6266_v16 = vmul.f32 %v15904_v38, %v6227_v48  ;;  %v6226_v8 = vadd.f32 %v6075_v15, %v5838_v23 }
 0x349   : > { %v12315_v27 = vpop.f32.mrf.mxu0 }
 0x34a   : > { %6368 = vst.msk [vmem:[#allocation3 + $0x21] sm:$0xff] %vm407_vm0, %v6335_v63  ;;  %v6334_v55 = vmax.f32 %v6302_v53, 0.0  ;;  %v6305_v25 = vadd.f32 %v15920_v34, %v6266_v16  ;;  %v6265_v46 = vmul.f32 %v15904_v38, %v6226_v8  ;;  %v6229_v57 = vadd.f32 %v12315_v27, %v5841_v30  ;;  %v15976_v63 = vld [vmem:[%s17517_s8 + $0x58] sm:$0xff] }
 0x34b   : > { %v6085_v39 = vpop.f32.mrf.mxu0  ;;  %v5842_v30 = vadd.f32 %v17915_v37, %v5454_v47  ;;  %12615 = vmatprep.subr.mxu0 %v15976_v63  ;;  %v5459_v47 = vadd.f32 %v17920_v35, %v5070_v20  ;;  %v4685_v20 = vadd.f32 %v17927_v18, %v15880_v24  ;;  %v17928_v37 = vld [vmem:[#allocation117_spill] sm:$0xff] }
 0x34c   : > { %6367 = vst.msk [vmem:[#allocation3 + $0x19] sm:$0xff] %vm407_vm0, %v6334_v55  ;;  %v6337_v23 = vmax.f32 %v6305_v25, 0.0  ;;  %v6304_v33 = vadd.f32 %v15920_v34, %v6265_v46  ;;  %v6268_v11 = vmul.f32 %v15904_v38, %v6229_v57  ;;  %v6228_v48 = vadd.f32 %v6085_v39, %v5840_v19  ;;  %v15987_v55 = vpop.f32.mrf.mxu1 }
 0x34d   : > { %v12318_v15 = vpop.f32.mrf.mxu0  ;;  %v5845_v19 = vadd.f32 %v17919_v40, %v5457_v44  ;;  %v17925_v44 = vld [vmem:[#allocation104_spill] sm:$0xff]  ;;  %v17930_v40 = vld [vmem:[#allocation62_spill] sm:$0xff] }
 0x34e   : > { %6370 = vst.msk [vmem:[#allocation3 + $0x39] sm:$0xff] %vm407_vm0, %v6337_v23  ;;  %v6336_v53 = vmax.f32 %v6304_v33, 0.0  ;;  %v6307_v16 = vadd.f32 %v15920_v34, %v6268_v11  ;;  %v6267_v17 = vmul.f32 %v15904_v38, %v6228_v48  ;;  %v6231_v8 = vadd.f32 %v12318_v15, %v5843_v52  ;;  %v17924_v52 = vld [vmem:[#allocation114_spill] sm:$0xff] }
 0x34f   : > { %v6095_v27 = vpop.f32.mrf.mxu0  ;;  %v5844_v60 = vadd.f32 %v17924_v52, %v5456_v5  ;;  %v5458_v39 = vadd.f32 %v17925_v44, %v5069_v62  ;;  %v5461_v5 = vadd.f32 %v17929_v4, %v5072_v6  ;;  %v17934_v6 = vld [vmem:[#allocation70_spill] sm:$0xff] }
 0x350   : > { %6369 = vst.msk [vmem:[#allocation3 + $0x31] sm:$0xff] %vm407_vm0, %v6336_v53  ;;  %v6339_v25 = vmax.f32 %v6307_v16, 0.0  ;;  %v6306_v46 = vadd.f32 %v15920_v34, %v6267_v17  ;;  %v6270_v57 = vmul.f32 %v15904_v38, %v6231_v8  ;;  %v6230_v50 = vadd.f32 %v6095_v27, %v5842_v30  ;;  %v16013_v8 = vpop.f32.mrf.mxu1 }
 0x351   : > { %v12321_v23 = vpop.f32.mrf.mxu0  ;;  %v5847_v30 = vadd.f32 %v17928_v37, %v5459_v47  ;;  %v16022_v41 = vld [vmem:[#allocation3 + $0x21] sm:$0xff]  ;;  %v17932_v47 = vld [vmem:[#allocation120_spill] sm:$0xff]  ;;  %v5073_v52 = vadd.f32 %v17934_v6, %v4685_v20 }
 0x352   : > { %6372 = vst.msk [vmem:[#allocation3 + $0x51] sm:$0xff] %vm407_vm0, %v6339_v25  ;;  %v6338_v33 = vmax.f32 %v6306_v46, 0.0  ;;  %v6309_v11 = vadd.f32 %v15920_v34, %v6270_v57  ;;  %v6269_v48 = vmul.f32 %v15904_v38, %v6230_v50  ;;  %v6233_v51 = vadd.f32 %v12321_v23, %v5845_v19  ;;  %v17931_v19 = vld [vmem:[#allocation61_spill] sm:$0xff]  ;;  %v17933_v25 = vld [vmem:[#allocation107_spill] sm:$0xff]  ;;  %v16046_v18 = vpop.f32.mrf.mxu1 }
 0x353   : > { %v6105_v15 = vpop.f32.mrf.mxu0  ;;  %v16007_v53 = vld [vmem:[#allocation3 + $0x19] sm:$0xff]  ;;  %v5074_v35 = vadd.f32 %v17931_v19, %v17930_v40  ;;  %v5846_v27 = vadd.f32 %v17932_v47, %v5458_v39  ;;  %v5460_v46 = vadd.f32 %v17933_v25, %v5071_v0 }
 0x354   : > { %v16009_v16 = vld [vmem:[#allocation3 + $0x18] sm:$0xff]  ;;  %v16011_v17 = vld [vmem:[#allocation3 + $0x20] sm:$0xff]  ;;  %6371 = vst.msk [vmem:[#allocation3 + $0x49] sm:$0xff] %vm407_vm0, %v6338_v33  ;;  %v6341_v42 = vmax.f32 %v6309_v11, 0.0  ;;  %v6308_v62 = vadd.f32 %v15920_v34, %v6269_v48  ;;  %v6272_v24 = vmul.f32 %v15904_v38, %v6233_v51  ;;  %v6232_v43 = vadd.f32 %v6105_v15, %v5844_v60  ;;  %12362 = vmatprep.mubr.msk.f32.mxu1 %vm407_vm0, %v16007_v53  ;;  %v17935_v60 = vld [vmem:[#allocation75_spill] sm:$0xff] }
 0x355   : > { %12414 = vmatprep.mubr.msk.f32.mxu0 %vm407_vm0, %v16009_v16  ;;  %v12324_v57 = vpop.f32.mrf.mxu0  ;;  %12363 = vmatmul.mubr.msk.f32.gmra.mxu1 %vm407_vm0, %v16022_v41  ;;  %v4687_v44 = vadd.f32 %v17935_v60, %v15893_v26  ;;  %v17936_v39 = vld [vmem:[#allocation5_spill] sm:$0xff]  ;;  %v17939_v15 = vld [vmem:[#allocation67_spill] sm:$0xff] }
 0x356   : > { %12415 = vmatmul.mubr.msk.f32.gmra.mxu0 %vm407_vm0, %v16011_v17  ;;  %6374 = vst.msk [vmem:[#allocation3 + $0x69] sm:$0xff] %vm407_vm0, %v6341_v42  ;;  %v6340_v50 = vmax.f32 %v6308_v62, 0.0  ;;  %v6311_v12 = vadd.f32 %v15920_v34, %v6272_v24  ;;  %v6271_v28 = vmul.f32 %v15904_v38, %v6232_v43  ;;  %v6235_v7 = vadd.f32 %v12324_v57, %v5847_v30  ;;  %v17937_v33 = vld [vmem:[#allocation109_spill] sm:$0xff]  ;;  %v17940_v62 = vld [vmem:[#allocation20_spill] sm:$0xff]  ;;  %v17941_v43 = vld [vmem:[#allocation110_spill] sm:$0xff] }
 0x357   : > { %v5849_v23 = vadd.f32 %v17936_v39, %v5461_v5  ;;  %v5463_v11 = vadd.f32 %v17937_v33, %v5074_v35  ;;  %v6115_v48 = vpop.f32.mrf.mxu0  ;;  %v16040_v51 = vld [vmem:[#allocation3 + $0x31] sm:$0xff]  ;;  %v16055_v4 = vld [vmem:[#allocation3 + $0x39] sm:$0xff]  ;;  %v5848_v24 = vadd.f32 %v17940_v62, %v5460_v46  ;;  %v5462_v40 = vadd.f32 %v17941_v43, %v5073_v52 }
 0x358   : > { %v16042_v61 = vld [vmem:[#allocation3 + $0x30] sm:$0xff]  ;;  %v16044_v0 = vld [vmem:[#allocation3 + $0x38] sm:$0xff]  ;;  %6373 = vst.msk [vmem:[#allocation3 + $0x61] sm:$0xff] %vm407_vm0, %v6340_v50  ;;  %v6343_v37 = vmax.f32 %v6311_v12, 0.0  ;;  %v6310_v20 = vadd.f32 %v15920_v34, %v6271_v28  ;;  %v6274_v26 = vmul.f32 %v15904_v38, %v6235_v7  ;;  %v6234_v30 = vadd.f32 %v6115_v48, %v5846_v27  ;;  %12365 = vmatprep.mubr.msk.f32.mxu1 %vm407_vm0, %v16040_v51  ;;  %v16079_v48 = vpop.f32.mrf.mxu1 }
 0x359   : > { %12417 = vmatprep.mubr.msk.f32.mxu0 %vm407_vm0, %v16042_v61  ;;  %v17938_v5 = vld [vmem:[#allocation68_spill] sm:$0xff]  ;;  %v12327_v19 = vpop.f32.mrf.mxu0  ;;  %12366 = vmatmul.mubr.msk.f32.gmra.mxu1 %vm407_vm0, %v16055_v4  ;;  %v17943_v46 = vld [vmem:[#allocation77_spill] sm:$0xff]  ;;  %v5851_v28 = vadd.f32 %v15831_v54, %v5463_v11 }
 0x35a   : > { %v5076_v42 = vadd.f32 %v17939_v15, %v17938_v5  ;;  %12418 = vmatmul.mubr.msk.f32.gmra.mxu0 %vm407_vm0, %v16044_v0  ;;  %6376 = vst.msk [vmem:[#allocation3 + $0x81] sm:$0xff] %vm407_vm0, %v6343_v37  ;;  %v6342_v35 = vmax.f32 %v6310_v20, 0.0  ;;  %v6313_v47 = vadd.f32 %v15920_v34, %v6274_v26  ;;  %v6273_v27 = vmul.f32 %v15904_v38, %v6234_v30  ;;  %v17942_v57 = vld [vmem:[#allocation76_spill] sm:$0xff]  ;;  %v17946_v20 = vld [vmem:[#allocation71_spill] sm:$0xff]  ;;  %v17947_v5 = vld [vmem:[#allocation113_spill] sm:$0xff] }
 0x35b   : > { %v6237_v25 = vadd.f32 %v12327_v19, %v5849_v23  ;;  %v5075_v50 = vadd.f32 %v17942_v57, %v4687_v44  ;;  %v4689_v12 = vadd.f32 %v17943_v46, %v15896_v21  ;;  %v17944_v7 = vld [vmem:[#allocation112_spill] sm:$0xff]  ;;  %v6125_v52 = vpop.f32.mrf.mxu0  ;;  %v16075_v39 = vld [vmem:[#allocation3 + $0x48] sm:$0xff]  ;;  %v5850_v30 = vadd.f32 %v15861_v1, %v5462_v40 }
 0x35c   : > { %v5465_v6 = vadd.f32 %v17944_v7, %v5076_v42  ;;  %v16073_v60 = vld [vmem:[#allocation3 + $0x49] sm:$0xff]  ;;  %6375 = vst.msk [vmem:[#allocation3 + $0x79] sm:$0xff] %vm407_vm0, %v6342_v35  ;;  %v6345_v23 = vmax.f32 %v6313_v47, 0.0  ;;  %v6312_v44 = vadd.f32 %v15920_v34, %v6273_v27  ;;  %v6236_v37 = vadd.f32 %v6125_v52, %v5848_v24  ;;  %12420 = vmatprep.mubr.msk.f32.mxu0 %vm407_vm0, %v16075_v39  ;;  %v16088_v54 = vld [vmem:[#allocation3 + $0x51] sm:$0xff]  ;;  %v17948_v35 = vld [vmem:[#allocation78_spill] sm:$0xff] }
 0x35d   : > { %v16077_v33 = vld [vmem:[#allocation3 + $0x50] sm:$0xff]  ;;  %v6276_v21 = vmul.f32 %v15904_v38, %v6237_v25  ;;  %12368 = vmatprep.mubr.msk.f32.mxu1 %vm407_vm0, %v16073_v60  ;;  %v5464_v15 = vadd.f32 %v17947_v5, %v5075_v50  ;;  %v12330_v42 = vpop.f32.mrf.mxu0  ;;  %v5077_v47 = vadd.f32 %v17948_v35, %v4689_v12  ;;  %v17950_v25 = vld [vmem:[#allocation115_spill] sm:$0xff] }
 0x35e   : > { %v17945_v11 = vld [vmem:[#allocation72_spill] sm:$0xff]  ;;  %12369 = vmatmul.mubr.msk.f32.gmra.mxu1 %vm407_vm0, %v16088_v54  ;;  %12421 = vmatmul.mubr.msk.f32.gmra.mxu0 %vm407_vm0, %v16077_v33  ;;  %6378 = vst.msk [vmem:[#allocation3 + $0x99] sm:$0xff] %vm407_vm0, %v6345_v23  ;;  %v6344_v62 = vmax.f32 %v6312_v44, 0.0  ;;  %v6275_v43 = vmul.f32 %v15904_v38, %v6236_v37  ;;  %v6239_v19 = vadd.f32 %v12330_v42, %v5851_v28  ;;  %v16112_v23 = vpop.f32.mrf.mxu1 }
 0x35f   : > { %v5078_v26 = vadd.f32 %v17946_v20, %v17945_v11  ;;  %v6315_v24 = vadd.f32 %v15920_v34, %v6276_v21  ;;  %v17949_v1 = vld [vmem:[#allocation16_spill] sm:$0xff]  ;;  %v5853_v27 = vadd.f32 %v15890_v59, %v5465_v6  ;;  %v6135_v50 = vpop.f32.mrf.mxu0  ;;  %v16106_v46 = vld [vmem:[#allocation3 + $0x61] sm:$0xff]  ;;  %v5852_v11 = vadd.f32 %v15926_v49, %v5464_v15 }
 0x360   : > { %v4691_v40 = vadd.f32 %v17949_v1, %v15907_v3  ;;  %v16108_v7 = vld [vmem:[#allocation3 + $0x60] sm:$0xff]  ;;  %v16110_v52 = vld [vmem:[#allocation3 + $0x68] sm:$0xff]  ;;  %6377 = vst.msk [vmem:[#allocation3 + $0x91] sm:$0xff] %vm407_vm0, %v6344_v62  ;;  %v6314_v12 = vadd.f32 %v15920_v34, %v6275_v43  ;;  %v6278_v3 = vmul.f32 %v15904_v38, %v6239_v19  ;;  %v6238_v44 = vadd.f32 %v6135_v50, %v5850_v30  ;;  %v17951_v6 = vld [vmem:[#allocation24_spill] sm:$0xff] }
 0x361   : > { %v5467_v57 = vadd.f32 %v17950_v25, %v5078_v26  ;;  %v6347_v28 = vmax.f32 %v6315_v24, 0.0  ;;  %12371 = vmatprep.mubr.msk.f32.mxu1 %vm407_vm0, %v16106_v46  ;;  %12423 = vmatprep.mubr.msk.f32.mxu0 %vm407_vm0, %v16108_v7  ;;  %v16121_v59 = vld [vmem:[#allocation3 + $0x69] sm:$0xff]  ;;  %v12333_v5 = vpop.f32.mrf.mxu0 }
 0x362   : > { %v17952_v21 = vld [vmem:[#allocation23_spill] sm:$0xff]  ;;  %v17953_v20 = vld [vmem:[#allocation116_spill] sm:$0xff]  ;;  %12372 = vmatmul.mubr.msk.f32.gmra.mxu1 %vm407_vm0, %v16121_v59  ;;  %12424 = vmatmul.mubr.msk.f32.gmra.mxu0 %vm407_vm0, %v16110_v52  ;;  %v6346_v30 = vmax.f32 %v6314_v12, 0.0  ;;  %v6317_v42 = vadd.f32 %v15920_v34, %v6278_v3  ;;  %v6277_v62 = vmul.f32 %v15904_v38, %v6238_v44  ;;  %v6241_v24 = vadd.f32 %v12333_v5, %v5853_v27  ;;  %v16145_v12 = vpop.f32.mrf.mxu1  ;;  %v17960_v44 = vld [vmem:[#allocation6_spill] sm:$0xff] }
 0x363   : > { %v5080_v37 = vadd.f32 %v17952_v21, %v17951_v6  ;;  %v5466_v26 = vadd.f32 %v17953_v20, %v5077_v47  ;;  %6380 = vst.msk [vmem:[#allocation3 + $0xb1] sm:$0xff] %vm407_vm0, %v6347_v28  ;;  %v17954_v43 = vld [vmem:[#allocation12_spill] sm:$0xff]  ;;  %v17955_v49 = vld [vmem:[#allocation15_spill] sm:$0xff]  ;;  %v5855_v35 = vadd.f32 %v15943_v32, %v5467_v57  ;;  %v17956_v47 = vld [vmem:[#allocation118_spill] sm:$0xff]  ;;  %v6145_v25 = vpop.f32.mrf.mxu0 }
 0x364   : > { %v5079_v19 = vadd.f32 %v17954_v43, %v4691_v40  ;;  %v4693_v15 = vadd.f32 %v17955_v49, %v15912_v22  ;;  %v16139_v50 = vld [vmem:[#allocation3 + $0x79] sm:$0xff]  ;;  %6379 = vst.msk [vmem:[#allocation3 + $0xa9] sm:$0xff] %vm407_vm0, %v6346_v30  ;;  %v6349_v27 = vmax.f32 %v6317_v42, 0.0  ;;  %v6316_v40 = vadd.f32 %v15920_v34, %v6277_v62  ;;  %v16154_v32 = vld [vmem:[#allocation3 + $0x81] sm:$0xff]  ;;  %v17959_v57 = vld [vmem:[#allocation4_spill] sm:$0xff] }
 0x365   : > { %v5469_v1 = vadd.f32 %v17956_v47, %v5080_v37  ;;  %v16141_v6 = vld [vmem:[#allocation3 + $0x78] sm:$0xff]  ;;  %v16143_v28 = vld [vmem:[#allocation3 + $0x80] sm:$0xff]  ;;  %v6280_v22 = vmul.f32 %v15904_v38, %v6241_v24  ;;  %v6240_v3 = vadd.f32 %v6145_v25, %v5852_v11  ;;  %12374 = vmatprep.mubr.msk.f32.mxu1 %vm407_vm0, %v16139_v50  ;;  %v5082_v21 = vadd.f32 %v17960_v44, %v17959_v57  ;;  %v17961_v20 = vld [vmem:[#allocation119_spill] sm:$0xff]  ;;  %v12336_v30 = vpop.f32.mrf.mxu0 }
 0x366   : > { %17957 = vst [vmem:[#allocation11_spill] sm:$0xff] %v16141_v6  ;;  %17958 = vst [vmem:[#allocation8_spill] sm:$0xff] %v16143_v28  ;;  %12426 = vmatprep.mubr.msk.f32.mxu0 %vm407_vm0, %v16141_v6  ;;  %v5854_v37 = vadd.f32 %v15962_v14, %v5466_v26  ;;  %v5468_v5 = vadd.f32 %v17961_v20, %v5079_v19  ;;  %12375 = vmatmul.mubr.msk.f32.gmra.mxu1 %vm407_vm0, %v16154_v32  ;;  %v6348_v11 = vmax.f32 %v6316_v40, 0.0  ;;  %v17962_v43 = vld [vmem:[#allocation10_spill] sm:$0xff]  ;;  %v17963_v14 = vld [vmem:[#allocation9_spill] sm:$0xff]  ;;  %v16178_v40 = vpop.f32.mrf.mxu1 }
 0x367   : > { %12427 = vmatmul.mubr.msk.f32.gmra.mxu0 %vm407_vm0, %v16143_v28  ;;  %6382 = vst.msk [vmem:[#allocation3 + $0xc9] sm:$0xff] %vm407_vm0, %v6349_v27  ;;  %v6319_v42 = vadd.f32 %v15920_v34, %v6280_v22  ;;  %v6279_v62 = vmul.f32 %v15904_v38, %v6240_v3  ;;  %v6243_v24 = vadd.f32 %v12336_v30, %v5855_v35  ;;  %v17964_v47 = vld [vmem:[#allocation121_spill] sm:$0xff]  ;;  %v6155_v57 = vpop.f32.mrf.mxu0  ;;  %v16174_v20 = vld [vmem:[#allocation3 + $0x90] sm:$0xff]  ;;  %v17970_v3 = vld [vmem:[#allocation27_spill] sm:$0xff] }
 0x368   : > { %v5081_v49 = vadd.f32 %v17962_v43, %v4693_v15  ;;  %v4695_v26 = vadd.f32 %v17963_v14, %v15923_v58  ;;  %v5857_v19 = vadd.f32 %v15987_v55, %v5469_v1  ;;  %v5471_v25 = vadd.f32 %v17964_v47, %v5082_v21  ;;  %v16172_v44 = vld [vmem:[#allocation3 + $0x91] sm:$0xff]  ;;  %17966 = vst [vmem:[#allocation30_spill] sm:$0xff] %v16174_v20  ;;  %v16187_v55 = vld [vmem:[#allocation3 + $0x99] sm:$0xff]  ;;  %v17969_v1 = vld [vmem:[#allocation39_spill] sm:$0xff] }
 0x369   : > { %17965 = vst [vmem:[#allocation29_spill] sm:$0xff] %v16172_v44  ;;  %v16176_v27 = vld [vmem:[#allocation3 + $0x98] sm:$0xff]  ;;  %6381 = vst.msk [vmem:[#allocation3 + $0xc1] sm:$0xff] %vm407_vm0, %v6348_v11  ;;  %v6351_v35 = vmax.f32 %v6319_v42, 0.0  ;;  %v6318_v15 = vadd.f32 %v15920_v34, %v6279_v62  ;;  %v6282_v58 = vmul.f32 %v15904_v38, %v6243_v24  ;;  %v6242_v22 = vadd.f32 %v6155_v57, %v5854_v37  ;;  %v17971_v11 = vld [vmem:[#allocation122_spill] sm:$0xff]  ;;  %v12339_v43 = vpop.f32.mrf.mxu0 }
 0x36a   : > { %17967 = vst [vmem:[#allocation28_spill] sm:$0xff] %v16176_v27  ;;  %12377 = vmatprep.mubr.msk.f32.mxu1 %vm407_vm0, %v16172_v44  ;;  %12429 = vmatprep.mubr.msk.f32.mxu0 %vm407_vm0, %v16174_v20  ;;  %17968 = vst [vmem:[#allocation25_spill] sm:$0xff] %v16187_v55  ;;  %v5084_v21 = vadd.f32 %v17970_v3, %v17969_v1  ;;  %v5856_v30 = vadd.f32 %v16013_v8, %v5468_v5  ;;  %v17972_v47 = vld [vmem:[#allocation26_spill] sm:$0xff]  ;;  %v17973_v8 = vld [vmem:[#allocation81_spill] sm:$0xff] }
 0x36b   : > { %v5470_v42 = vadd.f32 %v17971_v11, %v5081_v49  ;;  %12378 = vmatmul.mubr.msk.f32.gmra.mxu1 %vm407_vm0, %v16187_v55  ;;  %12430 = vmatmul.mubr.msk.f32.gmra.mxu0 %vm407_vm0, %v16176_v27  ;;  %6384 = vst.msk [vmem:[#allocation3 + $0xe1] sm:$0xff] %vm407_vm0, %v6351_v35  ;;  %v6350_v37 = vmax.f32 %v6318_v15, 0.0  ;;  %v6321_v62 = vadd.f32 %v15920_v34, %v6282_v58  ;;  %v17974_v1 = vld [vmem:[#allocation7_spill] sm:$0xff]  ;;  %v6165_v11 = vpop.f32.mrf.mxu0  ;;  %v16209_v35 = vld [vmem:[#allocation3 + $0xb0] sm:$0xff]  ;;  %v16211_v15 = vpop.f32.mrf.mxu1 }
 0x36c   : > { %v6281_v24 = vmul.f32 %v15904_v38, %v6242_v22  ;;  %v6245_v14 = vadd.f32 %v12339_v43, %v5857_v19  ;;  %v5083_v57 = vadd.f32 %v17972_v47, %v4695_v26  ;;  %v4697_v5 = vadd.f32 %v17973_v8, %v15930_v29  ;;  %v16205_v55 = vld [vmem:[#allocation3 + $0xa9] sm:$0xff]  ;;  %17976 = vst [vmem:[#allocation14_spill] sm:$0xff] %v16209_v35 }
 0x36d   : > { %v5859_v49 = vadd.f32 %v16046_v18, %v5471_v25  ;;  %v5473_v3 = vadd.f32 %v17974_v1, %v5084_v21  ;;  %v16207_v44 = vld [vmem:[#allocation3 + $0xa8] sm:$0xff]  ;;  %6383 = vst.msk [vmem:[#allocation3 + $0xd9] sm:$0xff] %vm407_vm0, %v6350_v37  ;;  %v6353_v19 = vmax.f32 %v6321_v62, 0.0  ;;  %v6244_v58 = vadd.f32 %v6165_v11, %v5856_v30  ;;  %12380 = vmatprep.mubr.msk.f32.mxu1 %vm407_vm0, %v16205_v55  ;;  %v16220_v18 = vld [vmem:[#allocation3 + $0xb1] sm:$0xff]  ;;  %v12342_v47 = vpop.f32.mrf.mxu0  ;;  %v17981_v1 = vld [vmem:[#allocation82_spill] sm:$0xff] }
 0x36e   : > { %17975 = vst [vmem:[#allocation18_spill] sm:$0xff] %v16207_v44  ;;  %v6320_v26 = vadd.f32 %v15920_v34, %v6281_v24  ;;  %v6284_v29 = vmul.f32 %v15904_v38, %v6245_v14  ;;  %12432 = vmatprep.mubr.msk.f32.mxu0 %vm407_vm0, %v16207_v44  ;;  %17977 = vst [vmem:[#allocation40_spill] sm:$0xff] %v16220_v18  ;;  %v17978_v25 = vld [vmem:[#allocation80_spill] sm:$0xff]  ;;  %v17979_v22 = vld [vmem:[#allocation79_spill] sm:$0xff]  ;;  %v5858_v43 = vadd.f32 %v16079_v48, %v5470_v42 }
 0x36f   : > { %v5086_v21 = vadd.f32 %v17979_v22, %v17978_v25  ;;  %v17980_v37 = vld [vmem:[#allocation123_spill] sm:$0xff]  ;;  %12381 = vmatmul.mubr.msk.f32.gmra.mxu1 %vm407_vm0, %v16220_v18  ;;  %12433 = vmatmul.mubr.msk.f32.gmra.mxu0 %vm407_vm0, %v16209_v35  ;;  %6386 = vst.msk [vmem:[#allocation3 + $0xf9] sm:$0xff] %vm407_vm0, %v6353_v19  ;;  %v6283_v14 = vmul.f32 %v15904_v38, %v6244_v58  ;;  %v17982_v48 = vld [vmem:[#allocation85_spill] sm:$0xff]  ;;  %v6175_v22 = vpop.f32.mrf.mxu0 }
 0x370   : > { %v5472_v62 = vadd.f32 %v17980_v37, %v5083_v57  ;;  %v6352_v30 = vmax.f32 %v6320_v26, 0.0  ;;  %v6323_v24 = vadd.f32 %v15920_v34, %v6284_v29  ;;  %v6247_v8 = vadd.f32 %v12342_v47, %v5859_v49  ;;  %v16238_v37 = vld [vmem:[#allocation3 + $0xc1] sm:$0xff]  ;;  %v12299_v26 = vpop.f32.mrf.mxu1 }
 0x371   : > { %v5085_v11 = vadd.f32 %v17981_v1, %v4697_v5  ;;  %v4699_v42 = vadd.f32 %v17982_v48, %v15948_v9  ;;  %v5861_v57 = vadd.f32 %v16112_v23, %v5473_v3  ;;  %v5475_v25 = vadd.f32 %v15807_v10, %v5086_v21  ;;  %v16240_v18 = vld [vmem:[#allocation3 + $0xc0] sm:$0xff]  ;;  %v16242_v19 = vld [vmem:[#allocation3 + $0xc8] sm:$0xff]  ;;  %12383 = vmatprep.mubr.msk.f32.mxu1 %vm407_vm0, %v16238_v37  ;;  %v17985_v23 = vld [vmem:[#allocation84_spill] sm:$0xff] }
 0x372   : > { %17983 = vst [vmem:[#allocation35_spill] sm:$0xff] %v16240_v18  ;;  %17984 = vst [vmem:[#allocation57_spill] sm:$0xff] %v16242_v19  ;;  %v6355_v49 = vmax.f32 %v6323_v24, 0.0  ;;  %v6322_v5 = vadd.f32 %v15920_v34, %v6283_v14  ;;  %v6286_v29 = vmul.f32 %v15904_v38, %v6247_v8  ;;  %v6246_v9 = vadd.f32 %v6175_v22, %v5858_v43  ;;  %v16251_v10 = vld [vmem:[#allocation3 + $0xc9] sm:$0xff]  ;;  %v17987_v1 = vld [vmem:[#allocation86_spill] sm:$0xff] }
 0x373   : > { %6385 = vst.msk [vmem:[#allocation3 + $0xf1] sm:$0xff] %vm407_vm0, %v6352_v30  ;;  %12435 = vmatprep.mubr.msk.f32.mxu0 %vm407_vm0, %v16240_v18  ;;  %v17986_v3 = vld [vmem:[#allocation83_spill] sm:$0xff]  ;;  %v5860_v21 = vadd.f32 %v16145_v12, %v5472_v62  ;;  %v5474_v47 = vadd.f32 %v15823_v13, %v5085_v11  ;;  %v12345_v30 = vpop.f32.mrf.mxu0  ;;  %12384 = vmatmul.mubr.msk.f32.gmra.mxu1 %vm407_vm0, %v16251_v10  ;;  %v17988_v12 = vld [vmem:[#allocation89_spill] sm:$0xff] }
 0x374   : > { %v5088_v58 = vadd.f32 %v17986_v3, %v17985_v23  ;;  %12436 = vmatmul.mubr.msk.f32.gmra.mxu0 %vm407_vm0, %v16242_v19  ;;  %6388 = vst.msk [vmem:[#allocation3 + $0x111] sm:$0xff] %vm407_vm0, %v6355_v49  ;;  %v6354_v43 = vmax.f32 %v6322_v5, 0.0  ;;  %v6325_v24 = vadd.f32 %v15920_v34, %v6286_v29  ;;  %v6285_v14 = vmul.f32 %v15904_v38, %v6246_v9  ;;  %v16269_v23 = vld [vmem:[#allocation3 + $0xd9] sm:$0xff]  ;;  %v5817_v5 = vpop.f32.mrf.mxu1 }
 0x375   : > { %v6249_v8 = vadd.f32 %v12345_v30, %v5861_v57  ;;  %v5087_v48 = vadd.f32 %v17987_v1, %v4699_v42  ;;  %v4701_v13 = vadd.f32 %v17988_v12, %v15993_v56  ;;  %v5863_v62 = vadd.f32 %v16178_v40, %v5475_v25  ;;  %v6185_v22 = vpop.f32.mrf.mxu0  ;;  %v16271_v3 = vld [vmem:[#allocation3 + $0xd8] sm:$0xff]  ;;  %v16273_v49 = vld [vmem:[#allocation3 + $0xe0] sm:$0xff]  ;;  %12386 = vmatprep.mubr.msk.f32.mxu1 %vm407_vm0, %v16269_v23  ;;  %v17991_v40 = vld [vmem:[#allocation88_spill] sm:$0xff] }
 0x376   : > { %v5477_v11 = vadd.f32 %v15839_v45, %v5088_v58  ;;  %17989 = vst [vmem:[#allocation36_spill] sm:$0xff] %v16271_v3  ;;  %17990 = vst [vmem:[#allocation58_spill] sm:$0xff] %v16273_v49  ;;  %v6357_v57 = vmax.f32 %v6325_v24, 0.0  ;;  %v6324_v42 = vadd.f32 %v15920_v34, %v6285_v14  ;;  %v6248_v56 = vadd.f32 %v6185_v22, %v5860_v21  ;;  %v16282_v45 = vld [vmem:[#allocation3 + $0xe1] sm:$0xff]  ;;  %v12302_v21 = vpop.f32.mrf.mxu1 }
 0x377   : > { %6387 = vst.msk [vmem:[#allocation3 + $0x109] sm:$0xff] %vm407_vm0, %v6354_v43  ;;  %v6288_v29 = vmul.f32 %v15904_v38, %v6249_v8  ;;  %12438 = vmatprep.mubr.msk.f32.mxu0 %vm407_vm0, %v16271_v3  ;;  %v17992_v25 = vld [vmem:[#allocation87_spill] sm:$0xff]  ;;  %v5862_v58 = vadd.f32 %v16211_v15, %v5474_v47  ;;  %v5476_v30 = vadd.f32 %v15855_v36, %v5087_v48  ;;  %v12348_v43 = vpop.f32.mrf.mxu0  ;;  %v17993_v12 = vld [vmem:[#allocation90_spill] sm:$0xff] }
 0x378   : > { %v5090_v9 = vadd.f32 %v17992_v25, %v17991_v40  ;;  %12387 = vmatmul.mubr.msk.f32.gmra.mxu1 %vm407_vm0, %v16282_v45  ;;  %12439 = vmatmul.mubr.msk.f32.gmra.mxu0 %vm407_vm0, %v16273_v49  ;;  %6390 = vst.msk [vmem:[#allocation3 + $0x129] sm:$0xff] %vm407_vm0, %v6357_v57  ;;  %v6356_v24 = vmax.f32 %v6324_v42, 0.0  ;;  %v6287_v8 = vmul.f32 %v15904_v38, %v6248_v56  ;;  %v5827_v56 = vpop.f32.mrf.mxu1 }
 0x379   : > { %v6327_v14 = vadd.f32 %v15920_v34, %v6288_v29  ;;  %v6251_v1 = vadd.f32 %v12348_v43, %v5863_v62  ;;  %v5089_v15 = vadd.f32 %v17993_v12, %v4701_v13  ;;  %v5865_v47 = vadd.f32 %v12299_v26, %v5477_v11  ;;  %v6195_v48 = vpop.f32.mrf.mxu0 }
 0x37a   : > { %v5479_v36 = vadd.f32 %v15867_v2, %v5090_v9  ;;  %v16297_v22 = vld [vmem:[#allocation3 + $0xf1] sm:$0xff]  ;;  %6389 = vst.msk [vmem:[#allocation3 + $0x121] sm:$0xff] %vm407_vm0, %v6356_v24  ;;  %v6326_v42 = vadd.f32 %v15920_v34, %v6287_v8  ;;  %v6250_v62 = vadd.f32 %v6195_v48, %v5862_v58  ;;  %v16310_v2 = vld [vmem:[#allocation3 + $0xf9] sm:$0xff]  ;;  %v5864_v26 = vadd.f32 %v5817_v5, %v5476_v30 }
 0x37b   : > { %v16299_v40 = vld [vmem:[#allocation3 + $0xf0] sm:$0xff]  ;;  %v16301_v25 = vld [vmem:[#allocation3 + $0xf8] sm:$0xff]  ;;  %v6359_v57 = vmax.f32 %v6327_v14, 0.0  ;;  %v6290_v29 = vmul.f32 %v15904_v38, %v6251_v1  ;;  %12389 = vmatprep.mubr.msk.f32.mxu1 %vm407_vm0, %v16297_v22  ;;  %v5478_v13 = vadd.f32 %v15884_v31, %v5089_v15  ;;  %v12351_v11 = vpop.f32.mrf.mxu0 }
 0x37c   : > { %17994 = vst [vmem:[#allocation46_spill] sm:$0xff] %v16299_v40  ;;  %17995 = vst [vmem:[#allocation32_spill] sm:$0xff] %v16301_v25  ;;  %12441 = vmatprep.mubr.msk.f32.mxu0 %vm407_vm0, %v16299_v40  ;;  %12390 = vmatmul.mubr.msk.f32.gmra.mxu1 %vm407_vm0, %v16310_v2  ;;  %v6358_v9 = vmax.f32 %v6326_v42, 0.0  ;;  %v6289_v43 = vmul.f32 %v15904_v38, %v6250_v62  ;;  %v6253_v24 = vadd.f32 %v12351_v11, %v5865_v47 }
 0x37d   : > { %12442 = vmatmul.mubr.msk.f32.gmra.mxu0 %vm407_vm0, %v16301_v25  ;;  %6392 = vst.msk [vmem:[#allocation3 + $0x141] sm:$0xff] %vm407_vm0, %v6359_v57  ;;  %v6329_v58 = vadd.f32 %v15920_v34, %v6290_v29  ;;  %v5867_v14 = vadd.f32 %v12302_v21, %v5479_v36  ;;  %v6205_v5 = vpop.f32.mrf.mxu0  ;;  %v16333_v21 = vld [vmem:[#allocation3 + $0x111] sm:$0xff]  ;;  %v5866_v47 = vadd.f32 %v5827_v56, %v5478_v13 }
 0x37e   : > { %v16320_v30 = vld [vmem:[#allocation3 + $0x109] sm:$0xff]  ;;  %6391 = vst.msk [vmem:[#allocation3 + $0x139] sm:$0xff] %vm407_vm0, %v6358_v9  ;;  %v6328_v12 = vadd.f32 %v15920_v34, %v6289_v43  ;;  %v6292_v15 = vmul.f32 %v15904_v38, %v6253_v24  ;;  %v6252_v48 = vadd.f32 %v6205_v5, %v5864_v26 }
 0x37f   : > { %v16322_v31 = vld [vmem:[#allocation3 + $0x108] sm:$0xff]  ;;  %v16324_v8 = vld [vmem:[#allocation3 + $0x110] sm:$0xff]  ;;  %v6361_v1 = vmax.f32 %v6329_v58, 0.0  ;;  %12392 = vmatprep.mubr.msk.f32.mxu1 %vm407_vm0, %v16320_v30  ;;  %v12354_v36 = vpop.f32.mrf.mxu0 }
 0x380   : > { %17996 = vst [vmem:[#allocation19_spill] sm:$0xff] %v16322_v31  ;;  %17997 = vst [vmem:[#allocation13_spill] sm:$0xff] %v16324_v8  ;;  %12444 = vmatprep.mubr.msk.f32.mxu0 %vm407_vm0, %v16322_v31  ;;  %12393 = vmatmul.mubr.msk.f32.gmra.mxu1 %vm407_vm0, %v16333_v21  ;;  %v6360_v57 = vmax.f32 %v6328_v12, 0.0  ;;  %v6331_v42 = vadd.f32 %v15920_v34, %v6292_v15  ;;  %v6291_v29 = vmul.f32 %v15904_v38, %v6252_v48 }
 0x381   : > { %12445 = vmatmul.mubr.msk.f32.gmra.mxu0 %vm407_vm0, %v16324_v8  ;;  %6394 = vst.msk [vmem:[#allocation3 + $0x159] sm:$0xff] %vm407_vm0, %v6361_v1  ;;  %v6255_v62 = vadd.f32 %v12354_v36, %v5867_v14  ;;  %v6215_v26 = vpop.f32.mrf.mxu0  ;;  %v16342_v11 = vld [vmem:[#allocation3 + $0x121] sm:$0xff]  ;;  %v16355_v14 = vld [vmem:[#allocation3 + $0x129] sm:$0xff] }
 0x382   : > { %v16344_v9 = vld [vmem:[#allocation3 + $0x120] sm:$0xff]  ;;  %v16346_v13 = vld [vmem:[#allocation3 + $0x128] sm:$0xff]  ;;  %6393 = vst.msk [vmem:[#allocation3 + $0x151] sm:$0xff] %vm407_vm0, %v6360_v57  ;;  %v6363_v56 = vmax.f32 %v6331_v42, 0.0  ;;  %v6330_v58 = vadd.f32 %v15920_v34, %v6291_v29  ;;  %v6254_v24 = vadd.f32 %v6215_v26, %v5866_v47  ;;  %12395 = vmatprep.mubr.msk.f32.mxu1 %vm407_vm0, %v16342_v11 }
 0x383   : > { %17998 = vst [vmem:[#allocation31_spill] sm:$0xff] %v16344_v9  ;;  %17999 = vst [vmem:[#allocation34_spill] sm:$0xff] %v16346_v13  ;;  %v6294_v43 = vmul.f32 %v15904_v38, %v6255_v62  ;;  %12447 = vmatprep.mubr.msk.f32.mxu0 %vm407_vm0, %v16344_v9 }
 0x384   : > { %12396 = vmatmul.mubr.msk.f32.gmra.mxu1 %vm407_vm0, %v16355_v14  ;;  %6396 = vst.msk [vmem:[#allocation3 + $0x171] sm:$0xff] %vm407_vm0, %v6363_v56  ;;  %v6362_v5 = vmax.f32 %v6330_v58, 0.0  ;;  %v6293_v12 = vmul.f32 %v15904_v38, %v6254_v24  ;;  %v16376_v42 = vld [vmem:[#allocation3 + $0x141] sm:$0xff] }
 0x385   : > { %12448 = vmatmul.mubr.msk.f32.gmra.mxu0 %vm407_vm0, %v16346_v13  ;;  %v6333_v1 = vadd.f32 %v15920_v34, %v6294_v43  ;;  %v16364_v15 = vld [vmem:[#allocation3 + $0x139] sm:$0xff]  ;;  %v7110_v56 = vld [vmem:[#allocation3 + $0x2] sm:$0xff] }
 0x386   : > { %v16366_v48 = vld [vmem:[#allocation3 + $0x138] sm:$0xff]  ;;  %v16368_v47 = vld [vmem:[#allocation3 + $0x140] sm:$0xff]  ;;  %6395 = vst.msk [vmem:[#allocation3 + $0x169] sm:$0xff] %vm407_vm0, %v6362_v5  ;;  %v6332_v57 = vadd.f32 %v15920_v34, %v6293_v12  ;;  %12398 = vmatprep.mubr.msk.f32.mxu1 %vm407_vm0, %v16364_v15  ;;  %v10754_v12 = vld [vmem:[%s17517_s8 + $0x40] sm:$0xff] }
 0x387   : > { %18000 = vst [vmem:[#allocation17_spill] sm:$0xff] %v16366_v48  ;;  %18001 = vst [vmem:[#allocation21_spill] sm:$0xff] %v16368_v47  ;;  %v6365_v36 = vmax.f32 %v6333_v1, 0.0  ;;  %12450 = vmatprep.mubr.msk.f32.mxu0 %vm407_vm0, %v16366_v48  ;;  %v7111_v1 = vld [vmem:[#allocation3 + $0xa] sm:$0xff] }
 0x388   : > { %12399 = vmatmul.mubr.msk.f32.gmra.mxu1 %vm407_vm0, %v16376_v42  ;;  %v6364_v38 = vmax.f32 %v6332_v57, 0.0  ;;  %v16394_v26 = vld [vmem:[#allocation3 + $0x159] sm:$0xff] }
 0x389   : > { %12451 = vmatmul.mubr.msk.f32.gmra.mxu0 %vm407_vm0, %v16368_v47  ;;  %6398 = vst.msk [vmem:[#allocation3 + $0x189] sm:$0xff] %vm407_vm0, %v6365_v36  ;;  %v16383_v29 = vld [vmem:[#allocation3 + $0x151] sm:$0xff]  ;;  %v16425_v36 = vld [vmem:[#allocation3 + $0x1a] sm:$0xff] }
 0x38a   : > { %v16385_v34 = vld [vmem:[#allocation3 + $0x150] sm:$0xff]  ;;  %v16387_v62 = vld [vmem:[#allocation3 + $0x158] sm:$0xff]  ;;  %6397 = vst.msk [vmem:[#allocation3 + $0x181] sm:$0xff] %vm407_vm0, %v6364_v38  ;;  %12401 = vmatprep.mubr.msk.f32.mxu1 %vm407_vm0, %v16383_v29 }
 0x38b   : > { %18002 = vst [vmem:[#allocation51_spill] sm:$0xff] %v16385_v34  ;;  %18003 = vst [vmem:[#allocation73_spill] sm:$0xff] %v16387_v62  ;;  %12453 = vmatprep.mubr.msk.f32.mxu0 %vm407_vm0, %v16385_v34  ;;  %v16410_v5 = vld [vmem:[#allocation3 + $0x171] sm:$0xff] }
 0x38c   : > { %12402 = vmatmul.mubr.msk.f32.gmra.mxu1 %vm407_vm0, %v16394_v26  ;;  %v12837_v57 = vld [vmem:[%s17517_s8 + $0x48] sm:$0xff] }
 0x38d   : > { %12454 = vmatmul.mubr.msk.f32.gmra.mxu0 %vm407_vm0, %v16387_v62  ;;  %v16400_v58 = vld [vmem:[#allocation3 + $0x169] sm:$0xff] }
 0x38e   : > { %v16402_v43 = vld [vmem:[#allocation3 + $0x168] sm:$0xff]  ;;  %v16404_v24 = vld [vmem:[#allocation3 + $0x170] sm:$0xff]  ;;  %12404 = vmatprep.mubr.msk.f32.mxu1 %vm407_vm0, %v16400_v58 }
 0x38f   : > { %18004 = vst [vmem:[#allocation22_spill] sm:$0xff] %v16402_v43  ;;  %12456 = vmatprep.mubr.msk.f32.mxu0 %vm407_vm0, %v16402_v43 }
 0x390   : > { %12405 = vmatmul.mubr.msk.f32.gmra.mxu1 %vm407_vm0, %v16410_v5  ;;  %v12413_v38 = vpop.f32.mrf.mxu0 }
 0x391   : > { %12457 = vmatmul.mubr.msk.f32.gmra.mxu0 %vm407_vm0, %v16404_v24  ;;  %12463 = vmatprep.mubr.msk.f32.mxu1 %vm407_vm0, %v7110_v56  ;;  %v16434_v56 = vld [vmem:[#allocation3 + $0x22] sm:$0xff] }
 0x392   : > { %12515 = vmatprep.mubr.msk.f32.mxu0 %vm407_vm0, %v16009_v16  ;;  %v12361_v16 = vpop.f32.mrf.mxu1 }
 0x394   : > { %12464 = vmatmul.mubr.msk.f32.vlgmr.msra.gmra.mxu1 %vm407_vm0, %v7111_v1  ;;  %v16443_v1 = vld [vmem:[%s17517_s8 + $0x68] sm:$0xff] }
 0x395   : > { %12516 = vmatmul.mubr.msk.f32.vlgmr.msra.gmra.mxu0 %vm407_vm0, %v16011_v17  ;;  %12564 = vmatpush3.msra.mxu1 %v12837_v57  ;;  %v10788_v17 = vld [vmem:[%s17517_s8 + $0x50] sm:$0xff]  ;;  %v16445_v57 = vadd.f32 %v12413_v38, %v12361_v16 }
 0x396   : > { %12466 = vmatprep.mubr.msk.f32.mxu1 %vm407_vm0, %v16425_v36  ;;  %12518 = vmatprep.mubr.msk.f32.mxu0 %vm407_vm0, %v16042_v61  ;;  %v16451_v61 = vld [vmem:[#allocation3 + $0x32] sm:$0xff]  ;;  %v16482_v16 = vld [vmem:[#allocation3 + $0x62] sm:$0xff]  ;;  %v16494_v38 = vld [vmem:[#allocation3 + $0x7a] sm:$0xff] }
 0x397   : > { %12565 = vmatprep.subr.mxu1 %v10754_v12  ;;  %12616 = vmatpush3.msra.mxu0 %v15976_v63  ;;  %18005 = vst [vmem:[#allocation91_spill] sm:$0xff] %v16445_v57  ;;  %v16458_v63 = vld [vmem:[#allocation3 + $0x3a] sm:$0xff]  ;;  %v16506_v57 = vld [vmem:[#allocation3 + $0x92] sm:$0xff] }
 0x398   : > { %12566 = vmatpush3.msra.mxu1 %v10754_v12  ;;  %12617 = vmatprep.subr.mxu0 %v10788_v17  ;;  %v16463_v12 = vld [vmem:[%s17517_s8 + $0x78] sm:$0xff] }
 0x399   : > { %12467 = vmatmul.mubr.msk.f32.gmra.mxu1 %vm407_vm0, %v16434_v56  ;;  %12519 = vmatmul.mubr.msk.f32.gmra.mxu0 %vm407_vm0, %v16044_v0  ;;  %v16469_v0 = vld [vmem:[#allocation3 + $0x4a] sm:$0xff] }
 0x39a   : > { %12469 = vmatprep.mubr.msk.f32.mxu1 %vm407_vm0, %v16451_v61  ;;  %12521 = vmatprep.mubr.msk.f32.mxu0 %vm407_vm0, %v16075_v39  ;;  %v16476_v39 = vld [vmem:[#allocation3 + $0x52] sm:$0xff] }
 0x39b   : > { %12667 = vmatprep.subr.mxu1 %v16443_v1  ;;  %12618 = vmatpush3.msra.mxu0 %v10788_v17  ;;  %v16500_v17 = vld [vmem:[#allocation3 + $0x82] sm:$0xff] }
 0x39c   : > { %12719 = vmatprep.subr.mxu0 %v16463_v12 }
 0x39d   : > { %12470 = vmatmul.mubr.msk.f32.gmra.mxu1 %vm407_vm0, %v16458_v63  ;;  %12522 = vmatmul.mubr.msk.f32.gmra.mxu0 %vm407_vm0, %v16077_v33  ;;  %v16488_v33 = vld [vmem:[#allocation3 + $0x6a] sm:$0xff] }
 0x39e   : > { %12472 = vmatprep.mubr.msk.f32.mxu1 %vm407_vm0, %v16469_v0  ;;  %12524 = vmatprep.mubr.msk.f32.mxu0 %vm407_vm0, %v16108_v7 }
 0x3a1   : > { %12473 = vmatmul.mubr.msk.f32.gmra.mxu1 %vm407_vm0, %v16476_v39  ;;  %12525 = vmatmul.mubr.msk.f32.gmra.mxu0 %vm407_vm0, %v16110_v52 }
 0x3a2   : > { %12475 = vmatprep.mubr.msk.f32.mxu1 %vm407_vm0, %v16482_v16  ;;  %12527 = vmatprep.mubr.msk.f32.mxu0 %vm407_vm0, %v16141_v6  ;;  %v16616_v6 = vld [vmem:[#allocation3 + $0x180] sm:$0xff] }
 0x3a3   : > { %18006 = vst [vmem:[#allocation92_spill] sm:$0xff] %v16616_v6 }
 0x3a5   : > { %12476 = vmatmul.mubr.msk.f32.gmra.mxu1 %vm407_vm0, %v16488_v33  ;;  %12528 = vmatmul.mubr.msk.f32.gmra.mxu0 %vm407_vm0, %v16143_v28  ;;  %v16512_v28 = vld [vmem:[#allocation3 + $0x9a] sm:$0xff] }
 0x3a6   : > { %12478 = vmatprep.mubr.msk.f32.mxu1 %vm407_vm0, %v16494_v38  ;;  %12530 = vmatprep.mubr.msk.f32.mxu0 %vm407_vm0, %v16174_v20  ;;  %v16518_v20 = vld [vmem:[#allocation3 + $0xaa] sm:$0xff] }
 0x3a9   : > { %12479 = vmatmul.mubr.msk.f32.gmra.mxu1 %vm407_vm0, %v16500_v17  ;;  %12531 = vmatmul.mubr.msk.f32.gmra.mxu0 %vm407_vm0, %v16176_v27  ;;  %v16524_v27 = vld [vmem:[#allocation3 + $0xb2] sm:$0xff] }
 0x3aa   : > { %12481 = vmatprep.mubr.msk.f32.mxu1 %vm407_vm0, %v16506_v57  ;;  %12533 = vmatprep.mubr.msk.f32.mxu0 %vm407_vm0, %v16207_v44  ;;  %v16530_v44 = vld [vmem:[#allocation3 + $0xc2] sm:$0xff] }
 0x3ad   : > { %12482 = vmatmul.mubr.msk.f32.gmra.mxu1 %vm407_vm0, %v16512_v28  ;;  %12534 = vmatmul.mubr.msk.f32.gmra.mxu0 %vm407_vm0, %v16209_v35  ;;  %v16536_v35 = vld [vmem:[#allocation3 + $0xca] sm:$0xff] }
 0x3ae   : > { %12484 = vmatprep.mubr.msk.f32.mxu1 %vm407_vm0, %v16518_v20  ;;  %12536 = vmatprep.mubr.msk.f32.mxu0 %vm407_vm0, %v16240_v18  ;;  %v16542_v18 = vld [vmem:[#allocation3 + $0xda] sm:$0xff] }
 0x3b1   : > { %12485 = vmatmul.mubr.msk.f32.gmra.mxu1 %vm407_vm0, %v16524_v27  ;;  %12537 = vmatmul.mubr.msk.f32.gmra.mxu0 %vm407_vm0, %v16242_v19  ;;  %v16548_v19 = vld [vmem:[#allocation3 + $0xe2] sm:$0xff] }
 0x3b2   : > { %12487 = vmatprep.mubr.msk.f32.mxu1 %vm407_vm0, %v16530_v44  ;;  %12539 = vmatprep.mubr.msk.f32.mxu0 %vm407_vm0, %v16271_v3  ;;  %v16554_v3 = vld [vmem:[#allocation3 + $0xf2] sm:$0xff] }
 0x3b5   : > { %12488 = vmatmul.mubr.msk.f32.gmra.mxu1 %vm407_vm0, %v16536_v35  ;;  %12540 = vmatmul.mubr.msk.f32.gmra.mxu0 %vm407_vm0, %v16273_v49  ;;  %v16560_v49 = vld [vmem:[#allocation3 + $0xfa] sm:$0xff] }
 0x3b6   : > { %12490 = vmatprep.mubr.msk.f32.mxu1 %vm407_vm0, %v16542_v18  ;;  %12542 = vmatprep.mubr.msk.f32.mxu0 %vm407_vm0, %v16299_v40  ;;  %v16566_v40 = vld [vmem:[#allocation3 + $0x10a] sm:$0xff] }
 0x3b9   : > { %12491 = vmatmul.mubr.msk.f32.gmra.mxu1 %vm407_vm0, %v16548_v19  ;;  %12543 = vmatmul.mubr.msk.f32.gmra.mxu0 %vm407_vm0, %v16301_v25  ;;  %v16572_v25 = vld [vmem:[#allocation3 + $0x112] sm:$0xff] }
 0x3ba   : > { %12493 = vmatprep.mubr.msk.f32.mxu1 %vm407_vm0, %v16554_v3  ;;  %12545 = vmatprep.mubr.msk.f32.mxu0 %vm407_vm0, %v16322_v31  ;;  %v16578_v31 = vld [vmem:[#allocation3 + $0x122] sm:$0xff] }
 0x3bd   : > { %12494 = vmatmul.mubr.msk.f32.gmra.mxu1 %vm407_vm0, %v16560_v49  ;;  %12546 = vmatmul.mubr.msk.f32.gmra.mxu0 %vm407_vm0, %v16324_v8  ;;  %v16584_v8 = vld [vmem:[#allocation3 + $0x12a] sm:$0xff] }
 0x3be   : > { %12496 = vmatprep.mubr.msk.f32.mxu1 %vm407_vm0, %v16566_v40  ;;  %12548 = vmatprep.mubr.msk.f32.mxu0 %vm407_vm0, %v16344_v9  ;;  %v16590_v9 = vld [vmem:[#allocation3 + $0x13a] sm:$0xff] }
 0x3c1   : > { %12497 = vmatmul.mubr.msk.f32.gmra.mxu1 %vm407_vm0, %v16572_v25  ;;  %12549 = vmatmul.mubr.msk.f32.gmra.mxu0 %vm407_vm0, %v16346_v13  ;;  %v16596_v13 = vld [vmem:[#allocation3 + $0x142] sm:$0xff] }
 0x3c2   : > { %12499 = vmatprep.mubr.msk.f32.mxu1 %vm407_vm0, %v16578_v31  ;;  %12551 = vmatprep.mubr.msk.f32.mxu0 %vm407_vm0, %v16366_v48  ;;  %v16602_v48 = vld [vmem:[#allocation3 + $0x152] sm:$0xff] }
 0x3c5   : > { %12500 = vmatmul.mubr.msk.f32.gmra.mxu1 %vm407_vm0, %v16584_v8  ;;  %12552 = vmatmul.mubr.msk.f32.gmra.mxu0 %vm407_vm0, %v16368_v47  ;;  %v16608_v47 = vld [vmem:[#allocation3 + $0x15a] sm:$0xff] }
 0x3c6   : > { %12502 = vmatprep.mubr.msk.f32.mxu1 %vm407_vm0, %v16590_v9  ;;  %12554 = vmatprep.mubr.msk.f32.mxu0 %vm407_vm0, %v16385_v34  ;;  %v16614_v34 = vld [vmem:[#allocation3 + $0x16a] sm:$0xff] }
 0x3c9   : > { %12503 = vmatmul.mubr.msk.f32.gmra.mxu1 %vm407_vm0, %v16596_v13  ;;  %12555 = vmatmul.mubr.msk.f32.gmra.mxu0 %vm407_vm0, %v16387_v62  ;;  %v16622_v62 = vld [vmem:[#allocation3 + $0x172] sm:$0xff] }
 0x3ca   : > { %12505 = vmatprep.mubr.msk.f32.mxu1 %vm407_vm0, %v16602_v48  ;;  %12557 = vmatprep.mubr.msk.f32.mxu0 %vm407_vm0, %v16402_v43  ;;  %v16624_v43 = vld [vmem:[#allocation3 + $0x188] sm:$0xff] }
 0x3cd   : > { %12506 = vmatmul.mubr.msk.f32.gmra.mxu1 %vm407_vm0, %v16608_v47  ;;  %12558 = vmatmul.mubr.msk.f32.gmra.mxu0 %vm407_vm0, %v16404_v24 }
 0x3ce   : > { %12508 = vmatprep.mubr.msk.f32.mxu1 %vm407_vm0, %v16614_v34  ;;  %12560 = vmatprep.mubr.msk.f32.mxu0 %vm407_vm0, %v16616_v6  ;;  %v10822_v6 = vld [vmem:[%s17517_s8 + $0x60] sm:$0xff] }
 0x3d1   : > { %12509 = vmatmul.mubr.msk.f32.gmra.mxu1 %vm407_vm0, %v16622_v62  ;;  %12561 = vmatmul.mubr.msk.f32.gmra.mxu0 %vm407_vm0, %v16624_v43 }
 0x3d2   : > { %12567 = vmatprep.mubr.msk.f32.mxu1 %vm407_vm0, %v16007_v53  ;;  %12619 = vmatprep.mubr.msk.f32.mxu0 %vm407_vm0, %v16425_v36  ;;  %v10856_v53 = vld [vmem:[%s17517_s8 + $0x70] sm:$0xff] }
 0x3d5   : > { %12568 = vmatmul.mubr.msk.f32.vlgmr.msra.gmra.mxu1 %vm407_vm0, %v16022_v41  ;;  %12620 = vmatmul.mubr.msk.f32.vlgmr.msra.gmra.mxu0 %vm407_vm0, %v16434_v56  ;;  %v16653_v41 = vld [vmem:[%s17517_s8 + $0x88] sm:$0xff] }
 0x3d6   : > { %12668 = vmatpush3.msra.mxu1 %v16443_v1  ;;  %12570 = vmatprep.mubr.msk.f32.mxu1 %vm407_vm0, %v16040_v51  ;;  %v18007_v51 = vld [vmem:[#allocation29_spill] sm:$0xff] }
 0x3d7   : > { %12622 = vmatprep.mubr.msk.f32.mxu0 %vm407_vm0, %v16451_v61  ;;  %12669 = vmatprep.subr.mxu1 %v10822_v6 }
 0x3d8   : > { %12670 = vmatpush3.msra.mxu1 %v10822_v6  ;;  %12720 = vmatpush3.msra.mxu0 %v16463_v12  ;;  %v16766_v6 = vld [vmem:[#allocation3 + $0x182] sm:$0xff] }
 0x3d9   : > { %12571 = vmatmul.mubr.msk.f32.gmra.mxu1 %vm407_vm0, %v16055_v4  ;;  %12623 = vmatmul.mubr.msk.f32.gmra.mxu0 %vm407_vm0, %v16458_v63  ;;  %v18008_v4 = vld [vmem:[#allocation25_spill] sm:$0xff] }
 0x3da   : > { %12573 = vmatprep.mubr.msk.f32.mxu1 %vm407_vm0, %v16073_v60  ;;  %12625 = vmatprep.mubr.msk.f32.mxu0 %vm407_vm0, %v16469_v0  ;;  %v18009_v60 = vld [vmem:[#allocation40_spill] sm:$0xff] }
 0x3db   : > { %12721 = vmatprep.subr.mxu0 %v10856_v53  ;;  %12771 = vmatprep.subr.mxu1 %v16653_v41 }
 0x3dc   : > { %12722 = vmatpush3.msra.mxu0 %v10856_v53 }
 0x3dd   : > { %12574 = vmatmul.mubr.msk.f32.gmra.mxu1 %vm407_vm0, %v16088_v54  ;;  %12626 = vmatmul.mubr.msk.f32.gmra.mxu0 %vm407_vm0, %v16476_v39  ;;  %v16764_v54 = vld [vmem:[#allocation3 + $0x181] sm:$0xff] }
 0x3de   : > { %12576 = vmatprep.mubr.msk.f32.mxu1 %vm407_vm0, %v16106_v46  ;;  %12628 = vmatprep.mubr.msk.f32.mxu0 %vm407_vm0, %v16482_v16 }
 0x3e1   : > { %12577 = vmatmul.mubr.msk.f32.gmra.mxu1 %vm407_vm0, %v16121_v59  ;;  %12629 = vmatmul.mubr.msk.f32.gmra.mxu0 %vm407_vm0, %v16488_v33 }
 0x3e2   : > { %12579 = vmatprep.mubr.msk.f32.mxu1 %vm407_vm0, %v16139_v50  ;;  %12631 = vmatprep.mubr.msk.f32.mxu0 %vm407_vm0, %v16494_v38 }
 0x3e5   : > { %12580 = vmatmul.mubr.msk.f32.gmra.mxu1 %vm407_vm0, %v16154_v32  ;;  %12632 = vmatmul.mubr.msk.f32.gmra.mxu0 %vm407_vm0, %v16500_v17 }
 0x3e6   : > { %12582 = vmatprep.mubr.msk.f32.mxu1 %vm407_vm0, %v18007_v51  ;;  %12634 = vmatprep.mubr.msk.f32.mxu0 %vm407_vm0, %v16506_v57 }
 0x3e9   : > { %12583 = vmatmul.mubr.msk.f32.gmra.mxu1 %vm407_vm0, %v18008_v4  ;;  %12635 = vmatmul.mubr.msk.f32.gmra.mxu0 %vm407_vm0, %v16512_v28 }
 0x3ea   : > { %12585 = vmatprep.mubr.msk.f32.mxu1 %vm407_vm0, %v16205_v55  ;;  %12637 = vmatprep.mubr.msk.f32.mxu0 %vm407_vm0, %v16518_v20 }
 0x3ed   : > { %12586 = vmatmul.mubr.msk.f32.gmra.mxu1 %vm407_vm0, %v18009_v60  ;;  %12638 = vmatmul.mubr.msk.f32.gmra.mxu0 %vm407_vm0, %v16524_v27  ;;  %v16772_v27 = vld [vmem:[#allocation3 + $0x189] sm:$0xff] }
 0x3ee   : > { %12588 = vmatprep.mubr.msk.f32.mxu1 %vm407_vm0, %v16238_v37  ;;  %12640 = vmatprep.mubr.msk.f32.mxu0 %vm407_vm0, %v16530_v44 }
 0x3f1   : > { %12589 = vmatmul.mubr.msk.f32.gmra.mxu1 %vm407_vm0, %v16251_v10  ;;  %12641 = vmatmul.mubr.msk.f32.gmra.mxu0 %vm407_vm0, %v16536_v35  ;;  %v16774_v35 = vld [vmem:[#allocation3 + $0x18a] sm:$0xff] }
 0x3f2   : > { %12591 = vmatprep.mubr.msk.f32.mxu1 %vm407_vm0, %v16269_v23  ;;  %12643 = vmatprep.mubr.msk.f32.mxu0 %vm407_vm0, %v16542_v18 }
 0x3f5   : > { %12592 = vmatmul.mubr.msk.f32.gmra.mxu1 %vm407_vm0, %v16282_v45  ;;  %12644 = vmatmul.mubr.msk.f32.gmra.mxu0 %vm407_vm0, %v16548_v19  ;;  %v8663_v19 = vld [vmem:[#allocation3 + $0x30] sm:$0xff] }
 0x3f6   : > { %12594 = vmatprep.mubr.msk.f32.mxu1 %vm407_vm0, %v16297_v22  ;;  %12646 = vmatprep.mubr.msk.f32.mxu0 %vm407_vm0, %v16554_v3  ;;  %v9051_v3 = vld [vmem:[#allocation3 + $0x31] sm:$0xff] }
 0x3f9   : > { %12595 = vmatmul.mubr.msk.f32.gmra.mxu1 %vm407_vm0, %v16310_v2  ;;  %12647 = vmatmul.mubr.msk.f32.gmra.mxu0 %vm407_vm0, %v16560_v49  ;;  %v8664_v49 = vld [vmem:[#allocation3 + $0x38] sm:$0xff] }
 0x3fa   : > { %12597 = vmatprep.mubr.msk.f32.mxu1 %vm407_vm0, %v16320_v30  ;;  %12649 = vmatprep.mubr.msk.f32.mxu0 %vm407_vm0, %v16566_v40  ;;  %v9052_v40 = vld [vmem:[#allocation3 + $0x39] sm:$0xff] }
 0x3fd   : > { %12598 = vmatmul.mubr.msk.f32.gmra.mxu1 %vm407_vm0, %v16333_v21  ;;  %12650 = vmatmul.mubr.msk.f32.gmra.mxu0 %vm407_vm0, %v16572_v25  ;;  %v10890_v25 = vld [vmem:[%s17517_s8 + $0x80] sm:$0xff] }
 0x3fe   : > { %12600 = vmatprep.mubr.msk.f32.mxu1 %vm407_vm0, %v16342_v11  ;;  %12652 = vmatprep.mubr.msk.f32.mxu0 %vm407_vm0, %v16578_v31  ;;  %v8665_v31 = vld [vmem:[#allocation3 + $0x48] sm:$0xff] }
 0x401   : > { %12601 = vmatmul.mubr.msk.f32.gmra.mxu1 %vm407_vm0, %v16355_v14  ;;  %12653 = vmatmul.mubr.msk.f32.gmra.mxu0 %vm407_vm0, %v16584_v8  ;;  %v9053_v8 = vld [vmem:[#allocation3 + $0x49] sm:$0xff] }
 0x402   : > { %12603 = vmatprep.mubr.msk.f32.mxu1 %vm407_vm0, %v16364_v15  ;;  %12655 = vmatprep.mubr.msk.f32.mxu0 %vm407_vm0, %v16590_v9  ;;  %v16789_v9 = vpop.f32.mrf.mxu1 }
 0x405   : > { %12604 = vmatmul.mubr.msk.f32.gmra.mxu1 %vm407_vm0, %v16376_v42  ;;  %12656 = vmatmul.mubr.msk.f32.gmra.mxu0 %vm407_vm0, %v16596_v13  ;;  %v16791_v13 = vpop.f32.mrf.mxu0 }
 0x406   : > { %12606 = vmatprep.mubr.msk.f32.mxu1 %vm407_vm0, %v16383_v29  ;;  %12658 = vmatprep.mubr.msk.f32.mxu0 %vm407_vm0, %v16602_v48  ;;  %v8666_v48 = vld [vmem:[#allocation3 + $0x50] sm:$0xff] }
 0x409   : > { %12607 = vmatmul.mubr.msk.f32.gmra.mxu1 %vm407_vm0, %v16394_v26  ;;  %12659 = vmatmul.mubr.msk.f32.gmra.mxu0 %vm407_vm0, %v16608_v47  ;;  %v9054_v47 = vld [vmem:[#allocation3 + $0x51] sm:$0xff] }
 0x40a   : > { %12609 = vmatprep.mubr.msk.f32.mxu1 %vm407_vm0, %v16400_v58  ;;  %12661 = vmatprep.mubr.msk.f32.mxu0 %vm407_vm0, %v16614_v34 }
 0x40d   : > { %12610 = vmatmul.mubr.msk.f32.gmra.mxu1 %vm407_vm0, %v16410_v5  ;;  %12662 = vmatmul.mubr.msk.f32.gmra.mxu0 %vm407_vm0, %v16622_v62 }
 0x40e   : > { %12612 = vmatprep.mubr.msk.f32.mxu1 %vm407_vm0, %v16764_v54  ;;  %12664 = vmatprep.mubr.msk.f32.mxu0 %vm407_vm0, %v16766_v6 }
 0x411   : > { %12613 = vmatmul.mubr.msk.f32.gmra.mxu1 %vm407_vm0, %v16772_v27  ;;  %12665 = vmatmul.mubr.msk.f32.gmra.mxu0 %vm407_vm0, %v16774_v35 }
 0x412   : > { %12671 = vmatprep.mubr.msk.f32.mxu1 %vm407_vm0, %v8663_v19  ;;  %12723 = vmatprep.mubr.msk.f32.mxu0 %vm407_vm0, %v9051_v3  ;;  %v18010_v3 = vld [vmem:[#allocation11_spill] sm:$0xff] }
 0x415   : > { %12672 = vmatmul.mubr.msk.f32.vlgmr.msra.gmra.mxu1 %vm407_vm0, %v8664_v49  ;;  %12724 = vmatmul.mubr.msk.f32.vlgmr.msra.gmra.mxu0 %vm407_vm0, %v9052_v40  ;;  %v12364_v34 = vpop.f32.mrf.mxu1 }
 0x416   : > { %12772 = vmatpush3.msra.mxu1 %v16653_v41  ;;  %12674 = vmatprep.mubr.msk.f32.mxu1 %vm407_vm0, %v8665_v31  ;;  %v12416_v62 = vpop.f32.mrf.mxu0  ;;  %v18011_v31 = vld [vmem:[#allocation8_spill] sm:$0xff] }
 0x417   : > { %12726 = vmatprep.mubr.msk.f32.mxu0 %vm407_vm0, %v9053_v8  ;;  %12773 = vmatprep.subr.mxu1 %v10890_v25  ;;  %v16796_v36 = vadd.f32 %v12416_v62, %v12364_v34  ;;  %v6640_v56 = vpop.f32.mrf.mxu1  ;;  %v18013_v62 = vld [vmem:[#allocation28_spill] sm:$0xff] }
 0x418   : > { %12774 = vmatpush3.msra.mxu1 %v10890_v25  ;;  %v6961_v1 = vpop.f32.mrf.mxu0 }
 0x419   : > { %12675 = vmatmul.mubr.msk.f32.gmra.mxu1 %vm407_vm0, %v8666_v48  ;;  %12727 = vmatmul.mubr.msk.f32.gmra.mxu0 %vm407_vm0, %v9054_v47  ;;  %v16802_v12 = vadd.f32 %v6961_v1, %v6640_v56  ;;  %v12367_v53 = vpop.f32.mrf.mxu1  ;;  %v18014_v56 = vld [vmem:[#allocation18_spill] sm:$0xff] }
 0x41a   : > { %12677 = vmatprep.mubr.msk.f32.mxu1 %vm407_vm0, %v16108_v7  ;;  %12729 = vmatprep.mubr.msk.f32.mxu0 %vm407_vm0, %v16106_v46  ;;  %v12419_v41 = vpop.f32.mrf.mxu0 }
 0x41b   : > { %v16808_v19 = vadd.f32 %v12419_v41, %v12367_v53  ;;  %v6650_v46 = vpop.f32.mrf.mxu1 }
 0x41c   : > { %v6971_v7 = vpop.f32.mrf.mxu0 }
 0x41d   : > { %12678 = vmatmul.mubr.msk.f32.gmra.mxu1 %vm407_vm0, %v16110_v52  ;;  %12730 = vmatmul.mubr.msk.f32.gmra.mxu0 %vm407_vm0, %v16121_v59  ;;  %v16814_v49 = vadd.f32 %v6971_v7, %v6650_v46  ;;  %v18012_v59 = vld [vmem:[#allocation30_spill] sm:$0xff]  ;;  %v18016_v7 = vld [vmem:[#allocation35_spill] sm:$0xff] }
 0x41e   : > { %12680 = vmatprep.mubr.msk.f32.mxu1 %vm407_vm0, %v18010_v3  ;;  %12732 = vmatprep.mubr.msk.f32.mxu0 %vm407_vm0, %v16139_v50  ;;  %v12370_v40 = vpop.f32.mrf.mxu1  ;;  %v12422_v25 = vpop.f32.mrf.mxu0  ;;  %v18015_v46 = vld [vmem:[#allocation14_spill] sm:$0xff] }
 0x41f   : > { %v16820_v52 = vadd.f32 %v12422_v25, %v12370_v40 }
 0x420   : > { %v6660_v50 = vpop.f32.mrf.mxu1  ;;  %v6981_v8 = vpop.f32.mrf.mxu0 }
 0x421   : > { %12681 = vmatmul.mubr.msk.f32.gmra.mxu1 %vm407_vm0, %v18011_v31  ;;  %12733 = vmatmul.mubr.msk.f32.gmra.mxu0 %vm407_vm0, %v16154_v32  ;;  %v16826_v48 = vadd.f32 %v6981_v8, %v6660_v50  ;;  %v18017_v50 = vld [vmem:[#allocation57_spill] sm:$0xff]  ;;  %v18018_v8 = vld [vmem:[#allocation36_spill] sm:$0xff] }
 0x422   : > { %12683 = vmatprep.mubr.msk.f32.mxu1 %vm407_vm0, %v18012_v59  ;;  %12735 = vmatprep.mubr.msk.f32.mxu0 %vm407_vm0, %v18007_v51  ;;  %v12373_v47 = vpop.f32.mrf.mxu1  ;;  %v12425_v34 = vpop.f32.mrf.mxu0 }
 0x423   : > { %v16832_v32 = vadd.f32 %v12425_v34, %v12373_v47 }
 0x424   : > { %v6670_v51 = vpop.f32.mrf.mxu1  ;;  %v6991_v1 = vpop.f32.mrf.mxu0 }
 0x425   : > { %12684 = vmatmul.mubr.msk.f32.gmra.mxu1 %vm407_vm0, %v18013_v62  ;;  %12736 = vmatmul.mubr.msk.f32.gmra.mxu0 %vm407_vm0, %v18008_v4  ;;  %v16838_v53 = vadd.f32 %v6991_v1, %v6670_v51  ;;  %v18019_v51 = vld [vmem:[#allocation58_spill] sm:$0xff] }
 0x426   : > { %12686 = vmatprep.mubr.msk.f32.mxu1 %vm407_vm0, %v18014_v56  ;;  %12738 = vmatprep.mubr.msk.f32.mxu0 %vm407_vm0, %v16205_v55  ;;  %v12376_v41 = vpop.f32.mrf.mxu1  ;;  %v18020_v1 = vld [vmem:[#allocation46_spill] sm:$0xff] }
 0x427   : > { %v12428_v3 = vpop.f32.mrf.mxu0 }
 0x428   : > { %v16844_v4 = vadd.f32 %v12428_v3, %v12376_v41  ;;  %v6680_v55 = vpop.f32.mrf.mxu1 }
 0x429   : > { %12687 = vmatmul.mubr.msk.f32.gmra.mxu1 %vm407_vm0, %v18015_v46  ;;  %12739 = vmatmul.mubr.msk.f32.gmra.mxu0 %vm407_vm0, %v18009_v60  ;;  %v7001_v40 = vpop.f32.mrf.mxu0 }
 0x42a   : > { %12689 = vmatprep.mubr.msk.f32.mxu1 %vm407_vm0, %v18016_v7  ;;  %12741 = vmatprep.mubr.msk.f32.mxu0 %vm407_vm0, %v16238_v37  ;;  %v16850_v25 = vadd.f32 %v7001_v40, %v6680_v55  ;;  %v18021_v55 = vld [vmem:[#allocation32_spill] sm:$0xff]  ;;  %v18022_v40 = vld [vmem:[#allocation19_spill] sm:$0xff] }
 0x42b   : > { %v12379_v31 = vpop.f32.mrf.mxu1  ;;  %v12431_v59 = vpop.f32.mrf.mxu0 }
 0x42c   : > { %v16856_v60 = vadd.f32 %v12431_v59, %v12379_v31 }
 0x42d   : > { %12690 = vmatmul.mubr.msk.f32.gmra.mxu1 %vm407_vm0, %v18017_v50  ;;  %12742 = vmatmul.mubr.msk.f32.gmra.mxu0 %vm407_vm0, %v16251_v10  ;;  %v6690_v37 = vpop.f32.mrf.mxu1  ;;  %v7011_v47 = vpop.f32.mrf.mxu0 }
 0x42e   : > { %12692 = vmatprep.mubr.msk.f32.mxu1 %vm407_vm0, %v18018_v8  ;;  %12744 = vmatprep.mubr.msk.f32.mxu0 %vm407_vm0, %v16269_v23  ;;  %v16862_v34 = vadd.f32 %v7011_v47, %v6690_v37  ;;  %v18023_v37 = vld [vmem:[#allocation13_spill] sm:$0xff]  ;;  %v18024_v47 = vld [vmem:[#allocation31_spill] sm:$0xff] }
 0x42f   : > { %v12382_v62 = vpop.f32.mrf.mxu1  ;;  %v12434_v56 = vpop.f32.mrf.mxu0 }
 0x430   : > { %v16868_v10 = vadd.f32 %v12434_v56, %v12382_v62 }
 0x431   : > { %12693 = vmatmul.mubr.msk.f32.gmra.mxu1 %vm407_vm0, %v18019_v51  ;;  %12745 = vmatmul.mubr.msk.f32.gmra.mxu0 %vm407_vm0, %v16282_v45  ;;  %v6700_v23 = vpop.f32.mrf.mxu1  ;;  %v7021_v41 = vpop.f32.mrf.mxu0 }
 0x432   : > { %12695 = vmatprep.mubr.msk.f32.mxu1 %vm407_vm0, %v18020_v1  ;;  %12747 = vmatprep.mubr.msk.f32.mxu0 %vm407_vm0, %v16297_v22  ;;  %v16874_v3 = vadd.f32 %v7021_v41, %v6700_v23  ;;  %v18025_v23 = vld [vmem:[#allocation34_spill] sm:$0xff]  ;;  %v18026_v41 = vld [vmem:[#allocation17_spill] sm:$0xff] }
 0x433   : > { %v12385_v46 = vpop.f32.mrf.mxu1 }
 0x434   : > { %v12437_v7 = vpop.f32.mrf.mxu0 }
 0x435   : > { %12696 = vmatmul.mubr.msk.f32.gmra.mxu1 %vm407_vm0, %v18021_v55  ;;  %12748 = vmatmul.mubr.msk.f32.gmra.mxu0 %vm407_vm0, %v16310_v2  ;;  %v16880_v45 = vadd.f32 %v12437_v7, %v12385_v46  ;;  %v6710_v22 = vpop.f32.mrf.mxu1 }
 0x436   : > { %12698 = vmatprep.mubr.msk.f32.mxu1 %vm407_vm0, %v18022_v40  ;;  %12750 = vmatprep.mubr.msk.f32.mxu0 %vm407_vm0, %v16320_v30  ;;  %v7031_v31 = vpop.f32.mrf.mxu0 }
 0x437   : > { %v16886_v59 = vadd.f32 %v7031_v31, %v6710_v22  ;;  %v18027_v22 = vld [vmem:[#allocation21_spill] sm:$0xff]  ;;  %v18028_v31 = vld [vmem:[#allocation51_spill] sm:$0xff] }
 0x438   : > { %v12388_v50 = vpop.f32.mrf.mxu1  ;;  %v12440_v8 = vpop.f32.mrf.mxu0 }
 0x439   : > { %12699 = vmatmul.mubr.msk.f32.gmra.mxu1 %vm407_vm0, %v18023_v37  ;;  %12751 = vmatmul.mubr.msk.f32.gmra.mxu0 %vm407_vm0, %v16333_v21  ;;  %v16892_v2 = vadd.f32 %v12440_v8, %v12388_v50 }
 0x43a   : > { %12701 = vmatprep.mubr.msk.f32.mxu1 %vm407_vm0, %v18024_v47  ;;  %12753 = vmatprep.mubr.msk.f32.mxu0 %vm407_vm0, %v16342_v11  ;;  %v6720_v30 = vpop.f32.mrf.mxu1  ;;  %v7041_v62 = vpop.f32.mrf.mxu0 }
 0x43b   : > { %v16898_v56 = vadd.f32 %v7041_v62, %v6720_v30  ;;  %v18029_v30 = vld [vmem:[#allocation73_spill] sm:$0xff]  ;;  %v18030_v62 = vld [vmem:[#allocation22_spill] sm:$0xff] }
 0x43c   : > { %v12391_v51 = vpop.f32.mrf.mxu1 }
 0x43d   : > { %v12443_v1 = vpop.f32.mrf.mxu0  ;;  %12702 = vmatmul.mubr.msk.f32.gmra.mxu1 %vm407_vm0, %v18025_v23  ;;  %12754 = vmatmul.mubr.msk.f32.gmra.mxu0 %vm407_vm0, %v16355_v14 }
 0x43e   : > { %v16904_v21 = vadd.f32 %v12443_v1, %v12391_v51  ;;  %12704 = vmatprep.mubr.msk.f32.mxu1 %vm407_vm0, %v18026_v41  ;;  %12756 = vmatprep.mubr.msk.f32.mxu0 %vm407_vm0, %v16364_v15  ;;  %v6730_v11 = vpop.f32.mrf.mxu1 }
 0x43f   : > { %v7051_v46 = vpop.f32.mrf.mxu0 }
 0x440   : > { %v16910_v7 = vadd.f32 %v7051_v46, %v6730_v11  ;;  %v12394_v55 = vpop.f32.mrf.mxu1  ;;  %v18031_v11 = vld [vmem:[#allocation92_spill] sm:$0xff] }
 0x441   : > { %v12446_v40 = vpop.f32.mrf.mxu0  ;;  %12705 = vmatmul.mubr.msk.f32.gmra.mxu1 %vm407_vm0, %v18027_v22  ;;  %12757 = vmatmul.mubr.msk.f32.gmra.mxu0 %vm407_vm0, %v16376_v42 }
 0x442   : > { %v16916_v14 = vadd.f32 %v12446_v40, %v12394_v55  ;;  %12707 = vmatprep.mubr.msk.f32.mxu1 %vm407_vm0, %v18028_v31  ;;  %12759 = vmatprep.mubr.msk.f32.mxu0 %vm407_vm0, %v16383_v29  ;;  %v6740_v15 = vpop.f32.mrf.mxu1  ;;  %v8693_v55 = vld [vmem:[#allocation3 + $0x198] sm:$0xff] }
 0x443   : > { %v7061_v50 = vpop.f32.mrf.mxu0  ;;  %v9081_v40 = vld [vmem:[#allocation3 + $0x199] sm:$0xff] }
 0x444   : > { %v16922_v8 = vadd.f32 %v7061_v50, %v6740_v15  ;;  %v12397_v37 = vpop.f32.mrf.mxu1 }
 0x445   : > { %v12449_v47 = vpop.f32.mrf.mxu0  ;;  %12708 = vmatmul.mubr.msk.f32.gmra.mxu1 %vm407_vm0, %v18029_v30  ;;  %12760 = vmatmul.mubr.msk.f32.gmra.mxu0 %vm407_vm0, %v16394_v26 }
 0x446   : > { %v16928_v42 = vadd.f32 %v12449_v47, %v12397_v37  ;;  %12710 = vmatprep.mubr.msk.f32.mxu1 %vm407_vm0, %v18030_v62  ;;  %12762 = vmatprep.mubr.msk.f32.mxu0 %vm407_vm0, %v16400_v58  ;;  %v6750_v29 = vpop.f32.mrf.mxu1 }
 0x447   : > { %v7071_v51 = vpop.f32.mrf.mxu0 }
 0x448   : > { %v16934_v1 = vadd.f32 %v7071_v51, %v6750_v29  ;;  %v12400_v23 = vpop.f32.mrf.mxu1 }
 0x449   : > { %v12452_v41 = vpop.f32.mrf.mxu0  ;;  %12711 = vmatmul.mubr.msk.f32.gmra.mxu1 %vm407_vm0, %v16404_v24  ;;  %12763 = vmatmul.mubr.msk.f32.gmra.mxu0 %vm407_vm0, %v16410_v5  ;;  %v8694_v5 = vld [vmem:[#allocation3 + $0x1a0] sm:$0xff] }
 0x44a   : > { %v16940_v26 = vadd.f32 %v12452_v41, %v12400_v23  ;;  %12713 = vmatprep.mubr.msk.f32.mxu1 %vm407_vm0, %v18031_v11  ;;  %12765 = vmatprep.mubr.msk.f32.mxu0 %vm407_vm0, %v16764_v54  ;;  %v6760_v58 = vpop.f32.mrf.mxu1  ;;  %v9082_v54 = vld [vmem:[#allocation3 + $0x1a1] sm:$0xff]  ;;  %v6952_v11 = vadd.f32 %v16791_v13, %v16789_v9 }
 0x44b   : > { %v7081_v46 = vpop.f32.mrf.mxu0 }
 0x44c   : > { %v16946_v22 = vadd.f32 %v7081_v46, %v6760_v58  ;;  %v12403_v31 = vpop.f32.mrf.mxu1  ;;  %v18032_v58 = vld [vmem:[#allocation91_spill] sm:$0xff] }
 0x44d   : > { %v12455_v15 = vpop.f32.mrf.mxu0  ;;  %12714 = vmatmul.mubr.msk.f32.gmra.mxu1 %vm407_vm0, %v16624_v43  ;;  %12766 = vmatmul.mubr.msk.f32.gmra.mxu0 %vm407_vm0, %v16772_v27 }
 0x44e   : > { %v16952_v24 = vadd.f32 %v12455_v15, %v12403_v31  ;;  %12716 = vmatprep.mubr.msk.f32.mxu1 %vm407_vm0, %v8693_v55  ;;  %12768 = vmatprep.mubr.msk.f32.mxu0 %vm407_vm0, %v9081_v40  ;;  %v6770_v50 = vpop.f32.mrf.mxu1 }
 0x44f   : > { %v7091_v37 = vpop.f32.mrf.mxu0 }
 0x450   : > { %v16956_v47 = vadd.f32 %v7091_v37, %v6770_v50  ;;  %v12406_v30 = vpop.f32.mrf.mxu1 }
 0x451   : > { %v12458_v62 = vpop.f32.mrf.mxu0  ;;  %12717 = vmatmul.mubr.msk.f32.gmra.mxu1 %vm407_vm0, %v8694_v5  ;;  %12769 = vmatmul.mubr.msk.f32.gmra.mxu0 %vm407_vm0, %v9082_v54 }
 0x452   : > { %v16960_v43 = vadd.f32 %v12458_v62, %v12406_v30  ;;  %12775 = vmatprep.mubr.msk.f32.mxu1 %vm407_vm0, %v16451_v61  ;;  %v6780_v27 = vpop.f32.mrf.mxu1 }
 0x453   : > { %v7101_v29 = vpop.f32.mrf.mxu0 }
 0x454   : > { %v16964_v51 = vadd.f32 %v7101_v29, %v6780_v27  ;;  %v12465_v23 = vpop.f32.mrf.mxu1 }
 0x455   : > { %v12517_v41 = vpop.f32.mrf.mxu0  ;;  %12776 = vmatmul.mubr.msk.f32.vlgmr.msra.gmra.mxu1 %vm407_vm0, %v16458_v63  ;;  %v7467_v46 = vadd.f32 %v12465_v23, %v18032_v58 }
 0x456   : > { %12778 = vmatprep.mubr.msk.f32.mxu1 %vm407_vm0, %v16469_v0  ;;  %v7307_v55 = vpop.f32.mrf.mxu1 }
 0x457   : > { %v7695_v40 = vpop.f32.mrf.mxu0  ;;  %v16973_v61 = vadd.f32 %v12517_v41, %v7467_v46  ;;  %v7466_v31 = vadd.f32 %v7307_v55, %v6952_v11 }
 0x459   : > { %v12468_v15 = vpop.f32.mrf.mxu1  ;;  %v12520_v5 = vpop.f32.mrf.mxu0  ;;  %12779 = vmatmul.mubr.msk.f32.gmra.mxu1 %vm407_vm0, %v16476_v39  ;;  %v16977_v54 = vadd.f32 %v7695_v40, %v7466_v31 }
 0x45a   : > { %v7469_v63 = vadd.f32 %v12468_v15, %v16796_v36  ;;  %12781 = vmatprep.mubr.msk.f32.mxu1 %vm407_vm0, %v16482_v16  ;;  %v9450_v15 = vld [vmem:[#allocation3 + $0xb2] sm:$0xff] }
 0x45b   : > { %v7317_v9 = vpop.f32.mrf.mxu1  ;;  %v7705_v13 = vpop.f32.mrf.mxu0 }
 0x45c   : > { %v16982_v0 = vadd.f32 %v12520_v5, %v7469_v63  ;;  %v7468_v50 = vadd.f32 %v7317_v9, %v16802_v12 }
 0x45d   : > { %v12471_v37 = vpop.f32.mrf.mxu1  ;;  %v12523_v30 = vpop.f32.mrf.mxu0  ;;  %12782 = vmatmul.mubr.msk.f32.gmra.mxu1 %vm407_vm0, %v16488_v33 }
 0x45e   : > { %v16987_v62 = vadd.f32 %v7705_v13, %v7468_v50  ;;  %v7471_v39 = vadd.f32 %v12471_v37, %v16808_v19  ;;  %12784 = vmatprep.mubr.msk.f32.mxu1 %vm407_vm0, %v16494_v38  ;;  %v9452_v50 = vld [vmem:[#allocation3 + $0xca] sm:$0xff] }
 0x45f   : > { %v7327_v36 = vpop.f32.mrf.mxu1  ;;  %v7715_v16 = vpop.f32.mrf.mxu0 }
 0x460   : > { %v16992_v27 = vadd.f32 %v12523_v30, %v7471_v39  ;;  %v7470_v29 = vadd.f32 %v7327_v36, %v16814_v49 }
 0x461   : > { %v12474_v23 = vpop.f32.mrf.mxu1  ;;  %v12526_v12 = vpop.f32.mrf.mxu0  ;;  %12785 = vmatmul.mubr.msk.f32.gmra.mxu1 %vm407_vm0, %v16500_v17 }
 0x462   : > { %v16997_v41 = vadd.f32 %v7715_v16, %v7470_v29  ;;  %v7473_v33 = vadd.f32 %v12474_v23, %v16820_v52  ;;  %12787 = vmatprep.mubr.msk.f32.mxu1 %vm407_vm0, %v16506_v57  ;;  %v9454_v29 = vld [vmem:[#allocation3 + $0xe2] sm:$0xff] }
 0x463   : > { %v7337_v19 = vpop.f32.mrf.mxu1  ;;  %v7725_v38 = vpop.f32.mrf.mxu0 }
 0x464   : > { %v17002_v11 = vadd.f32 %v12526_v12, %v7473_v33  ;;  %v7472_v58 = vadd.f32 %v7337_v19, %v16826_v48  ;;  %v9455_v12 = vld [vmem:[#allocation3 + $0xf2] sm:$0xff] }
 0x465   : > { %v12477_v46 = vpop.f32.mrf.mxu1  ;;  %v12529_v49 = vpop.f32.mrf.mxu0  ;;  %12788 = vmatmul.mubr.msk.f32.gmra.mxu1 %vm407_vm0, %v16512_v28 }
 0x466   : > { %v17007_v55 = vadd.f32 %v7725_v38, %v7472_v58  ;;  %v7475_v17 = vadd.f32 %v12477_v46, %v16832_v32  ;;  %12790 = vmatprep.mubr.msk.f32.mxu1 %vm407_vm0, %v16518_v20  ;;  %v9456_v46 = vld [vmem:[#allocation3 + $0xfa] sm:$0xff] }
 0x467   : > { %v7347_v52 = vpop.f32.mrf.mxu1  ;;  %v7735_v57 = vpop.f32.mrf.mxu0 }
 0x468   : > { %v17012_v40 = vadd.f32 %v12529_v49, %v7475_v17  ;;  %v7474_v31 = vadd.f32 %v7347_v52, %v16838_v53  ;;  %v9457_v17 = vld [vmem:[#allocation3 + $0x10a] sm:$0xff] }
 0x469   : > { %v12480_v48 = vpop.f32.mrf.mxu1  ;;  %v12532_v5 = vpop.f32.mrf.mxu0  ;;  %12791 = vmatmul.mubr.msk.f32.gmra.mxu1 %vm407_vm0, %v9450_v15 }
 0x46a   : > { %v17016_v63 = vadd.f32 %v7735_v57, %v7474_v31  ;;  %v7477_v28 = vadd.f32 %v12480_v48, %v16844_v4  ;;  %12793 = vmatprep.mubr.msk.f32.mxu1 %vm407_vm0, %v16530_v44 }
 0x46b   : > { %v7357_v32 = vpop.f32.mrf.mxu1  ;;  %v7745_v20 = vpop.f32.mrf.mxu0 }
 0x46c   : > { %v17021_v9 = vadd.f32 %v12532_v5, %v7477_v28  ;;  %v7476_v13 = vadd.f32 %v7357_v32, %v16850_v25  ;;  %v9458_v5 = vld [vmem:[#allocation3 + $0x112] sm:$0xff]  ;;  %v9459_v32 = vld [vmem:[#allocation3 + $0x122] sm:$0xff] }
 0x46d   : > { %v12483_v53 = vpop.f32.mrf.mxu1  ;;  %v12535_v37 = vpop.f32.mrf.mxu0  ;;  %12794 = vmatmul.mubr.msk.f32.gmra.mxu1 %vm407_vm0, %v9452_v50 }
 0x46e   : > { %v17025_v30 = vadd.f32 %v7745_v20, %v7476_v13  ;;  %v7479_v39 = vadd.f32 %v12483_v53, %v16856_v60  ;;  %12796 = vmatprep.mubr.msk.f32.mxu1 %vm407_vm0, %v16542_v18 }
 0x46f   : > { %v7367_v4 = vpop.f32.mrf.mxu1  ;;  %v7755_v44 = vpop.f32.mrf.mxu0 }
 0x470   : > { %v17030_v36 = vadd.f32 %v12535_v37, %v7479_v39  ;;  %v7478_v16 = vadd.f32 %v7367_v4, %v16862_v34  ;;  %v9460_v39 = vld [vmem:[#allocation3 + $0x12a] sm:$0xff] }
 0x471   : > { %v12486_v25 = vpop.f32.mrf.mxu1  ;;  %v12538_v23 = vpop.f32.mrf.mxu0  ;;  %12797 = vmatmul.mubr.msk.f32.gmra.mxu1 %vm407_vm0, %v9454_v29 }
 0x472   : > { %v17034_v33 = vadd.f32 %v7755_v44, %v7478_v16  ;;  %v7481_v19 = vadd.f32 %v12486_v25, %v16868_v10  ;;  %12799 = vmatprep.mubr.msk.f32.mxu1 %vm407_vm0, %v9455_v12  ;;  %v9461_v44 = vld [vmem:[#allocation3 + $0x13a] sm:$0xff] }
 0x473   : > { %v7377_v60 = vpop.f32.mrf.mxu1  ;;  %v7765_v18 = vpop.f32.mrf.mxu0 }
 0x474   : > { %v17038_v38 = vadd.f32 %v12538_v23, %v7481_v19  ;;  %v7480_v58 = vadd.f32 %v7377_v60, %v16874_v3  ;;  %v9462_v19 = vld [vmem:[#allocation3 + $0x142] sm:$0xff] }
 0x475   : > { %v12489_v34 = vpop.f32.mrf.mxu1  ;;  %v12541_v49 = vpop.f32.mrf.mxu0  ;;  %12800 = vmatmul.mubr.msk.f32.gmra.mxu1 %vm407_vm0, %v9456_v46 }
 0x476   : > { %v17042_v52 = vadd.f32 %v7765_v18, %v7480_v58  ;;  %v7483_v57 = vadd.f32 %v12489_v34, %v16880_v45  ;;  %12802 = vmatprep.mubr.msk.f32.mxu1 %vm407_vm0, %v9457_v17  ;;  %v9463_v18 = vld [vmem:[#allocation3 + $0x152] sm:$0xff] }
 0x477   : > { %v7387_v10 = vpop.f32.mrf.mxu1  ;;  %v7775_v31 = vpop.f32.mrf.mxu0 }
 0x478   : > { %v17046_v15 = vadd.f32 %v12541_v49, %v7483_v57  ;;  %v7482_v48 = vadd.f32 %v7387_v10, %v16886_v59  ;;  %v9464_v57 = vld [vmem:[#allocation3 + $0x15a] sm:$0xff] }
 0x479   : > { %v12492_v3 = vpop.f32.mrf.mxu1  ;;  %v12544_v28 = vpop.f32.mrf.mxu0  ;;  %12803 = vmatmul.mubr.msk.f32.gmra.mxu1 %vm407_vm0, %v9458_v5 }
 0x47a   : > { %v17050_v20 = vadd.f32 %v7775_v31, %v7482_v48  ;;  %v7485_v13 = vadd.f32 %v12492_v3, %v16892_v2  ;;  %12805 = vmatprep.mubr.msk.f32.mxu1 %vm407_vm0, %v9459_v32  ;;  %v9465_v31 = vld [vmem:[#allocation3 + $0x16a] sm:$0xff] }
 0x47b   : > { %v7397_v45 = vpop.f32.mrf.mxu1  ;;  %v7785_v50 = vpop.f32.mrf.mxu0 }
 0x47c   : > { %v17054_v53 = vadd.f32 %v12544_v28, %v7485_v13  ;;  %v7484_v37 = vadd.f32 %v7397_v45, %v16898_v56  ;;  %v9466_v13 = vld [vmem:[#allocation3 + $0x172] sm:$0xff] }
 0x47d   : > { %v12495_v59 = vpop.f32.mrf.mxu1  ;;  %v12547_v4 = vpop.f32.mrf.mxu0  ;;  %12806 = vmatmul.mubr.msk.f32.gmra.mxu1 %vm407_vm0, %v9460_v39 }
 0x47e   : > { %v17058_v16 = vadd.f32 %v7785_v50, %v7484_v37  ;;  %v7487_v29 = vadd.f32 %v12495_v59, %v16904_v21  ;;  %12808 = vmatprep.mubr.msk.f32.mxu1 %vm407_vm0, %v9461_v44  ;;  %v9469_v59 = vld [vmem:[#allocation3 + $0x19a] sm:$0xff] }
 0x47f   : > { %v7407_v2 = vpop.f32.mrf.mxu1  ;;  %v7795_v25 = vpop.f32.mrf.mxu0 }
 0x480   : > { %v17062_v23 = vadd.f32 %v12547_v4, %v7487_v29  ;;  %v7486_v12 = vadd.f32 %v7407_v2, %v16910_v7 }
 0x481   : > { %v12498_v56 = vpop.f32.mrf.mxu1  ;;  %v12550_v60 = vpop.f32.mrf.mxu0  ;;  %12809 = vmatmul.mubr.msk.f32.gmra.mxu1 %vm407_vm0, %v9462_v19 }
 0x482   : > { %v17066_v58 = vadd.f32 %v7795_v25, %v7486_v12  ;;  %v7489_v46 = vadd.f32 %v12498_v56, %v16916_v14  ;;  %12811 = vmatprep.mubr.msk.f32.mxu1 %vm407_vm0, %v9463_v18 }
 0x483   : > { %v7417_v21 = vpop.f32.mrf.mxu1  ;;  %v7805_v34 = vpop.f32.mrf.mxu0 }
 0x484   : > { %v17070_v49 = vadd.f32 %v12550_v60, %v7489_v46  ;;  %v7488_v17 = vadd.f32 %v7417_v21, %v16922_v8 }
 0x485   : > { %v12501_v7 = vpop.f32.mrf.mxu1  ;;  %v12553_v10 = vpop.f32.mrf.mxu0  ;;  %12812 = vmatmul.mubr.msk.f32.gmra.mxu1 %vm407_vm0, %v9464_v57 }
 0x486   : > { %v17074_v48 = vadd.f32 %v7805_v34, %v7488_v17  ;;  %v7491_v5 = vadd.f32 %v12501_v7, %v16928_v42  ;;  %12814 = vmatprep.mubr.msk.f32.mxu1 %vm407_vm0, %v9465_v31 }
 0x487   : > { %v7427_v14 = vpop.f32.mrf.mxu1  ;;  %v7815_v3 = vpop.f32.mrf.mxu0 }
 0x488   : > { %v17078_v28 = vadd.f32 %v12553_v10, %v7491_v5  ;;  %v7490_v32 = vadd.f32 %v7427_v14, %v16934_v1 }
 0x489   : > { %v12504_v8 = vpop.f32.mrf.mxu1  ;;  %v12556_v45 = vpop.f32.mrf.mxu0  ;;  %12815 = vmatmul.mubr.msk.f32.gmra.mxu1 %vm407_vm0, %v9466_v13 }
 0x48a   : > { %v17082_v50 = vadd.f32 %v7815_v3, %v7490_v32  ;;  %v7493_v37 = vadd.f32 %v12504_v8, %v16940_v26  ;;  %12817 = vmatprep.mubr.msk.f32.mxu1 %vm407_vm0, %v16766_v6  ;;  %v9470_v26 = vld [vmem:[#allocation3 + $0x1a2] sm:$0xff] }
 0x48b   : > { %v7437_v42 = vpop.f32.mrf.mxu1  ;;  %v7825_v39 = vpop.f32.mrf.mxu0 }
 0x48c   : > { %v17087_v4 = vadd.f32 %v12556_v45, %v7493_v37  ;;  %v7492_v44 = vadd.f32 %v7437_v42, %v16946_v22 }
 0x48d   : > { %v12507_v1 = vpop.f32.mrf.mxu1  ;;  %v12559_v29 = vpop.f32.mrf.mxu0  ;;  %12818 = vmatmul.mubr.msk.f32.gmra.mxu1 %vm407_vm0, %v16774_v35 }
 0x48e   : > { %v17092_v2 = vadd.f32 %v7825_v39, %v7492_v44  ;;  %v7495_v25 = vadd.f32 %v12507_v1, %v16952_v24  ;;  %12820 = vmatprep.mubr.msk.f32.mxu1 %vm407_vm0, %v9469_v59 }
 0x48f   : > { %v7447_v6 = vpop.f32.mrf.mxu1  ;;  %v7835_v12 = vpop.f32.mrf.mxu0 }
 0x490   : > { %v17096_v19 = vadd.f32 %v12559_v29, %v7495_v25  ;;  %v7494_v56 = vadd.f32 %v7447_v6, %v16956_v47 }
 0x491   : > { %v12510_v60 = vpop.f32.mrf.mxu1  ;;  %v12562_v22 = vpop.f32.mrf.mxu0  ;;  %12821 = vmatmul.mubr.msk.f32.gmra.mxu1 %vm407_vm0, %v9470_v26 }
 0x492   : > { %v17100_v18 = vadd.f32 %v7835_v12, %v7494_v56  ;;  %v7497_v35 = vadd.f32 %v12510_v60, %v16960_v43 }
 0x493   : > { %v7457_v46 = vpop.f32.mrf.mxu1  ;;  %v7845_v21 = vpop.f32.mrf.mxu0 }
 0x494   : > { %v17103_v24 = vadd.f32 %v12562_v22, %v7497_v35  ;;  %v7496_v34 = vadd.f32 %v7457_v46, %v16964_v51 }
 0x495   : > { %v12569_v17 = vpop.f32.mrf.mxu1  ;;  %v12621_v57 = vpop.f32.mrf.mxu0 }
 0x496   : > { %v17106_v7 = vadd.f32 %v7845_v21, %v7496_v34  ;;  %v8243_v47 = vadd.f32 %v12569_v17, %v16973_v61 }
 0x497   : > { %v8083_v10 = vpop.f32.mrf.mxu1  ;;  %v17109_v31 = vpop.f32.mrf.mxu0 }
 0x498   : > { %v17111_v5 = vadd.f32 %v12621_v57, %v8243_v47  ;;  %v17114_v14 = vadd.f32 %v8083_v10, %v16977_v54 }
 0x499   : > { %v12572_v43 = vpop.f32.mrf.mxu1  ;;  %v12624_v3 = vpop.f32.mrf.mxu0 }
 0x49a   : > { %v8245_v32 = vadd.f32 %v12572_v43, %v16982_v0 }
 0x49b   : > { %v8093_v13 = vpop.f32.mrf.mxu1  ;;  %v8481_v51 = vpop.f32.mrf.mxu0 }
 0x49c   : > { %v17117_v8 = vadd.f32 %v12624_v3, %v8245_v32  ;;  %v8244_v45 = vadd.f32 %v8093_v13, %v16987_v62 }
 0x49d   : > { %v12575_v37 = vpop.f32.mrf.mxu1  ;;  %v12627_v61 = vpop.f32.mrf.mxu0 }
 0x49e   : > { %v17120_v42 = vadd.f32 %v8481_v51, %v8244_v45  ;;  %v8247_v39 = vadd.f32 %v12575_v37, %v16992_v27 }
 0x49f   : > { %v8103_v59 = vpop.f32.mrf.mxu1  ;;  %v8491_v44 = vpop.f32.mrf.mxu0 }
 0x4a0   : > { %v17123_v54 = vadd.f32 %v12627_v61, %v8247_v39  ;;  %v8246_v1 = vadd.f32 %v8103_v59, %v16997_v41 }
 0x4a1   : > { %v12578_v29 = vpop.f32.mrf.mxu1  ;;  %v12630_v0 = vpop.f32.mrf.mxu0 }
 0x4a2   : > { %v17126_v25 = vadd.f32 %v8491_v44, %v8246_v1  ;;  %v8249_v26 = vadd.f32 %v12578_v29, %v17002_v11 }
 0x4a3   : > { %v8113_v6 = vpop.f32.mrf.mxu1  ;;  %v8501_v62 = vpop.f32.mrf.mxu0 }
 0x4a4   : > { %v17129_v12 = vadd.f32 %v12630_v0, %v8249_v26  ;;  %v8248_v56 = vadd.f32 %v8113_v6, %v17007_v55 }
 0x4a5   : > { %v12581_v60 = vpop.f32.mrf.mxu1  ;;  %v12633_v27 = vpop.f32.mrf.mxu0 }
 0x4a6   : > { %v17132_v22 = vadd.f32 %v8501_v62, %v8248_v56  ;;  %v8251_v35 = vadd.f32 %v12581_v60, %v17012_v40 }
 0x4a7   : > { %v8123_v46 = vpop.f32.mrf.mxu1  ;;  %v8511_v41 = vpop.f32.mrf.mxu0 }
 0x4a8   : > { %v17135_v21 = vadd.f32 %v12633_v27, %v8251_v35  ;;  %v8250_v34 = vadd.f32 %v8123_v46, %v17016_v63 }
 0x4a9   : > { %v12584_v17 = vpop.f32.mrf.mxu1  ;;  %v12636_v11 = vpop.f32.mrf.mxu0 }
 0x4aa   : > { %v17138_v57 = vadd.f32 %v8511_v41, %v8250_v34  ;;  %v8253_v47 = vadd.f32 %v12584_v17, %v17021_v9 }
 0x4ab   : > { %v8133_v10 = vpop.f32.mrf.mxu1  ;;  %v8521_v55 = vpop.f32.mrf.mxu0 }
 0x4ac   : > { %v17141_v43 = vadd.f32 %v12636_v11, %v8253_v47  ;;  %v8252_v3 = vadd.f32 %v8133_v10, %v17025_v30 }
 0x4ad   : > { %v12587_v32 = vpop.f32.mrf.mxu1  ;;  %v12639_v40 = vpop.f32.mrf.mxu0 }
 0x4ae   : > { %v17144_v13 = vadd.f32 %v8521_v55, %v8252_v3  ;;  %v8255_v51 = vadd.f32 %v12587_v32, %v17030_v36 }
 0x4af   : > { %v8143_v45 = vpop.f32.mrf.mxu1  ;;  %v8531_v63 = vpop.f32.mrf.mxu0 }
 0x4b0   : > { %v17147_v37 = vadd.f32 %v12639_v40, %v8255_v51  ;;  %v8254_v61 = vadd.f32 %v8143_v45, %v17034_v33 }
 0x4b1   : > { %v12590_v39 = vpop.f32.mrf.mxu1  ;;  %v12642_v9 = vpop.f32.mrf.mxu0 }
 0x4b2   : > { %v17150_v59 = vadd.f32 %v8531_v63, %v8254_v61  ;;  %v8257_v44 = vadd.f32 %v12590_v39, %v17038_v38 }
 0x4b3   : > { %v8153_v1 = vpop.f32.mrf.mxu1  ;;  %v8541_v30 = vpop.f32.mrf.mxu0 }
 0x4b4   : > { %v17153_v29 = vadd.f32 %v12642_v9, %v8257_v44  ;;  %v8256_v0 = vadd.f32 %v8153_v1, %v17042_v52 }
 0x4b5   : > { %v12593_v26 = vpop.f32.mrf.mxu1  ;;  %v12645_v36 = vpop.f32.mrf.mxu0 }
 0x4b6   : > { %v17156_v6 = vadd.f32 %v8541_v30, %v8256_v0  ;;  %v8259_v62 = vadd.f32 %v12593_v26, %v17046_v15 }
 0x4b7   : > { %v8163_v56 = vpop.f32.mrf.mxu1  ;;  %v17159_v33 = vpop.f32.mrf.mxu0 }
 0x4b8   : > { %v17161_v60 = vadd.f32 %v12645_v36, %v8259_v62  ;;  %v17164_v27 = vadd.f32 %v8163_v56, %v17050_v20 }
 0x4b9   : > { %v12596_v38 = vpop.f32.mrf.mxu1  ;;  %v12648_v35 = vpop.f32.mrf.mxu0 }
 0x4ba   : > { %v8261_v46 = vadd.f32 %v12596_v38, %v17054_v53 }
 0x4bb   : > { %v8173_v41 = vpop.f32.mrf.mxu1  ;;  %v8561_v52 = vpop.f32.mrf.mxu0 }
 0x4bc   : > { %v17167_v34 = vadd.f32 %v12648_v35, %v8261_v46  ;;  %v8260_v17 = vadd.f32 %v8173_v41, %v17058_v16 }
 0x4bd   : > { %v12599_v11 = vpop.f32.mrf.mxu1  ;;  %v12651_v15 = vpop.f32.mrf.mxu0 }
 0x4be   : > { %v17170_v47 = vadd.f32 %v8561_v52, %v8260_v17  ;;  %v8263_v10 = vadd.f32 %v12599_v11, %v17062_v23 }
 0x4bf   : > { %v8183_v55 = vpop.f32.mrf.mxu1  ;;  %v8571_v3 = vpop.f32.mrf.mxu0 }
 0x4c0   : > { %v17173_v20 = vadd.f32 %v12651_v15, %v8263_v10  ;;  %v8262_v32 = vadd.f32 %v8183_v55, %v17066_v58 }
 0x4c1   : > { %v12602_v40 = vpop.f32.mrf.mxu1  ;;  %v12654_v53 = vpop.f32.mrf.mxu0 }
 0x4c2   : > { %v17176_v51 = vadd.f32 %v8571_v3, %v8262_v32  ;;  %v8265_v45 = vadd.f32 %v12602_v40, %v17070_v49 }
 0x4c3   : > { %v8193_v63 = vpop.f32.mrf.mxu1  ;;  %v8581_v16 = vpop.f32.mrf.mxu0 }
 0x4c4   : > { %v17179_v61 = vadd.f32 %v12654_v53, %v8265_v45  ;;  %v8264_v39 = vadd.f32 %v8193_v63, %v17074_v48 }
 0x4c5   : > { %v12605_v9 = vpop.f32.mrf.mxu1  ;;  %v12657_v23 = vpop.f32.mrf.mxu0 }
 0x4c6   : > { %v17182_v44 = vadd.f32 %v8581_v16, %v8264_v39  ;;  %v8267_v1 = vadd.f32 %v12605_v9, %v17078_v28 }
 0x4c7   : > { %v8203_v30 = vpop.f32.mrf.mxu1  ;;  %v8591_v58 = vpop.f32.mrf.mxu0 }
 0x4c8   : > { %v17185_v0 = vadd.f32 %v12657_v23, %v8267_v1  ;;  %v8266_v26 = vadd.f32 %v8203_v30, %v17082_v50 }
 0x4c9   : > { %v12608_v36 = vpop.f32.mrf.mxu1  ;;  %v12660_v49 = vpop.f32.mrf.mxu0 }
 0x4ca   : > { %v17188_v62 = vadd.f32 %v8591_v58, %v8266_v26  ;;  %v8269_v56 = vadd.f32 %v12608_v36, %v17087_v4 }
 0x4cb   : > { %v8213_v38 = vpop.f32.mrf.mxu1  ;;  %v8601_v48 = vpop.f32.mrf.mxu0 }
 0x4cc   : > { %v17191_v35 = vadd.f32 %v12660_v49, %v8269_v56  ;;  %v8268_v46 = vadd.f32 %v8213_v38, %v17092_v2 }
 0x4cd   : > { %v12611_v41 = vpop.f32.mrf.mxu1  ;;  %v12663_v28 = vpop.f32.mrf.mxu0 }
 0x4ce   : > { %v17194_v52 = vadd.f32 %v8601_v48, %v8268_v46  ;;  %v8271_v17 = vadd.f32 %v12611_v41, %v17096_v19 }
 0x4cf   : > { %v8223_v11 = vpop.f32.mrf.mxu1  ;;  %v8611_v50 = vpop.f32.mrf.mxu0 }
 0x4d0   : > { %v17197_v15 = vadd.f32 %v12663_v28, %v8271_v17  ;;  %v8270_v10 = vadd.f32 %v8223_v11, %v17100_v18 }
 0x4d1   : > { %v12614_v55 = vpop.f32.mrf.mxu1  ;;  %v12666_v4 = vpop.f32.mrf.mxu0 }
 0x4d2   : > { %v17200_v3 = vadd.f32 %v8611_v50, %v8270_v10  ;;  %v8273_v32 = vadd.f32 %v12614_v55, %v17103_v24 }
 0x4d3   : > { %v8233_v40 = vpop.f32.mrf.mxu1  ;;  %v8621_v2 = vpop.f32.mrf.mxu0 }
 0x4d4   : > { %v17203_v53 = vadd.f32 %v12666_v4, %v8273_v32  ;;  %v8272_v45 = vadd.f32 %v8233_v40, %v17106_v7 }
 0x4d5   : > { %v12673_v63 = vpop.f32.mrf.mxu1  ;;  %v17206_v19 = vpop.f32.mrf.mxu0 }
 0x4d6   : > { %v17208_v16 = vadd.f32 %v8621_v2, %v8272_v45  ;;  %v17211_v39 = vadd.f32 %v12673_v63, %v17111_v5 }
 0x4d7   : > { %v17213_v18 = vpop.f32.mrf.mxu1  ;;  %v17215_v9 = vpop.f32.mrf.mxu0 }
 0x4d9   : > { %v12676_v23 = vpop.f32.mrf.mxu1  ;;  %v17220_v1 = vpop.f32.mrf.mxu0 }
 0x4da   : > { %v17218_v24 = vadd.f32 %v12676_v23, %v17117_v8 }
 0x4db   : > { %v8870_v30 = vpop.f32.mrf.mxu1  ;;  %v17225_v26 = vpop.f32.mrf.mxu0 }
 0x4dc   : > { %v17223_v7 = vadd.f32 %v8870_v30, %v17120_v42 }
 0x4dd   : > { %v12679_v58 = vpop.f32.mrf.mxu1  ;;  %v17233_v38 = vpop.f32.mrf.mxu0 }
 0x4de   : > { %v17228_v5 = vadd.f32 %v12679_v58, %v17123_v54 }
 0x4df   : > { %v8880_v36 = vpop.f32.mrf.mxu1  ;;  %v17241_v41 = vpop.f32.mrf.mxu0 }
 0x4e0   : > { %v17231_v49 = vadd.f32 %v8880_v36, %v17126_v25 }
 0x4e1   : > { %v12682_v56 = vpop.f32.mrf.mxu1  ;;  %v17249_v11 = vpop.f32.mrf.mxu0 }
 0x4e2   : > { %v17236_v8 = vadd.f32 %v12682_v56, %v17129_v12 }
 0x4e3   : > { %v8890_v48 = vpop.f32.mrf.mxu1  ;;  %v17257_v55 = vpop.f32.mrf.mxu0 }
 0x4e4   : > { %v17239_v42 = vadd.f32 %v8890_v48, %v17132_v22 }
 0x4e5   : > { %v12685_v46 = vpop.f32.mrf.mxu1  ;;  %v17265_v40 = vpop.f32.mrf.mxu0 }
 0x4e6   : > { %v17244_v54 = vadd.f32 %v12685_v46, %v17135_v21 }
 0x4e7   : > { %v8900_v28 = vpop.f32.mrf.mxu1  ;;  %v17273_v63 = vpop.f32.mrf.mxu0 }
 0x4e8   : > { %v17247_v25 = vadd.f32 %v8900_v28, %v17138_v57 }
 0x4e9   : > { %v12688_v17 = vpop.f32.mrf.mxu1  ;;  %v17280_v30 = vpop.f32.mrf.mxu0 }
 0x4ea   : > { %v17252_v12 = vadd.f32 %v12688_v17, %v17141_v43 }
 0x4eb   : > { %v8910_v50 = vpop.f32.mrf.mxu1  ;;  %v17288_v56 = vpop.f32.mrf.mxu0 }
 0x4ec   : > { %v17255_v22 = vadd.f32 %v8910_v50, %v17144_v13 }
 0x4ed   : > { %v12691_v10 = vpop.f32.mrf.mxu1  ;;  %v17296_v17 = vpop.f32.mrf.mxu0 }
 0x4ee   : > { %v17260_v21 = vadd.f32 %v12691_v10, %v17147_v37 }
 0x4ef   : > { %v8920_v4 = vpop.f32.mrf.mxu1 }
 0x4f0   : > { %v17263_v57 = vadd.f32 %v8920_v4, %v17150_v59  ;;  %v17304_v4 = vpop.f32.mrf.mxu0 }
 0x4f1   : > { %v12694_v32 = vpop.f32.mrf.mxu1 }
 0x4f2   : > { %v17268_v43 = vadd.f32 %v12694_v32, %v17153_v29 }
 0x4f3   : > { %v8930_v2 = vpop.f32.mrf.mxu1 }
 0x4f4   : > { %v17271_v13 = vadd.f32 %v8930_v2, %v17156_v6 }
 0x4f5   : > { %v12697_v45 = vpop.f32.mrf.mxu1 }
 0x4f6   : > { %v17276_v37 = vadd.f32 %v12697_v45, %v17161_v60  ;;  %v17312_v45 = vpop.f32.mrf.mxu0 }
 0x4f7   : > { %v17278_v23 = vpop.f32.mrf.mxu1 }
 0x4f9   : > { %v12700_v59 = vpop.f32.mrf.mxu1 }
 0x4fa   : > { %v17283_v58 = vadd.f32 %v12700_v59, %v17167_v34 }
 0x4fb   : > { %v8950_v29 = vpop.f32.mrf.mxu1 }
 0x4fc   : > { %v17286_v36 = vadd.f32 %v8950_v29, %v17170_v47 }
 0x4fd   : > { %v12703_v6 = vpop.f32.mrf.mxu1 }
 0x4fe   : > { %v17291_v48 = vadd.f32 %v12703_v6, %v17173_v20  ;;  %v17320_v6 = vpop.f32.mrf.mxu0 }
 0x4ff   : > { %v8960_v60 = vpop.f32.mrf.mxu1 }
 0x500   : > { %v17294_v46 = vadd.f32 %v8960_v60, %v17176_v51 }
 0x501   : > { %v12706_v28 = vpop.f32.mrf.mxu1 }
 0x502   : > { %v17299_v34 = vadd.f32 %v12706_v28, %v17179_v61 }
 0x503   : > { %v8970_v50 = vpop.f32.mrf.mxu1 }
 0x504   : > { %v17302_v47 = vadd.f32 %v8970_v50, %v17182_v44 }
 0x505   : > { %v12709_v10 = vpop.f32.mrf.mxu1 }
 0x506   : > { %v17307_v20 = vadd.f32 %v12709_v10, %v17185_v0  ;;  %v17331_v10 = vpop.f32.mrf.mxu0 }
 0x507   : > { %v8980_v32 = vpop.f32.mrf.mxu1 }
 0x508   : > { %v17310_v51 = vadd.f32 %v8980_v32, %v17188_v62  ;;  %v8630_v62 = vadd.f32 %v17109_v31, %v17114_v14  ;;  %v17342_v14 = vpop.f32.mrf.mxu0 }
 0x509   : > { %v12712_v2 = vpop.f32.mrf.mxu1 }
 0x50a   : > { %v17315_v61 = vadd.f32 %v12712_v2, %v17191_v35  ;;  %v9019_v35 = vadd.f32 %v17213_v18, %v8630_v62  ;;  %v17347_v18 = vld [vmem:[%s17518_s9] ss:$0 sm:$0xff] }
 0x50b   : > { %v8990_v59 = vpop.f32.mrf.mxu1  ;;  %v17358_v62 = vld [vmem:[%s17519_s10] ss:$0 sm:$0xff] }
 0x50c   : > { %v17318_v44 = vadd.f32 %v8990_v59, %v17194_v52  ;;  %v9407_v31 = vadd.f32 %v17215_v9, %v9019_v35  ;;  %v9410_v35 = vadd.f32 %v17220_v1, %v17218_v24 }
 0x50d   : > { %v12715_v29 = vpop.f32.mrf.mxu1 }
 0x50e   : > { %v17323_v0 = vadd.f32 %v12715_v29, %v17197_v15  ;;  %v9408_v15 = vadd.f32 %v17206_v19, %v17211_v39  ;;  %v9409_v19 = vadd.f32 %v17225_v26, %v17223_v7  ;;  %v17351_v39 = vpop.f32.mrf.mxu0 }
 0x50f   : > { %v9000_v60 = vpop.f32.mrf.mxu1 }
 0x510   : > { %v17328_v28 = vadd.f32 %v9000_v60, %v17200_v3  ;;  %v17363_v7 = vpop.f32.mrf.mxu0 }
 0x511   : > { %v12718_v50 = vpop.f32.mrf.mxu1 }
 0x512   : > { %18033 = vst [vmem:[#allocation74_spill] sm:$0xff] %v17328_v28  ;;  %v17334_v52 = vadd.f32 %v12718_v50, %v17203_v53  ;;  %v17369_v28 = vpop.f32.mrf.mxu0 }
 0x513   : > { %v9010_v32 = vpop.f32.mrf.mxu1 }
 0x514   : > { %18034 = vst [vmem:[#allocation37_spill] sm:$0xff] %v17334_v52  ;;  %v17339_v2 = vadd.f32 %v9010_v32, %v17208_v16 }
 0x515   : > { %v12777_v59 = vpop.f32.mrf.mxu1 }
 0x516   : > { %18035 = vst [vmem:[#allocation43_spill] sm:$0xff] %v17339_v2  ;;  %v9796_v3 = vadd.f32 %v12777_v59, %v9408_v15  ;;  %v9411_v2 = vadd.f32 %v17241_v41, %v17231_v49 }
 0x517   : > { %v9636_v53 = vpop.f32.mrf.mxu1 }
 0x518   : > { %v9795_v29 = vadd.f32 %v9636_v53, %v9407_v31  ;;  %v9835_v16 = vmul.f32 %v17347_v18, %v9796_v3 }
 0x519   : > { %v12780_v60 = vpop.f32.mrf.mxu1 }
 0x51a   : > { %v9834_v9 = vmul.f32 %v17347_v18, %v9795_v29  ;;  %v9874_v26 = vadd.f32 %v17358_v62, %v9835_v16  ;;  %v9798_v3 = vadd.f32 %v12780_v60, %v9410_v35  ;;  %v9412_v60 = vadd.f32 %v17233_v38, %v17228_v5  ;;  %v17375_v35 = vpop.f32.mrf.mxu0 }
 0x51b   : > { %v9646_v50 = vpop.f32.mrf.mxu1 }
 0x51c   : > { %v9873_v32 = vadd.f32 %v17358_v62, %v9834_v9  ;;  %v9797_v15 = vadd.f32 %v9646_v50, %v9409_v19  ;;  %v9906_v24 = vmax.f32 %v9874_v26, 0.0  ;;  %v9837_v1 = vmul.f32 %v17347_v18, %v9798_v3  ;;  %v17381_v3 = vpop.f32.mrf.mxu0 }
 0x51d   : > { %v12783_v59 = vpop.f32.mrf.mxu1 }
 0x51e   : > { %v9905_v31 = vmax.f32 %v9873_v32, 0.0  ;;  %v9836_v53 = vmul.f32 %v17347_v18, %v9797_v15  ;;  %v9876_v49 = vadd.f32 %v17358_v62, %v9837_v1  ;;  %v9800_v32 = vadd.f32 %v12783_v59, %v9412_v60 }
 0x51f   : > { %v9656_v29 = vpop.f32.mrf.mxu1  ;;  %v9414_v59 = vadd.f32 %v17249_v11, %v17236_v8 }
 0x520   : > { %9937 = vxpose.xlu0.b32.start [1/16] (narrow) %v9905_v31, 16  ;;  %v9875_v19 = vadd.f32 %v17358_v62, %v9836_v53  ;;  %v9799_v9 = vadd.f32 %v9656_v29, %v9411_v2  ;;  %v9413_v31 = vadd.f32 %v17257_v55, %v17239_v42  ;;  %v9908_v53 = vmax.f32 %v9876_v49, 0.0 }
 0x521   : > { %v12786_v52 = vpop.f32.mrf.mxu1  ;;  %v9839_v5 = vmul.f32 %v17347_v18, %v9800_v32  ;;  %v9415_v49 = vadd.f32 %v17273_v63, %v17247_v25  ;;  %v9416_v25 = vadd.f32 %v17265_v40, %v17244_v54  ;;  %v9417_v54 = vadd.f32 %v17288_v56, %v17255_v22 }
 0x522   : > { %v9907_v41 = vmax.f32 %v9875_v19, 0.0  ;;  %v9838_v15 = vmul.f32 %v17347_v18, %v9799_v9  ;;  %v17389_v19 = vpop.f32.mrf.mxu0  ;;  %v9802_v9 = vadd.f32 %v12786_v52, %v9414_v59  ;;  %v9426_v56 = vadd.f32 %v17351_v39, %v17283_v58 }
 0x523   : > { %v9666_v50 = vpop.f32.mrf.mxu1  ;;  %v9878_v42 = vadd.f32 %v17358_v62, %v9839_v5 }
 0x524   : > { %9938 = vxpose.xlu0.b32.cont [2/16] (narrow) %v9906_v24, 16  ;;  %v9877_v38 = vadd.f32 %v17358_v62, %v9838_v15  ;;  %v9801_v29 = vadd.f32 %v9666_v50, %v9413_v31  ;;  %v8646_v50 = vadd.f32 %v17159_v33, %v17164_v27  ;;  %v17400_v15 = vpop.f32.mrf.mxu0  ;;  %v9841_v52 = vmul.f32 %v17347_v18, %v9802_v9 }
 0x525   : > { %v12789_v16 = vpop.f32.mrf.mxu1  ;;  %v9910_v31 = vmax.f32 %v9878_v42, 0.0  ;;  %v9424_v33 = vadd.f32 %v17331_v10, %v17276_v37  ;;  %v9418_v37 = vadd.f32 %v17280_v30, %v17252_v12  ;;  %v9425_v10 = vadd.f32 %v17363_v7, %v17286_v36 }
 0x526   : > { %v9909_v55 = vmax.f32 %v9877_v38, 0.0  ;;  %v9840_v60 = vmul.f32 %v17347_v18, %v9801_v29  ;;  %v9035_v32 = vadd.f32 %v17278_v23, %v8646_v50  ;;  %v9804_v27 = vadd.f32 %v12789_v16, %v9416_v25  ;;  %v17412_v38 = vpop.f32.mrf.mxu0 }
 0x527   : > { %v9676_v26 = vpop.f32.mrf.mxu1  ;;  %v9880_v29 = vadd.f32 %v17358_v62, %v9841_v52  ;;  %v9419_v7 = vadd.f32 %v17304_v4, %v17263_v57  ;;  %v9420_v4 = vadd.f32 %v17296_v17, %v17260_v21  ;;  %v9428_v21 = vadd.f32 %v17369_v28, %v17291_v48 }
 0x528   : > { %9939 = vxpose.xlu0.b32.cont [3/16] (narrow) %v9907_v41, 16  ;;  %v9803_v8 = vadd.f32 %v9676_v26, %v9415_v49  ;;  %v9423_v5 = vadd.f32 %v17342_v14, %v9035_v32  ;;  %v9843_v14 = vmul.f32 %v17347_v18, %v9804_v27  ;;  %v9431_v28 = vadd.f32 %v17412_v38, %v17310_v51 }
 0x529   : > { %v12792_v2 = vpop.f32.mrf.mxu1  ;;  %v9912_v49 = vmax.f32 %v9880_v29, 0.0 }
 0x52a   : > { %v9842_v26 = vmul.f32 %v17347_v18, %v9803_v8  ;;  %v9806_v12 = vadd.f32 %v12792_v2, %v9418_v37  ;;  %v9427_v2 = vadd.f32 %v17375_v35, %v17294_v46  ;;  %v9422_v35 = vadd.f32 %v17312_v45, %v17268_v43 }
 0x52b   : > { %v9686_v24 = vpop.f32.mrf.mxu1  ;;  %v9430_v43 = vadd.f32 %v17381_v3, %v17299_v34 }
 0x52c   : > { %9940 = vxpose.xlu0.b32.cont [4/16] (narrow) %v9908_v53, 16  ;;  %v9879_v53 = vadd.f32 %v17358_v62, %v9840_v60  ;;  %v9881_v16 = vadd.f32 %v17358_v62, %v9842_v26  ;;  %v12764_v60 = vpop.f32.mrf.mxu0  ;;  %v9805_v50 = vadd.f32 %v9686_v24, %v9417_v54 }
 0x52d   : > { %v17387_v1 = vpop.f32.mrf.mxu1 }
 0x52e   : > { %v9911_v59 = vmax.f32 %v9879_v53, 0.0  ;;  %v9913_v52 = vmax.f32 %v9881_v16, 0.0  ;;  %v9378_v25 = vpop.f32.mrf.mxu0  ;;  %v9808_v17 = vadd.f32 %v17387_v1, %v9420_v4 }
 0x52f   : > { %v9696_v41 = vpop.f32.mrf.mxu1  ;;  %v9433_v34 = vadd.f32 %v9378_v25, %v17318_v44 }
 0x530   : > { %9941 = vxpose.xlu0.b32.cont [5/16] (narrow) %v9909_v55, 16  ;;  %v9807_v57 = vadd.f32 %v9696_v41, %v9419_v7  ;;  %v9421_v41 = vadd.f32 %v17320_v6, %v17271_v13  ;;  %v9847_v3 = vmul.f32 %v17347_v18, %v9808_v17 }
 0x531   : > { %v17397_v11 = vpop.f32.mrf.mxu1 }
 0x532   : > { %v9846_v16 = vmul.f32 %v17347_v18, %v9807_v57 }
 0x533   : > { %v17406_v63 = vpop.f32.mrf.mxu1 }
 0x534   : > { %9942 = vxpose.xlu0.b32.cont [6/16] (narrow) %v9910_v31, 16  ;;  %v9882_v31 = vadd.f32 %v17358_v62, %v9843_v14 }
 0x535   : > { %v12801_v23 = vpop.f32.mrf.mxu1 }
 0x536   : > { %v9812_v42 = vadd.f32 %v12801_v23, %v9424_v33  ;;  %v9844_v33 = vmul.f32 %v17347_v18, %v9805_v50  ;;  %v9845_v23 = vmul.f32 %v17347_v18, %v9806_v12  ;;  %v9434_v50 = vadd.f32 %v12764_v60, %v17315_v61 }
 0x537   : > { %v9716_v55 = vpop.f32.mrf.mxu1  ;;  %v9809_v12 = vadd.f32 %v17406_v63, %v9421_v41  ;;  %v9810_v63 = vadd.f32 %v17397_v11, %v9422_v35 }
 0x538   : > { %v9811_v40 = vadd.f32 %v9716_v55, %v9423_v5  ;;  %9943 = vxpose.xlu0.b32.cont [7/16] (narrow) %v9911_v59, 16  ;;  %v9851_v8 = vmul.f32 %v17347_v18, %v9812_v42  ;;  %v12767_v42 = vpop.f32.mrf.mxu0  ;;  %v9914_v55 = vmax.f32 %v9882_v31, 0.0  ;;  %v9883_v54 = vadd.f32 %v17358_v62, %v9844_v33 }
 0x539   : > { %v12804_v9 = vpop.f32.mrf.mxu1  ;;  %v9884_v14 = vadd.f32 %v17358_v62, %v9845_v23  ;;  %v9436_v31 = vadd.f32 %v12767_v42, %v17323_v0 }
 0x53a   : > { %v9850_v22 = vmul.f32 %v17347_v18, %v9811_v40  ;;  %v9814_v24 = vadd.f32 %v12804_v9, %v9426_v56  ;;  %v9890_v27 = vadd.f32 %v17358_v62, %v9851_v8  ;;  %v9388_v1 = vpop.f32.mrf.mxu0 }
 0x53b   : > { %v9726_v32 = vpop.f32.mrf.mxu1  ;;  %v9916_v56 = vmax.f32 %v9884_v14, 0.0 }
 0x53c   : > { %v9889_v30 = vadd.f32 %v17358_v62, %v9850_v22  ;;  %v9813_v36 = vadd.f32 %v9726_v32, %v9425_v10  ;;  %9944 = vxpose.xlu0.b32.cont [8/16] (narrow) %v9912_v49, 16  ;;  %v9853_v5 = vmul.f32 %v17347_v18, %v9814_v24  ;;  %v9922_v40 = vmax.f32 %v9890_v27, 0.0  ;;  %v12770_v22 = vpop.f32.mrf.mxu0 }
 0x53d   : > { %v12807_v53 = vpop.f32.mrf.mxu1  ;;  %v9432_v10 = vadd.f32 %v17400_v15, %v17307_v20  ;;  %v9915_v20 = vmax.f32 %v9883_v54, 0.0  ;;  %v9429_v49 = vadd.f32 %v17389_v19, %v17302_v47  ;;  %v9885_v32 = vadd.f32 %v17358_v62, %v9846_v16 }
 0x53e   : > { %v9921_v58 = vmax.f32 %v9889_v30, 0.0  ;;  %v9852_v39 = vmul.f32 %v17347_v18, %v9813_v36  ;;  %v9892_v13 = vadd.f32 %v17358_v62, %v9853_v5  ;;  %v9816_v45 = vadd.f32 %v12807_v53, %v9428_v21  ;;  %v9398_v33 = vpop.f32.mrf.mxu0 }
 0x53f   : > { %v9736_v26 = vpop.f32.mrf.mxu1  ;;  %v9886_v53 = vadd.f32 %v17358_v62, %v9847_v3  ;;  %v9917_v27 = vmax.f32 %v9885_v32, 0.0 }
 0x540   : > { %9945 = vxpose.xlu0.b32.cont [9/16] (narrow) %v9913_v52, 16  ;;  %9969 = vxpose.xlu1.b32.start [1/16] (narrow) %v9921_v58, 16  ;;  %v9815_v29 = vadd.f32 %v9736_v26, %v9427_v2  ;;  %v9891_v46 = vadd.f32 %v17358_v62, %v9852_v39  ;;  %v9924_v30 = vmax.f32 %v9892_v13, 0.0  ;;  %v9855_v47 = vmul.f32 %v17347_v18, %v9816_v45  ;;  %v18036_v52 = vld [vmem:[#allocation74_spill] sm:$0xff] }
 0x541   : > { %v12810_v59 = vpop.f32.mrf.mxu1  ;;  %v9435_v24 = vadd.f32 %v9388_v1, %v18036_v52  ;;  %v9848_v26 = vmul.f32 %v17347_v18, %v9809_v12  ;;  %v9918_v41 = vmax.f32 %v9886_v53, 0.0 }
 0x542   : > { %v9854_v48 = vmul.f32 %v17347_v18, %v9815_v29  ;;  %v9923_v15 = vmax.f32 %v9891_v46, 0.0  ;;  %v9894_v0 = vadd.f32 %v17358_v62, %v9855_v47  ;;  %v9818_v57 = vadd.f32 %v12810_v59, %v9430_v43 }
 0x543   : > { %v9746_v37 = vpop.f32.mrf.mxu1  ;;  %v9849_v59 = vmul.f32 %v17347_v18, %v9810_v63 }
 0x544   : > { %9946 = vxpose.xlu0.b32.cont [10/16] (narrow) %v9914_v55, 16  ;;  %9970 = vxpose.xlu1.b32.cont [2/16] (narrow) %v9922_v40, 16  ;;  %v9893_v61 = vadd.f32 %v17358_v62, %v9854_v48  ;;  %v9817_v19 = vadd.f32 %v9746_v37, %v9429_v49  ;;  %v18037_v55 = vld [vmem:[#allocation37_spill] sm:$0xff]  ;;  %v18038_v40 = vld [vmem:[#allocation43_spill] sm:$0xff]  ;;  %v9926_v14 = vmax.f32 %v9894_v0, 0.0  ;;  %v9857_v16 = vmul.f32 %v17347_v18, %v9818_v57 }
 0x545   : > { %v12813_v6 = vpop.f32.mrf.mxu1  ;;  %v9438_v54 = vadd.f32 %v12770_v22, %v18037_v55  ;;  %v9437_v46 = vadd.f32 %v9398_v33, %v18038_v40 }
 0x546   : > { %v9820_v9 = vadd.f32 %v12813_v6, %v9432_v10  ;;  %v9925_v23 = vmax.f32 %v9893_v61, 0.0  ;;  %v9856_v5 = vmul.f32 %v17347_v18, %v9817_v19  ;;  %v9887_v10 = vadd.f32 %v17358_v62, %v9848_v26 }
 0x547   : > { %v9756_v8 = vpop.f32.mrf.mxu1 }
 0x548   : > { %v9859_v51 = vmul.f32 %v17347_v18, %v9820_v9  ;;  %v9819_v38 = vadd.f32 %v9756_v8, %v9431_v28  ;;  %9947 = vxpose.xlu0.b32.cont [11/16] (narrow) %v9915_v20, 16  ;;  %9971 = vxpose.xlu1.b32.cont [3/16] (narrow) %v9923_v15, 16  ;;  %v9895_v13 = vadd.f32 %v17358_v62, %v9856_v5  ;;  %v9919_v49 = vmax.f32 %v9887_v10, 0.0 }
 0x549   : > { %v12816_v44 = vpop.f32.mrf.mxu1  ;;  %v9888_v9 = vadd.f32 %v17358_v62, %v9849_v59 }
 0x54a   : > { %v17470_v60 = vadd.f32 %v17358_v62, %v9859_v51  ;;  %v9858_v36 = vmul.f32 %v17347_v18, %v9819_v38  ;;  %v9822_v7 = vadd.f32 %v12816_v44, %v9434_v50  ;;  %v9896_v50 = vadd.f32 %v17358_v62, %v9857_v16 }
 0x54b   : > { %v9766_v25 = vpop.f32.mrf.mxu1 }
 0x54c   : > { %v9897_v58 = vadd.f32 %v17358_v62, %v9858_v36  ;;  %v9861_v39 = vmul.f32 %v17347_v18, %v9822_v7  ;;  %v9821_v2 = vadd.f32 %v9766_v25, %v9433_v34  ;;  %9948 = vxpose.xlu0.b32.cont [12/16] (narrow) %v9916_v56, 16  ;;  %9972 = vxpose.xlu1.b32.cont [4/16] (narrow) %v9924_v30, 16  ;;  %v9927_v34 = vmax.f32 %v9895_v13, 0.0 }
 0x54d   : > { %v12819_v4 = vpop.f32.mrf.mxu1  ;;  %v9920_v56 = vmax.f32 %v9888_v9, 0.0  ;;  %v9928_v32 = vmax.f32 %v9896_v50, 0.0  ;;  %v9930_v38 = vmax.f32 %v17470_v60, 0.0 }
 0x54e   : > { %v9900_v11 = vadd.f32 %v17358_v62, %v9861_v39  ;;  %v9860_v29 = vmul.f32 %v17347_v18, %v9821_v2  ;;  %v9824_v42 = vadd.f32 %v12819_v4, %v9436_v31  ;;  %v9929_v51 = vmax.f32 %v9897_v58, 0.0 }
 0x54f   : > { %v9776_v35 = vpop.f32.mrf.mxu1 }
 0x550   : > { %v9899_v21 = vadd.f32 %v17358_v62, %v9860_v29  ;;  %v9863_v17 = vmul.f32 %v17347_v18, %v9824_v42  ;;  %v9823_v37 = vadd.f32 %v9776_v35, %v9435_v24  ;;  %9949 = vxpose.xlu0.b32.cont [13/16] (narrow) %v9917_v27, 16  ;;  %9973 = vxpose.xlu1.b32.cont [5/16] (narrow) %v9925_v23, 16  ;;  %v9932_v30 = vmax.f32 %v9900_v11, 0.0 }
 0x551   : > { %v12822_v43 = vpop.f32.mrf.mxu1 }
 0x552   : > { %v9902_v45 = vadd.f32 %v17358_v62, %v9863_v17  ;;  %v9862_v48 = vmul.f32 %v17347_v18, %v9823_v37  ;;  %v9826_v6 = vadd.f32 %v12822_v43, %v9438_v54  ;;  %v9931_v12 = vmax.f32 %v9899_v21, 0.0 }
 0x553   : > { %v9786_v28 = vpop.f32.mrf.mxu1 }
 0x554   : > { %v9901_v1 = vadd.f32 %v17358_v62, %v9862_v48  ;;  %v9865_v20 = vmul.f32 %v17347_v18, %v9826_v6  ;;  %v9825_v15 = vadd.f32 %v9786_v28, %v9437_v46  ;;  %9950 = vxpose.xlu0.b32.cont [14/16] (narrow) %v9918_v41, 16  ;;  %9974 = vxpose.xlu1.b32.cont [6/16] (narrow) %v9926_v14, 16 }
 0x556   : > { %v9904_v3 = vadd.f32 %v17358_v62, %v9865_v20  ;;  %v9864_v8 = vmul.f32 %v17347_v18, %v9825_v15  ;;  %v9933_v47 = vmax.f32 %v9901_v1, 0.0  ;;  %v9934_v18 = vmax.f32 %v9902_v45, 0.0 }
 0x558   : > { %v9903_v22 = vadd.f32 %v17358_v62, %v9864_v8  ;;  %9951 = vxpose.xlu0.b32.cont [15/16] (narrow) %v9919_v49, 16  ;;  %9975 = vxpose.xlu1.b32.cont [7/16] (narrow) %v9927_v34, 16  ;;  %v9936_v61 = vmax.f32 %v9904_v3, 0.0 }
 0x55a   : > { %v9935_v62 = vmax.f32 %v9903_v22, 0.0 }
 0x55c   : > { %9952 = vxpose.xlu0.b32.end [16/16] (narrow) %v9920_v56, 16  ;;  %9976 = vxpose.xlu1.b32.cont [8/16] (narrow) %v9928_v32, 16 }
 0x560   : > { %9977 = vxpose.xlu1.b32.cont [9/16] (narrow) %v9929_v51, 16 }
 0x564   : > { %9978 = vxpose.xlu1.b32.cont [10/16] (narrow) %v9930_v38, 16 }
 0x568   : > { %9979 = vxpose.xlu1.b32.cont [11/16] (narrow) %v9931_v12, 16 }
 0x56c   : > { %9980 = vxpose.xlu1.b32.cont [12/16] (narrow) %v9932_v30, 16 }
 0x570   : > { %9981 = vxpose.xlu1.b32.cont [13/16] (narrow) %v9933_v47, 16 }
 0x574   : > { %9982 = vxpose.xlu1.b32.cont [14/16] (narrow) %v9934_v18, 16 }
 0x578   : > { %9983 = vxpose.xlu1.b32.cont [15/16] (narrow) %v9935_v62, 16 }
 0x57c   : > { %9984 = vxpose.xlu1.b32.end [16/16] (narrow) %v9936_v61, 16 }
 0x59c   : > { %v9953_v44 = vpop.trf.xlu0 }
 0x59d   : > { %10001 = vst [vmem:[%s406_s30] sm:$0xff] %v9953_v44 }
 0x5a0   : > { %v9954_v19 = vpop.trf.xlu0 }
 0x5a1   : > { %10003 = vst [vmem:[%s406_s30 + $0x10] sm:$0xff] %v9954_v19 }
 0x5bc   : > { %v9985_v60 = vpop.trf.xlu1 }
 0x5bd   : > { %10002 = vst [vmem:[%s406_s30 + $0x8] sm:$0xff] %v9985_v60 }
 0x5c0   : > { %v9986_v36 = vpop.trf.xlu1 }
 0x5c1   : > { %10004 = vst [vmem:[%s406_s30 + $0x18] sm:$0xff] %v9986_v36 }
 0x5c2 PF: > { %s21_s17 = sadd.s32 1, %s12844_s17  }
 0x5c3   : > { %p18_p4 = scmp.ge.s32.totalorder %s21_s17, 4  }
 0x5c5   :  { %20 = sbr.rel (!%p18_p4) target bundleno = 1 (0x1), region = 125 }

</bundles_post_ra>
